<compile_context>
chip_gen: v7x
topology: tpu7x:2x2x1
jax: 0.10.0
libtpu: 0.0.40
codegen_flags: <defaults>
</compile_context>

<pallas_src>
import functools

import jax
import jax.numpy as jnp
from jax import lax
from jax.experimental import pallas as pl
from jax.experimental.pallas import tpu as pltpu

_CPAD = 128                     # lane-dense conv channel width
_CIN0_PAD = 8                   # pad the tiny layer-1 input channel dim
_VMEM_LIMIT = 32 * 1024 * 1024  # explicit scoped-VMEM cap (safe on v5e/v6e/v7x)


# --------------------- fused conv + ReLU + 2x2 maxpool kernel ---------------------

def _conv_relu_pool_kernel(x_ref, w_ref, b_ref, o_ref, vrow_ref, *, W, Wo, RB, Cout):
    # x_ref : (1, H+2, W+2, Cin)  zero-padded input image (bf16)
    # w_ref : (9, Cin, Cout)      conv weights, tap-major (kh*3+kw) (bf16)
    # b_ref : (1, Cout)           bias (f32)
    # o_ref : (1, RB, Wo, Cout)   pooled output rows for this grid step (bf16)
    # vrow  : (W, Cout) f32       scratch row for the strided horizontal-pool read
    r = pl.program_id(1)
    bias = b_ref[...]                                    # (1, Cout), hoisted

    def row_body(ho_local, carry):
        ho = r * RB + ho_local                           # global pooled-output row
        v = None
        for dh in range(2):                              # two conv rows feed one pooled row
            acc = jnp.zeros((W, Cout), jnp.float32)
            for kh in range(3):                          # shift-and-matmul over the 9 taps
                for kw in range(3):
                    xs = x_ref[0, 2 * ho + dh + kh, pl.ds(kw, W), :]      # (W, Cin) bf16
                    acc = acc + jnp.dot(xs, w_ref[kh * 3 + kw],
                                        preferred_element_type=jnp.float32)
            rrow = jnp.maximum(acc + bias, 0.0)          # conv + bias + ReLU, (W, Cout)
            v = rrow if v is None else jnp.maximum(v, rrow)               # vertical max
        vrow_ref[...] = v
        pooled = jnp.maximum(vrow_ref[pl.ds(0, Wo, 2), :],                # horizontal max
                             vrow_ref[pl.ds(1, Wo, 2), :])                # (strided sublane reads)
        o_ref[0, ho_local] = pooled.astype(o_ref.dtype)
        return carry

    lax.fori_loop(0, RB, row_body, 0)


def _row_block(ho):
    for rb in (8, 4, 2, 1):
        if ho % rb == 0:
            return rb
    return 1


def conv3x3_relu_pool(x, w9, b):
    """Fused Conv2d(3x3, stride 1, pad 1) + ReLU + MaxPool2d(2, 2) on NHWC bf16."""
    N, H, W, Cin = x.shape
    Cout = w9.shape[-1]
    Ho, Wo = H // 2, W // 2
    RB = _row_block(Ho)
    xp = jnp.pad(x, ((0, 0), (1, 1), (1, 1), (0, 0)))    # 'same' zero padding (cheap glue)
    kern = functools.partial(_conv_relu_pool_kernel, W=W, Wo=Wo, RB=RB, Cout=Cout)
    return pl.pallas_call(
        kern,
        out_shape=jax.ShapeDtypeStruct((N, Ho, Wo, Cout), jnp.bfloat16),
        grid_spec=pltpu.PrefetchScalarGridSpec(
            num_scalar_prefetch=0,
            grid=(N, Ho // RB),
            in_specs=[
                pl.BlockSpec((1, H + 2, W + 2, Cin), lambda n, r: (n, 0, 0, 0)),
                pl.BlockSpec((9, Cin, Cout), lambda n, r: (0, 0, 0)),
                pl.BlockSpec((1, Cout), lambda n, r: (0, 0)),
            ],
            out_specs=pl.BlockSpec((1, RB, Wo, Cout), lambda n, r: (n, r, 0, 0)),
            scratch_shapes=[pltpu.VMEM((W, Cout), jnp.float32)],
        ),
        compiler_params=pltpu.CompilerParams(
            dimension_semantics=("parallel", "parallel"),
            vmem_limit_bytes=_VMEM_LIMIT),
    )(xp, w9, b)


# ------------------------------ FC (matmul) kernel ------------------------------

def _linear_kernel(x_ref, w_ref, b_ref, o_ref, *, apply_relu):
    y = jnp.dot(x_ref[...], w_ref[...], preferred_element_type=jnp.float32)
    y = y + b_ref[...]
    if apply_relu:
        y = jnp.maximum(y, 0.0)
    o_ref[...] = y.astype(o_ref.dtype)


def linear(x, w, b, *, apply_relu, out_dtype, block_m=256):
    """y = relu?(x @ w + b), gridded over rows of x (parallel / double-buffered)."""
    M, K = x.shape
    _, Nf = w.shape
    bm = min(block_m, M)
    kern = functools.partial(_linear_kernel, apply_relu=apply_relu)
    return pl.pallas_call(
        kern,
        out_shape=jax.ShapeDtypeStruct((M, Nf), out_dtype),
        grid_spec=pltpu.PrefetchScalarGridSpec(
            num_scalar_prefetch=0,
            grid=(pl.cdiv(M, bm),),
            in_specs=[
                pl.BlockSpec((bm, K), lambda i: (i, 0)),
                pl.BlockSpec((K, Nf), lambda i: (0, 0)),
                pl.BlockSpec((1, Nf), lambda i: (0, 0)),
            ],
            out_specs=pl.BlockSpec((bm, Nf), lambda i: (i, 0)),
        ),
        compiler_params=pltpu.CompilerParams(
            dimension_semantics=("parallel",),
            vmem_limit_bytes=_VMEM_LIMIT),
    )(x, w, b)


# ----------------------------------- forward -----------------------------------

def simple_cnn_forward(x_nchw, kp, *, num_classes):
    # PyTorch NCHW -> NHWC (channel on lanes), bf16 matmul inputs.
    x = jnp.transpose(x_nchw, (0, 2, 3, 1)).astype(jnp.bfloat16)
    cin = x.shape[-1]
    if cin < _CIN0_PAD:
        x = jnp.pad(x, ((0, 0), (0, 0), (0, 0), (0, _CIN0_PAD - cin)))
    for i in range(4):
        x = conv3x3_relu_pool(x, kp[f"conv{i}_w"], kp[f"conv{i}_b"])
    n = x.shape[0]
    # NHWC flatten; fc1_w rows are stored in this (h, w, c) order, so no
    # NHWC->NCHW transpose is needed (PyTorch weights would be permuted once).
    x = x.reshape(n, -1)
    x = linear(x, kp["fc1_w"], kp["fc1_b"], apply_relu=True, out_dtype=jnp.bfloat16)
    # Dropout(0.5): inference-mode identity.
    # TODO(synk): training-mode dropout masking (pltpu PRNG) not implemented.
    x = linear(x, kp["fc2_w"], kp["fc2_b"], apply_relu=False, out_dtype=jnp.float32)
    return x[:, :num_classes]                            # fc2 lanes were padded to 128


# --------------------------------- parameters ----------------------------------

def init_params(key, num_classes, flattened_size):
    channels = [1, 16, 32, 64, 128]
    keys = jax.random.split(key, 12)
    params, ki = {}, 0
    for i in range(4):
        cin, cout = channels[i], channels[i + 1]
        params[f"conv{i}_w"] = 0.05 * jax.random.normal(
            keys[ki], (3, 3, cin, cout), jnp.float32); ki += 1
        params[f"conv{i}_b"] = 0.01 * jax.random.normal(
            keys[ki], (cout,), jnp.float32); ki += 1
    # fc1_w rows in NHWC-flatten order (h, w, c).
    params["fc1_w"] = 0.05 * jax.random.normal(
        keys[ki], (flattened_size, 256), jnp.float32); ki += 1
    params["fc1_b"] = 0.01 * jax.random.normal(keys[ki], (256,), jnp.float32); ki += 1
    params["fc2_w"] = 0.05 * jax.random.normal(
        keys[ki], (256, num_classes), jnp.float32); ki += 1
    params["fc2_b"] = 0.01 * jax.random.normal(
        keys[ki], (num_classes,), jnp.float32); ki += 1
    return params


def prepare_params(params, num_classes):
    """Pad to lane-dense shapes, reorder conv weights tap-major, cast to bf16."""
    channels = [1, 16, 32, 64, 128]
    kp = {}
    for i in range(4):
        cin, cout = channels[i], channels[i + 1]
        cin_p = _CIN0_PAD if i == 0 else _CPAD
        w = jnp.pad(params[f"conv{i}_w"],
                    ((0, 0), (0, 0), (0, cin_p - cin), (0, _CPAD - cout)))
        kp[f"conv{i}_w"] = w.reshape(9, cin_p, _CPAD).astype(jnp.bfloat16)
        b = jnp.pad(params[f"conv{i}_b"], (0, _CPAD - cout))
        kp[f"conv{i}_b"] = b.reshape(1, _CPAD).astype(jnp.float32)
    kp["fc1_w"] = params["fc1_w"].astype(jnp.bfloat16)
    kp["fc1_b"] = params["fc1_b"].reshape(1, -1).astype(jnp.float32)
    ncp = 128                                            # lane-dense fc2 output
    kp["fc2_w"] = jnp.pad(params["fc2_w"],
                          ((0, 0), (0, ncp - num_classes))).astype(jnp.bfloat16)
    kp["fc2_b"] = jnp.pad(params["fc2_b"],
                          (0, ncp - num_classes)).reshape(1, ncp).astype(jnp.float32)
    return kp


if __name__ == "__main__":
    num_classes = 10
    N, Cin, H, W = 2, 1, 32, 32                          # small demo shapes (Cin=1 as in the module)
    key = jax.random.PRNGKey(0)
    kx, kparam = jax.random.split(key)
    x = jax.random.normal(kx, (N, Cin, H, W), jnp.float32)

    h4, w4 = H, W
    for _ in range(4):
        h4 //= 2; w4 //= 2
    flattened_size = 128 * h4 * w4                       # = 512 here

    raw = init_params(kparam, num_classes, flattened_size)
    kp = prepare_params(raw, num_classes)

    fwd = jax.jit(functools.partial(simple_cnn_forward, num_classes=num_classes))
    out = fwd(x, kp)
    out = jax.block_until_ready(out)
    assert out.shape == (N, num_classes), out.shape
    assert out.dtype == jnp.float32
    print("KERNEL_OK")
</pallas_src>

<mosaic_0001>
module attributes {stable_mosaic.version = 11 : i64} {
  func.func @_conv_relu_pool_kernel(%arg0: i32, %arg1: i32, %arg2: memref<1x34x34x8xbf16, #tpu.memory_space<vmem>>, %arg3: memref<9x8x128xbf16, #tpu.memory_space<vmem>>, %arg4: memref<1x128xf32, #tpu.memory_space<vmem>>, %arg5: memref<1x8x16x128xbf16, #tpu.memory_space<vmem>>, %arg6: memref<32x128xf32, #tpu.memory_space<vmem>>) attributes {dimension_semantics = [#tpu.dimension_semantics<parallel>, #tpu.dimension_semantics<parallel>], iteration_bounds = array<i64: 2, 2>, scalar_prefetch = 0 : i64, scratch_operands = 1 : i64, tpu.core_type = #tpu.core_type<tc>, window_params = [{transform_indices = @transform_0, window_bounds = array<i64: 1, 34, 34, 8>}, {pipeline_mode = #tpu.pipeline_mode<synchronous>, transform_indices = @transform_1, window_bounds = array<i64: 9, 8, 128>}, {pipeline_mode = #tpu.pipeline_mode<synchronous>, transform_indices = @transform_2, window_bounds = array<i64: 1, 128>}, {transform_indices = @transform_3, window_bounds = array<i64: 1, 8, 16, 128>}]} {
    %c0 = arith.constant 0 : index
    %c0_0 = arith.constant 0 : index
    %0 = vector.load %arg4[%c0, %c0_0] : memref<1x128xf32, #tpu.memory_space<vmem>>, vector<1x128xf32>
    %c0_i32 = arith.constant 0 : i32
    %c8_i32 = arith.constant 8 : i32
    %1 = arith.addi %c0_i32, %c8_i32 : i32
    %c1_i32 = arith.constant 1 : i32
    scf.for %arg7 = %c0_i32 to %1 step %c1_i32  : i32 {
      %c8_i32_2 = arith.constant 8 : i32
      %2 = arith.muli %arg1, %c8_i32_2 : i32
      %3 = arith.addi %2, %arg7 : i32
      %cst = arith.constant 0.000000e+00 : f32
      %4 = vector.broadcast %cst : f32 to vector<32x128xf32>
      %c2_i32 = arith.constant 2 : i32
      %5 = arith.muli %c2_i32, %3 : i32
      %c0_i32_3 = arith.constant 0 : i32
      %6 = arith.addi %5, %c0_i32_3 : i32
      %c0_i32_4 = arith.constant 0 : i32
      %7 = arith.addi %6, %c0_i32_4 : i32
      %c0_5 = arith.constant 0 : index
      %8 = arith.index_cast %7 : i32 to index
      %c0_6 = arith.constant 0 : index
      %c0_7 = arith.constant 0 : index
      %9 = vector.load %arg2[%c0_5, %8, %c0_6, %c0_7] : memref<1x34x34x8xbf16, #tpu.memory_space<vmem>>, vector<1x1x32x8xbf16>
      %10 = vector.shape_cast %9 : vector<1x1x32x8xbf16> to vector<32x8xbf16>
      %c0_8 = arith.constant 0 : index
      %c0_9 = arith.constant 0 : index
      %c0_10 = arith.constant 0 : index
      %11 = vector.load %arg3[%c0_8, %c0_9, %c0_10] : memref<9x8x128xbf16, #tpu.memory_space<vmem>>, vector<1x8x128xbf16>
      %12 = vector.shape_cast %11 : vector<1x8x128xbf16> to vector<8x128xbf16>
      %cst_11 = arith.constant dense<0.000000e+00> : vector<32x128xf32>
      %13 = tpu.matmul %10, %12, %cst_11 {dimension_numbers = #tpu.dot_dimension_numbers<[1], [0], [0], [1], [0, 0, 1, 1], [], []>} : vector<32x8xbf16>, vector<8x128xbf16>, vector<32x128xf32> -> vector<32x128xf32>
      %14 = arith.addf %4, %13 : vector<32x128xf32>
      %c2_i32_12 = arith.constant 2 : i32
      %15 = arith.muli %c2_i32_12, %3 : i32
      %c0_i32_13 = arith.constant 0 : i32
      %16 = arith.addi %15, %c0_i32_13 : i32
      %c0_i32_14 = arith.constant 0 : i32
      %17 = arith.addi %16, %c0_i32_14 : i32
      %c0_15 = arith.constant 0 : index
      %18 = arith.index_cast %17 : i32 to index
      %c1 = arith.constant 1 : index
      %c0_16 = arith.constant 0 : index
      %19 = vector.load %arg2[%c0_15, %18, %c1, %c0_16] : memref<1x34x34x8xbf16, #tpu.memory_space<vmem>>, vector<1x1x32x8xbf16>
      %20 = vector.shape_cast %19 : vector<1x1x32x8xbf16> to vector<32x8xbf16>
      %c1_17 = arith.constant 1 : index
      %c0_18 = arith.constant 0 : index
      %c0_19 = arith.constant 0 : index
      %21 = vector.load %arg3[%c1_17, %c0_18, %c0_19] : memref<9x8x128xbf16, #tpu.memory_space<vmem>>, vector<1x8x128xbf16>
      %22 = vector.shape_cast %21 : vector<1x8x128xbf16> to vector<8x128xbf16>
      %cst_20 = arith.constant dense<0.000000e+00> : vector<32x128xf32>
      %23 = tpu.matmul %20, %22, %cst_20 {dimension_numbers = #tpu.dot_dimension_numbers<[1], [0], [0], [1], [0, 0, 1, 1], [], []>} : vector<32x8xbf16>, vector<8x128xbf16>, vector<32x128xf32> -> vector<32x128xf32>
      %24 = arith.addf %14, %23 : vector<32x128xf32>
      %c2_i32_21 = arith.constant 2 : i32
      %25 = arith.muli %c2_i32_21, %3 : i32
      %c0_i32_22 = arith.constant 0 : i32
      %26 = arith.addi %25, %c0_i32_22 : i32
      %c0_i32_23 = arith.constant 0 : i32
      %27 = arith.addi %26, %c0_i32_23 : i32
      %c0_24 = arith.constant 0 : index
      %28 = arith.index_cast %27 : i32 to index
      %c2 = arith.constant 2 : index
      %c0_25 = arith.constant 0 : index
      %29 = vector.load %arg2[%c0_24, %28, %c2, %c0_25] : memref<1x34x34x8xbf16, #tpu.memory_space<vmem>>, vector<1x1x32x8xbf16>
      %30 = vector.shape_cast %29 : vector<1x1x32x8xbf16> to vector<32x8xbf16>
      %c2_26 = arith.constant 2 : index
      %c0_27 = arith.constant 0 : index
      %c0_28 = arith.constant 0 : index
      %31 = vector.load %arg3[%c2_26, %c0_27, %c0_28] : memref<9x8x128xbf16, #tpu.memory_space<vmem>>, vector<1x8x128xbf16>
      %32 = vector.shape_cast %31 : vector<1x8x128xbf16> to vector<8x128xbf16>
      %cst_29 = arith.constant dense<0.000000e+00> : vector<32x128xf32>
      %33 = tpu.matmul %30, %32, %cst_29 {dimension_numbers = #tpu.dot_dimension_numbers<[1], [0], [0], [1], [0, 0, 1, 1], [], []>} : vector<32x8xbf16>, vector<8x128xbf16>, vector<32x128xf32> -> vector<32x128xf32>
      %34 = arith.addf %24, %33 : vector<32x128xf32>
      %c2_i32_30 = arith.constant 2 : i32
      %35 = arith.muli %c2_i32_30, %3 : i32
      %c0_i32_31 = arith.constant 0 : i32
      %36 = arith.addi %35, %c0_i32_31 : i32
      %c1_i32_32 = arith.constant 1 : i32
      %37 = arith.addi %36, %c1_i32_32 : i32
      %c0_33 = arith.constant 0 : index
      %38 = arith.index_cast %37 : i32 to index
      %c0_34 = arith.constant 0 : index
      %c0_35 = arith.constant 0 : index
      %39 = vector.load %arg2[%c0_33, %38, %c0_34, %c0_35] : memref<1x34x34x8xbf16, #tpu.memory_space<vmem>>, vector<1x1x32x8xbf16>
      %40 = vector.shape_cast %39 : vector<1x1x32x8xbf16> to vector<32x8xbf16>
      %c3 = arith.constant 3 : index
      %c0_36 = arith.constant 0 : index
      %c0_37 = arith.constant 0 : index
      %41 = vector.load %arg3[%c3, %c0_36, %c0_37] : memref<9x8x128xbf16, #tpu.memory_space<vmem>>, vector<1x8x128xbf16>
      %42 = vector.shape_cast %41 : vector<1x8x128xbf16> to vector<8x128xbf16>
      %cst_38 = arith.constant dense<0.000000e+00> : vector<32x128xf32>
      %43 = tpu.matmul %40, %42, %cst_38 {dimension_numbers = #tpu.dot_dimension_numbers<[1], [0], [0], [1], [0, 0, 1, 1], [], []>} : vector<32x8xbf16>, vector<8x128xbf16>, vector<32x128xf32> -> vector<32x128xf32>
      %44 = arith.addf %34, %43 : vector<32x128xf32>
      %c2_i32_39 = arith.constant 2 : i32
      %45 = arith.muli %c2_i32_39, %3 : i32
      %c0_i32_40 = arith.constant 0 : i32
      %46 = arith.addi %45, %c0_i32_40 : i32
      %c1_i32_41 = arith.constant 1 : i32
      %47 = arith.addi %46, %c1_i32_41 : i32
      %c0_42 = arith.constant 0 : index
      %48 = arith.index_cast %47 : i32 to index
      %c1_43 = arith.constant 1 : index
      %c0_44 = arith.constant 0 : index
      %49 = vector.load %arg2[%c0_42, %48, %c1_43, %c0_44] : memref<1x34x34x8xbf16, #tpu.memory_space<vmem>>, vector<1x1x32x8xbf16>
      %50 = vector.shape_cast %49 : vector<1x1x32x8xbf16> to vector<32x8xbf16>
      %c4 = arith.constant 4 : index
      %c0_45 = arith.constant 0 : index
      %c0_46 = arith.constant 0 : index
      %51 = vector.load %arg3[%c4, %c0_45, %c0_46] : memref<9x8x128xbf16, #tpu.memory_space<vmem>>, vector<1x8x128xbf16>
      %52 = vector.shape_cast %51 : vector<1x8x128xbf16> to vector<8x128xbf16>
      %cst_47 = arith.constant dense<0.000000e+00> : vector<32x128xf32>
      %53 = tpu.matmul %50, %52, %cst_47 {dimension_numbers = #tpu.dot_dimension_numbers<[1], [0], [0], [1], [0, 0, 1, 1], [], []>} : vector<32x8xbf16>, vector<8x128xbf16>, vector<32x128xf32> -> vector<32x128xf32>
      %54 = arith.addf %44, %53 : vector<32x128xf32>
      %c2_i32_48 = arith.constant 2 : i32
      %55 = arith.muli %c2_i32_48, %3 : i32
      %c0_i32_49 = arith.constant 0 : i32
      %56 = arith.addi %55, %c0_i32_49 : i32
      %c1_i32_50 = arith.constant 1 : i32
      %57 = arith.addi %56, %c1_i32_50 : i32
      %c0_51 = arith.constant 0 : index
      %58 = arith.index_cast %57 : i32 to index
      %c2_52 = arith.constant 2 : index
      %c0_53 = arith.constant 0 : index
      %59 = vector.load %arg2[%c0_51, %58, %c2_52, %c0_53] : memref<1x34x34x8xbf16, #tpu.memory_space<vmem>>, vector<1x1x32x8xbf16>
      %60 = vector.shape_cast %59 : vector<1x1x32x8xbf16> to vector<32x8xbf16>
      %c5 = arith.constant 5 : index
      %c0_54 = arith.constant 0 : index
      %c0_55 = arith.constant 0 : index
      %61 = vector.load %arg3[%c5, %c0_54, %c0_55] : memref<9x8x128xbf16, #tpu.memory_space<vmem>>, vector<1x8x128xbf16>
      %62 = vector.shape_cast %61 : vector<1x8x128xbf16> to vector<8x128xbf16>
      %cst_56 = arith.constant dense<0.000000e+00> : vector<32x128xf32>
      %63 = tpu.matmul %60, %62, %cst_56 {dimension_numbers = #tpu.dot_dimension_numbers<[1], [0], [0], [1], [0, 0, 1, 1], [], []>} : vector<32x8xbf16>, vector<8x128xbf16>, vector<32x128xf32> -> vector<32x128xf32>
      %64 = arith.addf %54, %63 : vector<32x128xf32>
      %c2_i32_57 = arith.constant 2 : i32
      %65 = arith.muli %c2_i32_57, %3 : i32
      %c0_i32_58 = arith.constant 0 : i32
      %66 = arith.addi %65, %c0_i32_58 : i32
      %c2_i32_59 = arith.constant 2 : i32
      %67 = arith.addi %66, %c2_i32_59 : i32
      %c0_60 = arith.constant 0 : index
      %68 = arith.index_cast %67 : i32 to index
      %c0_61 = arith.constant 0 : index
      %c0_62 = arith.constant 0 : index
      %69 = vector.load %arg2[%c0_60, %68, %c0_61, %c0_62] : memref<1x34x34x8xbf16, #tpu.memory_space<vmem>>, vector<1x1x32x8xbf16>
      %70 = vector.shape_cast %69 : vector<1x1x32x8xbf16> to vector<32x8xbf16>
      %c6 = arith.constant 6 : index
      %c0_63 = arith.constant 0 : index
      %c0_64 = arith.constant 0 : index
      %71 = vector.load %arg3[%c6, %c0_63, %c0_64] : memref<9x8x128xbf16, #tpu.memory_space<vmem>>, vector<1x8x128xbf16>
      %72 = vector.shape_cast %71 : vector<1x8x128xbf16> to vector<8x128xbf16>
      %cst_65 = arith.constant dense<0.000000e+00> : vector<32x128xf32>
      %73 = tpu.matmul %70, %72, %cst_65 {dimension_numbers = #tpu.dot_dimension_numbers<[1], [0], [0], [1], [0, 0, 1, 1], [], []>} : vector<32x8xbf16>, vector<8x128xbf16>, vector<32x128xf32> -> vector<32x128xf32>
      %74 = arith.addf %64, %73 : vector<32x128xf32>
      %c2_i32_66 = arith.constant 2 : i32
      %75 = arith.muli %c2_i32_66, %3 : i32
      %c0_i32_67 = arith.constant 0 : i32
      %76 = arith.addi %75, %c0_i32_67 : i32
      %c2_i32_68 = arith.constant 2 : i32
      %77 = arith.addi %76, %c2_i32_68 : i32
      %c0_69 = arith.constant 0 : index
      %78 = arith.index_cast %77 : i32 to index
      %c1_70 = arith.constant 1 : index
      %c0_71 = arith.constant 0 : index
      %79 = vector.load %arg2[%c0_69, %78, %c1_70, %c0_71] : memref<1x34x34x8xbf16, #tpu.memory_space<vmem>>, vector<1x1x32x8xbf16>
      %80 = vector.shape_cast %79 : vector<1x1x32x8xbf16> to vector<32x8xbf16>
      %c7 = arith.constant 7 : index
      %c0_72 = arith.constant 0 : index
      %c0_73 = arith.constant 0 : index
      %81 = vector.load %arg3[%c7, %c0_72, %c0_73] : memref<9x8x128xbf16, #tpu.memory_space<vmem>>, vector<1x8x128xbf16>
      %82 = vector.shape_cast %81 : vector<1x8x128xbf16> to vector<8x128xbf16>
      %cst_74 = arith.constant dense<0.000000e+00> : vector<32x128xf32>
      %83 = tpu.matmul %80, %82, %cst_74 {dimension_numbers = #tpu.dot_dimension_numbers<[1], [0], [0], [1], [0, 0, 1, 1], [], []>} : vector<32x8xbf16>, vector<8x128xbf16>, vector<32x128xf32> -> vector<32x128xf32>
      %84 = arith.addf %74, %83 : vector<32x128xf32>
      %c2_i32_75 = arith.constant 2 : i32
      %85 = arith.muli %c2_i32_75, %3 : i32
      %c0_i32_76 = arith.constant 0 : i32
      %86 = arith.addi %85, %c0_i32_76 : i32
      %c2_i32_77 = arith.constant 2 : i32
      %87 = arith.addi %86, %c2_i32_77 : i32
      %c0_78 = arith.constant 0 : index
      %88 = arith.index_cast %87 : i32 to index
      %c2_79 = arith.constant 2 : index
      %c0_80 = arith.constant 0 : index
      %89 = vector.load %arg2[%c0_78, %88, %c2_79, %c0_80] : memref<1x34x34x8xbf16, #tpu.memory_space<vmem>>, vector<1x1x32x8xbf16>
      %90 = vector.shape_cast %89 : vector<1x1x32x8xbf16> to vector<32x8xbf16>
      %c8 = arith.constant 8 : index
      %c0_81 = arith.constant 0 : index
      %c0_82 = arith.constant 0 : index
      %91 = vector.load %arg3[%c8, %c0_81, %c0_82] : memref<9x8x128xbf16, #tpu.memory_space<vmem>>, vector<1x8x128xbf16>
      %92 = vector.shape_cast %91 : vector<1x8x128xbf16> to vector<8x128xbf16>
      %cst_83 = arith.constant dense<0.000000e+00> : vector<32x128xf32>
      %93 = tpu.matmul %90, %92, %cst_83 {dimension_numbers = #tpu.dot_dimension_numbers<[1], [0], [0], [1], [0, 0, 1, 1], [], []>} : vector<32x8xbf16>, vector<8x128xbf16>, vector<32x128xf32> -> vector<32x128xf32>
      %94 = arith.addf %84, %93 : vector<32x128xf32>
      %95 = vector.broadcast %0 : vector<1x128xf32> to vector<32x128xf32>
      %96 = arith.addf %94, %95 : vector<32x128xf32>
      %cst_84 = arith.constant 0.000000e+00 : f32
      %97 = vector.broadcast %cst_84 : f32 to vector<32x128xf32>
      %98 = arith.maximumf %96, %97 : vector<32x128xf32>
      %cst_85 = arith.constant 0.000000e+00 : f32
      %99 = vector.broadcast %cst_85 : f32 to vector<32x128xf32>
      %c2_i32_86 = arith.constant 2 : i32
      %100 = arith.muli %c2_i32_86, %3 : i32
      %c1_i32_87 = arith.constant 1 : i32
      %101 = arith.addi %100, %c1_i32_87 : i32
      %c0_i32_88 = arith.constant 0 : i32
      %102 = arith.addi %101, %c0_i32_88 : i32
      %c0_89 = arith.constant 0 : index
      %103 = arith.index_cast %102 : i32 to index
      %c0_90 = arith.constant 0 : index
      %c0_91 = arith.constant 0 : index
      %104 = vector.load %arg2[%c0_89, %103, %c0_90, %c0_91] : memref<1x34x34x8xbf16, #tpu.memory_space<vmem>>, vector<1x1x32x8xbf16>
      %105 = vector.shape_cast %104 : vector<1x1x32x8xbf16> to vector<32x8xbf16>
      %c0_92 = arith.constant 0 : index
      %c0_93 = arith.constant 0 : index
      %c0_94 = arith.constant 0 : index
      %106 = vector.load %arg3[%c0_92, %c0_93, %c0_94] : memref<9x8x128xbf16, #tpu.memory_space<vmem>>, vector<1x8x128xbf16>
      %107 = vector.shape_cast %106 : vector<1x8x128xbf16> to vector<8x128xbf16>
      %cst_95 = arith.constant dense<0.000000e+00> : vector<32x128xf32>
      %108 = tpu.matmul %105, %107, %cst_95 {dimension_numbers = #tpu.dot_dimension_numbers<[1], [0], [0], [1], [0, 0, 1, 1], [], []>} : vector<32x8xbf16>, vector<8x128xbf16>, vector<32x128xf32> -> vector<32x128xf32>
      %109 = arith.addf %99, %108 : vector<32x128xf32>
      %c2_i32_96 = arith.constant 2 : i32
      %110 = arith.muli %c2_i32_96, %3 : i32
      %c1_i32_97 = arith.constant 1 : i32
      %111 = arith.addi %110, %c1_i32_97 : i32
      %c0_i32_98 = arith.constant 0 : i32
      %112 = arith.addi %111, %c0_i32_98 : i32
      %c0_99 = arith.constant 0 : index
      %113 = arith.index_cast %112 : i32 to index
      %c1_100 = arith.constant 1 : index
      %c0_101 = arith.constant 0 : index
      %114 = vector.load %arg2[%c0_99, %113, %c1_100, %c0_101] : memref<1x34x34x8xbf16, #tpu.memory_space<vmem>>, vector<1x1x32x8xbf16>
      %115 = vector.shape_cast %114 : vector<1x1x32x8xbf16> to vector<32x8xbf16>
      %c1_102 = arith.constant 1 : index
      %c0_103 = arith.constant 0 : index
      %c0_104 = arith.constant 0 : index
      %116 = vector.load %arg3[%c1_102, %c0_103, %c0_104] : memref<9x8x128xbf16, #tpu.memory_space<vmem>>, vector<1x8x128xbf16>
      %117 = vector.shape_cast %116 : vector<1x8x128xbf16> to vector<8x128xbf16>
      %cst_105 = arith.constant dense<0.000000e+00> : vector<32x128xf32>
      %118 = tpu.matmul %115, %117, %cst_105 {dimension_numbers = #tpu.dot_dimension_numbers<[1], [0], [0], [1], [0, 0, 1, 1], [], []>} : vector<32x8xbf16>, vector<8x128xbf16>, vector<32x128xf32> -> vector<32x128xf32>
      %119 = arith.addf %109, %118 : vector<32x128xf32>
      %c2_i32_106 = arith.constant 2 : i32
      %120 = arith.muli %c2_i32_106, %3 : i32
      %c1_i32_107 = arith.constant 1 : i32
      %121 = arith.addi %120, %c1_i32_107 : i32
      %c0_i32_108 = arith.constant 0 : i32
      %122 = arith.addi %121, %c0_i32_108 : i32
      %c0_109 = arith.constant 0 : index
      %123 = arith.index_cast %122 : i32 to index
      %c2_110 = arith.constant 2 : index
      %c0_111 = arith.constant 0 : index
      %124 = vector.load %arg2[%c0_109, %123, %c2_110, %c0_111] : memref<1x34x34x8xbf16, #tpu.memory_space<vmem>>, vector<1x1x32x8xbf16>
      %125 = vector.shape_cast %124 : vector<1x1x32x8xbf16> to vector<32x8xbf16>
      %c2_112 = arith.constant 2 : index
      %c0_113 = arith.constant 0 : index
      %c0_114 = arith.constant 0 : index
      %126 = vector.load %arg3[%c2_112, %c0_113, %c0_114] : memref<9x8x128xbf16, #tpu.memory_space<vmem>>, vector<1x8x128xbf16>
      %127 = vector.shape_cast %126 : vector<1x8x128xbf16> to vector<8x128xbf16>
      %cst_115 = arith.constant dense<0.000000e+00> : vector<32x128xf32>
      %128 = tpu.matmul %125, %127, %cst_115 {dimension_numbers = #tpu.dot_dimension_numbers<[1], [0], [0], [1], [0, 0, 1, 1], [], []>} : vector<32x8xbf16>, vector<8x128xbf16>, vector<32x128xf32> -> vector<32x128xf32>
      %129 = arith.addf %119, %128 : vector<32x128xf32>
      %c2_i32_116 = arith.constant 2 : i32
      %130 = arith.muli %c2_i32_116, %3 : i32
      %c1_i32_117 = arith.constant 1 : i32
      %131 = arith.addi %130, %c1_i32_117 : i32
      %c1_i32_118 = arith.constant 1 : i32
      %132 = arith.addi %131, %c1_i32_118 : i32
      %c0_119 = arith.constant 0 : index
      %133 = arith.index_cast %132 : i32 to index
      %c0_120 = arith.constant 0 : index
      %c0_121 = arith.constant 0 : index
      %134 = vector.load %arg2[%c0_119, %133, %c0_120, %c0_121] : memref<1x34x34x8xbf16, #tpu.memory_space<vmem>>, vector<1x1x32x8xbf16>
      %135 = vector.shape_cast %134 : vector<1x1x32x8xbf16> to vector<32x8xbf16>
      %c3_122 = arith.constant 3 : index
      %c0_123 = arith.constant 0 : index
      %c0_124 = arith.constant 0 : index
      %136 = vector.load %arg3[%c3_122, %c0_123, %c0_124] : memref<9x8x128xbf16, #tpu.memory_space<vmem>>, vector<1x8x128xbf16>
      %137 = vector.shape_cast %136 : vector<1x8x128xbf16> to vector<8x128xbf16>
      %cst_125 = arith.constant dense<0.000000e+00> : vector<32x128xf32>
      %138 = tpu.matmul %135, %137, %cst_125 {dimension_numbers = #tpu.dot_dimension_numbers<[1], [0], [0], [1], [0, 0, 1, 1], [], []>} : vector<32x8xbf16>, vector<8x128xbf16>, vector<32x128xf32> -> vector<32x128xf32>
      %139 = arith.addf %129, %138 : vector<32x128xf32>
      %c2_i32_126 = arith.constant 2 : i32
      %140 = arith.muli %c2_i32_126, %3 : i32
      %c1_i32_127 = arith.constant 1 : i32
      %141 = arith.addi %140, %c1_i32_127 : i32
      %c1_i32_128 = arith.constant 1 : i32
      %142 = arith.addi %141, %c1_i32_128 : i32
      %c0_129 = arith.constant 0 : index
      %143 = arith.index_cast %142 : i32 to index
      %c1_130 = arith.constant 1 : index
      %c0_131 = arith.constant 0 : index
      %144 = vector.load %arg2[%c0_129, %143, %c1_130, %c0_131] : memref<1x34x34x8xbf16, #tpu.memory_space<vmem>>, vector<1x1x32x8xbf16>
      %145 = vector.shape_cast %144 : vector<1x1x32x8xbf16> to vector<32x8xbf16>
      %c4_132 = arith.constant 4 : index
      %c0_133 = arith.constant 0 : index
      %c0_134 = arith.constant 0 : index
      %146 = vector.load %arg3[%c4_132, %c0_133, %c0_134] : memref<9x8x128xbf16, #tpu.memory_space<vmem>>, vector<1x8x128xbf16>
      %147 = vector.shape_cast %146 : vector<1x8x128xbf16> to vector<8x128xbf16>
      %cst_135 = arith.constant dense<0.000000e+00> : vector<32x128xf32>
      %148 = tpu.matmul %145, %147, %cst_135 {dimension_numbers = #tpu.dot_dimension_numbers<[1], [0], [0], [1], [0, 0, 1, 1], [], []>} : vector<32x8xbf16>, vector<8x128xbf16>, vector<32x128xf32> -> vector<32x128xf32>
      %149 = arith.addf %139, %148 : vector<32x128xf32>
      %c2_i32_136 = arith.constant 2 : i32
      %150 = arith.muli %c2_i32_136, %3 : i32
      %c1_i32_137 = arith.constant 1 : i32
      %151 = arith.addi %150, %c1_i32_137 : i32
      %c1_i32_138 = arith.constant 1 : i32
      %152 = arith.addi %151, %c1_i32_138 : i32
      %c0_139 = arith.constant 0 : index
      %153 = arith.index_cast %152 : i32 to index
      %c2_140 = arith.constant 2 : index
      %c0_141 = arith.constant 0 : index
      %154 = vector.load %arg2[%c0_139, %153, %c2_140, %c0_141] : memref<1x34x34x8xbf16, #tpu.memory_space<vmem>>, vector<1x1x32x8xbf16>
      %155 = vector.shape_cast %154 : vector<1x1x32x8xbf16> to vector<32x8xbf16>
      %c5_142 = arith.constant 5 : index
      %c0_143 = arith.constant 0 : index
      %c0_144 = arith.constant 0 : index
      %156 = vector.load %arg3[%c5_142, %c0_143, %c0_144] : memref<9x8x128xbf16, #tpu.memory_space<vmem>>, vector<1x8x128xbf16>
      %157 = vector.shape_cast %156 : vector<1x8x128xbf16> to vector<8x128xbf16>
      %cst_145 = arith.constant dense<0.000000e+00> : vector<32x128xf32>
      %158 = tpu.matmul %155, %157, %cst_145 {dimension_numbers = #tpu.dot_dimension_numbers<[1], [0], [0], [1], [0, 0, 1, 1], [], []>} : vector<32x8xbf16>, vector<8x128xbf16>, vector<32x128xf32> -> vector<32x128xf32>
      %159 = arith.addf %149, %158 : vector<32x128xf32>
      %c2_i32_146 = arith.constant 2 : i32
      %160 = arith.muli %c2_i32_146, %3 : i32
      %c1_i32_147 = arith.constant 1 : i32
      %161 = arith.addi %160, %c1_i32_147 : i32
      %c2_i32_148 = arith.constant 2 : i32
      %162 = arith.addi %161, %c2_i32_148 : i32
      %c0_149 = arith.constant 0 : index
      %163 = arith.index_cast %162 : i32 to index
      %c0_150 = arith.constant 0 : index
      %c0_151 = arith.constant 0 : index
      %164 = vector.load %arg2[%c0_149, %163, %c0_150, %c0_151] : memref<1x34x34x8xbf16, #tpu.memory_space<vmem>>, vector<1x1x32x8xbf16>
      %165 = vector.shape_cast %164 : vector<1x1x32x8xbf16> to vector<32x8xbf16>
      %c6_152 = arith.constant 6 : index
      %c0_153 = arith.constant 0 : index
      %c0_154 = arith.constant 0 : index
      %166 = vector.load %arg3[%c6_152, %c0_153, %c0_154] : memref<9x8x128xbf16, #tpu.memory_space<vmem>>, vector<1x8x128xbf16>
      %167 = vector.shape_cast %166 : vector<1x8x128xbf16> to vector<8x128xbf16>
      %cst_155 = arith.constant dense<0.000000e+00> : vector<32x128xf32>
      %168 = tpu.matmul %165, %167, %cst_155 {dimension_numbers = #tpu.dot_dimension_numbers<[1], [0], [0], [1], [0, 0, 1, 1], [], []>} : vector<32x8xbf16>, vector<8x128xbf16>, vector<32x128xf32> -> vector<32x128xf32>
      %169 = arith.addf %159, %168 : vector<32x128xf32>
      %c2_i32_156 = arith.constant 2 : i32
      %170 = arith.muli %c2_i32_156, %3 : i32
      %c1_i32_157 = arith.constant 1 : i32
      %171 = arith.addi %170, %c1_i32_157 : i32
      %c2_i32_158 = arith.constant 2 : i32
      %172 = arith.addi %171, %c2_i32_158 : i32
      %c0_159 = arith.constant 0 : index
      %173 = arith.index_cast %172 : i32 to index
      %c1_160 = arith.constant 1 : index
      %c0_161 = arith.constant 0 : index
      %174 = vector.load %arg2[%c0_159, %173, %c1_160, %c0_161] : memref<1x34x34x8xbf16, #tpu.memory_space<vmem>>, vector<1x1x32x8xbf16>
      %175 = vector.shape_cast %174 : vector<1x1x32x8xbf16> to vector<32x8xbf16>
      %c7_162 = arith.constant 7 : index
      %c0_163 = arith.constant 0 : index
      %c0_164 = arith.constant 0 : index
      %176 = vector.load %arg3[%c7_162, %c0_163, %c0_164] : memref<9x8x128xbf16, #tpu.memory_space<vmem>>, vector<1x8x128xbf16>
      %177 = vector.shape_cast %176 : vector<1x8x128xbf16> to vector<8x128xbf16>
      %cst_165 = arith.constant dense<0.000000e+00> : vector<32x128xf32>
      %178 = tpu.matmul %175, %177, %cst_165 {dimension_numbers = #tpu.dot_dimension_numbers<[1], [0], [0], [1], [0, 0, 1, 1], [], []>} : vector<32x8xbf16>, vector<8x128xbf16>, vector<32x128xf32> -> vector<32x128xf32>
      %179 = arith.addf %169, %178 : vector<32x128xf32>
      %c2_i32_166 = arith.constant 2 : i32
      %180 = arith.muli %c2_i32_166, %3 : i32
      %c1_i32_167 = arith.constant 1 : i32
      %181 = arith.addi %180, %c1_i32_167 : i32
      %c2_i32_168 = arith.constant 2 : i32
      %182 = arith.addi %181, %c2_i32_168 : i32
      %c0_169 = arith.constant 0 : index
      %183 = arith.index_cast %182 : i32 to index
      %c2_170 = arith.constant 2 : index
      %c0_171 = arith.constant 0 : index
      %184 = vector.load %arg2[%c0_169, %183, %c2_170, %c0_171] : memref<1x34x34x8xbf16, #tpu.memory_space<vmem>>, vector<1x1x32x8xbf16>
      %185 = vector.shape_cast %184 : vector<1x1x32x8xbf16> to vector<32x8xbf16>
      %c8_172 = arith.constant 8 : index
      %c0_173 = arith.constant 0 : index
      %c0_174 = arith.constant 0 : index
      %186 = vector.load %arg3[%c8_172, %c0_173, %c0_174] : memref<9x8x128xbf16, #tpu.memory_space<vmem>>, vector<1x8x128xbf16>
      %187 = vector.shape_cast %186 : vector<1x8x128xbf16> to vector<8x128xbf16>
      %cst_175 = arith.constant dense<0.000000e+00> : vector<32x128xf32>
      %188 = tpu.matmul %185, %187, %cst_175 {dimension_numbers = #tpu.dot_dimension_numbers<[1], [0], [0], [1], [0, 0, 1, 1], [], []>} : vector<32x8xbf16>, vector<8x128xbf16>, vector<32x128xf32> -> vector<32x128xf32>
      %189 = arith.addf %179, %188 : vector<32x128xf32>
      %190 = vector.broadcast %0 : vector<1x128xf32> to vector<32x128xf32>
      %191 = arith.addf %189, %190 : vector<32x128xf32>
      %cst_176 = arith.constant 0.000000e+00 : f32
      %192 = vector.broadcast %cst_176 : f32 to vector<32x128xf32>
      %193 = arith.maximumf %191, %192 : vector<32x128xf32>
      %194 = arith.maximumf %98, %193 : vector<32x128xf32>
      %c0_177 = arith.constant 0 : index
      %c0_178 = arith.constant 0 : index
      %195 = vector.load %arg6[%c0_177, %c0_178] : memref<32x128xf32, #tpu.memory_space<vmem>>, vector<32x128xf32>
      tpu.vector_store %arg6[%c0_177, %c0_178], %194 {strides = array<i32>} : memref<32x128xf32, #tpu.memory_space<vmem>>, vector<32x128xf32>,
      %c0_179 = arith.constant 0 : index
      %c0_180 = arith.constant 0 : index
      %196 = tpu.strided_load %arg6[%c0_179, %c0_180] {strides = array<i32: 2, 1>} : memref<32x128xf32, #tpu.memory_space<vmem>>, vector<16x128xf32>
      %c1_181 = arith.constant 1 : index
      %c0_182 = arith.constant 0 : index
      %197 = tpu.strided_load %arg6[%c1_181, %c0_182] {strides = array<i32: 2, 1>} : memref<32x128xf32, #tpu.memory_space<vmem>>, vector<16x128xf32>
      %198 = arith.maximumf %196, %197 : vector<16x128xf32>
      %199 = arith.truncf %198 : vector<16x128xf32> to vector<16x128xbf16>
      %c0_183 = arith.constant 0 : index
      %200 = arith.index_cast %arg7 : i32 to index
      %c0_184 = arith.constant 0 : index
      %c0_185 = arith.constant 0 : index
      %201 = vector.load %arg5[%c0_183, %200, %c0_184, %c0_185] : memref<1x8x16x128xbf16, #tpu.memory_space<vmem>>, vector<1x1x16x128xbf16>
      %202 = vector.shape_cast %201 : vector<1x1x16x128xbf16> to vector<16x128xbf16>
      %203 = vector.shape_cast %199 : vector<16x128xbf16> to vector<1x1x16x128xbf16>
      tpu.vector_store %arg5[%c0_183, %200, %c0_184, %c0_185], %203 {strides = array<i32>} : memref<1x8x16x128xbf16, #tpu.memory_space<vmem>>, vector<1x1x16x128xbf16>,
    }
    %c8_i32_1 = arith.constant 8 : i32
    return
  }
  func.func @transform_0(%arg0: i32, %arg1: i32) -> (i32, i32, i32, i32) {
    %c0_i32 = arith.constant 0 : i32
    %c0_i32_0 = arith.constant 0 : i32
    %c0_i32_1 = arith.constant 0 : i32
    %c0_i32_2 = arith.constant 0 : i32
    return %arg0, %c0_i32, %c0_i32_0, %c0_i32_1 : i32, i32, i32, i32
  }
  func.func @transform_1(%arg0: i32, %arg1: i32) -> (i32, i32, i32) {
    %c0_i32 = arith.constant 0 : i32
    %c0_i32_0 = arith.constant 0 : i32
    %c0_i32_1 = arith.constant 0 : i32
    %c0_i32_2 = arith.constant 0 : i32
    return %c0_i32, %c0_i32_0, %c0_i32_1 : i32, i32, i32
  }
  func.func @transform_2(%arg0: i32, %arg1: i32) -> (i32, i32) {
    %c0_i32 = arith.constant 0 : i32
    %c0_i32_0 = arith.constant 0 : i32
    %c0_i32_1 = arith.constant 0 : i32
    return %c0_i32, %c0_i32_0 : i32, i32
  }
  func.func @transform_3(%arg0: i32, %arg1: i32) -> (i32, i32, i32, i32) {
    %c0_i32 = arith.constant 0 : i32
    %c0_i32_0 = arith.constant 0 : i32
    %c0_i32_1 = arith.constant 0 : i32
    return %arg0, %arg1, %c0_i32, %c0_i32_0 : i32, i32, i32, i32
  }
}

module attributes {stable_mosaic.version = 11 : i64} {
  func.func @_conv_relu_pool_kernel(%arg0: i32, %arg1: i32, %arg2: memref<1x18x18x128xbf16, #tpu.memory_space<vmem>>, %arg3: memref<9x128x128xbf16, #tpu.memory_space<vmem>>, %arg4: memref<1x128xf32, #tpu.memory_space<vmem>>, %arg5: memref<1x8x8x128xbf16, #tpu.memory_space<vmem>>, %arg6: memref<16x128xf32, #tpu.memory_space<vmem>>) attributes {dimension_semantics = [#tpu.dimension_semantics<parallel>, #tpu.dimension_semantics<parallel>], iteration_bounds = array<i64: 2, 1>, scalar_prefetch = 0 : i64, scratch_operands = 1 : i64, tpu.core_type = #tpu.core_type<tc>, window_params = [{transform_indices = @transform_0, window_bounds = array<i64: 1, 18, 18, 128>}, {pipeline_mode = #tpu.pipeline_mode<synchronous>, transform_indices = @transform_1, window_bounds = array<i64: 9, 128, 128>}, {pipeline_mode = #tpu.pipeline_mode<synchronous>, transform_indices = @transform_2, window_bounds = array<i64: 1, 128>}, {transform_indices = @transform_3, window_bounds = array<i64: 1, 8, 8, 128>}]} {
    %c0 = arith.constant 0 : index
    %c0_0 = arith.constant 0 : index
    %0 = vector.load %arg4[%c0, %c0_0] : memref<1x128xf32, #tpu.memory_space<vmem>>, vector<1x128xf32>
    %c0_i32 = arith.constant 0 : i32
    %c8_i32 = arith.constant 8 : i32
    %1 = arith.addi %c0_i32, %c8_i32 : i32
    %c1_i32 = arith.constant 1 : i32
    scf.for %arg7 = %c0_i32 to %1 step %c1_i32  : i32 {
      %c8_i32_2 = arith.constant 8 : i32
      %2 = arith.muli %arg1, %c8_i32_2 : i32
      %3 = arith.addi %2, %arg7 : i32
      %cst = arith.constant 0.000000e+00 : f32
      %4 = vector.broadcast %cst : f32 to vector<16x128xf32>
      %c2_i32 = arith.constant 2 : i32
      %5 = arith.muli %c2_i32, %3 : i32
      %c0_i32_3 = arith.constant 0 : i32
      %6 = arith.addi %5, %c0_i32_3 : i32
      %c0_i32_4 = arith.constant 0 : i32
      %7 = arith.addi %6, %c0_i32_4 : i32
      %c0_5 = arith.constant 0 : index
      %8 = arith.index_cast %7 : i32 to index
      %c0_6 = arith.constant 0 : index
      %c0_7 = arith.constant 0 : index
      %9 = vector.load %arg2[%c0_5, %8, %c0_6, %c0_7] : memref<1x18x18x128xbf16, #tpu.memory_space<vmem>>, vector<1x1x16x128xbf16>
      %10 = vector.shape_cast %9 : vector<1x1x16x128xbf16> to vector<16x128xbf16>
      %c0_8 = arith.constant 0 : index
      %c0_9 = arith.constant 0 : index
      %c0_10 = arith.constant 0 : index
      %11 = vector.load %arg3[%c0_8, %c0_9, %c0_10] : memref<9x128x128xbf16, #tpu.memory_space<vmem>>, vector<1x128x128xbf16>
      %12 = vector.shape_cast %11 : vector<1x128x128xbf16> to vector<128x128xbf16>
      %cst_11 = arith.constant dense<0.000000e+00> : vector<16x128xf32>
      %13 = tpu.matmul %10, %12, %cst_11 {dimension_numbers = #tpu.dot_dimension_numbers<[1], [0], [0], [1], [0, 0, 1, 1], [], []>} : vector<16x128xbf16>, vector<128x128xbf16>, vector<16x128xf32> -> vector<16x128xf32>
      %14 = arith.addf %4, %13 : vector<16x128xf32>
      %c2_i32_12 = arith.constant 2 : i32
      %15 = arith.muli %c2_i32_12, %3 : i32
      %c0_i32_13 = arith.constant 0 : i32
      %16 = arith.addi %15, %c0_i32_13 : i32
      %c0_i32_14 = arith.constant 0 : i32
      %17 = arith.addi %16, %c0_i32_14 : i32
      %c0_15 = arith.constant 0 : index
      %18 = arith.index_cast %17 : i32 to index
      %c1 = arith.constant 1 : index
      %c0_16 = arith.constant 0 : index
      %19 = vector.load %arg2[%c0_15, %18, %c1, %c0_16] : memref<1x18x18x128xbf16, #tpu.memory_space<vmem>>, vector<1x1x16x128xbf16>
      %20 = vector.shape_cast %19 : vector<1x1x16x128xbf16> to vector<16x128xbf16>
      %c1_17 = arith.constant 1 : index
      %c0_18 = arith.constant 0 : index
      %c0_19 = arith.constant 0 : index
      %21 = vector.load %arg3[%c1_17, %c0_18, %c0_19] : memref<9x128x128xbf16, #tpu.memory_space<vmem>>, vector<1x128x128xbf16>
      %22 = vector.shape_cast %21 : vector<1x128x128xbf16> to vector<128x128xbf16>
      %cst_20 = arith.constant dense<0.000000e+00> : vector<16x128xf32>
      %23 = tpu.matmul %20, %22, %cst_20 {dimension_numbers = #tpu.dot_dimension_numbers<[1], [0], [0], [1], [0, 0, 1, 1], [], []>} : vector<16x128xbf16>, vector<128x128xbf16>, vector<16x128xf32> -> vector<16x128xf32>
      %24 = arith.addf %14, %23 : vector<16x128xf32>
      %c2_i32_21 = arith.constant 2 : i32
      %25 = arith.muli %c2_i32_21, %3 : i32
      %c0_i32_22 = arith.constant 0 : i32
      %26 = arith.addi %25, %c0_i32_22 : i32
      %c0_i32_23 = arith.constant 0 : i32
      %27 = arith.addi %26, %c0_i32_23 : i32
      %c0_24 = arith.constant 0 : index
      %28 = arith.index_cast %27 : i32 to index
      %c2 = arith.constant 2 : index
      %c0_25 = arith.constant 0 : index
      %29 = vector.load %arg2[%c0_24, %28, %c2, %c0_25] : memref<1x18x18x128xbf16, #tpu.memory_space<vmem>>, vector<1x1x16x128xbf16>
      %30 = vector.shape_cast %29 : vector<1x1x16x128xbf16> to vector<16x128xbf16>
      %c2_26 = arith.constant 2 : index
      %c0_27 = arith.constant 0 : index
      %c0_28 = arith.constant 0 : index
      %31 = vector.load %arg3[%c2_26, %c0_27, %c0_28] : memref<9x128x128xbf16, #tpu.memory_space<vmem>>, vector<1x128x128xbf16>
      %32 = vector.shape_cast %31 : vector<1x128x128xbf16> to vector<128x128xbf16>
      %cst_29 = arith.constant dense<0.000000e+00> : vector<16x128xf32>
      %33 = tpu.matmul %30, %32, %cst_29 {dimension_numbers = #tpu.dot_dimension_numbers<[1], [0], [0], [1], [0, 0, 1, 1], [], []>} : vector<16x128xbf16>, vector<128x128xbf16>, vector<16x128xf32> -> vector<16x128xf32>
      %34 = arith.addf %24, %33 : vector<16x128xf32>
      %c2_i32_30 = arith.constant 2 : i32
      %35 = arith.muli %c2_i32_30, %3 : i32
      %c0_i32_31 = arith.constant 0 : i32
      %36 = arith.addi %35, %c0_i32_31 : i32
      %c1_i32_32 = arith.constant 1 : i32
      %37 = arith.addi %36, %c1_i32_32 : i32
      %c0_33 = arith.constant 0 : index
      %38 = arith.index_cast %37 : i32 to index
      %c0_34 = arith.constant 0 : index
      %c0_35 = arith.constant 0 : index
      %39 = vector.load %arg2[%c0_33, %38, %c0_34, %c0_35] : memref<1x18x18x128xbf16, #tpu.memory_space<vmem>>, vector<1x1x16x128xbf16>
      %40 = vector.shape_cast %39 : vector<1x1x16x128xbf16> to vector<16x128xbf16>
      %c3 = arith.constant 3 : index
      %c0_36 = arith.constant 0 : index
      %c0_37 = arith.constant 0 : index
      %41 = vector.load %arg3[%c3, %c0_36, %c0_37] : memref<9x128x128xbf16, #tpu.memory_space<vmem>>, vector<1x128x128xbf16>
      %42 = vector.shape_cast %41 : vector<1x128x128xbf16> to vector<128x128xbf16>
      %cst_38 = arith.constant dense<0.000000e+00> : vector<16x128xf32>
      %43 = tpu.matmul %40, %42, %cst_38 {dimension_numbers = #tpu.dot_dimension_numbers<[1], [0], [0], [1], [0, 0, 1, 1], [], []>} : vector<16x128xbf16>, vector<128x128xbf16>, vector<16x128xf32> -> vector<16x128xf32>
      %44 = arith.addf %34, %43 : vector<16x128xf32>
      %c2_i32_39 = arith.constant 2 : i32
      %45 = arith.muli %c2_i32_39, %3 : i32
      %c0_i32_40 = arith.constant 0 : i32
      %46 = arith.addi %45, %c0_i32_40 : i32
      %c1_i32_41 = arith.constant 1 : i32
      %47 = arith.addi %46, %c1_i32_41 : i32
      %c0_42 = arith.constant 0 : index
      %48 = arith.index_cast %47 : i32 to index
      %c1_43 = arith.constant 1 : index
      %c0_44 = arith.constant 0 : index
      %49 = vector.load %arg2[%c0_42, %48, %c1_43, %c0_44] : memref<1x18x18x128xbf16, #tpu.memory_space<vmem>>, vector<1x1x16x128xbf16>
      %50 = vector.shape_cast %49 : vector<1x1x16x128xbf16> to vector<16x128xbf16>
      %c4 = arith.constant 4 : index
      %c0_45 = arith.constant 0 : index
      %c0_46 = arith.constant 0 : index
      %51 = vector.load %arg3[%c4, %c0_45, %c0_46] : memref<9x128x128xbf16, #tpu.memory_space<vmem>>, vector<1x128x128xbf16>
      %52 = vector.shape_cast %51 : vector<1x128x128xbf16> to vector<128x128xbf16>
      %cst_47 = arith.constant dense<0.000000e+00> : vector<16x128xf32>
      %53 = tpu.matmul %50, %52, %cst_47 {dimension_numbers = #tpu.dot_dimension_numbers<[1], [0], [0], [1], [0, 0, 1, 1], [], []>} : vector<16x128xbf16>, vector<128x128xbf16>, vector<16x128xf32> -> vector<16x128xf32>
      %54 = arith.addf %44, %53 : vector<16x128xf32>
      %c2_i32_48 = arith.constant 2 : i32
      %55 = arith.muli %c2_i32_48, %3 : i32
      %c0_i32_49 = arith.constant 0 : i32
      %56 = arith.addi %55, %c0_i32_49 : i32
      %c1_i32_50 = arith.constant 1 : i32
      %57 = arith.addi %56, %c1_i32_50 : i32
      %c0_51 = arith.constant 0 : index
      %58 = arith.index_cast %57 : i32 to index
      %c2_52 = arith.constant 2 : index
      %c0_53 = arith.constant 0 : index
      %59 = vector.load %arg2[%c0_51, %58, %c2_52, %c0_53] : memref<1x18x18x128xbf16, #tpu.memory_space<vmem>>, vector<1x1x16x128xbf16>
      %60 = vector.shape_cast %59 : vector<1x1x16x128xbf16> to vector<16x128xbf16>
      %c5 = arith.constant 5 : index
      %c0_54 = arith.constant 0 : index
      %c0_55 = arith.constant 0 : index
      %61 = vector.load %arg3[%c5, %c0_54, %c0_55] : memref<9x128x128xbf16, #tpu.memory_space<vmem>>, vector<1x128x128xbf16>
      %62 = vector.shape_cast %61 : vector<1x128x128xbf16> to vector<128x128xbf16>
      %cst_56 = arith.constant dense<0.000000e+00> : vector<16x128xf32>
      %63 = tpu.matmul %60, %62, %cst_56 {dimension_numbers = #tpu.dot_dimension_numbers<[1], [0], [0], [1], [0, 0, 1, 1], [], []>} : vector<16x128xbf16>, vector<128x128xbf16>, vector<16x128xf32> -> vector<16x128xf32>
      %64 = arith.addf %54, %63 : vector<16x128xf32>
      %c2_i32_57 = arith.constant 2 : i32
      %65 = arith.muli %c2_i32_57, %3 : i32
      %c0_i32_58 = arith.constant 0 : i32
      %66 = arith.addi %65, %c0_i32_58 : i32
      %c2_i32_59 = arith.constant 2 : i32
      %67 = arith.addi %66, %c2_i32_59 : i32
      %c0_60 = arith.constant 0 : index
      %68 = arith.index_cast %67 : i32 to index
      %c0_61 = arith.constant 0 : index
      %c0_62 = arith.constant 0 : index
      %69 = vector.load %arg2[%c0_60, %68, %c0_61, %c0_62] : memref<1x18x18x128xbf16, #tpu.memory_space<vmem>>, vector<1x1x16x128xbf16>
      %70 = vector.shape_cast %69 : vector<1x1x16x128xbf16> to vector<16x128xbf16>
      %c6 = arith.constant 6 : index
      %c0_63 = arith.constant 0 : index
      %c0_64 = arith.constant 0 : index
      %71 = vector.load %arg3[%c6, %c0_63, %c0_64] : memref<9x128x128xbf16, #tpu.memory_space<vmem>>, vector<1x128x128xbf16>
      %72 = vector.shape_cast %71 : vector<1x128x128xbf16> to vector<128x128xbf16>
      %cst_65 = arith.constant dense<0.000000e+00> : vector<16x128xf32>
      %73 = tpu.matmul %70, %72, %cst_65 {dimension_numbers = #tpu.dot_dimension_numbers<[1], [0], [0], [1], [0, 0, 1, 1], [], []>} : vector<16x128xbf16>, vector<128x128xbf16>, vector<16x128xf32> -> vector<16x128xf32>
      %74 = arith.addf %64, %73 : vector<16x128xf32>
      %c2_i32_66 = arith.constant 2 : i32
      %75 = arith.muli %c2_i32_66, %3 : i32
      %c0_i32_67 = arith.constant 0 : i32
      %76 = arith.addi %75, %c0_i32_67 : i32
      %c2_i32_68 = arith.constant 2 : i32
      %77 = arith.addi %76, %c2_i32_68 : i32
      %c0_69 = arith.constant 0 : index
      %78 = arith.index_cast %77 : i32 to index
      %c1_70 = arith.constant 1 : index
      %c0_71 = arith.constant 0 : index
      %79 = vector.load %arg2[%c0_69, %78, %c1_70, %c0_71] : memref<1x18x18x128xbf16, #tpu.memory_space<vmem>>, vector<1x1x16x128xbf16>
      %80 = vector.shape_cast %79 : vector<1x1x16x128xbf16> to vector<16x128xbf16>
      %c7 = arith.constant 7 : index
      %c0_72 = arith.constant 0 : index
      %c0_73 = arith.constant 0 : index
      %81 = vector.load %arg3[%c7, %c0_72, %c0_73] : memref<9x128x128xbf16, #tpu.memory_space<vmem>>, vector<1x128x128xbf16>
      %82 = vector.shape_cast %81 : vector<1x128x128xbf16> to vector<128x128xbf16>
      %cst_74 = arith.constant dense<0.000000e+00> : vector<16x128xf32>
      %83 = tpu.matmul %80, %82, %cst_74 {dimension_numbers = #tpu.dot_dimension_numbers<[1], [0], [0], [1], [0, 0, 1, 1], [], []>} : vector<16x128xbf16>, vector<128x128xbf16>, vector<16x128xf32> -> vector<16x128xf32>
      %84 = arith.addf %74, %83 : vector<16x128xf32>
      %c2_i32_75 = arith.constant 2 : i32
      %85 = arith.muli %c2_i32_75, %3 : i32
      %c0_i32_76 = arith.constant 0 : i32
      %86 = arith.addi %85, %c0_i32_76 : i32
      %c2_i32_77 = arith.constant 2 : i32
      %87 = arith.addi %86, %c2_i32_77 : i32
      %c0_78 = arith.constant 0 : index
      %88 = arith.index_cast %87 : i32 to index
      %c2_79 = arith.constant 2 : index
      %c0_80 = arith.constant 0 : index
      %89 = vector.load %arg2[%c0_78, %88, %c2_79, %c0_80] : memref<1x18x18x128xbf16, #tpu.memory_space<vmem>>, vector<1x1x16x128xbf16>
      %90 = vector.shape_cast %89 : vector<1x1x16x128xbf16> to vector<16x128xbf16>
      %c8 = arith.constant 8 : index
      %c0_81 = arith.constant 0 : index
      %c0_82 = arith.constant 0 : index
      %91 = vector.load %arg3[%c8, %c0_81, %c0_82] : memref<9x128x128xbf16, #tpu.memory_space<vmem>>, vector<1x128x128xbf16>
      %92 = vector.shape_cast %91 : vector<1x128x128xbf16> to vector<128x128xbf16>
      %cst_83 = arith.constant dense<0.000000e+00> : vector<16x128xf32>
      %93 = tpu.matmul %90, %92, %cst_83 {dimension_numbers = #tpu.dot_dimension_numbers<[1], [0], [0], [1], [0, 0, 1, 1], [], []>} : vector<16x128xbf16>, vector<128x128xbf16>, vector<16x128xf32> -> vector<16x128xf32>
      %94 = arith.addf %84, %93 : vector<16x128xf32>
      %95 = vector.broadcast %0 : vector<1x128xf32> to vector<16x128xf32>
      %96 = arith.addf %94, %95 : vector<16x128xf32>
      %cst_84 = arith.constant 0.000000e+00 : f32
      %97 = vector.broadcast %cst_84 : f32 to vector<16x128xf32>
      %98 = arith.maximumf %96, %97 : vector<16x128xf32>
      %cst_85 = arith.constant 0.000000e+00 : f32
      %99 = vector.broadcast %cst_85 : f32 to vector<16x128xf32>
      %c2_i32_86 = arith.constant 2 : i32
      %100 = arith.muli %c2_i32_86, %3 : i32
      %c1_i32_87 = arith.constant 1 : i32
      %101 = arith.addi %100, %c1_i32_87 : i32
      %c0_i32_88 = arith.constant 0 : i32
      %102 = arith.addi %101, %c0_i32_88 : i32
      %c0_89 = arith.constant 0 : index
      %103 = arith.index_cast %102 : i32 to index
      %c0_90 = arith.constant 0 : index
      %c0_91 = arith.constant 0 : index
      %104 = vector.load %arg2[%c0_89, %103, %c0_90, %c0_91] : memref<1x18x18x128xbf16, #tpu.memory_space<vmem>>, vector<1x1x16x128xbf16>
      %105 = vector.shape_cast %104 : vector<1x1x16x128xbf16> to vector<16x128xbf16>
      %c0_92 = arith.constant 0 : index
      %c0_93 = arith.constant 0 : index
      %c0_94 = arith.constant 0 : index
      %106 = vector.load %arg3[%c0_92, %c0_93, %c0_94] : memref<9x128x128xbf16, #tpu.memory_space<vmem>>, vector<1x128x128xbf16>
      %107 = vector.shape_cast %106 : vector<1x128x128xbf16> to vector<128x128xbf16>
      %cst_95 = arith.constant dense<0.000000e+00> : vector<16x128xf32>
      %108 = tpu.matmul %105, %107, %cst_95 {dimension_numbers = #tpu.dot_dimension_numbers<[1], [0], [0], [1], [0, 0, 1, 1], [], []>} : vector<16x128xbf16>, vector<128x128xbf16>, vector<16x128xf32> -> vector<16x128xf32>
      %109 = arith.addf %99, %108 : vector<16x128xf32>
      %c2_i32_96 = arith.constant 2 : i32
      %110 = arith.muli %c2_i32_96, %3 : i32
      %c1_i32_97 = arith.constant 1 : i32
      %111 = arith.addi %110, %c1_i32_97 : i32
      %c0_i32_98 = arith.constant 0 : i32
      %112 = arith.addi %111, %c0_i32_98 : i32
      %c0_99 = arith.constant 0 : index
      %113 = arith.index_cast %112 : i32 to index
      %c1_100 = arith.constant 1 : index
      %c0_101 = arith.constant 0 : index
      %114 = vector.load %arg2[%c0_99, %113, %c1_100, %c0_101] : memref<1x18x18x128xbf16, #tpu.memory_space<vmem>>, vector<1x1x16x128xbf16>
      %115 = vector.shape_cast %114 : vector<1x1x16x128xbf16> to vector<16x128xbf16>
      %c1_102 = arith.constant 1 : index
      %c0_103 = arith.constant 0 : index
      %c0_104 = arith.constant 0 : index
      %116 = vector.load %arg3[%c1_102, %c0_103, %c0_104] : memref<9x128x128xbf16, #tpu.memory_space<vmem>>, vector<1x128x128xbf16>
      %117 = vector.shape_cast %116 : vector<1x128x128xbf16> to vector<128x128xbf16>
      %cst_105 = arith.constant dense<0.000000e+00> : vector<16x128xf32>
      %118 = tpu.matmul %115, %117, %cst_105 {dimension_numbers = #tpu.dot_dimension_numbers<[1], [0], [0], [1], [0, 0, 1, 1], [], []>} : vector<16x128xbf16>, vector<128x128xbf16>, vector<16x128xf32> -> vector<16x128xf32>
      %119 = arith.addf %109, %118 : vector<16x128xf32>
      %c2_i32_106 = arith.constant 2 : i32
      %120 = arith.muli %c2_i32_106, %3 : i32
      %c1_i32_107 = arith.constant 1 : i32
      %121 = arith.addi %120, %c1_i32_107 : i32
      %c0_i32_108 = arith.constant 0 : i32
      %122 = arith.addi %121, %c0_i32_108 : i32
      %c0_109 = arith.constant 0 : index
      %123 = arith.index_cast %122 : i32 to index
      %c2_110 = arith.constant 2 : index
      %c0_111 = arith.constant 0 : index
      %124 = vector.load %arg2[%c0_109, %123, %c2_110, %c0_111] : memref<1x18x18x128xbf16, #tpu.memory_space<vmem>>, vector<1x1x16x128xbf16>
      %125 = vector.shape_cast %124 : vector<1x1x16x128xbf16> to vector<16x128xbf16>
      %c2_112 = arith.constant 2 : index
      %c0_113 = arith.constant 0 : index
      %c0_114 = arith.constant 0 : index
      %126 = vector.load %arg3[%c2_112, %c0_113, %c0_114] : memref<9x128x128xbf16, #tpu.memory_space<vmem>>, vector<1x128x128xbf16>
      %127 = vector.shape_cast %126 : vector<1x128x128xbf16> to vector<128x128xbf16>
      %cst_115 = arith.constant dense<0.000000e+00> : vector<16x128xf32>
      %128 = tpu.matmul %125, %127, %cst_115 {dimension_numbers = #tpu.dot_dimension_numbers<[1], [0], [0], [1], [0, 0, 1, 1], [], []>} : vector<16x128xbf16>, vector<128x128xbf16>, vector<16x128xf32> -> vector<16x128xf32>
      %129 = arith.addf %119, %128 : vector<16x128xf32>
      %c2_i32_116 = arith.constant 2 : i32
      %130 = arith.muli %c2_i32_116, %3 : i32
      %c1_i32_117 = arith.constant 1 : i32
      %131 = arith.addi %130, %c1_i32_117 : i32
      %c1_i32_118 = arith.constant 1 : i32
      %132 = arith.addi %131, %c1_i32_118 : i32
      %c0_119 = arith.constant 0 : index
      %133 = arith.index_cast %132 : i32 to index
      %c0_120 = arith.constant 0 : index
      %c0_121 = arith.constant 0 : index
      %134 = vector.load %arg2[%c0_119, %133, %c0_120, %c0_121] : memref<1x18x18x128xbf16, #tpu.memory_space<vmem>>, vector<1x1x16x128xbf16>
      %135 = vector.shape_cast %134 : vector<1x1x16x128xbf16> to vector<16x128xbf16>
      %c3_122 = arith.constant 3 : index
      %c0_123 = arith.constant 0 : index
      %c0_124 = arith.constant 0 : index
      %136 = vector.load %arg3[%c3_122, %c0_123, %c0_124] : memref<9x128x128xbf16, #tpu.memory_space<vmem>>, vector<1x128x128xbf16>
      %137 = vector.shape_cast %136 : vector<1x128x128xbf16> to vector<128x128xbf16>
      %cst_125 = arith.constant dense<0.000000e+00> : vector<16x128xf32>
      %138 = tpu.matmul %135, %137, %cst_125 {dimension_numbers = #tpu.dot_dimension_numbers<[1], [0], [0], [1], [0, 0, 1, 1], [], []>} : vector<16x128xbf16>, vector<128x128xbf16>, vector<16x128xf32> -> vector<16x128xf32>
      %139 = arith.addf %129, %138 : vector<16x128xf32>
      %c2_i32_126 = arith.constant 2 : i32
      %140 = arith.muli %c2_i32_126, %3 : i32
      %c1_i32_127 = arith.constant 1 : i32
      %141 = arith.addi %140, %c1_i32_127 : i32
      %c1_i32_128 = arith.constant 1 : i32
      %142 = arith.addi %141, %c1_i32_128 : i32
      %c0_129 = arith.constant 0 : index
      %143 = arith.index_cast %142 : i32 to index
      %c1_130 = arith.constant 1 : index
      %c0_131 = arith.constant 0 : index
      %144 = vector.load %arg2[%c0_129, %143, %c1_130, %c0_131] : memref<1x18x18x128xbf16, #tpu.memory_space<vmem>>, vector<1x1x16x128xbf16>
      %145 = vector.shape_cast %144 : vector<1x1x16x128xbf16> to vector<16x128xbf16>
      %c4_132 = arith.constant 4 : index
      %c0_133 = arith.constant 0 : index
      %c0_134 = arith.constant 0 : index
      %146 = vector.load %arg3[%c4_132, %c0_133, %c0_134] : memref<9x128x128xbf16, #tpu.memory_space<vmem>>, vector<1x128x128xbf16>
      %147 = vector.shape_cast %146 : vector<1x128x128xbf16> to vector<128x128xbf16>
      %cst_135 = arith.constant dense<0.000000e+00> : vector<16x128xf32>
      %148 = tpu.matmul %145, %147, %cst_135 {dimension_numbers = #tpu.dot_dimension_numbers<[1], [0], [0], [1], [0, 0, 1, 1], [], []>} : vector<16x128xbf16>, vector<128x128xbf16>, vector<16x128xf32> -> vector<16x128xf32>
      %149 = arith.addf %139, %148 : vector<16x128xf32>
      %c2_i32_136 = arith.constant 2 : i32
      %150 = arith.muli %c2_i32_136, %3 : i32
      %c1_i32_137 = arith.constant 1 : i32
      %151 = arith.addi %150, %c1_i32_137 : i32
      %c1_i32_138 = arith.constant 1 : i32
      %152 = arith.addi %151, %c1_i32_138 : i32
      %c0_139 = arith.constant 0 : index
      %153 = arith.index_cast %152 : i32 to index
      %c2_140 = arith.constant 2 : index
      %c0_141 = arith.constant 0 : index
      %154 = vector.load %arg2[%c0_139, %153, %c2_140, %c0_141] : memref<1x18x18x128xbf16, #tpu.memory_space<vmem>>, vector<1x1x16x128xbf16>
      %155 = vector.shape_cast %154 : vector<1x1x16x128xbf16> to vector<16x128xbf16>
      %c5_142 = arith.constant 5 : index
      %c0_143 = arith.constant 0 : index
      %c0_144 = arith.constant 0 : index
      %156 = vector.load %arg3[%c5_142, %c0_143, %c0_144] : memref<9x128x128xbf16, #tpu.memory_space<vmem>>, vector<1x128x128xbf16>
      %157 = vector.shape_cast %156 : vector<1x128x128xbf16> to vector<128x128xbf16>
      %cst_145 = arith.constant dense<0.000000e+00> : vector<16x128xf32>
      %158 = tpu.matmul %155, %157, %cst_145 {dimension_numbers = #tpu.dot_dimension_numbers<[1], [0], [0], [1], [0, 0, 1, 1], [], []>} : vector<16x128xbf16>, vector<128x128xbf16>, vector<16x128xf32> -> vector<16x128xf32>
      %159 = arith.addf %149, %158 : vector<16x128xf32>
      %c2_i32_146 = arith.constant 2 : i32
      %160 = arith.muli %c2_i32_146, %3 : i32
      %c1_i32_147 = arith.constant 1 : i32
      %161 = arith.addi %160, %c1_i32_147 : i32
      %c2_i32_148 = arith.constant 2 : i32
      %162 = arith.addi %161, %c2_i32_148 : i32
      %c0_149 = arith.constant 0 : index
      %163 = arith.index_cast %162 : i32 to index
      %c0_150 = arith.constant 0 : index
      %c0_151 = arith.constant 0 : index
      %164 = vector.load %arg2[%c0_149, %163, %c0_150, %c0_151] : memref<1x18x18x128xbf16, #tpu.memory_space<vmem>>, vector<1x1x16x128xbf16>
      %165 = vector.shape_cast %164 : vector<1x1x16x128xbf16> to vector<16x128xbf16>
      %c6_152 = arith.constant 6 : index
      %c0_153 = arith.constant 0 : index
      %c0_154 = arith.constant 0 : index
      %166 = vector.load %arg3[%c6_152, %c0_153, %c0_154] : memref<9x128x128xbf16, #tpu.memory_space<vmem>>, vector<1x128x128xbf16>
      %167 = vector.shape_cast %166 : vector<1x128x128xbf16> to vector<128x128xbf16>
      %cst_155 = arith.constant dense<0.000000e+00> : vector<16x128xf32>
      %168 = tpu.matmul %165, %167, %cst_155 {dimension_numbers = #tpu.dot_dimension_numbers<[1], [0], [0], [1], [0, 0, 1, 1], [], []>} : vector<16x128xbf16>, vector<128x128xbf16>, vector<16x128xf32> -> vector<16x128xf32>
      %169 = arith.addf %159, %168 : vector<16x128xf32>
      %c2_i32_156 = arith.constant 2 : i32
      %170 = arith.muli %c2_i32_156, %3 : i32
      %c1_i32_157 = arith.constant 1 : i32
      %171 = arith.addi %170, %c1_i32_157 : i32
      %c2_i32_158 = arith.constant 2 : i32
      %172 = arith.addi %171, %c2_i32_158 : i32
      %c0_159 = arith.constant 0 : index
      %173 = arith.index_cast %172 : i32 to index
      %c1_160 = arith.constant 1 : index
      %c0_161 = arith.constant 0 : index
      %174 = vector.load %arg2[%c0_159, %173, %c1_160, %c0_161] : memref<1x18x18x128xbf16, #tpu.memory_space<vmem>>, vector<1x1x16x128xbf16>
      %175 = vector.shape_cast %174 : vector<1x1x16x128xbf16> to vector<16x128xbf16>
      %c7_162 = arith.constant 7 : index
      %c0_163 = arith.constant 0 : index
      %c0_164 = arith.constant 0 : index
      %176 = vector.load %arg3[%c7_162, %c0_163, %c0_164] : memref<9x128x128xbf16, #tpu.memory_space<vmem>>, vector<1x128x128xbf16>
      %177 = vector.shape_cast %176 : vector<1x128x128xbf16> to vector<128x128xbf16>
      %cst_165 = arith.constant dense<0.000000e+00> : vector<16x128xf32>
      %178 = tpu.matmul %175, %177, %cst_165 {dimension_numbers = #tpu.dot_dimension_numbers<[1], [0], [0], [1], [0, 0, 1, 1], [], []>} : vector<16x128xbf16>, vector<128x128xbf16>, vector<16x128xf32> -> vector<16x128xf32>
      %179 = arith.addf %169, %178 : vector<16x128xf32>
      %c2_i32_166 = arith.constant 2 : i32
      %180 = arith.muli %c2_i32_166, %3 : i32
      %c1_i32_167 = arith.constant 1 : i32
      %181 = arith.addi %180, %c1_i32_167 : i32
      %c2_i32_168 = arith.constant 2 : i32
      %182 = arith.addi %181, %c2_i32_168 : i32
      %c0_169 = arith.constant 0 : index
      %183 = arith.index_cast %182 : i32 to index
      %c2_170 = arith.constant 2 : index
      %c0_171 = arith.constant 0 : index
      %184 = vector.load %arg2[%c0_169, %183, %c2_170, %c0_171] : memref<1x18x18x128xbf16, #tpu.memory_space<vmem>>, vector<1x1x16x128xbf16>
      %185 = vector.shape_cast %184 : vector<1x1x16x128xbf16> to vector<16x128xbf16>
      %c8_172 = arith.constant 8 : index
      %c0_173 = arith.constant 0 : index
      %c0_174 = arith.constant 0 : index
      %186 = vector.load %arg3[%c8_172, %c0_173, %c0_174] : memref<9x128x128xbf16, #tpu.memory_space<vmem>>, vector<1x128x128xbf16>
      %187 = vector.shape_cast %186 : vector<1x128x128xbf16> to vector<128x128xbf16>
      %cst_175 = arith.constant dense<0.000000e+00> : vector<16x128xf32>
      %188 = tpu.matmul %185, %187, %cst_175 {dimension_numbers = #tpu.dot_dimension_numbers<[1], [0], [0], [1], [0, 0, 1, 1], [], []>} : vector<16x128xbf16>, vector<128x128xbf16>, vector<16x128xf32> -> vector<16x128xf32>
      %189 = arith.addf %179, %188 : vector<16x128xf32>
      %190 = vector.broadcast %0 : vector<1x128xf32> to vector<16x128xf32>
      %191 = arith.addf %189, %190 : vector<16x128xf32>
      %cst_176 = arith.constant 0.000000e+00 : f32
      %192 = vector.broadcast %cst_176 : f32 to vector<16x128xf32>
      %193 = arith.maximumf %191, %192 : vector<16x128xf32>
      %194 = arith.maximumf %98, %193 : vector<16x128xf32>
      %c0_177 = arith.constant 0 : index
      %c0_178 = arith.constant 0 : index
      %195 = vector.load %arg6[%c0_177, %c0_178] : memref<16x128xf32, #tpu.memory_space<vmem>>, vector<16x128xf32>
      tpu.vector_store %arg6[%c0_177, %c0_178], %194 {strides = array<i32>} : memref<16x128xf32, #tpu.memory_space<vmem>>, vector<16x128xf32>,
      %c0_179 = arith.constant 0 : index
      %c0_180 = arith.constant 0 : index
      %196 = tpu.strided_load %arg6[%c0_179, %c0_180] {strides = array<i32: 2, 1>} : memref<16x128xf32, #tpu.memory_space<vmem>>, vector<8x128xf32>
      %c1_181 = arith.constant 1 : index
      %c0_182 = arith.constant 0 : index
      %197 = tpu.strided_load %arg6[%c1_181, %c0_182] {strides = array<i32: 2, 1>} : memref<16x128xf32, #tpu.memory_space<vmem>>, vector<8x128xf32>
      %198 = arith.maximumf %196, %197 : vector<8x128xf32>
      %199 = arith.truncf %198 : vector<8x128xf32> to vector<8x128xbf16>
      %c0_183 = arith.constant 0 : index
      %200 = arith.index_cast %arg7 : i32 to index
      %c0_184 = arith.constant 0 : index
      %c0_185 = arith.constant 0 : index
      %201 = vector.load %arg5[%c0_183, %200, %c0_184, %c0_185] : memref<1x8x8x128xbf16, #tpu.memory_space<vmem>>, vector<1x1x8x128xbf16>
      %202 = vector.shape_cast %201 : vector<1x1x8x128xbf16> to vector<8x128xbf16>
      %203 = vector.shape_cast %199 : vector<8x128xbf16> to vector<1x1x8x128xbf16>
      tpu.vector_store %arg5[%c0_183, %200, %c0_184, %c0_185], %203 {strides = array<i32>} : memref<1x8x8x128xbf16, #tpu.memory_space<vmem>>, vector<1x1x8x128xbf16>,
    }
    %c8_i32_1 = arith.constant 8 : i32
    return
  }
  func.func @transform_0(%arg0: i32, %arg1: i32) -> (i32, i32, i32, i32) {
    %c0_i32 = arith.constant 0 : i32
    %c0_i32_0 = arith.constant 0 : i32
    %c0_i32_1 = arith.constant 0 : i32
    %c0_i32_2 = arith.constant 0 : i32
    return %arg0, %c0_i32, %c0_i32_0, %c0_i32_1 : i32, i32, i32, i32
  }
  func.func @transform_1(%arg0: i32, %arg1: i32) -> (i32, i32, i32) {
    %c0_i32 = arith.constant 0 : i32
    %c0_i32_0 = arith.constant 0 : i32
    %c0_i32_1 = arith.constant 0 : i32
    %c0_i32_2 = arith.constant 0 : i32
    return %c0_i32, %c0_i32_0, %c0_i32_1 : i32, i32, i32
  }
  func.func @transform_2(%arg0: i32, %arg1: i32) -> (i32, i32) {
    %c0_i32 = arith.constant 0 : i32
    %c0_i32_0 = arith.constant 0 : i32
    %c0_i32_1 = arith.constant 0 : i32
    return %c0_i32, %c0_i32_0 : i32, i32
  }
  func.func @transform_3(%arg0: i32, %arg1: i32) -> (i32, i32, i32, i32) {
    %c0_i32 = arith.constant 0 : i32
    %c0_i32_0 = arith.constant 0 : i32
    %c0_i32_1 = arith.constant 0 : i32
    return %arg0, %arg1, %c0_i32, %c0_i32_0 : i32, i32, i32, i32
  }
}

module attributes {stable_mosaic.version = 11 : i64} {
  func.func @_conv_relu_pool_kernel(%arg0: i32, %arg1: i32, %arg2: memref<1x10x10x128xbf16, #tpu.memory_space<vmem>>, %arg3: memref<9x128x128xbf16, #tpu.memory_space<vmem>>, %arg4: memref<1x128xf32, #tpu.memory_space<vmem>>, %arg5: memref<1x4x4x128xbf16, #tpu.memory_space<vmem>>, %arg6: memref<8x128xf32, #tpu.memory_space<vmem>>) attributes {dimension_semantics = [#tpu.dimension_semantics<parallel>, #tpu.dimension_semantics<parallel>], iteration_bounds = array<i64: 2, 1>, scalar_prefetch = 0 : i64, scratch_operands = 1 : i64, tpu.core_type = #tpu.core_type<tc>, window_params = [{transform_indices = @transform_0, window_bounds = array<i64: 1, 10, 10, 128>}, {pipeline_mode = #tpu.pipeline_mode<synchronous>, transform_indices = @transform_1, window_bounds = array<i64: 9, 128, 128>}, {pipeline_mode = #tpu.pipeline_mode<synchronous>, transform_indices = @transform_2, window_bounds = array<i64: 1, 128>}, {transform_indices = @transform_3, window_bounds = array<i64: 1, 4, 4, 128>}]} {
    %c0 = arith.constant 0 : index
    %c0_0 = arith.constant 0 : index
    %0 = vector.load %arg4[%c0, %c0_0] : memref<1x128xf32, #tpu.memory_space<vmem>>, vector<1x128xf32>
    %c0_i32 = arith.constant 0 : i32
    %c4_i32 = arith.constant 4 : i32
    %1 = arith.addi %c0_i32, %c4_i32 : i32
    %c1_i32 = arith.constant 1 : i32
    scf.for %arg7 = %c0_i32 to %1 step %c1_i32  : i32 {
      %c4_i32_2 = arith.constant 4 : i32
      %2 = arith.muli %arg1, %c4_i32_2 : i32
      %3 = arith.addi %2, %arg7 : i32
      %cst = arith.constant 0.000000e+00 : f32
      %4 = vector.broadcast %cst : f32 to vector<8x128xf32>
      %c2_i32 = arith.constant 2 : i32
      %5 = arith.muli %c2_i32, %3 : i32
      %c0_i32_3 = arith.constant 0 : i32
      %6 = arith.addi %5, %c0_i32_3 : i32
      %c0_i32_4 = arith.constant 0 : i32
      %7 = arith.addi %6, %c0_i32_4 : i32
      %c0_5 = arith.constant 0 : index
      %8 = arith.index_cast %7 : i32 to index
      %c0_6 = arith.constant 0 : index
      %c0_7 = arith.constant 0 : index
      %9 = vector.load %arg2[%c0_5, %8, %c0_6, %c0_7] : memref<1x10x10x128xbf16, #tpu.memory_space<vmem>>, vector<1x1x8x128xbf16>
      %10 = vector.shape_cast %9 : vector<1x1x8x128xbf16> to vector<8x128xbf16>
      %c0_8 = arith.constant 0 : index
      %c0_9 = arith.constant 0 : index
      %c0_10 = arith.constant 0 : index
      %11 = vector.load %arg3[%c0_8, %c0_9, %c0_10] : memref<9x128x128xbf16, #tpu.memory_space<vmem>>, vector<1x128x128xbf16>
      %12 = vector.shape_cast %11 : vector<1x128x128xbf16> to vector<128x128xbf16>
      %cst_11 = arith.constant dense<0.000000e+00> : vector<8x128xf32>
      %13 = tpu.matmul %10, %12, %cst_11 {dimension_numbers = #tpu.dot_dimension_numbers<[1], [0], [0], [1], [0, 0, 1, 1], [], []>} : vector<8x128xbf16>, vector<128x128xbf16>, vector<8x128xf32> -> vector<8x128xf32>
      %14 = arith.addf %4, %13 : vector<8x128xf32>
      %c2_i32_12 = arith.constant 2 : i32
      %15 = arith.muli %c2_i32_12, %3 : i32
      %c0_i32_13 = arith.constant 0 : i32
      %16 = arith.addi %15, %c0_i32_13 : i32
      %c0_i32_14 = arith.constant 0 : i32
      %17 = arith.addi %16, %c0_i32_14 : i32
      %c0_15 = arith.constant 0 : index
      %18 = arith.index_cast %17 : i32 to index
      %c1 = arith.constant 1 : index
      %c0_16 = arith.constant 0 : index
      %19 = vector.load %arg2[%c0_15, %18, %c1, %c0_16] : memref<1x10x10x128xbf16, #tpu.memory_space<vmem>>, vector<1x1x8x128xbf16>
      %20 = vector.shape_cast %19 : vector<1x1x8x128xbf16> to vector<8x128xbf16>
      %c1_17 = arith.constant 1 : index
      %c0_18 = arith.constant 0 : index
      %c0_19 = arith.constant 0 : index
      %21 = vector.load %arg3[%c1_17, %c0_18, %c0_19] : memref<9x128x128xbf16, #tpu.memory_space<vmem>>, vector<1x128x128xbf16>
      %22 = vector.shape_cast %21 : vector<1x128x128xbf16> to vector<128x128xbf16>
      %cst_20 = arith.constant dense<0.000000e+00> : vector<8x128xf32>
      %23 = tpu.matmul %20, %22, %cst_20 {dimension_numbers = #tpu.dot_dimension_numbers<[1], [0], [0], [1], [0, 0, 1, 1], [], []>} : vector<8x128xbf16>, vector<128x128xbf16>, vector<8x128xf32> -> vector<8x128xf32>
      %24 = arith.addf %14, %23 : vector<8x128xf32>
      %c2_i32_21 = arith.constant 2 : i32
      %25 = arith.muli %c2_i32_21, %3 : i32
      %c0_i32_22 = arith.constant 0 : i32
      %26 = arith.addi %25, %c0_i32_22 : i32
      %c0_i32_23 = arith.constant 0 : i32
      %27 = arith.addi %26, %c0_i32_23 : i32
      %c0_24 = arith.constant 0 : index
      %28 = arith.index_cast %27 : i32 to index
      %c2 = arith.constant 2 : index
      %c0_25 = arith.constant 0 : index
      %29 = vector.load %arg2[%c0_24, %28, %c2, %c0_25] : memref<1x10x10x128xbf16, #tpu.memory_space<vmem>>, vector<1x1x8x128xbf16>
      %30 = vector.shape_cast %29 : vector<1x1x8x128xbf16> to vector<8x128xbf16>
      %c2_26 = arith.constant 2 : index
      %c0_27 = arith.constant 0 : index
      %c0_28 = arith.constant 0 : index
      %31 = vector.load %arg3[%c2_26, %c0_27, %c0_28] : memref<9x128x128xbf16, #tpu.memory_space<vmem>>, vector<1x128x128xbf16>
      %32 = vector.shape_cast %31 : vector<1x128x128xbf16> to vector<128x128xbf16>
      %cst_29 = arith.constant dense<0.000000e+00> : vector<8x128xf32>
      %33 = tpu.matmul %30, %32, %cst_29 {dimension_numbers = #tpu.dot_dimension_numbers<[1], [0], [0], [1], [0, 0, 1, 1], [], []>} : vector<8x128xbf16>, vector<128x128xbf16>, vector<8x128xf32> -> vector<8x128xf32>
      %34 = arith.addf %24, %33 : vector<8x128xf32>
      %c2_i32_30 = arith.constant 2 : i32
      %35 = arith.muli %c2_i32_30, %3 : i32
      %c0_i32_31 = arith.constant 0 : i32
      %36 = arith.addi %35, %c0_i32_31 : i32
      %c1_i32_32 = arith.constant 1 : i32
      %37 = arith.addi %36, %c1_i32_32 : i32
      %c0_33 = arith.constant 0 : index
      %38 = arith.index_cast %37 : i32 to index
      %c0_34 = arith.constant 0 : index
      %c0_35 = arith.constant 0 : index
      %39 = vector.load %arg2[%c0_33, %38, %c0_34, %c0_35] : memref<1x10x10x128xbf16, #tpu.memory_space<vmem>>, vector<1x1x8x128xbf16>
      %40 = vector.shape_cast %39 : vector<1x1x8x128xbf16> to vector<8x128xbf16>
      %c3 = arith.constant 3 : index
      %c0_36 = arith.constant 0 : index
      %c0_37 = arith.constant 0 : index
      %41 = vector.load %arg3[%c3, %c0_36, %c0_37] : memref<9x128x128xbf16, #tpu.memory_space<vmem>>, vector<1x128x128xbf16>
      %42 = vector.shape_cast %41 : vector<1x128x128xbf16> to vector<128x128xbf16>
      %cst_38 = arith.constant dense<0.000000e+00> : vector<8x128xf32>
      %43 = tpu.matmul %40, %42, %cst_38 {dimension_numbers = #tpu.dot_dimension_numbers<[1], [0], [0], [1], [0, 0, 1, 1], [], []>} : vector<8x128xbf16>, vector<128x128xbf16>, vector<8x128xf32> -> vector<8x128xf32>
      %44 = arith.addf %34, %43 : vector<8x128xf32>
      %c2_i32_39 = arith.constant 2 : i32
      %45 = arith.muli %c2_i32_39, %3 : i32
      %c0_i32_40 = arith.constant 0 : i32
      %46 = arith.addi %45, %c0_i32_40 : i32
      %c1_i32_41 = arith.constant 1 : i32
      %47 = arith.addi %46, %c1_i32_41 : i32
      %c0_42 = arith.constant 0 : index
      %48 = arith.index_cast %47 : i32 to index
      %c1_43 = arith.constant 1 : index
      %c0_44 = arith.constant 0 : index
      %49 = vector.load %arg2[%c0_42, %48, %c1_43, %c0_44] : memref<1x10x10x128xbf16, #tpu.memory_space<vmem>>, vector<1x1x8x128xbf16>
      %50 = vector.shape_cast %49 : vector<1x1x8x128xbf16> to vector<8x128xbf16>
      %c4 = arith.constant 4 : index
      %c0_45 = arith.constant 0 : index
      %c0_46 = arith.constant 0 : index
      %51 = vector.load %arg3[%c4, %c0_45, %c0_46] : memref<9x128x128xbf16, #tpu.memory_space<vmem>>, vector<1x128x128xbf16>
      %52 = vector.shape_cast %51 : vector<1x128x128xbf16> to vector<128x128xbf16>
      %cst_47 = arith.constant dense<0.000000e+00> : vector<8x128xf32>
      %53 = tpu.matmul %50, %52, %cst_47 {dimension_numbers = #tpu.dot_dimension_numbers<[1], [0], [0], [1], [0, 0, 1, 1], [], []>} : vector<8x128xbf16>, vector<128x128xbf16>, vector<8x128xf32> -> vector<8x128xf32>
      %54 = arith.addf %44, %53 : vector<8x128xf32>
      %c2_i32_48 = arith.constant 2 : i32
      %55 = arith.muli %c2_i32_48, %3 : i32
      %c0_i32_49 = arith.constant 0 : i32
      %56 = arith.addi %55, %c0_i32_49 : i32
      %c1_i32_50 = arith.constant 1 : i32
      %57 = arith.addi %56, %c1_i32_50 : i32
      %c0_51 = arith.constant 0 : index
      %58 = arith.index_cast %57 : i32 to index
      %c2_52 = arith.constant 2 : index
      %c0_53 = arith.constant 0 : index
      %59 = vector.load %arg2[%c0_51, %58, %c2_52, %c0_53] : memref<1x10x10x128xbf16, #tpu.memory_space<vmem>>, vector<1x1x8x128xbf16>
      %60 = vector.shape_cast %59 : vector<1x1x8x128xbf16> to vector<8x128xbf16>
      %c5 = arith.constant 5 : index
      %c0_54 = arith.constant 0 : index
      %c0_55 = arith.constant 0 : index
      %61 = vector.load %arg3[%c5, %c0_54, %c0_55] : memref<9x128x128xbf16, #tpu.memory_space<vmem>>, vector<1x128x128xbf16>
      %62 = vector.shape_cast %61 : vector<1x128x128xbf16> to vector<128x128xbf16>
      %cst_56 = arith.constant dense<0.000000e+00> : vector<8x128xf32>
      %63 = tpu.matmul %60, %62, %cst_56 {dimension_numbers = #tpu.dot_dimension_numbers<[1], [0], [0], [1], [0, 0, 1, 1], [], []>} : vector<8x128xbf16>, vector<128x128xbf16>, vector<8x128xf32> -> vector<8x128xf32>
      %64 = arith.addf %54, %63 : vector<8x128xf32>
      %c2_i32_57 = arith.constant 2 : i32
      %65 = arith.muli %c2_i32_57, %3 : i32
      %c0_i32_58 = arith.constant 0 : i32
      %66 = arith.addi %65, %c0_i32_58 : i32
      %c2_i32_59 = arith.constant 2 : i32
      %67 = arith.addi %66, %c2_i32_59 : i32
      %c0_60 = arith.constant 0 : index
      %68 = arith.index_cast %67 : i32 to index
      %c0_61 = arith.constant 0 : index
      %c0_62 = arith.constant 0 : index
      %69 = vector.load %arg2[%c0_60, %68, %c0_61, %c0_62] : memref<1x10x10x128xbf16, #tpu.memory_space<vmem>>, vector<1x1x8x128xbf16>
      %70 = vector.shape_cast %69 : vector<1x1x8x128xbf16> to vector<8x128xbf16>
      %c6 = arith.constant 6 : index
      %c0_63 = arith.constant 0 : index
      %c0_64 = arith.constant 0 : index
      %71 = vector.load %arg3[%c6, %c0_63, %c0_64] : memref<9x128x128xbf16, #tpu.memory_space<vmem>>, vector<1x128x128xbf16>
      %72 = vector.shape_cast %71 : vector<1x128x128xbf16> to vector<128x128xbf16>
      %cst_65 = arith.constant dense<0.000000e+00> : vector<8x128xf32>
      %73 = tpu.matmul %70, %72, %cst_65 {dimension_numbers = #tpu.dot_dimension_numbers<[1], [0], [0], [1], [0, 0, 1, 1], [], []>} : vector<8x128xbf16>, vector<128x128xbf16>, vector<8x128xf32> -> vector<8x128xf32>
      %74 = arith.addf %64, %73 : vector<8x128xf32>
      %c2_i32_66 = arith.constant 2 : i32
      %75 = arith.muli %c2_i32_66, %3 : i32
      %c0_i32_67 = arith.constant 0 : i32
      %76 = arith.addi %75, %c0_i32_67 : i32
      %c2_i32_68 = arith.constant 2 : i32
      %77 = arith.addi %76, %c2_i32_68 : i32
      %c0_69 = arith.constant 0 : index
      %78 = arith.index_cast %77 : i32 to index
      %c1_70 = arith.constant 1 : index
      %c0_71 = arith.constant 0 : index
      %79 = vector.load %arg2[%c0_69, %78, %c1_70, %c0_71] : memref<1x10x10x128xbf16, #tpu.memory_space<vmem>>, vector<1x1x8x128xbf16>
      %80 = vector.shape_cast %79 : vector<1x1x8x128xbf16> to vector<8x128xbf16>
      %c7 = arith.constant 7 : index
      %c0_72 = arith.constant 0 : index
      %c0_73 = arith.constant 0 : index
      %81 = vector.load %arg3[%c7, %c0_72, %c0_73] : memref<9x128x128xbf16, #tpu.memory_space<vmem>>, vector<1x128x128xbf16>
      %82 = vector.shape_cast %81 : vector<1x128x128xbf16> to vector<128x128xbf16>
      %cst_74 = arith.constant dense<0.000000e+00> : vector<8x128xf32>
      %83 = tpu.matmul %80, %82, %cst_74 {dimension_numbers = #tpu.dot_dimension_numbers<[1], [0], [0], [1], [0, 0, 1, 1], [], []>} : vector<8x128xbf16>, vector<128x128xbf16>, vector<8x128xf32> -> vector<8x128xf32>
      %84 = arith.addf %74, %83 : vector<8x128xf32>
      %c2_i32_75 = arith.constant 2 : i32
      %85 = arith.muli %c2_i32_75, %3 : i32
      %c0_i32_76 = arith.constant 0 : i32
      %86 = arith.addi %85, %c0_i32_76 : i32
      %c2_i32_77 = arith.constant 2 : i32
      %87 = arith.addi %86, %c2_i32_77 : i32
      %c0_78 = arith.constant 0 : index
      %88 = arith.index_cast %87 : i32 to index
      %c2_79 = arith.constant 2 : index
      %c0_80 = arith.constant 0 : index
      %89 = vector.load %arg2[%c0_78, %88, %c2_79, %c0_80] : memref<1x10x10x128xbf16, #tpu.memory_space<vmem>>, vector<1x1x8x128xbf16>
      %90 = vector.shape_cast %89 : vector<1x1x8x128xbf16> to vector<8x128xbf16>
      %c8 = arith.constant 8 : index
      %c0_81 = arith.constant 0 : index
      %c0_82 = arith.constant 0 : index
      %91 = vector.load %arg3[%c8, %c0_81, %c0_82] : memref<9x128x128xbf16, #tpu.memory_space<vmem>>, vector<1x128x128xbf16>
      %92 = vector.shape_cast %91 : vector<1x128x128xbf16> to vector<128x128xbf16>
      %cst_83 = arith.constant dense<0.000000e+00> : vector<8x128xf32>
      %93 = tpu.matmul %90, %92, %cst_83 {dimension_numbers = #tpu.dot_dimension_numbers<[1], [0], [0], [1], [0, 0, 1, 1], [], []>} : vector<8x128xbf16>, vector<128x128xbf16>, vector<8x128xf32> -> vector<8x128xf32>
      %94 = arith.addf %84, %93 : vector<8x128xf32>
      %95 = vector.broadcast %0 : vector<1x128xf32> to vector<8x128xf32>
      %96 = arith.addf %94, %95 : vector<8x128xf32>
      %cst_84 = arith.constant 0.000000e+00 : f32
      %97 = vector.broadcast %cst_84 : f32 to vector<8x128xf32>
      %98 = arith.maximumf %96, %97 : vector<8x128xf32>
      %cst_85 = arith.constant 0.000000e+00 : f32
      %99 = vector.broadcast %cst_85 : f32 to vector<8x128xf32>
      %c2_i32_86 = arith.constant 2 : i32
      %100 = arith.muli %c2_i32_86, %3 : i32
      %c1_i32_87 = arith.constant 1 : i32
      %101 = arith.addi %100, %c1_i32_87 : i32
      %c0_i32_88 = arith.constant 0 : i32
      %102 = arith.addi %101, %c0_i32_88 : i32
      %c0_89 = arith.constant 0 : index
      %103 = arith.index_cast %102 : i32 to index
      %c0_90 = arith.constant 0 : index
      %c0_91 = arith.constant 0 : index
      %104 = vector.load %arg2[%c0_89, %103, %c0_90, %c0_91] : memref<1x10x10x128xbf16, #tpu.memory_space<vmem>>, vector<1x1x8x128xbf16>
      %105 = vector.shape_cast %104 : vector<1x1x8x128xbf16> to vector<8x128xbf16>
      %c0_92 = arith.constant 0 : index
      %c0_93 = arith.constant 0 : index
      %c0_94 = arith.constant 0 : index
      %106 = vector.load %arg3[%c0_92, %c0_93, %c0_94] : memref<9x128x128xbf16, #tpu.memory_space<vmem>>, vector<1x128x128xbf16>
      %107 = vector.shape_cast %106 : vector<1x128x128xbf16> to vector<128x128xbf16>
      %cst_95 = arith.constant dense<0.000000e+00> : vector<8x128xf32>
      %108 = tpu.matmul %105, %107, %cst_95 {dimension_numbers = #tpu.dot_dimension_numbers<[1], [0], [0], [1], [0, 0, 1, 1], [], []>} : vector<8x128xbf16>, vector<128x128xbf16>, vector<8x128xf32> -> vector<8x128xf32>
      %109 = arith.addf %99, %108 : vector<8x128xf32>
      %c2_i32_96 = arith.constant 2 : i32
      %110 = arith.muli %c2_i32_96, %3 : i32
      %c1_i32_97 = arith.constant 1 : i32
      %111 = arith.addi %110, %c1_i32_97 : i32
      %c0_i32_98 = arith.constant 0 : i32
      %112 = arith.addi %111, %c0_i32_98 : i32
      %c0_99 = arith.constant 0 : index
      %113 = arith.index_cast %112 : i32 to index
      %c1_100 = arith.constant 1 : index
      %c0_101 = arith.constant 0 : index
      %114 = vector.load %arg2[%c0_99, %113, %c1_100, %c0_101] : memref<1x10x10x128xbf16, #tpu.memory_space<vmem>>, vector<1x1x8x128xbf16>
      %115 = vector.shape_cast %114 : vector<1x1x8x128xbf16> to vector<8x128xbf16>
      %c1_102 = arith.constant 1 : index
      %c0_103 = arith.constant 0 : index
      %c0_104 = arith.constant 0 : index
      %116 = vector.load %arg3[%c1_102, %c0_103, %c0_104] : memref<9x128x128xbf16, #tpu.memory_space<vmem>>, vector<1x128x128xbf16>
      %117 = vector.shape_cast %116 : vector<1x128x128xbf16> to vector<128x128xbf16>
      %cst_105 = arith.constant dense<0.000000e+00> : vector<8x128xf32>
      %118 = tpu.matmul %115, %117, %cst_105 {dimension_numbers = #tpu.dot_dimension_numbers<[1], [0], [0], [1], [0, 0, 1, 1], [], []>} : vector<8x128xbf16>, vector<128x128xbf16>, vector<8x128xf32> -> vector<8x128xf32>
      %119 = arith.addf %109, %118 : vector<8x128xf32>
      %c2_i32_106 = arith.constant 2 : i32
      %120 = arith.muli %c2_i32_106, %3 : i32
      %c1_i32_107 = arith.constant 1 : i32
      %121 = arith.addi %120, %c1_i32_107 : i32
      %c0_i32_108 = arith.constant 0 : i32
      %122 = arith.addi %121, %c0_i32_108 : i32
      %c0_109 = arith.constant 0 : index
      %123 = arith.index_cast %122 : i32 to index
      %c2_110 = arith.constant 2 : index
      %c0_111 = arith.constant 0 : index
      %124 = vector.load %arg2[%c0_109, %123, %c2_110, %c0_111] : memref<1x10x10x128xbf16, #tpu.memory_space<vmem>>, vector<1x1x8x128xbf16>
      %125 = vector.shape_cast %124 : vector<1x1x8x128xbf16> to vector<8x128xbf16>
      %c2_112 = arith.constant 2 : index
      %c0_113 = arith.constant 0 : index
      %c0_114 = arith.constant 0 : index
      %126 = vector.load %arg3[%c2_112, %c0_113, %c0_114] : memref<9x128x128xbf16, #tpu.memory_space<vmem>>, vector<1x128x128xbf16>
      %127 = vector.shape_cast %126 : vector<1x128x128xbf16> to vector<128x128xbf16>
      %cst_115 = arith.constant dense<0.000000e+00> : vector<8x128xf32>
      %128 = tpu.matmul %125, %127, %cst_115 {dimension_numbers = #tpu.dot_dimension_numbers<[1], [0], [0], [1], [0, 0, 1, 1], [], []>} : vector<8x128xbf16>, vector<128x128xbf16>, vector<8x128xf32> -> vector<8x128xf32>
      %129 = arith.addf %119, %128 : vector<8x128xf32>
      %c2_i32_116 = arith.constant 2 : i32
      %130 = arith.muli %c2_i32_116, %3 : i32
      %c1_i32_117 = arith.constant 1 : i32
      %131 = arith.addi %130, %c1_i32_117 : i32
      %c1_i32_118 = arith.constant 1 : i32
      %132 = arith.addi %131, %c1_i32_118 : i32
      %c0_119 = arith.constant 0 : index
      %133 = arith.index_cast %132 : i32 to index
      %c0_120 = arith.constant 0 : index
      %c0_121 = arith.constant 0 : index
      %134 = vector.load %arg2[%c0_119, %133, %c0_120, %c0_121] : memref<1x10x10x128xbf16, #tpu.memory_space<vmem>>, vector<1x1x8x128xbf16>
      %135 = vector.shape_cast %134 : vector<1x1x8x128xbf16> to vector<8x128xbf16>
      %c3_122 = arith.constant 3 : index
      %c0_123 = arith.constant 0 : index
      %c0_124 = arith.constant 0 : index
      %136 = vector.load %arg3[%c3_122, %c0_123, %c0_124] : memref<9x128x128xbf16, #tpu.memory_space<vmem>>, vector<1x128x128xbf16>
      %137 = vector.shape_cast %136 : vector<1x128x128xbf16> to vector<128x128xbf16>
      %cst_125 = arith.constant dense<0.000000e+00> : vector<8x128xf32>
      %138 = tpu.matmul %135, %137, %cst_125 {dimension_numbers = #tpu.dot_dimension_numbers<[1], [0], [0], [1], [0, 0, 1, 1], [], []>} : vector<8x128xbf16>, vector<128x128xbf16>, vector<8x128xf32> -> vector<8x128xf32>
      %139 = arith.addf %129, %138 : vector<8x128xf32>
      %c2_i32_126 = arith.constant 2 : i32
      %140 = arith.muli %c2_i32_126, %3 : i32
      %c1_i32_127 = arith.constant 1 : i32
      %141 = arith.addi %140, %c1_i32_127 : i32
      %c1_i32_128 = arith.constant 1 : i32
      %142 = arith.addi %141, %c1_i32_128 : i32
      %c0_129 = arith.constant 0 : index
      %143 = arith.index_cast %142 : i32 to index
      %c1_130 = arith.constant 1 : index
      %c0_131 = arith.constant 0 : index
      %144 = vector.load %arg2[%c0_129, %143, %c1_130, %c0_131] : memref<1x10x10x128xbf16, #tpu.memory_space<vmem>>, vector<1x1x8x128xbf16>
      %145 = vector.shape_cast %144 : vector<1x1x8x128xbf16> to vector<8x128xbf16>
      %c4_132 = arith.constant 4 : index
      %c0_133 = arith.constant 0 : index
      %c0_134 = arith.constant 0 : index
      %146 = vector.load %arg3[%c4_132, %c0_133, %c0_134] : memref<9x128x128xbf16, #tpu.memory_space<vmem>>, vector<1x128x128xbf16>
      %147 = vector.shape_cast %146 : vector<1x128x128xbf16> to vector<128x128xbf16>
      %cst_135 = arith.constant dense<0.000000e+00> : vector<8x128xf32>
      %148 = tpu.matmul %145, %147, %cst_135 {dimension_numbers = #tpu.dot_dimension_numbers<[1], [0], [0], [1], [0, 0, 1, 1], [], []>} : vector<8x128xbf16>, vector<128x128xbf16>, vector<8x128xf32> -> vector<8x128xf32>
      %149 = arith.addf %139, %148 : vector<8x128xf32>
      %c2_i32_136 = arith.constant 2 : i32
      %150 = arith.muli %c2_i32_136, %3 : i32
      %c1_i32_137 = arith.constant 1 : i32
      %151 = arith.addi %150, %c1_i32_137 : i32
      %c1_i32_138 = arith.constant 1 : i32
      %152 = arith.addi %151, %c1_i32_138 : i32
      %c0_139 = arith.constant 0 : index
      %153 = arith.index_cast %152 : i32 to index
      %c2_140 = arith.constant 2 : index
      %c0_141 = arith.constant 0 : index
      %154 = vector.load %arg2[%c0_139, %153, %c2_140, %c0_141] : memref<1x10x10x128xbf16, #tpu.memory_space<vmem>>, vector<1x1x8x128xbf16>
      %155 = vector.shape_cast %154 : vector<1x1x8x128xbf16> to vector<8x128xbf16>
      %c5_142 = arith.constant 5 : index
      %c0_143 = arith.constant 0 : index
      %c0_144 = arith.constant 0 : index
      %156 = vector.load %arg3[%c5_142, %c0_143, %c0_144] : memref<9x128x128xbf16, #tpu.memory_space<vmem>>, vector<1x128x128xbf16>
      %157 = vector.shape_cast %156 : vector<1x128x128xbf16> to vector<128x128xbf16>
      %cst_145 = arith.constant dense<0.000000e+00> : vector<8x128xf32>
      %158 = tpu.matmul %155, %157, %cst_145 {dimension_numbers = #tpu.dot_dimension_numbers<[1], [0], [0], [1], [0, 0, 1, 1], [], []>} : vector<8x128xbf16>, vector<128x128xbf16>, vector<8x128xf32> -> vector<8x128xf32>
      %159 = arith.addf %149, %158 : vector<8x128xf32>
      %c2_i32_146 = arith.constant 2 : i32
      %160 = arith.muli %c2_i32_146, %3 : i32
      %c1_i32_147 = arith.constant 1 : i32
      %161 = arith.addi %160, %c1_i32_147 : i32
      %c2_i32_148 = arith.constant 2 : i32
      %162 = arith.addi %161, %c2_i32_148 : i32
      %c0_149 = arith.constant 0 : index
      %163 = arith.index_cast %162 : i32 to index
      %c0_150 = arith.constant 0 : index
      %c0_151 = arith.constant 0 : index
      %164 = vector.load %arg2[%c0_149, %163, %c0_150, %c0_151] : memref<1x10x10x128xbf16, #tpu.memory_space<vmem>>, vector<1x1x8x128xbf16>
      %165 = vector.shape_cast %164 : vector<1x1x8x128xbf16> to vector<8x128xbf16>
      %c6_152 = arith.constant 6 : index
      %c0_153 = arith.constant 0 : index
      %c0_154 = arith.constant 0 : index
      %166 = vector.load %arg3[%c6_152, %c0_153, %c0_154] : memref<9x128x128xbf16, #tpu.memory_space<vmem>>, vector<1x128x128xbf16>
      %167 = vector.shape_cast %166 : vector<1x128x128xbf16> to vector<128x128xbf16>
      %cst_155 = arith.constant dense<0.000000e+00> : vector<8x128xf32>
      %168 = tpu.matmul %165, %167, %cst_155 {dimension_numbers = #tpu.dot_dimension_numbers<[1], [0], [0], [1], [0, 0, 1, 1], [], []>} : vector<8x128xbf16>, vector<128x128xbf16>, vector<8x128xf32> -> vector<8x128xf32>
      %169 = arith.addf %159, %168 : vector<8x128xf32>
      %c2_i32_156 = arith.constant 2 : i32
      %170 = arith.muli %c2_i32_156, %3 : i32
      %c1_i32_157 = arith.constant 1 : i32
      %171 = arith.addi %170, %c1_i32_157 : i32
      %c2_i32_158 = arith.constant 2 : i32
      %172 = arith.addi %171, %c2_i32_158 : i32
      %c0_159 = arith.constant 0 : index
      %173 = arith.index_cast %172 : i32 to index
      %c1_160 = arith.constant 1 : index
      %c0_161 = arith.constant 0 : index
      %174 = vector.load %arg2[%c0_159, %173, %c1_160, %c0_161] : memref<1x10x10x128xbf16, #tpu.memory_space<vmem>>, vector<1x1x8x128xbf16>
      %175 = vector.shape_cast %174 : vector<1x1x8x128xbf16> to vector<8x128xbf16>
      %c7_162 = arith.constant 7 : index
      %c0_163 = arith.constant 0 : index
      %c0_164 = arith.constant 0 : index
      %176 = vector.load %arg3[%c7_162, %c0_163, %c0_164] : memref<9x128x128xbf16, #tpu.memory_space<vmem>>, vector<1x128x128xbf16>
      %177 = vector.shape_cast %176 : vector<1x128x128xbf16> to vector<128x128xbf16>
      %cst_165 = arith.constant dense<0.000000e+00> : vector<8x128xf32>
      %178 = tpu.matmul %175, %177, %cst_165 {dimension_numbers = #tpu.dot_dimension_numbers<[1], [0], [0], [1], [0, 0, 1, 1], [], []>} : vector<8x128xbf16>, vector<128x128xbf16>, vector<8x128xf32> -> vector<8x128xf32>
      %179 = arith.addf %169, %178 : vector<8x128xf32>
      %c2_i32_166 = arith.constant 2 : i32
      %180 = arith.muli %c2_i32_166, %3 : i32
      %c1_i32_167 = arith.constant 1 : i32
      %181 = arith.addi %180, %c1_i32_167 : i32
      %c2_i32_168 = arith.constant 2 : i32
      %182 = arith.addi %181, %c2_i32_168 : i32
      %c0_169 = arith.constant 0 : index
      %183 = arith.index_cast %182 : i32 to index
      %c2_170 = arith.constant 2 : index
      %c0_171 = arith.constant 0 : index
      %184 = vector.load %arg2[%c0_169, %183, %c2_170, %c0_171] : memref<1x10x10x128xbf16, #tpu.memory_space<vmem>>, vector<1x1x8x128xbf16>
      %185 = vector.shape_cast %184 : vector<1x1x8x128xbf16> to vector<8x128xbf16>
      %c8_172 = arith.constant 8 : index
      %c0_173 = arith.constant 0 : index
      %c0_174 = arith.constant 0 : index
      %186 = vector.load %arg3[%c8_172, %c0_173, %c0_174] : memref<9x128x128xbf16, #tpu.memory_space<vmem>>, vector<1x128x128xbf16>
      %187 = vector.shape_cast %186 : vector<1x128x128xbf16> to vector<128x128xbf16>
      %cst_175 = arith.constant dense<0.000000e+00> : vector<8x128xf32>
      %188 = tpu.matmul %185, %187, %cst_175 {dimension_numbers = #tpu.dot_dimension_numbers<[1], [0], [0], [1], [0, 0, 1, 1], [], []>} : vector<8x128xbf16>, vector<128x128xbf16>, vector<8x128xf32> -> vector<8x128xf32>
      %189 = arith.addf %179, %188 : vector<8x128xf32>
      %190 = vector.broadcast %0 : vector<1x128xf32> to vector<8x128xf32>
      %191 = arith.addf %189, %190 : vector<8x128xf32>
      %cst_176 = arith.constant 0.000000e+00 : f32
      %192 = vector.broadcast %cst_176 : f32 to vector<8x128xf32>
      %193 = arith.maximumf %191, %192 : vector<8x128xf32>
      %194 = arith.maximumf %98, %193 : vector<8x128xf32>
      %c0_177 = arith.constant 0 : index
      %c0_178 = arith.constant 0 : index
      %195 = vector.load %arg6[%c0_177, %c0_178] : memref<8x128xf32, #tpu.memory_space<vmem>>, vector<8x128xf32>
      tpu.vector_store %arg6[%c0_177, %c0_178], %194 {strides = array<i32>} : memref<8x128xf32, #tpu.memory_space<vmem>>, vector<8x128xf32>,
      %c0_179 = arith.constant 0 : index
      %c0_180 = arith.constant 0 : index
      %196 = tpu.strided_load %arg6[%c0_179, %c0_180] {strides = array<i32: 2, 1>} : memref<8x128xf32, #tpu.memory_space<vmem>>, vector<4x128xf32>
      %c1_181 = arith.constant 1 : index
      %c0_182 = arith.constant 0 : index
      %197 = tpu.strided_load %arg6[%c1_181, %c0_182] {strides = array<i32: 2, 1>} : memref<8x128xf32, #tpu.memory_space<vmem>>, vector<4x128xf32>
      %198 = arith.maximumf %196, %197 : vector<4x128xf32>
      %199 = arith.truncf %198 : vector<4x128xf32> to vector<4x128xbf16>
      %c0_183 = arith.constant 0 : index
      %200 = arith.index_cast %arg7 : i32 to index
      %c0_184 = arith.constant 0 : index
      %c0_185 = arith.constant 0 : index
      %201 = vector.load %arg5[%c0_183, %200, %c0_184, %c0_185] : memref<1x4x4x128xbf16, #tpu.memory_space<vmem>>, vector<1x1x4x128xbf16>
      %202 = vector.shape_cast %201 : vector<1x1x4x128xbf16> to vector<4x128xbf16>
      %203 = vector.shape_cast %199 : vector<4x128xbf16> to vector<1x1x4x128xbf16>
      tpu.vector_store %arg5[%c0_183, %200, %c0_184, %c0_185], %203 {strides = array<i32>} : memref<1x4x4x128xbf16, #tpu.memory_space<vmem>>, vector<1x1x4x128xbf16>,
    }
    %c4_i32_1 = arith.constant 4 : i32
    return
  }
  func.func @transform_0(%arg0: i32, %arg1: i32) -> (i32, i32, i32, i32) {
    %c0_i32 = arith.constant 0 : i32
    %c0_i32_0 = arith.constant 0 : i32
    %c0_i32_1 = arith.constant 0 : i32
    %c0_i32_2 = arith.constant 0 : i32
    return %arg0, %c0_i32, %c0_i32_0, %c0_i32_1 : i32, i32, i32, i32
  }
  func.func @transform_1(%arg0: i32, %arg1: i32) -> (i32, i32, i32) {
    %c0_i32 = arith.constant 0 : i32
    %c0_i32_0 = arith.constant 0 : i32
    %c0_i32_1 = arith.constant 0 : i32
    %c0_i32_2 = arith.constant 0 : i32
    return %c0_i32, %c0_i32_0, %c0_i32_1 : i32, i32, i32
  }
  func.func @transform_2(%arg0: i32, %arg1: i32) -> (i32, i32) {
    %c0_i32 = arith.constant 0 : i32
    %c0_i32_0 = arith.constant 0 : i32
    %c0_i32_1 = arith.constant 0 : i32
    return %c0_i32, %c0_i32_0 : i32, i32
  }
  func.func @transform_3(%arg0: i32, %arg1: i32) -> (i32, i32, i32, i32) {
    %c0_i32 = arith.constant 0 : i32
    %c0_i32_0 = arith.constant 0 : i32
    %c0_i32_1 = arith.constant 0 : i32
    return %arg0, %arg1, %c0_i32, %c0_i32_0 : i32, i32, i32, i32
  }
}

module attributes {stable_mosaic.version = 11 : i64} {
  func.func @_linear_kernel(%arg0: i32, %arg1: memref<2x512xbf16, #tpu.memory_space<vmem>>, %arg2: memref<512x256xbf16, #tpu.memory_space<vmem>>, %arg3: memref<1x256xf32, #tpu.memory_space<vmem>>, %arg4: memref<2x256xbf16, #tpu.memory_space<vmem>>) attributes {dimension_semantics = [#tpu.dimension_semantics<parallel>], iteration_bounds = array<i64: 1>, scalar_prefetch = 0 : i64, scratch_operands = 0 : i64, tpu.core_type = #tpu.core_type<tc>, window_params = [{transform_indices = @transform_0, window_bounds = array<i64: 2, 512>}, {pipeline_mode = #tpu.pipeline_mode<synchronous>, transform_indices = @transform_1, window_bounds = array<i64: 512, 256>}, {pipeline_mode = #tpu.pipeline_mode<synchronous>, transform_indices = @transform_2, window_bounds = array<i64: 1, 256>}, {transform_indices = @transform_3, window_bounds = array<i64: 2, 256>}]} {
    %c0 = arith.constant 0 : index
    %c0_0 = arith.constant 0 : index
    %0 = vector.load %arg1[%c0, %c0_0] : memref<2x512xbf16, #tpu.memory_space<vmem>>, vector<2x512xbf16>
    %c0_1 = arith.constant 0 : index
    %c0_2 = arith.constant 0 : index
    %1 = vector.load %arg2[%c0_1, %c0_2] : memref<512x256xbf16, #tpu.memory_space<vmem>>, vector<512x256xbf16>
    %cst = arith.constant dense<0.000000e+00> : vector<2x256xf32>
    %2 = tpu.matmul %0, %1, %cst {dimension_numbers = #tpu.dot_dimension_numbers<[1], [0], [0], [1], [0, 0, 1, 1], [], []>} : vector<2x512xbf16>, vector<512x256xbf16>, vector<2x256xf32> -> vector<2x256xf32>
    %c0_3 = arith.constant 0 : index
    %c0_4 = arith.constant 0 : index
    %3 = vector.load %arg3[%c0_3, %c0_4] : memref<1x256xf32, #tpu.memory_space<vmem>>, vector<1x256xf32>
    %4 = vector.broadcast %3 : vector<1x256xf32> to vector<2x256xf32>
    %5 = arith.addf %2, %4 : vector<2x256xf32>
    %cst_5 = arith.constant 0.000000e+00 : f32
    %6 = vector.broadcast %cst_5 : f32 to vector<2x256xf32>
    %7 = arith.maximumf %5, %6 : vector<2x256xf32>
    %8 = arith.truncf %7 : vector<2x256xf32> to vector<2x256xbf16>
    %c0_6 = arith.constant 0 : index
    %c0_7 = arith.constant 0 : index
    %9 = vector.load %arg4[%c0_6, %c0_7] : memref<2x256xbf16, #tpu.memory_space<vmem>>, vector<2x256xbf16>
    tpu.vector_store %arg4[%c0_6, %c0_7], %8 {strides = array<i32>} : memref<2x256xbf16, #tpu.memory_space<vmem>>, vector<2x256xbf16>,
    return
  }
  func.func @transform_0(%arg0: i32) -> (i32, i32) {
    %c0_i32 = arith.constant 0 : i32
    %c0_i32_0 = arith.constant 0 : i32
    return %arg0, %c0_i32 : i32, i32
  }
  func.func @transform_1(%arg0: i32) -> (i32, i32) {
    %c0_i32 = arith.constant 0 : i32
    %c0_i32_0 = arith.constant 0 : i32
    %c0_i32_1 = arith.constant 0 : i32
    return %c0_i32, %c0_i32_0 : i32, i32
  }
  func.func @transform_2(%arg0: i32) -> (i32, i32) {
    %c0_i32 = arith.constant 0 : i32
    %c0_i32_0 = arith.constant 0 : i32
    %c0_i32_1 = arith.constant 0 : i32
    return %c0_i32, %c0_i32_0 : i32, i32
  }
  func.func @transform_3(%arg0: i32) -> (i32, i32) {
    %c0_i32 = arith.constant 0 : i32
    %c0_i32_0 = arith.constant 0 : i32
    return %arg0, %c0_i32 : i32, i32
  }
}

module attributes {stable_mosaic.version = 11 : i64} {
  func.func @_conv_relu_pool_kernel(%arg0: i32, %arg1: i32, %arg2: memref<1x6x6x128xbf16, #tpu.memory_space<vmem>>, %arg3: memref<9x128x128xbf16, #tpu.memory_space<vmem>>, %arg4: memref<1x128xf32, #tpu.memory_space<vmem>>, %arg5: memref<1x2x2x128xbf16, #tpu.memory_space<vmem>>, %arg6: memref<4x128xf32, #tpu.memory_space<vmem>>) attributes {dimension_semantics = [#tpu.dimension_semantics<parallel>, #tpu.dimension_semantics<parallel>], iteration_bounds = array<i64: 2, 1>, scalar_prefetch = 0 : i64, scratch_operands = 1 : i64, tpu.core_type = #tpu.core_type<tc>, window_params = [{transform_indices = @transform_0, window_bounds = array<i64: 1, 6, 6, 128>}, {pipeline_mode = #tpu.pipeline_mode<synchronous>, transform_indices = @transform_1, window_bounds = array<i64: 9, 128, 128>}, {pipeline_mode = #tpu.pipeline_mode<synchronous>, transform_indices = @transform_2, window_bounds = array<i64: 1, 128>}, {transform_indices = @transform_3, window_bounds = array<i64: 1, 2, 2, 128>}]} {
    %c0 = arith.constant 0 : index
    %c0_0 = arith.constant 0 : index
    %0 = vector.load %arg4[%c0, %c0_0] : memref<1x128xf32, #tpu.memory_space<vmem>>, vector<1x128xf32>
    %c0_i32 = arith.constant 0 : i32
    %c2_i32 = arith.constant 2 : i32
    %1 = arith.addi %c0_i32, %c2_i32 : i32
    %c1_i32 = arith.constant 1 : i32
    scf.for %arg7 = %c0_i32 to %1 step %c1_i32  : i32 {
      %c2_i32_2 = arith.constant 2 : i32
      %2 = arith.muli %arg1, %c2_i32_2 : i32
      %3 = arith.addi %2, %arg7 : i32
      %cst = arith.constant 0.000000e+00 : f32
      %4 = vector.broadcast %cst : f32 to vector<4x128xf32>
      %c2_i32_3 = arith.constant 2 : i32
      %5 = arith.muli %c2_i32_3, %3 : i32
      %c0_i32_4 = arith.constant 0 : i32
      %6 = arith.addi %5, %c0_i32_4 : i32
      %c0_i32_5 = arith.constant 0 : i32
      %7 = arith.addi %6, %c0_i32_5 : i32
      %c0_6 = arith.constant 0 : index
      %8 = arith.index_cast %7 : i32 to index
      %c0_7 = arith.constant 0 : index
      %c0_8 = arith.constant 0 : index
      %9 = vector.load %arg2[%c0_6, %8, %c0_7, %c0_8] : memref<1x6x6x128xbf16, #tpu.memory_space<vmem>>, vector<1x1x4x128xbf16>
      %10 = vector.shape_cast %9 : vector<1x1x4x128xbf16> to vector<4x128xbf16>
      %c0_9 = arith.constant 0 : index
      %c0_10 = arith.constant 0 : index
      %c0_11 = arith.constant 0 : index
      %11 = vector.load %arg3[%c0_9, %c0_10, %c0_11] : memref<9x128x128xbf16, #tpu.memory_space<vmem>>, vector<1x128x128xbf16>
      %12 = vector.shape_cast %11 : vector<1x128x128xbf16> to vector<128x128xbf16>
      %cst_12 = arith.constant dense<0.000000e+00> : vector<4x128xf32>
      %13 = tpu.matmul %10, %12, %cst_12 {dimension_numbers = #tpu.dot_dimension_numbers<[1], [0], [0], [1], [0, 0, 1, 1], [], []>} : vector<4x128xbf16>, vector<128x128xbf16>, vector<4x128xf32> -> vector<4x128xf32>
      %14 = arith.addf %4, %13 : vector<4x128xf32>
      %c2_i32_13 = arith.constant 2 : i32
      %15 = arith.muli %c2_i32_13, %3 : i32
      %c0_i32_14 = arith.constant 0 : i32
      %16 = arith.addi %15, %c0_i32_14 : i32
      %c0_i32_15 = arith.constant 0 : i32
      %17 = arith.addi %16, %c0_i32_15 : i32
      %c0_16 = arith.constant 0 : index
      %18 = arith.index_cast %17 : i32 to index
      %c1 = arith.constant 1 : index
      %c0_17 = arith.constant 0 : index
      %19 = vector.load %arg2[%c0_16, %18, %c1, %c0_17] : memref<1x6x6x128xbf16, #tpu.memory_space<vmem>>, vector<1x1x4x128xbf16>
      %20 = vector.shape_cast %19 : vector<1x1x4x128xbf16> to vector<4x128xbf16>
      %c1_18 = arith.constant 1 : index
      %c0_19 = arith.constant 0 : index
      %c0_20 = arith.constant 0 : index
      %21 = vector.load %arg3[%c1_18, %c0_19, %c0_20] : memref<9x128x128xbf16, #tpu.memory_space<vmem>>, vector<1x128x128xbf16>
      %22 = vector.shape_cast %21 : vector<1x128x128xbf16> to vector<128x128xbf16>
      %cst_21 = arith.constant dense<0.000000e+00> : vector<4x128xf32>
      %23 = tpu.matmul %20, %22, %cst_21 {dimension_numbers = #tpu.dot_dimension_numbers<[1], [0], [0], [1], [0, 0, 1, 1], [], []>} : vector<4x128xbf16>, vector<128x128xbf16>, vector<4x128xf32> -> vector<4x128xf32>
      %24 = arith.addf %14, %23 : vector<4x128xf32>
      %c2_i32_22 = arith.constant 2 : i32
      %25 = arith.muli %c2_i32_22, %3 : i32
      %c0_i32_23 = arith.constant 0 : i32
      %26 = arith.addi %25, %c0_i32_23 : i32
      %c0_i32_24 = arith.constant 0 : i32
      %27 = arith.addi %26, %c0_i32_24 : i32
      %c0_25 = arith.constant 0 : index
      %28 = arith.index_cast %27 : i32 to index
      %c2 = arith.constant 2 : index
      %c0_26 = arith.constant 0 : index
      %29 = vector.load %arg2[%c0_25, %28, %c2, %c0_26] : memref<1x6x6x128xbf16, #tpu.memory_space<vmem>>, vector<1x1x4x128xbf16>
      %30 = vector.shape_cast %29 : vector<1x1x4x128xbf16> to vector<4x128xbf16>
      %c2_27 = arith.constant 2 : index
      %c0_28 = arith.constant 0 : index
      %c0_29 = arith.constant 0 : index
      %31 = vector.load %arg3[%c2_27, %c0_28, %c0_29] : memref<9x128x128xbf16, #tpu.memory_space<vmem>>, vector<1x128x128xbf16>
      %32 = vector.shape_cast %31 : vector<1x128x128xbf16> to vector<128x128xbf16>
      %cst_30 = arith.constant dense<0.000000e+00> : vector<4x128xf32>
      %33 = tpu.matmul %30, %32, %cst_30 {dimension_numbers = #tpu.dot_dimension_numbers<[1], [0], [0], [1], [0, 0, 1, 1], [], []>} : vector<4x128xbf16>, vector<128x128xbf16>, vector<4x128xf32> -> vector<4x128xf32>
      %34 = arith.addf %24, %33 : vector<4x128xf32>
      %c2_i32_31 = arith.constant 2 : i32
      %35 = arith.muli %c2_i32_31, %3 : i32
      %c0_i32_32 = arith.constant 0 : i32
      %36 = arith.addi %35, %c0_i32_32 : i32
      %c1_i32_33 = arith.constant 1 : i32
      %37 = arith.addi %36, %c1_i32_33 : i32
      %c0_34 = arith.constant 0 : index
      %38 = arith.index_cast %37 : i32 to index
      %c0_35 = arith.constant 0 : index
      %c0_36 = arith.constant 0 : index
      %39 = vector.load %arg2[%c0_34, %38, %c0_35, %c0_36] : memref<1x6x6x128xbf16, #tpu.memory_space<vmem>>, vector<1x1x4x128xbf16>
      %40 = vector.shape_cast %39 : vector<1x1x4x128xbf16> to vector<4x128xbf16>
      %c3 = arith.constant 3 : index
      %c0_37 = arith.constant 0 : index
      %c0_38 = arith.constant 0 : index
      %41 = vector.load %arg3[%c3, %c0_37, %c0_38] : memref<9x128x128xbf16, #tpu.memory_space<vmem>>, vector<1x128x128xbf16>
      %42 = vector.shape_cast %41 : vector<1x128x128xbf16> to vector<128x128xbf16>
      %cst_39 = arith.constant dense<0.000000e+00> : vector<4x128xf32>
      %43 = tpu.matmul %40, %42, %cst_39 {dimension_numbers = #tpu.dot_dimension_numbers<[1], [0], [0], [1], [0, 0, 1, 1], [], []>} : vector<4x128xbf16>, vector<128x128xbf16>, vector<4x128xf32> -> vector<4x128xf32>
      %44 = arith.addf %34, %43 : vector<4x128xf32>
      %c2_i32_40 = arith.constant 2 : i32
      %45 = arith.muli %c2_i32_40, %3 : i32
      %c0_i32_41 = arith.constant 0 : i32
      %46 = arith.addi %45, %c0_i32_41 : i32
      %c1_i32_42 = arith.constant 1 : i32
      %47 = arith.addi %46, %c1_i32_42 : i32
      %c0_43 = arith.constant 0 : index
      %48 = arith.index_cast %47 : i32 to index
      %c1_44 = arith.constant 1 : index
      %c0_45 = arith.constant 0 : index
      %49 = vector.load %arg2[%c0_43, %48, %c1_44, %c0_45] : memref<1x6x6x128xbf16, #tpu.memory_space<vmem>>, vector<1x1x4x128xbf16>
      %50 = vector.shape_cast %49 : vector<1x1x4x128xbf16> to vector<4x128xbf16>
      %c4 = arith.constant 4 : index
      %c0_46 = arith.constant 0 : index
      %c0_47 = arith.constant 0 : index
      %51 = vector.load %arg3[%c4, %c0_46, %c0_47] : memref<9x128x128xbf16, #tpu.memory_space<vmem>>, vector<1x128x128xbf16>
      %52 = vector.shape_cast %51 : vector<1x128x128xbf16> to vector<128x128xbf16>
      %cst_48 = arith.constant dense<0.000000e+00> : vector<4x128xf32>
      %53 = tpu.matmul %50, %52, %cst_48 {dimension_numbers = #tpu.dot_dimension_numbers<[1], [0], [0], [1], [0, 0, 1, 1], [], []>} : vector<4x128xbf16>, vector<128x128xbf16>, vector<4x128xf32> -> vector<4x128xf32>
      %54 = arith.addf %44, %53 : vector<4x128xf32>
      %c2_i32_49 = arith.constant 2 : i32
      %55 = arith.muli %c2_i32_49, %3 : i32
      %c0_i32_50 = arith.constant 0 : i32
      %56 = arith.addi %55, %c0_i32_50 : i32
      %c1_i32_51 = arith.constant 1 : i32
      %57 = arith.addi %56, %c1_i32_51 : i32
      %c0_52 = arith.constant 0 : index
      %58 = arith.index_cast %57 : i32 to index
      %c2_53 = arith.constant 2 : index
      %c0_54 = arith.constant 0 : index
      %59 = vector.load %arg2[%c0_52, %58, %c2_53, %c0_54] : memref<1x6x6x128xbf16, #tpu.memory_space<vmem>>, vector<1x1x4x128xbf16>
      %60 = vector.shape_cast %59 : vector<1x1x4x128xbf16> to vector<4x128xbf16>
      %c5 = arith.constant 5 : index
      %c0_55 = arith.constant 0 : index
      %c0_56 = arith.constant 0 : index
      %61 = vector.load %arg3[%c5, %c0_55, %c0_56] : memref<9x128x128xbf16, #tpu.memory_space<vmem>>, vector<1x128x128xbf16>
      %62 = vector.shape_cast %61 : vector<1x128x128xbf16> to vector<128x128xbf16>
      %cst_57 = arith.constant dense<0.000000e+00> : vector<4x128xf32>
      %63 = tpu.matmul %60, %62, %cst_57 {dimension_numbers = #tpu.dot_dimension_numbers<[1], [0], [0], [1], [0, 0, 1, 1], [], []>} : vector<4x128xbf16>, vector<128x128xbf16>, vector<4x128xf32> -> vector<4x128xf32>
      %64 = arith.addf %54, %63 : vector<4x128xf32>
      %c2_i32_58 = arith.constant 2 : i32
      %65 = arith.muli %c2_i32_58, %3 : i32
      %c0_i32_59 = arith.constant 0 : i32
      %66 = arith.addi %65, %c0_i32_59 : i32
      %c2_i32_60 = arith.constant 2 : i32
      %67 = arith.addi %66, %c2_i32_60 : i32
      %c0_61 = arith.constant 0 : index
      %68 = arith.index_cast %67 : i32 to index
      %c0_62 = arith.constant 0 : index
      %c0_63 = arith.constant 0 : index
      %69 = vector.load %arg2[%c0_61, %68, %c0_62, %c0_63] : memref<1x6x6x128xbf16, #tpu.memory_space<vmem>>, vector<1x1x4x128xbf16>
      %70 = vector.shape_cast %69 : vector<1x1x4x128xbf16> to vector<4x128xbf16>
      %c6 = arith.constant 6 : index
      %c0_64 = arith.constant 0 : index
      %c0_65 = arith.constant 0 : index
      %71 = vector.load %arg3[%c6, %c0_64, %c0_65] : memref<9x128x128xbf16, #tpu.memory_space<vmem>>, vector<1x128x128xbf16>
      %72 = vector.shape_cast %71 : vector<1x128x128xbf16> to vector<128x128xbf16>
      %cst_66 = arith.constant dense<0.000000e+00> : vector<4x128xf32>
      %73 = tpu.matmul %70, %72, %cst_66 {dimension_numbers = #tpu.dot_dimension_numbers<[1], [0], [0], [1], [0, 0, 1, 1], [], []>} : vector<4x128xbf16>, vector<128x128xbf16>, vector<4x128xf32> -> vector<4x128xf32>
      %74 = arith.addf %64, %73 : vector<4x128xf32>
      %c2_i32_67 = arith.constant 2 : i32
      %75 = arith.muli %c2_i32_67, %3 : i32
      %c0_i32_68 = arith.constant 0 : i32
      %76 = arith.addi %75, %c0_i32_68 : i32
      %c2_i32_69 = arith.constant 2 : i32
      %77 = arith.addi %76, %c2_i32_69 : i32
      %c0_70 = arith.constant 0 : index
      %78 = arith.index_cast %77 : i32 to index
      %c1_71 = arith.constant 1 : index
      %c0_72 = arith.constant 0 : index
      %79 = vector.load %arg2[%c0_70, %78, %c1_71, %c0_72] : memref<1x6x6x128xbf16, #tpu.memory_space<vmem>>, vector<1x1x4x128xbf16>
      %80 = vector.shape_cast %79 : vector<1x1x4x128xbf16> to vector<4x128xbf16>
      %c7 = arith.constant 7 : index
      %c0_73 = arith.constant 0 : index
      %c0_74 = arith.constant 0 : index
      %81 = vector.load %arg3[%c7, %c0_73, %c0_74] : memref<9x128x128xbf16, #tpu.memory_space<vmem>>, vector<1x128x128xbf16>
      %82 = vector.shape_cast %81 : vector<1x128x128xbf16> to vector<128x128xbf16>
      %cst_75 = arith.constant dense<0.000000e+00> : vector<4x128xf32>
      %83 = tpu.matmul %80, %82, %cst_75 {dimension_numbers = #tpu.dot_dimension_numbers<[1], [0], [0], [1], [0, 0, 1, 1], [], []>} : vector<4x128xbf16>, vector<128x128xbf16>, vector<4x128xf32> -> vector<4x128xf32>
      %84 = arith.addf %74, %83 : vector<4x128xf32>
      %c2_i32_76 = arith.constant 2 : i32
      %85 = arith.muli %c2_i32_76, %3 : i32
      %c0_i32_77 = arith.constant 0 : i32
      %86 = arith.addi %85, %c0_i32_77 : i32
      %c2_i32_78 = arith.constant 2 : i32
      %87 = arith.addi %86, %c2_i32_78 : i32
      %c0_79 = arith.constant 0 : index
      %88 = arith.index_cast %87 : i32 to index
      %c2_80 = arith.constant 2 : index
      %c0_81 = arith.constant 0 : index
      %89 = vector.load %arg2[%c0_79, %88, %c2_80, %c0_81] : memref<1x6x6x128xbf16, #tpu.memory_space<vmem>>, vector<1x1x4x128xbf16>
      %90 = vector.shape_cast %89 : vector<1x1x4x128xbf16> to vector<4x128xbf16>
      %c8 = arith.constant 8 : index
      %c0_82 = arith.constant 0 : index
      %c0_83 = arith.constant 0 : index
      %91 = vector.load %arg3[%c8, %c0_82, %c0_83] : memref<9x128x128xbf16, #tpu.memory_space<vmem>>, vector<1x128x128xbf16>
      %92 = vector.shape_cast %91 : vector<1x128x128xbf16> to vector<128x128xbf16>
      %cst_84 = arith.constant dense<0.000000e+00> : vector<4x128xf32>
      %93 = tpu.matmul %90, %92, %cst_84 {dimension_numbers = #tpu.dot_dimension_numbers<[1], [0], [0], [1], [0, 0, 1, 1], [], []>} : vector<4x128xbf16>, vector<128x128xbf16>, vector<4x128xf32> -> vector<4x128xf32>
      %94 = arith.addf %84, %93 : vector<4x128xf32>
      %95 = vector.broadcast %0 : vector<1x128xf32> to vector<4x128xf32>
      %96 = arith.addf %94, %95 : vector<4x128xf32>
      %cst_85 = arith.constant 0.000000e+00 : f32
      %97 = vector.broadcast %cst_85 : f32 to vector<4x128xf32>
      %98 = arith.maximumf %96, %97 : vector<4x128xf32>
      %cst_86 = arith.constant 0.000000e+00 : f32
      %99 = vector.broadcast %cst_86 : f32 to vector<4x128xf32>
      %c2_i32_87 = arith.constant 2 : i32
      %100 = arith.muli %c2_i32_87, %3 : i32
      %c1_i32_88 = arith.constant 1 : i32
      %101 = arith.addi %100, %c1_i32_88 : i32
      %c0_i32_89 = arith.constant 0 : i32
      %102 = arith.addi %101, %c0_i32_89 : i32
      %c0_90 = arith.constant 0 : index
      %103 = arith.index_cast %102 : i32 to index
      %c0_91 = arith.constant 0 : index
      %c0_92 = arith.constant 0 : index
      %104 = vector.load %arg2[%c0_90, %103, %c0_91, %c0_92] : memref<1x6x6x128xbf16, #tpu.memory_space<vmem>>, vector<1x1x4x128xbf16>
      %105 = vector.shape_cast %104 : vector<1x1x4x128xbf16> to vector<4x128xbf16>
      %c0_93 = arith.constant 0 : index
      %c0_94 = arith.constant 0 : index
      %c0_95 = arith.constant 0 : index
      %106 = vector.load %arg3[%c0_93, %c0_94, %c0_95] : memref<9x128x128xbf16, #tpu.memory_space<vmem>>, vector<1x128x128xbf16>
      %107 = vector.shape_cast %106 : vector<1x128x128xbf16> to vector<128x128xbf16>
      %cst_96 = arith.constant dense<0.000000e+00> : vector<4x128xf32>
      %108 = tpu.matmul %105, %107, %cst_96 {dimension_numbers = #tpu.dot_dimension_numbers<[1], [0], [0], [1], [0, 0, 1, 1], [], []>} : vector<4x128xbf16>, vector<128x128xbf16>, vector<4x128xf32> -> vector<4x128xf32>
      %109 = arith.addf %99, %108 : vector<4x128xf32>
      %c2_i32_97 = arith.constant 2 : i32
      %110 = arith.muli %c2_i32_97, %3 : i32
      %c1_i32_98 = arith.constant 1 : i32
      %111 = arith.addi %110, %c1_i32_98 : i32
      %c0_i32_99 = arith.constant 0 : i32
      %112 = arith.addi %111, %c0_i32_99 : i32
      %c0_100 = arith.constant 0 : index
      %113 = arith.index_cast %112 : i32 to index
      %c1_101 = arith.constant 1 : index
      %c0_102 = arith.constant 0 : index
      %114 = vector.load %arg2[%c0_100, %113, %c1_101, %c0_102] : memref<1x6x6x128xbf16, #tpu.memory_space<vmem>>, vector<1x1x4x128xbf16>
      %115 = vector.shape_cast %114 : vector<1x1x4x128xbf16> to vector<4x128xbf16>
      %c1_103 = arith.constant 1 : index
      %c0_104 = arith.constant 0 : index
      %c0_105 = arith.constant 0 : index
      %116 = vector.load %arg3[%c1_103, %c0_104, %c0_105] : memref<9x128x128xbf16, #tpu.memory_space<vmem>>, vector<1x128x128xbf16>
      %117 = vector.shape_cast %116 : vector<1x128x128xbf16> to vector<128x128xbf16>
      %cst_106 = arith.constant dense<0.000000e+00> : vector<4x128xf32>
      %118 = tpu.matmul %115, %117, %cst_106 {dimension_numbers = #tpu.dot_dimension_numbers<[1], [0], [0], [1], [0, 0, 1, 1], [], []>} : vector<4x128xbf16>, vector<128x128xbf16>, vector<4x128xf32> -> vector<4x128xf32>
      %119 = arith.addf %109, %118 : vector<4x128xf32>
      %c2_i32_107 = arith.constant 2 : i32
      %120 = arith.muli %c2_i32_107, %3 : i32
      %c1_i32_108 = arith.constant 1 : i32
      %121 = arith.addi %120, %c1_i32_108 : i32
      %c0_i32_109 = arith.constant 0 : i32
      %122 = arith.addi %121, %c0_i32_109 : i32
      %c0_110 = arith.constant 0 : index
      %123 = arith.index_cast %122 : i32 to index
      %c2_111 = arith.constant 2 : index
      %c0_112 = arith.constant 0 : index
      %124 = vector.load %arg2[%c0_110, %123, %c2_111, %c0_112] : memref<1x6x6x128xbf16, #tpu.memory_space<vmem>>, vector<1x1x4x128xbf16>
      %125 = vector.shape_cast %124 : vector<1x1x4x128xbf16> to vector<4x128xbf16>
      %c2_113 = arith.constant 2 : index
      %c0_114 = arith.constant 0 : index
      %c0_115 = arith.constant 0 : index
      %126 = vector.load %arg3[%c2_113, %c0_114, %c0_115] : memref<9x128x128xbf16, #tpu.memory_space<vmem>>, vector<1x128x128xbf16>
      %127 = vector.shape_cast %126 : vector<1x128x128xbf16> to vector<128x128xbf16>
      %cst_116 = arith.constant dense<0.000000e+00> : vector<4x128xf32>
      %128 = tpu.matmul %125, %127, %cst_116 {dimension_numbers = #tpu.dot_dimension_numbers<[1], [0], [0], [1], [0, 0, 1, 1], [], []>} : vector<4x128xbf16>, vector<128x128xbf16>, vector<4x128xf32> -> vector<4x128xf32>
      %129 = arith.addf %119, %128 : vector<4x128xf32>
      %c2_i32_117 = arith.constant 2 : i32
      %130 = arith.muli %c2_i32_117, %3 : i32
      %c1_i32_118 = arith.constant 1 : i32
      %131 = arith.addi %130, %c1_i32_118 : i32
      %c1_i32_119 = arith.constant 1 : i32
      %132 = arith.addi %131, %c1_i32_119 : i32
      %c0_120 = arith.constant 0 : index
      %133 = arith.index_cast %132 : i32 to index
      %c0_121 = arith.constant 0 : index
      %c0_122 = arith.constant 0 : index
      %134 = vector.load %arg2[%c0_120, %133, %c0_121, %c0_122] : memref<1x6x6x128xbf16, #tpu.memory_space<vmem>>, vector<1x1x4x128xbf16>
      %135 = vector.shape_cast %134 : vector<1x1x4x128xbf16> to vector<4x128xbf16>
      %c3_123 = arith.constant 3 : index
      %c0_124 = arith.constant 0 : index
      %c0_125 = arith.constant 0 : index
      %136 = vector.load %arg3[%c3_123, %c0_124, %c0_125] : memref<9x128x128xbf16, #tpu.memory_space<vmem>>, vector<1x128x128xbf16>
      %137 = vector.shape_cast %136 : vector<1x128x128xbf16> to vector<128x128xbf16>
      %cst_126 = arith.constant dense<0.000000e+00> : vector<4x128xf32>
      %138 = tpu.matmul %135, %137, %cst_126 {dimension_numbers = #tpu.dot_dimension_numbers<[1], [0], [0], [1], [0, 0, 1, 1], [], []>} : vector<4x128xbf16>, vector<128x128xbf16>, vector<4x128xf32> -> vector<4x128xf32>
      %139 = arith.addf %129, %138 : vector<4x128xf32>
      %c2_i32_127 = arith.constant 2 : i32
      %140 = arith.muli %c2_i32_127, %3 : i32
      %c1_i32_128 = arith.constant 1 : i32
      %141 = arith.addi %140, %c1_i32_128 : i32
      %c1_i32_129 = arith.constant 1 : i32
      %142 = arith.addi %141, %c1_i32_129 : i32
      %c0_130 = arith.constant 0 : index
      %143 = arith.index_cast %142 : i32 to index
      %c1_131 = arith.constant 1 : index
      %c0_132 = arith.constant 0 : index
      %144 = vector.load %arg2[%c0_130, %143, %c1_131, %c0_132] : memref<1x6x6x128xbf16, #tpu.memory_space<vmem>>, vector<1x1x4x128xbf16>
      %145 = vector.shape_cast %144 : vector<1x1x4x128xbf16> to vector<4x128xbf16>
      %c4_133 = arith.constant 4 : index
      %c0_134 = arith.constant 0 : index
      %c0_135 = arith.constant 0 : index
      %146 = vector.load %arg3[%c4_133, %c0_134, %c0_135] : memref<9x128x128xbf16, #tpu.memory_space<vmem>>, vector<1x128x128xbf16>
      %147 = vector.shape_cast %146 : vector<1x128x128xbf16> to vector<128x128xbf16>
      %cst_136 = arith.constant dense<0.000000e+00> : vector<4x128xf32>
      %148 = tpu.matmul %145, %147, %cst_136 {dimension_numbers = #tpu.dot_dimension_numbers<[1], [0], [0], [1], [0, 0, 1, 1], [], []>} : vector<4x128xbf16>, vector<128x128xbf16>, vector<4x128xf32> -> vector<4x128xf32>
      %149 = arith.addf %139, %148 : vector<4x128xf32>
      %c2_i32_137 = arith.constant 2 : i32
      %150 = arith.muli %c2_i32_137, %3 : i32
      %c1_i32_138 = arith.constant 1 : i32
      %151 = arith.addi %150, %c1_i32_138 : i32
      %c1_i32_139 = arith.constant 1 : i32
      %152 = arith.addi %151, %c1_i32_139 : i32
      %c0_140 = arith.constant 0 : index
      %153 = arith.index_cast %152 : i32 to index
      %c2_141 = arith.constant 2 : index
      %c0_142 = arith.constant 0 : index
      %154 = vector.load %arg2[%c0_140, %153, %c2_141, %c0_142] : memref<1x6x6x128xbf16, #tpu.memory_space<vmem>>, vector<1x1x4x128xbf16>
      %155 = vector.shape_cast %154 : vector<1x1x4x128xbf16> to vector<4x128xbf16>
      %c5_143 = arith.constant 5 : index
      %c0_144 = arith.constant 0 : index
      %c0_145 = arith.constant 0 : index
      %156 = vector.load %arg3[%c5_143, %c0_144, %c0_145] : memref<9x128x128xbf16, #tpu.memory_space<vmem>>, vector<1x128x128xbf16>
      %157 = vector.shape_cast %156 : vector<1x128x128xbf16> to vector<128x128xbf16>
      %cst_146 = arith.constant dense<0.000000e+00> : vector<4x128xf32>
      %158 = tpu.matmul %155, %157, %cst_146 {dimension_numbers = #tpu.dot_dimension_numbers<[1], [0], [0], [1], [0, 0, 1, 1], [], []>} : vector<4x128xbf16>, vector<128x128xbf16>, vector<4x128xf32> -> vector<4x128xf32>
      %159 = arith.addf %149, %158 : vector<4x128xf32>
      %c2_i32_147 = arith.constant 2 : i32
      %160 = arith.muli %c2_i32_147, %3 : i32
      %c1_i32_148 = arith.constant 1 : i32
      %161 = arith.addi %160, %c1_i32_148 : i32
      %c2_i32_149 = arith.constant 2 : i32
      %162 = arith.addi %161, %c2_i32_149 : i32
      %c0_150 = arith.constant 0 : index
      %163 = arith.index_cast %162 : i32 to index
      %c0_151 = arith.constant 0 : index
      %c0_152 = arith.constant 0 : index
      %164 = vector.load %arg2[%c0_150, %163, %c0_151, %c0_152] : memref<1x6x6x128xbf16, #tpu.memory_space<vmem>>, vector<1x1x4x128xbf16>
      %165 = vector.shape_cast %164 : vector<1x1x4x128xbf16> to vector<4x128xbf16>
      %c6_153 = arith.constant 6 : index
      %c0_154 = arith.constant 0 : index
      %c0_155 = arith.constant 0 : index
      %166 = vector.load %arg3[%c6_153, %c0_154, %c0_155] : memref<9x128x128xbf16, #tpu.memory_space<vmem>>, vector<1x128x128xbf16>
      %167 = vector.shape_cast %166 : vector<1x128x128xbf16> to vector<128x128xbf16>
      %cst_156 = arith.constant dense<0.000000e+00> : vector<4x128xf32>
      %168 = tpu.matmul %165, %167, %cst_156 {dimension_numbers = #tpu.dot_dimension_numbers<[1], [0], [0], [1], [0, 0, 1, 1], [], []>} : vector<4x128xbf16>, vector<128x128xbf16>, vector<4x128xf32> -> vector<4x128xf32>
      %169 = arith.addf %159, %168 : vector<4x128xf32>
      %c2_i32_157 = arith.constant 2 : i32
      %170 = arith.muli %c2_i32_157, %3 : i32
      %c1_i32_158 = arith.constant 1 : i32
      %171 = arith.addi %170, %c1_i32_158 : i32
      %c2_i32_159 = arith.constant 2 : i32
      %172 = arith.addi %171, %c2_i32_159 : i32
      %c0_160 = arith.constant 0 : index
      %173 = arith.index_cast %172 : i32 to index
      %c1_161 = arith.constant 1 : index
      %c0_162 = arith.constant 0 : index
      %174 = vector.load %arg2[%c0_160, %173, %c1_161, %c0_162] : memref<1x6x6x128xbf16, #tpu.memory_space<vmem>>, vector<1x1x4x128xbf16>
      %175 = vector.shape_cast %174 : vector<1x1x4x128xbf16> to vector<4x128xbf16>
      %c7_163 = arith.constant 7 : index
      %c0_164 = arith.constant 0 : index
      %c0_165 = arith.constant 0 : index
      %176 = vector.load %arg3[%c7_163, %c0_164, %c0_165] : memref<9x128x128xbf16, #tpu.memory_space<vmem>>, vector<1x128x128xbf16>
      %177 = vector.shape_cast %176 : vector<1x128x128xbf16> to vector<128x128xbf16>
      %cst_166 = arith.constant dense<0.000000e+00> : vector<4x128xf32>
      %178 = tpu.matmul %175, %177, %cst_166 {dimension_numbers = #tpu.dot_dimension_numbers<[1], [0], [0], [1], [0, 0, 1, 1], [], []>} : vector<4x128xbf16>, vector<128x128xbf16>, vector<4x128xf32> -> vector<4x128xf32>
      %179 = arith.addf %169, %178 : vector<4x128xf32>
      %c2_i32_167 = arith.constant 2 : i32
      %180 = arith.muli %c2_i32_167, %3 : i32
      %c1_i32_168 = arith.constant 1 : i32
      %181 = arith.addi %180, %c1_i32_168 : i32
      %c2_i32_169 = arith.constant 2 : i32
      %182 = arith.addi %181, %c2_i32_169 : i32
      %c0_170 = arith.constant 0 : index
      %183 = arith.index_cast %182 : i32 to index
      %c2_171 = arith.constant 2 : index
      %c0_172 = arith.constant 0 : index
      %184 = vector.load %arg2[%c0_170, %183, %c2_171, %c0_172] : memref<1x6x6x128xbf16, #tpu.memory_space<vmem>>, vector<1x1x4x128xbf16>
      %185 = vector.shape_cast %184 : vector<1x1x4x128xbf16> to vector<4x128xbf16>
      %c8_173 = arith.constant 8 : index
      %c0_174 = arith.constant 0 : index
      %c0_175 = arith.constant 0 : index
      %186 = vector.load %arg3[%c8_173, %c0_174, %c0_175] : memref<9x128x128xbf16, #tpu.memory_space<vmem>>, vector<1x128x128xbf16>
      %187 = vector.shape_cast %186 : vector<1x128x128xbf16> to vector<128x128xbf16>
      %cst_176 = arith.constant dense<0.000000e+00> : vector<4x128xf32>
      %188 = tpu.matmul %185, %187, %cst_176 {dimension_numbers = #tpu.dot_dimension_numbers<[1], [0], [0], [1], [0, 0, 1, 1], [], []>} : vector<4x128xbf16>, vector<128x128xbf16>, vector<4x128xf32> -> vector<4x128xf32>
      %189 = arith.addf %179, %188 : vector<4x128xf32>
      %190 = vector.broadcast %0 : vector<1x128xf32> to vector<4x128xf32>
      %191 = arith.addf %189, %190 : vector<4x128xf32>
      %cst_177 = arith.constant 0.000000e+00 : f32
      %192 = vector.broadcast %cst_177 : f32 to vector<4x128xf32>
      %193 = arith.maximumf %191, %192 : vector<4x128xf32>
      %194 = arith.maximumf %98, %193 : vector<4x128xf32>
      %c0_178 = arith.constant 0 : index
      %c0_179 = arith.constant 0 : index
      %195 = vector.load %arg6[%c0_178, %c0_179] : memref<4x128xf32, #tpu.memory_space<vmem>>, vector<4x128xf32>
      tpu.vector_store %arg6[%c0_178, %c0_179], %194 {strides = array<i32>} : memref<4x128xf32, #tpu.memory_space<vmem>>, vector<4x128xf32>,
      %c0_180 = arith.constant 0 : index
      %c0_181 = arith.constant 0 : index
      %196 = tpu.strided_load %arg6[%c0_180, %c0_181] {strides = array<i32: 2, 1>} : memref<4x128xf32, #tpu.memory_space<vmem>>, vector<2x128xf32>
      %c1_182 = arith.constant 1 : index
      %c0_183 = arith.constant 0 : index
      %197 = tpu.strided_load %arg6[%c1_182, %c0_183] {strides = array<i32: 2, 1>} : memref<4x128xf32, #tpu.memory_space<vmem>>, vector<2x128xf32>
      %198 = arith.maximumf %196, %197 : vector<2x128xf32>
      %199 = arith.truncf %198 : vector<2x128xf32> to vector<2x128xbf16>
      %c0_184 = arith.constant 0 : index
      %200 = arith.index_cast %arg7 : i32 to index
      %c0_185 = arith.constant 0 : index
      %c0_186 = arith.constant 0 : index
      %201 = vector.load %arg5[%c0_184, %200, %c0_185, %c0_186] : memref<1x2x2x128xbf16, #tpu.memory_space<vmem>>, vector<1x1x2x128xbf16>
      %202 = vector.shape_cast %201 : vector<1x1x2x128xbf16> to vector<2x128xbf16>
      %203 = vector.shape_cast %199 : vector<2x128xbf16> to vector<1x1x2x128xbf16>
      tpu.vector_store %arg5[%c0_184, %200, %c0_185, %c0_186], %203 {strides = array<i32>} : memref<1x2x2x128xbf16, #tpu.memory_space<vmem>>, vector<1x1x2x128xbf16>,
    }
    %c2_i32_1 = arith.constant 2 : i32
    return
  }
  func.func @transform_0(%arg0: i32, %arg1: i32) -> (i32, i32, i32, i32) {
    %c0_i32 = arith.constant 0 : i32
    %c0_i32_0 = arith.constant 0 : i32
    %c0_i32_1 = arith.constant 0 : i32
    %c0_i32_2 = arith.constant 0 : i32
    return %arg0, %c0_i32, %c0_i32_0, %c0_i32_1 : i32, i32, i32, i32
  }
  func.func @transform_1(%arg0: i32, %arg1: i32) -> (i32, i32, i32) {
    %c0_i32 = arith.constant 0 : i32
    %c0_i32_0 = arith.constant 0 : i32
    %c0_i32_1 = arith.constant 0 : i32
    %c0_i32_2 = arith.constant 0 : i32
    return %c0_i32, %c0_i32_0, %c0_i32_1 : i32, i32, i32
  }
  func.func @transform_2(%arg0: i32, %arg1: i32) -> (i32, i32) {
    %c0_i32 = arith.constant 0 : i32
    %c0_i32_0 = arith.constant 0 : i32
    %c0_i32_1 = arith.constant 0 : i32
    return %c0_i32, %c0_i32_0 : i32, i32
  }
  func.func @transform_3(%arg0: i32, %arg1: i32) -> (i32, i32, i32, i32) {
    %c0_i32 = arith.constant 0 : i32
    %c0_i32_0 = arith.constant 0 : i32
    %c0_i32_1 = arith.constant 0 : i32
    return %arg0, %arg1, %c0_i32, %c0_i32_0 : i32, i32, i32, i32
  }
}

module attributes {stable_mosaic.version = 11 : i64} {
  func.func @_linear_kernel(%arg0: i32, %arg1: memref<2x256xbf16, #tpu.memory_space<vmem>>, %arg2: memref<256x128xbf16, #tpu.memory_space<vmem>>, %arg3: memref<1x128xf32, #tpu.memory_space<vmem>>, %arg4: memref<2x128xf32, #tpu.memory_space<vmem>>) attributes {dimension_semantics = [#tpu.dimension_semantics<parallel>], iteration_bounds = array<i64: 1>, scalar_prefetch = 0 : i64, scratch_operands = 0 : i64, tpu.core_type = #tpu.core_type<tc>, window_params = [{transform_indices = @transform_0, window_bounds = array<i64: 2, 256>}, {pipeline_mode = #tpu.pipeline_mode<synchronous>, transform_indices = @transform_1, window_bounds = array<i64: 256, 128>}, {pipeline_mode = #tpu.pipeline_mode<synchronous>, transform_indices = @transform_2, window_bounds = array<i64: 1, 128>}, {transform_indices = @transform_3, window_bounds = array<i64: 2, 128>}]} {
    %c0 = arith.constant 0 : index
    %c0_0 = arith.constant 0 : index
    %0 = vector.load %arg1[%c0, %c0_0] : memref<2x256xbf16, #tpu.memory_space<vmem>>, vector<2x256xbf16>
    %c0_1 = arith.constant 0 : index
    %c0_2 = arith.constant 0 : index
    %1 = vector.load %arg2[%c0_1, %c0_2] : memref<256x128xbf16, #tpu.memory_space<vmem>>, vector<256x128xbf16>
    %cst = arith.constant dense<0.000000e+00> : vector<2x128xf32>
    %2 = tpu.matmul %0, %1, %cst {dimension_numbers = #tpu.dot_dimension_numbers<[1], [0], [0], [1], [0, 0, 1, 1], [], []>} : vector<2x256xbf16>, vector<256x128xbf16>, vector<2x128xf32> -> vector<2x128xf32>
    %c0_3 = arith.constant 0 : index
    %c0_4 = arith.constant 0 : index
    %3 = vector.load %arg3[%c0_3, %c0_4] : memref<1x128xf32, #tpu.memory_space<vmem>>, vector<1x128xf32>
    %4 = vector.broadcast %3 : vector<1x128xf32> to vector<2x128xf32>
    %5 = arith.addf %2, %4 : vector<2x128xf32>
    %c0_5 = arith.constant 0 : index
    %c0_6 = arith.constant 0 : index
    %6 = vector.load %arg4[%c0_5, %c0_6] : memref<2x128xf32, #tpu.memory_space<vmem>>, vector<2x128xf32>
    tpu.vector_store %arg4[%c0_5, %c0_6], %5 {strides = array<i32>} : memref<2x128xf32, #tpu.memory_space<vmem>>, vector<2x128xf32>,
    return
  }
  func.func @transform_0(%arg0: i32) -> (i32, i32) {
    %c0_i32 = arith.constant 0 : i32
    %c0_i32_0 = arith.constant 0 : i32
    return %arg0, %c0_i32 : i32, i32
  }
  func.func @transform_1(%arg0: i32) -> (i32, i32) {
    %c0_i32 = arith.constant 0 : i32
    %c0_i32_0 = arith.constant 0 : i32
    %c0_i32_1 = arith.constant 0 : i32
    return %c0_i32, %c0_i32_0 : i32, i32
  }
  func.func @transform_2(%arg0: i32) -> (i32, i32) {
    %c0_i32 = arith.constant 0 : i32
    %c0_i32_0 = arith.constant 0 : i32
    %c0_i32_1 = arith.constant 0 : i32
    return %c0_i32, %c0_i32_0 : i32, i32
  }
  func.func @transform_3(%arg0: i32) -> (i32, i32) {
    %c0_i32 = arith.constant 0 : i32
    %c0_i32_0 = arith.constant 0 : i32
    return %arg0, %c0_i32 : i32, i32
  }
}

</mosaic_0001>

<bundles_post_ra>
// kernel: simple_cnn_forward.6
= control target key start
LH: loop header
LB: loop body
LE: loop exit
PB: predicated region body
PF: predicated region fallthrough
CT: control target
= control target key end

     0   :  { %s2197_s12 = smov 0   ;;  %s2199_s13 = smov 0   ;;  %s2463_s0 = inlined_call_operand.vmem [shape: bf16[2,34,34,8], index: 0, kind: input, shape index: {}]   ;;  %s2464_s1 = inlined_call_operand.vmem [shape: bf16[9,8,128], index: 1, kind: input, shape index: {}]   ;;  %s2465_s2 = inlined_call_operand.vmem [shape: f32[1,128], index: 2, kind: input, shape index: {}]   ;;  %s2466_s3 = inlined_call_operand.vmem [shape: bf16[2,16,16,128], index: 3, kind: output, shape index: {}]  }
   0x1   :  { %s2201_s14 = smov 0   ;;  %s2203_s15 = smov 0  }
   0x2   :  { %s2205_s16 = smov 0  }
   0x3 LB: > { %s22_s17 = sadd.s32 1, %s2163_s14  ;;  %s25_s18 = sadd.s32 1, %s2167_s15  ;;  %s2171_s16 = sphi %s2205_s16, %s13_s16   ;;  %s2167_s15 = sphi %s2203_s15, %s2470_s15   ;;  %s2163_s14 = sphi %s2201_s14, %s2469_s14   ;;  %s2159_s13 = sphi %s2199_s13, %s2468_s13   ;;  %s2155_s12 = sphi %s2197_s12, %s2467_s12  }
   0x4   : > { %p23_p0 = scmp.ge.s32.totalorder %s22_s17, 2  ;;  %p1683_p1 = scmp.ge.s32.totalorder %s2171_s16, 1 }
   0x5   : > { %p151_p2 = scmp.lt.s32.totalorder %s2171_s16, 5 }
   0x6   : > { %s2472_s17 = smov (%p23_p0, %s22_s17), 0  ;;  %s2474_s18 = smov (!%p23_p0, %s25_s18), %s2167_s15 }
   0x7   : > { %p152_p3 = pnand %p1683_p1, %p151_p2  ;;  %p27_p4 = scmp.ge.s32.totalorder %s2474_s18, 2 }
   0x8   : > { %p180_p5 = scmp.lt.s32.totalorder (!%p152_p3), %s2159_s13, 1  ;;  %s2227_s19 = sshll.u32 (!%p152_p3), %s2155_s12, 3  ;;  %v2232_v0 = vld [vmem:[%s2465_s2] ss:$0 sm:$0xff] (!%p152_p3) }
   0x9   : > { %s2476_s18 = smov (%p27_p4, %s2474_s18), 0  ;;  %155 = sbr.rel (%p152_p3) target bundleno = 370 (0x172), region = 32 }
   0xa   : > { %p188_p6 = scmp.lt.s32.totalorder (!%p152_p3), %s2227_s19, 15  ;;  %s2246_s7 = smov (!%p152_p3), 0  }
  0x10   : > { %s2478_s13 = smov (!%p180_p5, %s2159_s13), 1 }
  0x11   : > { %s189_s22 = scalar_select %p188_p6, %s2227_s19, 15 }
  0x12   : > { %s2058_s23 = smul.u32 680, %s2478_s13  ;;  %s1687_s24 = sshll.u32 %s2478_s13, 5 }
  0x13   : > { %s1686_s25 = sshll.u32 %s189_s22, 1 }
  0x14   : > { %s2239_s28 = scalar_lea.vmem %s2463_s0, %s2058_s23  ;;  %s192_s29 = sadd.s32 %s1687_s24, %s1686_s25 }
  0x15   : > { %s1688_s30 = sshll.u32 %s192_s29, 2 }
  0x16   : > { %s2244_s6 = scalar_lea.vmem %s2466_s3, %s1688_s30 }
  0x17 LB: >> { %v1693_v1 = vld [vmem:[%s2464_s1 + $0x4] sm:$0xf]  ;;  %vm259_vm0 = vcmask 1043456   ;;  %v214_v3 = vld [vmem:[%s2464_s1] sm:$0xf]  ;;  %s205_s12 = sadd.s32 %s2175_s7, %s2227_s19  ;;  %vm252_vm2 = vcmask 64512   ;;  %s2175_s7 = sphi %s2246_s7, %s203_s7  }
  0x18   : >> { %2040 = vmatprep.subr.msk.bf16.mxu0 %vm259_vm0, %v1693_v1  ;;  %2049 = vmatprep.subr.msk.bf16.mxu1 %vm259_vm0, %v1693_v1  ;;  %v261_v2 = vsel %vm259_vm0, %v1693_v1, 0  ;;  %s1805_s13 = smul.u32 40, %s205_s12  ;;  %vm231_vm1 = vsmask.f32 7424  ;;  %v1701_v31 = vld [vmem:[%s2464_s1 + $0x8] sm:$0xf] }
  0x19   : >> { %1869 = vmatpush3.bf16.msra.mxu0 %v261_v2  ;;  %1923 = vmatpush3.bf16.msra.mxu1 %v261_v2  ;;  %v317_v34 = vsel %vm259_vm0, %v214_v3, 0  ;;  %v387_v46 = vsel %vm259_vm0, %v1701_v31, 0  ;;  %vm374_vm3 = vcmask 1046528   ;;  %v1712_v61 = vld [vmem:[%s2464_s1 + $0xc] sm:$0xf]  ;;  %s1808_s11 = sshll.u32 %s2175_s7, 3 }
  0x1a   : >> { %2041 = vmatprep.subr.msk.bf16.mxu0 %vm259_vm0, %v214_v3  ;;  %2050 = vmatprep.subr.msk.bf16.mxu1 %vm259_vm0, %v214_v3  ;;  %s2265_s20 = scalar_lea.vmem %s2239_s28, %s1805_s13  ;;  %s1557_s12 = scalar_lea.vmem %s2244_s6, %s1808_s11 }
  0x1b   : >> { %v210_v4 = vld [vmem:[%s2265_s20] sm:$0xf]  ;;  %v211_v5 = vld [vmem:[%s2265_s20 + $0x4] sm:$0xf]  ;;  %v2270_v7 = vld [vmem:[%s2265_s20 + $0x8] sm:$0xff]   ;;  %s203_s7 = sadd.s32 1, %s2175_s7  }
  0x1c   : >> { %v1694_v6 = vcombine.low %v210_v4, %v211_v5  ;;  %v1717_v8 = vld [vmem:[%s2265_s20 + $0x14] sm:$0xf]  ;;  %v1718_v9 = vld [vmem:[%s2265_s20 + $0x18] sm:$0xf]  ;;  %v240_v12 = vshll.u32 %v2270_v7, 16  ;;  %v244_v13 = vshrl.u32 %v2270_v7, 16 }
  0x1d   : >> { %v2277_v14 = vld [vmem:[%s2265_s20 + $0x1c] sm:$0xff]   ;;  %v1723_v15 = vcombine.low %v1717_v8, %v1718_v9  ;;  %v2280_v16 = vld [vmem:[%s2265_s20 + $0x10] ss:$0 sps:$4 sm:$0x11]   ;;  %v2298_v39 = vld [vmem:[%s2265_s20 + $0x14] sm:$0xff]   ;;  %v376_v48 = vrot.slane %v2270_v7, 1 }
  0x1e   : >> { %v233_v10 = vshrl.u32 %v1694_v6, 16  ;;  %v235_v11 = vshll.u32 %v1694_v6, 16  ;;  %v242_v18 = vrot.slane %v240_v12, 1  ;;  %v552_v19 = vshll.u32 %v2277_v14, 16  ;;  %v368_v35 = vld [vmem:[%s2265_s20] sm:$0xe] }
  0x1f   : >> { %v556_v20 = vshrl.u32 %v2277_v14, 16  ;;  %v545_v21 = vshrl.u32 %v1723_v15, 16  ;;  %v547_v22 = vshll.u32 %v1723_v15, 16  ;;  %v248_v23 = vshll.u32 %v2280_v16, 16  ;;  %v1728_v40 = vld [vmem:[%s2265_s20 + $0x14] sm:$0xe] }
  0x20   : >> { %v237_v17 = vrot.slane %v235_v11, 1  ;;  %v2286_v24 = vld [vmem:[%s2265_s20 + $0x24] ss:$0 sps:$4 sm:$0x11]   ;;  %v246_v26 = vor.u32 %v244_v13, %v242_v18  ;;  %v554_v27 = vrot.slane %v552_v19, 1  ;;  %v1702_v43 = vcombine.low %v368_v35, %v211_v5  ;;  %v2114_v60 = vld [vmem:[%s2265_s20 + $0x1c] sm:$0xff]  }
  0x21   : >> { %v549_v28 = vrot.slane %v547_v22, 1  ;;  %v250_v29 = vrot.slane %v248_v23, 1  ;;  %v560_v30 = vshll.u32 %v2286_v24, 16  ;;  %v1730_v44 = vcombine.low %v1728_v40, %v1718_v9  ;;  %v2126_v45 = vld [vmem:[%s2265_s20 + $0x44] sm:$0xff]   ;;  %v1785_v51 = vld [vmem:[%s2265_s20 + $0x3c] sm:$0xf] }
  0x22   : >> { %v238_v25 = vor.u32 %v237_v17, %v233_v10  ;;  %v558_v33 = vor.u32 %v556_v20, %v554_v27  ;;  %v375_v47 = vrot.slane %v1702_v43, 1  ;;  %v633_v50 = vrot.slane %v2277_v14, 1  ;;  %v1786_v52 = vld [vmem:[%s2265_s20 + $0x40] sm:$0xf]  ;;  %v1795_v58 = vld [vmem:[%s2265_s20 + $0x3c] sm:$0xe] }
  0x23   : >> { %v550_v36 = vor.u32 %v549_v28, %v545_v21  ;;  %v251_v37 = vsel %vm231_vm1, %v246_v26, %v250_v29  ;;  %v562_v38 = vrot.slane %v560_v30, 1  ;;  %v632_v49 = vrot.slane %v1730_v44, 1  ;;  %v2127_v57 = vld [vmem:[%s2265_s20 + $0x4c] ss:$0 sps:$4 sm:$0x11]   ;;  %p200_p7 = scmp.ge.s32.totalorder %s203_s7, 8  }
  0x24   : >> { %v243_v32 = vsel %vm231_vm1, %v238_v25, %v242_v18  ;;  %v1790_v53 = vcombine.low %v1785_v51, %v1786_v52  ;;  %v1383_v54 = vshll.u32 %v2126_v45, 16  ;;  %v1387_v55 = vshrl.u32 %v2126_v45, 16  ;;  %v1745_v17 = vld [vmem:[%s2265_s20 + $0x28] sm:$0xf]  ;;  %v1746_v18 = vld [vmem:[%s2265_s20 + $0x2c] sm:$0xf] }
  0x25   : >> { %1870 = vmatprep.mubr.msk.bf16.mxu0 %vm252_vm2, %v243_v32  ;;  %v2303_v41 = vsel %vm231_vm1, %v550_v36, %v554_v27  ;;  %v2306_v42 = vsel %vm231_vm1, %v558_v33, %v562_v38  ;;  %v377_v56 = vsel %vm374_vm3, %v375_v47, %v376_v48  ;;  %v1459_v59 = vrot.slane %v2126_v45, 1  ;;  %v1722_v23 = vld [vmem:[%s2464_s1 + $0x10] sm:$0xf]  ;;  %v2117_v25 = vld [vmem:[%s2265_s20 + $0x28] sm:$0xff]   ;;  %v1740_v47 = vld [vmem:[%s2464_s1 + $0x18] sm:$0xf] }
  0x26   : >> { %1871 = vmatmul.mubr.msk.bf16.vlgmr.msra.gmra.mrb[0].mxu0 %vm252_vm2, %v251_v37  ;;  %1924 = vmatprep.mubr.msk.bf16.mxu1 %vm252_vm2, %v2303_v41  ;;  %v1376_v62 = vshrl.u32 %v1790_v53, 16  ;;  %v1378_v63 = vshll.u32 %v1790_v53, 16  ;;  %v1385_v1 = vrot.slane %v1383_v54, 1  ;;  %v1796_v2 = vcombine.low %v1795_v58, %v1786_v52  ;;  %v2118_v33 = vld [vmem:[%s2265_s20 + $0x30] sm:$0xff]   ;;  %v1756_v37 = vld [vmem:[%s2265_s20 + $0x28] sm:$0xe] }
  0x27   : >> { %1875 = vmatpush3.bf16.msra.mxu0 %v317_v34  ;;  %1876 = vmatprep.mubr.msk.bf16.mxu0 %vm252_vm2, %v1694_v6  ;;  %v1391_v3 = vshll.u32 %v2127_v57, 16  ;;  %v1461_v4 = vrot.slane %v2127_v57, 1  ;;  %v2334_v5 = vsel %vm374_vm3, %v632_v49, %v633_v50  ;;  %v378_v14 = vrot.slane %v2280_v16, 1  ;;  %v2121_v35 = vld [vmem:[%s2265_s20 + $0x38] ss:$0 sps:$4 sm:$0x11]  }
  0x28   : >> { %2042 = vmatprep.subr.msk.bf16.mxu0 %vm259_vm0, %v1701_v31  ;;  %1925 = vmatmul.mubr.msk.bf16.vlgmr.msra.gmra.mrb[0].mxu1 %vm252_vm2, %v2306_v42  ;;  %v1380_v6 = vrot.slane %v1378_v63, 1  ;;  %v1389_v8 = vor.u32 %v1387_v55, %v1385_v1  ;;  %v1458_v9 = vrot.slane %v1796_v2, 1  ;;  %v635_v19 = vrot.slane %v2286_v24, 1  ;;  %v2120_v24 = vld [vmem:[%s2265_s20 + $0x30] sm:$0xff]   ;;  %v1750_v51 = vld [vmem:[%s2464_s1 + $0x1c] sm:$0xf] }
  0x29   : >> { %1929 = vmatpush3.bf16.msra.mxu1 %v317_v34  ;;  %1930 = vmatprep.mubr.msk.bf16.mxu1 %vm252_vm2, %v2298_v39  ;;  %v1393_v10 = vrot.slane %v1391_v3, 1  ;;  %v2338_v11 = vsel %vm374_vm3, %v1459_v59, %v1461_v4  ;;  %v379_v20 = vsel %vm374_vm3, %v376_v48, %v378_v14  ;;  %v1751_v21 = vcombine.low %v1745_v17, %v1746_v18  ;;  %v1729_v34 = vld [vmem:[%s2464_s1 + $0x14] sm:$0xf]  ;;  %v2123_v53 = vld [vmem:[%s2265_s20 + $0x3c] sm:$0xff]   ;;  %v2124_v55 = vld [vmem:[%s2265_s20 + $0x44] sm:$0xff]  }
  0x2a   : >> { %2051 = vmatprep.subr.msk.bf16.mxu1 %vm259_vm0, %v1701_v31  ;;  %v2342_v12 = vsel %vm374_vm3, %v1458_v9, %v1459_v59  ;;  %v469_v22 = vsel %vm259_vm0, %v1712_v61, 0  ;;  %v636_v16 = vsel %vm374_vm3, %v633_v50, %v635_v19  ;;  %v809_v29 = vshll.u32 %v2120_v24, 16 }
  0x2b   : >> { %v2347_v13 = vsel %vm231_vm1, %v1389_v8, %v1393_v10  ;;  %v804_v26 = vshll.u32 %v1751_v21, 16  ;;  %v802_v27 = vshrl.u32 %v1751_v21, 16  ;;  %v571_v32 = vsel %vm259_vm0, %v1722_v23, 0 }
  0x2c   : >> { %v811_v31 = vrot.slane %v809_v29, 1  ;;  %v813_v38 = vshrl.u32 %v2120_v24, 16  ;;  %v1758_v40 = vcombine.low %v1756_v37, %v1746_v18  ;;  %v892_v50 = vrot.slane %v2121_v35, 1 }
  0x2d   : >> { %v806_v28 = vrot.slane %v804_v26, 1  ;;  %v828_v54 = vsel %vm259_vm0, %v1750_v51, 0 }
  0x2e   : >> { %v815_v43 = vor.u32 %v813_v38, %v811_v31  ;;  %v889_v45 = vrot.slane %v1758_v40, 1 }
  0x2f   : >> { %v807_v30 = vor.u32 %v806_v28, %v802_v27 }
  0x31   : >> { %v812_v36 = vsel %vm231_vm1, %v807_v30, %v811_v31 }
  0x32   : >> { %1877 = vmatmul.mubr.msk.bf16.vlgmr.msra.gmra.mrb[0].mxu0 %vm252_vm2, %v2270_v7  ;;  %v1381_v7 = vor.u32 %v1380_v6, %v1376_v62 }
  0x33   : >> { %1881 = vmatpush3.bf16.msra.mxu0 %v387_v46  ;;  %1882 = vmatprep.mubr.msk.bf16.mxu0 %vm252_vm2, %v377_v56  ;;  %v1757_v56 = vld [vmem:[%s2464_s1 + $0x20] sm:$0xf] }
  0x34   : >> { %2043 = vmatprep.subr.msk.bf16.mxu0 %vm259_vm0, %v1712_v61  ;;  %1931 = vmatmul.mubr.msk.bf16.vlgmr.msra.gmra.mrb[0].mxu1 %vm252_vm2, %v2114_v60  ;;  %v2352_v15 = vsel %vm231_vm1, %v1381_v7, %v1385_v1  ;;  %v901_v57 = vsel %vm259_vm0, %v1757_v56, 0 }
  0x35   : >> { %1935 = vmatpush3.bf16.msra.mxu1 %v387_v46  ;;  %1936 = vmatprep.mubr.msk.bf16.mxu1 %vm252_vm2, %v2334_v5  ;;  %v890_v46 = vrot.slane %v2120_v24, 1 }
  0x36   : >> { %2052 = vmatprep.subr.msk.bf16.mxu1 %vm259_vm0, %v1712_v61 }
  0x37   : >> { %v891_v49 = vsel %vm374_vm3, %v889_v45, %v890_v46  ;;  %v893_v52 = vsel %vm374_vm3, %v890_v46, %v892_v50 }
  0x3e   : >> { %1883 = vmatmul.mubr.msk.bf16.vlgmr.msra.gmra.mrb[0].mxu0 %vm252_vm2, %v379_v20 }
  0x3f   : >> { %1887 = vmatpush3.bf16.msra.mxu0 %v469_v22  ;;  %1888 = vmatprep.mubr.msk.bf16.mxu0 %vm252_vm2, %v2298_v39  ;;  %v817_v39 = vshll.u32 %v2121_v35, 16 }
  0x40   : >> { %2044 = vmatprep.subr.msk.bf16.mxu0 %vm259_vm0, %v1722_v23  ;;  %1937 = vmatmul.mubr.msk.bf16.vlgmr.msra.gmra.mrb[0].mxu1 %vm252_vm2, %v636_v16 }
  0x41   : >> { %1941 = vmatpush3.bf16.msra.mxu1 %v469_v22  ;;  %1942 = vmatprep.mubr.msk.bf16.mxu1 %vm252_vm2, %v2117_v25  ;;  %v819_v44 = vrot.slane %v817_v39, 1 }
  0x42   : >> { %2053 = vmatprep.subr.msk.bf16.mxu1 %vm259_vm0, %v1722_v23 }
  0x43   : >> { %v820_v48 = vsel %vm231_vm1, %v815_v43, %v819_v44 }
  0x4a   : >> { %1889 = vmatmul.mubr.msk.bf16.vlgmr.msra.gmra.mrb[0].mxu0 %vm252_vm2, %v2114_v60 }
  0x4b   : >> { %1893 = vmatpush3.bf16.msra.mxu0 %v571_v32  ;;  %1894 = vmatprep.mubr.msk.bf16.mxu0 %vm252_vm2, %v2303_v41  ;;  %v644_v41 = vsel %vm259_vm0, %v1729_v34, 0 }
  0x4c   : >> { %2045 = vmatprep.subr.msk.bf16.mxu0 %vm259_vm0, %v1729_v34  ;;  %1943 = vmatmul.mubr.msk.bf16.vlgmr.msra.gmra.mrb[0].mxu1 %vm252_vm2, %v2118_v33 }
  0x4d   : >> { %1947 = vmatpush3.bf16.msra.mxu1 %v571_v32  ;;  %1948 = vmatprep.mubr.msk.bf16.mxu1 %vm252_vm2, %v812_v36 }
  0x4e   : >> { %2054 = vmatprep.subr.msk.bf16.mxu1 %vm259_vm0, %v1729_v34 }
  0x56   : >> { %1895 = vmatmul.mubr.msk.bf16.vlgmr.msra.gmra.mrb[0].mxu0 %vm252_vm2, %v2306_v42  ;;  %v726_v42 = vsel %vm259_vm0, %v1740_v47, 0 }
  0x57   : >> { %1899 = vmatpush3.bf16.msra.mxu0 %v644_v41  ;;  %1900 = vmatprep.mubr.msk.bf16.mxu0 %vm252_vm2, %v2334_v5 }
  0x58   : >> { %2046 = vmatprep.subr.msk.bf16.mxu0 %vm259_vm0, %v1740_v47  ;;  %1949 = vmatmul.mubr.msk.bf16.vlgmr.msra.gmra.mrb[0].mxu1 %vm252_vm2, %v820_v48 }
  0x59   : >> { %1953 = vmatpush3.bf16.msra.mxu1 %v644_v41  ;;  %1954 = vmatprep.mubr.msk.bf16.mxu1 %vm252_vm2, %v891_v49 }
  0x5a   : >> { %2055 = vmatprep.subr.msk.bf16.mxu1 %vm259_vm0, %v1740_v47 }
  0x62   : >> { %1901 = vmatmul.mubr.msk.bf16.vlgmr.msra.gmra.mrb[0].mxu0 %vm252_vm2, %v636_v16 }
  0x63   : >> { %1905 = vmatpush3.bf16.msra.mxu0 %v726_v42  ;;  %1906 = vmatprep.mubr.msk.bf16.mxu0 %vm252_vm2, %v2117_v25 }
  0x64   : >> { %2047 = vmatprep.subr.msk.bf16.mxu0 %vm259_vm0, %v1750_v51  ;;  %1955 = vmatmul.mubr.msk.bf16.vlgmr.msra.gmra.mrb[0].mxu1 %vm252_vm2, %v893_v52 }
  0x65   : >> { %1959 = vmatpush3.bf16.msra.mxu1 %v726_v42  ;;  %1960 = vmatprep.mubr.msk.bf16.mxu1 %vm252_vm2, %v2123_v53 }
  0x66   : >> { %2056 = vmatprep.subr.msk.bf16.mxu1 %vm259_vm0, %v1750_v51 }
  0x6e   : >> { %1907 = vmatmul.mubr.msk.bf16.vlgmr.msra.gmra.mrb[0].mxu0 %vm252_vm2, %v2118_v33 }
  0x6f   : >> { %1911 = vmatpush3.bf16.msra.mxu0 %v828_v54  ;;  %1912 = vmatprep.mubr.msk.bf16.mxu0 %vm252_vm2, %v812_v36 }
  0x70   : >> { %2048 = vmatprep.subr.msk.bf16.mxu0 %vm259_vm0, %v1757_v56  ;;  %1961 = vmatmul.mubr.msk.bf16.vlgmr.msra.gmra.mrb[0].mxu1 %vm252_vm2, %v2124_v55 }
  0x71   : >> { %1965 = vmatpush3.bf16.msra.mxu1 %v828_v54  ;;  %1966 = vmatprep.mubr.msk.bf16.mxu1 %vm252_vm2, %v2352_v15 }
  0x72   : >> { %2057 = vmatprep.subr.msk.bf16.mxu1 %vm259_vm0, %v1757_v56 }
  0x7a   : >> { %1913 = vmatmul.mubr.msk.bf16.vlgmr.msra.gmra.mrb[0].mxu0 %vm252_vm2, %v820_v48 }
  0x7b   : >> { %1917 = vmatpush3.bf16.msra.mxu0 %v901_v57  ;;  %1918 = vmatprep.mubr.msk.bf16.mxu0 %vm252_vm2, %v891_v49 }
  0x7c   : >> { %1967 = vmatmul.mubr.msk.bf16.vlgmr.msra.gmra.mrb[0].mxu1 %vm252_vm2, %v2347_v13 }
  0x7d   : >> { %1971 = vmatpush3.bf16.msra.mxu1 %v901_v57  ;;  %1972 = vmatprep.mubr.msk.bf16.mxu1 %vm252_vm2, %v2342_v12 }
  0x86   : >> { %1919 = vmatmul.mubr.msk.bf16.vlgmr.msra.gmra.mrb[0].mxu0 %vm252_vm2, %v893_v52 }
  0x88   : >> { %1973 = vmatmul.mubr.msk.bf16.vlgmr.msra.gmra.mrb[0].mxu1 %vm252_vm2, %v2338_v11 }
 0x159   : >> { %v1920_v58 = vpop.f32.mrb[0].mxu0 }
 0x15a   : >> { %v964_v59 = vadd.f32 %v1920_v58, %v2232_v0  ;;  %v937_v60 = vpop.f32.mrb[1].mxu0 }
 0x15b   : >> { %v962_v61 = vadd.f32 %v2232_v0, %v937_v60  ;;  %v1921_v62 = vpop.f32.mrb[2].mxu0  ;;  %v1974_v63 = vpop.f32.mrb[0].mxu1 }
 0x15c   : >> { %v965_v1 = vadd.f32 %v1921_v62, %v2232_v0  ;;  %v940_v2 = vpop.f32.mrb[3].mxu0  ;;  %v968_v3 = vmax.f32 %v964_v59, 0.0  ;;  %v1524_v4 = vadd.f32 %v1974_v63, %v2232_v0  ;;  %v1503_v5 = vpop.f32.mrb[1].mxu1 }
 0x15d   : >> { %v963_v6 = vadd.f32 %v2232_v0, %v940_v2  ;;  %v966_v8 = vmax.f32 %v962_v61, 0.0  ;;  %v1522_v9 = vadd.f32 %v2232_v0, %v1503_v5  ;;  %v1975_v10 = vpop.f32.mrb[2].mxu1 }
 0x15e   : >> { %v1528_v11 = vmax.f32 %v1524_v4, 0.0  ;;  %v969_v7 = vmax.f32 %v965_v1, 0.0  ;;  %v1525_v12 = vadd.f32 %v1975_v10, %v2232_v0  ;;  %v1506_v13 = vpop.f32.mrb[3].mxu1 }
 0x15f   : >> { %v1526_v14 = vmax.f32 %v1522_v9, 0.0  ;;  %v967_v15 = vmax.f32 %v963_v6, 0.0  ;;  %v1523_v17 = vadd.f32 %v2232_v0, %v1506_v13 }
 0x160   : >> { %v1532_v18 = vmax.f32 %v968_v3, %v1528_v11  ;;  %v1529_v19 = vmax.f32 %v1525_v12, 0.0 }
 0x161   : >> { %v1530_v20 = vmax.f32 %v966_v8, %v1526_v14  ;;  %v1527_v21 = vmax.f32 %v1523_v17, 0.0 }
 0x162   : >> { %1536 = vst [vmem:[#allocation2 + $0x10] sm:$0xff] %v1532_v18  ;;  %v1533_v22 = vmax.f32 %v969_v7, %v1529_v19 }
 0x163   : >> { %1534 = vst [vmem:[#allocation2] sm:$0xff] %v1530_v20  ;;  %v1531_v23 = vmax.f32 %v967_v15, %v1527_v21 }
 0x164   : >> { %1537 = vst [vmem:[#allocation2 + $0x18] sm:$0xff] %v1533_v22 }
 0x165   : >> { %1535 = vst [vmem:[#allocation2 + $0x8] sm:$0xff] %v1531_v23 }
 0x16b   : >> { %v1540_v16 = vld [vmem:[#allocation2 + $0x10] ss:$2 sm:$0xff]  ;;  %v1544_v25 = vld [vmem:[#allocation2 + $0x11] ss:$2 sm:$0xff]  ;;  %202 = sbr.rel (!%p200_p7) target bundleno = 23 (0x17), region = 85 }
 0x16c   : >> { %v1546_v24 = vmax.f32 %v1540_v16, %v1544_v25  ;;  %v1538_v26 = vld [vmem:[#allocation2] ss:$2 sm:$0xff]  ;;  %v1542_v27 = vld [vmem:[#allocation2 + $0x1] ss:$2 sm:$0xff] }
 0x16d   : >> { %v1545_v28 = vmax.f32 %v1538_v26, %v1542_v27 }
 0x16f   : >> { %v1812_v29 = vpack.c.bf16 %v1546_v24, %v1545_v28 }
 0x171   : >> { %1813 = vst [vmem:[%s1557_s12] sm:$0xff] %v1812_v29  }
 0x172 PF: > { %s13_s16 = sadd.s32 1, %s2171_s16   ;;  %s2467_s12 = smov %s2163_s14 }
 0x173   : > { %p10_p8 = scmp.ge.s32.totalorder %s13_s16, 6   ;;  %s2468_s13 = smov %s2167_s15 }
 0x174   : > { %s2469_s14 = smov %s2472_s17  ;;  %s2470_s15 = smov %s2476_s18 }
 0x175   :  { %12 = sbr.rel (!%p10_p8) target bundleno = 3 (0x3), region = 96 }

// kernel: simple_cnn_forward.10
= control target key start
LH: loop header
LB: loop body
LE: loop exit
PB: predicated region body
PF: predicated region fallthrough
CT: control target
= control target key end

     0   :  { %v81_v38 = vlaneseq  ;;  %v717_v39 = vmov 1966171168   ;;  %s949_s1 = inlined_call_operand.vmem [shape: bf16[512,256], index: 1, kind: input, shape index: {}]   ;;  %s950_s0 = inlined_call_operand.vmem [shape: bf16[2,512], index: 0, kind: input, shape index: {}]   ;;  %s951_s2 = inlined_call_operand.vmem [shape: f32[1,256], index: 2, kind: input, shape index: {}]   ;;  %s952_s3 = inlined_call_operand.vmem [shape: bf16[2,256], index: 3, kind: output, shape index: {}]  }
   0x1   :  { %v621_v0 = vld [vmem:[%s949_s1 + $0x4] ss:$8 sps:$4 sm:$0xff]   ;;  %v625_v2 = vld [vmem:[%s949_s1] ss:$8 sps:$4 sm:$0xff]   ;;  %v627_v4 = vld [vmem:[%s949_s1 + $0x14] ss:$8 sps:$4 sm:$0xff]   ;;  %v101_v40 = vunpack.c.l.s4 %v717_v39 }
   0x2   :  { %v623_v1 = vld [vmem:[%s949_s1 + $0x104] ss:$8 sps:$4 sm:$0xff]   ;;  %440 = vmatprep.subr.bf16.mxu1 %v621_v0  ;;  %v626_v3 = vld [vmem:[%s949_s1 + $0x100] ss:$8 sps:$4 sm:$0xff]   ;;  %v629_v5 = vld [vmem:[%s949_s1 + $0x114] ss:$8 sps:$4 sm:$0xff]  }
   0x3   :  { %481 = vmatprep.subr.bf16.mxu0 %v623_v1  ;;  %441 = vmatpush1.bf16.msra.mxu1 %v625_v2  ;;  %v631_v6 = vld [vmem:[%s949_s1 + $0x10] ss:$8 sps:$4 sm:$0xff]   ;;  %v633_v8 = vld [vmem:[%s949_s1 + $0x24] ss:$8 sps:$4 sm:$0xff]   ;;  %v637_v10 = vld [vmem:[%s949_s1 + $0x20] ss:$8 sps:$4 sm:$0xff]   ;;  %v102_v46 = vunpack.c.0.s8 %v101_v40 }
   0x4   :  { %482 = vmatpush1.bf16.msra.mxu0 %v626_v3  ;;  %442 = vmatprep.subr.bf16.mxu1 %v627_v4  ;;  %v632_v7 = vld [vmem:[%s949_s1 + $0x110] ss:$8 sps:$4 sm:$0xff]   ;;  %v635_v9 = vld [vmem:[%s949_s1 + $0x124] ss:$8 sps:$4 sm:$0xff]   ;;  %v638_v11 = vld [vmem:[%s949_s1 + $0x120] ss:$8 sps:$4 sm:$0xff]  }
   0x5   :  { %483 = vmatprep.subr.bf16.mxu0 %v629_v5  ;;  %v639_v12 = vld [vmem:[%s949_s1 + $0x34] ss:$8 sps:$4 sm:$0xff]   ;;  %v643_v14 = vld [vmem:[%s949_s1 + $0x30] ss:$8 sps:$4 sm:$0xff]   ;;  %v645_v16 = vld [vmem:[%s949_s1 + $0x44] ss:$8 sps:$4 sm:$0xff]  }
   0x6   :  { %v641_v13 = vld [vmem:[%s949_s1 + $0x134] ss:$8 sps:$4 sm:$0xff]   ;;  %v644_v15 = vld [vmem:[%s949_s1 + $0x130] ss:$8 sps:$4 sm:$0xff]   ;;  %v647_v17 = vld [vmem:[%s949_s1 + $0x144] ss:$8 sps:$4 sm:$0xff]  }
   0x7   :  { %443 = vmatpush1.bf16.msra.mxu1 %v631_v6  ;;  %v649_v18 = vld [vmem:[%s949_s1 + $0x40] ss:$8 sps:$4 sm:$0xff]   ;;  %v651_v20 = vld [vmem:[%s949_s1 + $0x54] ss:$8 sps:$4 sm:$0xff]   ;;  %v655_v22 = vld [vmem:[%s949_s1 + $0x50] ss:$8 sps:$4 sm:$0xff]  }
   0x8   :  { %484 = vmatpush1.bf16.msra.mxu0 %v632_v7  ;;  %444 = vmatprep.subr.bf16.mxu1 %v633_v8  ;;  %v650_v19 = vld [vmem:[%s949_s1 + $0x140] ss:$8 sps:$4 sm:$0xff]   ;;  %v653_v21 = vld [vmem:[%s949_s1 + $0x154] ss:$8 sps:$4 sm:$0xff]   ;;  %v656_v23 = vld [vmem:[%s949_s1 + $0x150] ss:$8 sps:$4 sm:$0xff]  }
   0x9   :  { %485 = vmatprep.subr.bf16.mxu0 %v635_v9  ;;  %v657_v24 = vld [vmem:[%s949_s1 + $0x64] ss:$8 sps:$4 sm:$0xff]   ;;  %v661_v26 = vld [vmem:[%s949_s1 + $0x60] ss:$8 sps:$4 sm:$0xff]   ;;  %v663_v28 = vld [vmem:[%s949_s1 + $0x74] ss:$8 sps:$4 sm:$0xff]  }
   0xa   :  { %v659_v25 = vld [vmem:[%s949_s1 + $0x164] ss:$8 sps:$4 sm:$0xff]   ;;  %v662_v27 = vld [vmem:[%s949_s1 + $0x160] ss:$8 sps:$4 sm:$0xff]   ;;  %v665_v29 = vld [vmem:[%s949_s1 + $0x174] ss:$8 sps:$4 sm:$0xff]  }
   0xb   :  { %445 = vmatpush1.bf16.msra.mxu1 %v637_v10  ;;  %v667_v30 = vld [vmem:[%s949_s1 + $0x70] ss:$8 sps:$4 sm:$0xff]   ;;  %v669_v32 = vld [vmem:[%s949_s1 + $0x84] ss:$8 sps:$4 sm:$0xff]   ;;  %v673_v34 = vld [vmem:[%s949_s1 + $0x80] ss:$8 sps:$4 sm:$0xff]  }
   0xc   :  { %486 = vmatpush1.bf16.msra.mxu0 %v638_v11  ;;  %446 = vmatprep.subr.bf16.mxu1 %v639_v12  ;;  %v668_v31 = vld [vmem:[%s949_s1 + $0x170] ss:$8 sps:$4 sm:$0xff]   ;;  %v671_v33 = vld [vmem:[%s949_s1 + $0x184] ss:$8 sps:$4 sm:$0xff]   ;;  %v674_v35 = vld [vmem:[%s949_s1 + $0x180] ss:$8 sps:$4 sm:$0xff]  }
   0xd   :  { %487 = vmatprep.subr.bf16.mxu0 %v641_v13  ;;  %v675_v36 = vld [vmem:[%s949_s1 + $0x94] ss:$8 sps:$4 sm:$0xff]   ;;  %v679_v41 = vld [vmem:[%s949_s1 + $0x90] ss:$8 sps:$4 sm:$0xff]   ;;  %v681_v43 = vld [vmem:[%s949_s1 + $0xa4] ss:$8 sps:$4 sm:$0xff]  }
   0xe   :  { %v677_v37 = vld [vmem:[%s949_s1 + $0x194] ss:$8 sps:$4 sm:$0xff]   ;;  %v680_v42 = vld [vmem:[%s949_s1 + $0x190] ss:$8 sps:$4 sm:$0xff]   ;;  %v683_v44 = vld [vmem:[%s949_s1 + $0x1a4] ss:$8 sps:$4 sm:$0xff]  }
   0xf   :  { %447 = vmatpush1.bf16.msra.mxu1 %v643_v14  ;;  %v864_v45 = vshrl.u32 %v81_v38, 7  ;;  %v685_v47 = vld [vmem:[%s949_s1 + $0xa0] ss:$8 sps:$4 sm:$0xff]   ;;  %v687_v49 = vld [vmem:[%s949_s1 + $0xb4] ss:$8 sps:$4 sm:$0xff]  }
  0x10   :  { %488 = vmatpush1.bf16.msra.mxu0 %v644_v15  ;;  %448 = vmatprep.subr.bf16.mxu1 %v645_v16  ;;  %v686_v48 = vld [vmem:[%s949_s1 + $0x1a0] ss:$8 sps:$4 sm:$0xff]   ;;  %v689_v50 = vld [vmem:[%s949_s1 + $0x1b4] ss:$8 sps:$4 sm:$0xff]   ;;  %v691_v53 = vld [vmem:[%s949_s1 + $0xb0] ss:$8 sps:$4 sm:$0xff]  }
  0x11   :  { %489 = vmatprep.subr.bf16.mxu0 %v647_v17  ;;  %v879_v51 = vsub.s32 %v102_v46, %v864_v45  ;;  %v549_v52 = vld.sshfl [vmem:[%s950_s0] sm:$0x33 pattern:$0x75316420]  ;;  %v692_v54 = vld [vmem:[%s949_s1 + $0x1b0] ss:$8 sps:$4 sm:$0xff]  }
  0x12   :  { %v99_v55 = vcombine.high %v549_v52, %v549_v52  ;;  %v693_v56 = vld [vmem:[%s949_s1 + $0xc4] ss:$8 sps:$4 sm:$0xff]   ;;  %v697_v59 = vld [vmem:[%s949_s1 + $0xc0] ss:$8 sps:$4 sm:$0xff]   ;;  %v699_v62 = vld [vmem:[%s949_s1 + $0xd4] ss:$8 sps:$4 sm:$0xff]  }
  0x13   :  { %449 = vmatpush1.bf16.msra.mxu1 %v649_v18  ;;  %v695_v57 = vld [vmem:[%s949_s1 + $0x1c4] ss:$8 sps:$4 sm:$0xff]   ;;  %v698_v60 = vld [vmem:[%s949_s1 + $0x1c0] ss:$8 sps:$4 sm:$0xff]   ;;  %v701_v63 = vld [vmem:[%s949_s1 + $0x1d4] ss:$8 sps:$4 sm:$0xff]   ;;  %v106_v8 = vrot.slane %v549_v52, %v879_v51 }
  0x14   :  { %490 = vmatpush1.bf16.msra.mxu0 %v650_v19  ;;  %450 = vmatprep.subr.bf16.mxu1 %v651_v20  ;;  %v113_v58 = vrot.slane %v99_v55, %v879_v51  ;;  %v703_v0 = vld [vmem:[%s949_s1 + $0xd0] ss:$8 sps:$4 sm:$0xff]   ;;  %v705_v2 = vld [vmem:[%s949_s1 + $0xe4] ss:$8 sps:$4 sm:$0xff]   ;;  %v709_v4 = vld [vmem:[%s949_s1 + $0xe0] ss:$8 sps:$4 sm:$0xff]  }
  0x15   :  { %491 = vmatprep.subr.bf16.mxu0 %v653_v21  ;;  %v704_v1 = vld [vmem:[%s949_s1 + $0x1d0] ss:$8 sps:$4 sm:$0xff]   ;;  %v707_v3 = vld [vmem:[%s949_s1 + $0x1e4] ss:$8 sps:$4 sm:$0xff]   ;;  %v710_v5 = vld [vmem:[%s949_s1 + $0x1e0] ss:$8 sps:$4 sm:$0xff]   ;;  %v114_v11 = vcombine.high %v106_v8, %v106_v8 }
  0x16   :  { %v115_v61 = vcombine.high %v113_v58, %v113_v58  ;;  %472 = vmatprep.mubr.bf16.mxu1 %v113_v58  ;;  %v711_v6 = vld [vmem:[%s949_s1 + $0xf4] ss:$8 sps:$4 sm:$0xff]   ;;  %v715_v9 = vld [vmem:[%s949_s1 + $0xf0] ss:$8 sps:$4 sm:$0xff]   ;;  %v83_v12 = vsub.s32 0, %v864_v45  ;;  %v87_v14 = vsub.s32 1, %v864_v45 }
  0x17   :  { %451 = vmatpush1.bf16.msra.mxu1 %v655_v22  ;;  %v713_v7 = vld [vmem:[%s949_s1 + $0x1f4] ss:$8 sps:$4 sm:$0xff]   ;;  %v716_v10 = vld [vmem:[%s949_s1 + $0x1f0] ss:$8 sps:$4 sm:$0xff]   ;;  %v79_v13 = vld [vmem:[%s951_s2] sm:$0x3] }
  0x18   :  { %492 = vmatpush1.bf16.msra.mxu0 %v656_v23  ;;  %452 = vmatprep.subr.bf16.mxu1 %v657_v24  ;;  %v84_v15 = vrot.slane %v79_v13, %v83_v12  ;;  %v88_v16 = vrot.slane %v79_v13, %v87_v14 }
  0x19   :  { %493 = vmatprep.subr.bf16.mxu0 %v659_v25  ;;  %513 = vmatprep.mubr.bf16.mxu0 %v115_v61 }
  0x1b   :  { %453 = vmatpush1.bf16.msra.mxu1 %v661_v26 }
  0x1c   :  { %494 = vmatpush1.bf16.msra.mxu0 %v662_v27  ;;  %454 = vmatprep.subr.bf16.mxu1 %v663_v28 }
  0x1d   :  { %495 = vmatprep.subr.bf16.mxu0 %v665_v29 }
  0x1f   :  { %455 = vmatpush1.bf16.msra.mxu1 %v667_v30 }
  0x20   :  { %496 = vmatpush1.bf16.msra.mxu0 %v668_v31  ;;  %456 = vmatprep.subr.bf16.mxu1 %v669_v32 }
  0x21   :  { %497 = vmatprep.subr.bf16.mxu0 %v671_v33 }
  0x23   :  { %457 = vmatpush1.bf16.msra.mxu1 %v673_v34 }
  0x24   :  { %498 = vmatpush1.bf16.msra.mxu0 %v674_v35  ;;  %458 = vmatprep.subr.bf16.mxu1 %v675_v36 }
  0x25   :  { %499 = vmatprep.subr.bf16.mxu0 %v677_v37 }
  0x27   :  { %459 = vmatpush1.bf16.msra.mxu1 %v679_v41 }
  0x28   :  { %500 = vmatpush1.bf16.msra.mxu0 %v680_v42  ;;  %460 = vmatprep.subr.bf16.mxu1 %v681_v43 }
  0x29   :  { %501 = vmatprep.subr.bf16.mxu0 %v683_v44 }
  0x2b   :  { %461 = vmatpush1.bf16.msra.mxu1 %v685_v47 }
  0x2c   :  { %502 = vmatpush1.bf16.msra.mxu0 %v686_v48  ;;  %462 = vmatprep.subr.bf16.mxu1 %v687_v49 }
  0x2d   :  { %503 = vmatprep.subr.bf16.mxu0 %v689_v50 }
  0x2f   :  { %463 = vmatpush1.bf16.msra.mxu1 %v691_v53 }
  0x30   :  { %504 = vmatpush1.bf16.msra.mxu0 %v692_v54  ;;  %464 = vmatprep.subr.bf16.mxu1 %v693_v56 }
  0x31   :  { %505 = vmatprep.subr.bf16.mxu0 %v695_v57 }
  0x33   :  { %465 = vmatpush1.bf16.msra.mxu1 %v697_v59 }
  0x34   :  { %506 = vmatpush1.bf16.msra.mxu0 %v698_v60  ;;  %466 = vmatprep.subr.bf16.mxu1 %v699_v62 }
  0x35   :  { %507 = vmatprep.subr.bf16.mxu0 %v701_v63 }
  0x37   :  { %467 = vmatpush1.bf16.msra.mxu1 %v703_v0 }
  0x38   :  { %508 = vmatpush1.bf16.msra.mxu0 %v704_v1  ;;  %468 = vmatprep.subr.bf16.mxu1 %v705_v2 }
  0x39   :  { %509 = vmatprep.subr.bf16.mxu0 %v707_v3 }
  0x3b   :  { %469 = vmatpush1.bf16.msra.mxu1 %v709_v4 }
  0x3c   :  { %510 = vmatpush1.bf16.msra.mxu0 %v710_v5  ;;  %470 = vmatprep.subr.bf16.mxu1 %v711_v6 }
  0x3d   :  { %511 = vmatprep.subr.bf16.mxu0 %v713_v7 }
  0x3f   :  { %471 = vmatpush1.bf16.msra.mxu1 %v715_v9 }
  0x40   :  { %512 = vmatpush1.bf16.msra.mxu0 %v716_v10 }
  0x42   :  { %473 = vmatmul.mubr.bf16.vlgmr.msra.gmra.mrb[0].mxu1 %v106_v8 }
  0x43   :  { %514 = vmatmul.mubr.bf16.vlgmr.msra.gmra.mrb[0].mxu0 %v114_v11 }
 0x115   :  { %v474_v17 = vpop.f32.mrb[0].mxu1 }
 0x116   :  { %v515_v18 = vpop.f32.mrb[0].mxu0  ;;  %v475_v19 = vadd.f32 %v474_v17, %v84_v15  ;;  %v476_v20 = vpop.f32.mrb[1].mxu1 }
 0x117   :  { %v517_v21 = vpop.f32.mrb[1].mxu0  ;;  %v477_v22 = vadd.f32 %v476_v20, %v88_v16  ;;  %v478_v23 = vpop.f32.mrb[2].mxu1 }
 0x118   :  { %v519_v24 = vpop.f32.mrb[2].mxu0  ;;  %v516_v25 = vadd.f32 %v515_v18, %v475_v19  ;;  %v479_v26 = vpop.f32.mrb[3].mxu1 }
 0x119   :  { %v520_v27 = vpop.f32.mrb[3].mxu0  ;;  %v518_v28 = vadd.f32 %v517_v21, %v477_v22 }
 0x11a   :  { %v522_v29 = vmax.f32 %v516_v25, 0.0 }
 0x11b   :  { %v523_v30 = vmax.f32 %v518_v28, 0.0 }
 0x11d   :  { %v614_v31 = vpack.c.bf16 %v523_v30, %v522_v29 }
 0x11f   :  { %v535_v32 = vrot.slane %v614_v31, %v879_v51 }
 0x121   :  { %615 = vst.sshfl [vmem:[%s952_s3] sm:$0x5 pattern:$0x73625140] %v535_v32 }

// kernel: simple_cnn_forward.7
= control target key start
LH: loop header
LB: loop body
LE: loop exit
PB: predicated region body
PF: predicated region fallthrough
CT: control target
= control target key end

     0   :  { %s2815_s12 = smov 0   ;;  %s2817_s13 = smov 0   ;;  %s3626_s0 = inlined_call_operand.vmem [shape: bf16[2,18,18,128], index: 0, kind: input, shape index: {}]   ;;  %s3627_s1 = inlined_call_operand.vmem [shape: bf16[9,128,128], index: 1, kind: input, shape index: {}]   ;;  %s3628_s2 = inlined_call_operand.vmem [shape: f32[1,128], index: 2, kind: input, shape index: {}]   ;;  %s3629_s3 = inlined_call_operand.vmem [shape: bf16[2,8,8,128], index: 3, kind: output, shape index: {}]  }
   0x1   :  { %s2819_s14 = smov 0  }
   0x2 LB: > { %s25_s15 = sadd.s32 1, %s2783_s13  ;;  %p1865_p0 = scmp.ge.s32.totalorder %s2787_s14, 1  ;;  %s2787_s14 = sphi %s2819_s14, %s13_s14   ;;  %s2783_s13 = sphi %s2817_s13, %s3679_s13   ;;  %s2779_s12 = sphi %s2815_s12, %s3678_s12  }
   0x3   : > { %p27_p1 = scmp.ge.s32.totalorder %s25_s15, 2  ;;  %p151_p2 = scmp.lt.s32.totalorder %s2787_s14, 3 }
   0x5   : > { %s3681_s15 = smov (%p27_p1, %s25_s15), 0  ;;  %p152_p3 = pnand %p1865_p0, %p151_p2 }
   0x6   : > { %p179_p4 = scmp.lt.s32.totalorder (!%p152_p3), %s2779_s12, 1  ;;  %v2836_v0 = vld [vmem:[%s3628_s2] ss:$0 sm:$0xff] (!%p152_p3)  ;;  %s2848_s26 = smov (!%p152_p3), 0  }
   0x7   : > { %155 = sbr.rel (%p152_p3) target bundleno = 544 (0x220), region = 32  ;;  %3646 = vst [vmem:[#allocation3_spill] sm:$0xff] (!%p152_p3), %v2836_v0 }
   0xe   : > { %s3683_s12 = smov (!%p179_p4, %s2779_s12), 1 }
   0xf   : > { %s2639_s18 = smul.u32 216, %s3683_s12  ;;  %s2115_s19 = sshll.u32 %s3683_s12, 5 }
  0x10   : > { %s2841_s22 = scalar_lea.vmem %s3629_s3, %s2115_s19 }
  0x11   : > { %s2846_s25 = scalar_lea.vmem %s3626_s0, %s2639_s18 }
  0x12 LB: >> { %v2856_v1 = vld [vmem:[%s3627_s1 + $0x40] sm:$0xff]   ;;  %v2793_v2 = vmov 0.0   ;;  %v2869_v4 = vld [vmem:[%s3627_s1 + $0x48] sm:$0xff]   ;;  %vm2794_vm0 = vmmov 0   ;;  %v2887_v6 = vld [vmem:[%s3627_s1 + $0x50] sm:$0xff]   ;;  %s2116_s12 = smul.u32 24, %s2791_s26  ;;  %s2791_s26 = sphi %s2848_s26, %s201_s26  }
  0x13   : >> { %2279 = vmatprep.subr.bf16.mxu0 %v2793_v2  ;;  %2299 = vmatprep.subr.bf16.mxu1 %v2793_v2  ;;  %v2863_v3 = vld [vmem:[%s3627_s1] sm:$0xff]   ;;  %v2878_v5 = vld [vmem:[%s3627_s1 + $0x8] sm:$0xff]   ;;  %v2894_v7 = vld [vmem:[%s3627_s1 + $0x10] sm:$0xff]   ;;  %vm252_vm1 = vsmask.f32 7424  ;;  %vm466_vm2 = vcmask 1046528  }
  0x14   : >> { %2280 = vmatpush3.bf16.msra.mxu0 %v2856_v1  ;;  %2295 = vmatprep.mubr.msk.bf16.mxu0 %vm2794_vm0, %v2793_v2  ;;  %v2902_v8 = vld [vmem:[%s3627_s1 + $0x58] sm:$0xff]   ;;  %s2913_s20 = scalar_lea.vmem %s2846_s25, %s2116_s12  ;;  %v2919_v10 = vld [vmem:[%s3627_s1 + $0x60] sm:$0xff]   ;;  %v2936_v14 = vld [vmem:[%s3627_s1 + $0x68] sm:$0xff]  }
  0x15   : >> { %2300 = vmatpush3.bf16.msra.mxu1 %v2863_v3  ;;  %2281 = vmatprep.subr.bf16.mxu0 %v2793_v2  ;;  %v2909_v9 = vld [vmem:[%s3627_s1 + $0x18] sm:$0xff]   ;;  %v2926_v11 = vld [vmem:[%s3627_s1 + $0x20] sm:$0xff]   ;;  %v2940_v16 = vld [vmem:[%s2913_s20 + $0x8] ss:$0 sps:$4 sm:$0x11]  }
  0x16   : >> { %2301 = vmatprep.subr.bf16.mxu1 %v2793_v2  ;;  %2315 = vmatprep.mubr.msk.bf16.mxu1 %vm2794_vm0, %v2793_v2  ;;  %v208_v12 = vld [vmem:[%s2913_s20] sm:$0xf]  ;;  %v2931_v13 = vld [vmem:[%s2913_s20 + $0x4] sm:$0xf]  ;;  %v2948_v17 = vld [vmem:[%s3627_s1 + $0x28] sm:$0xff]   ;;  %v261_v22 = vshll.u32 %v2940_v16, 16 }
  0x17   : >> { %v1888_v15 = vcombine.low %v208_v12, %v2931_v13  ;;  %v2954_v19 = vld [vmem:[%s3627_s1 + $0x70] sm:$0xff]   ;;  %v2969_v24 = vld [vmem:[%s3627_s1 + $0x78] sm:$0xff]   ;;  %v2985_v29 = vld [vmem:[%s3627_s1 + $0x80] sm:$0xff]   ;;  %v468_v45 = vrot.slane %v2940_v16, 1 }
  0x18   : >> { %2282 = vmatpush3.bf16.msra.mxu0 %v2869_v4  ;;  %v2963_v23 = vld [vmem:[%s3627_s1 + $0x30] sm:$0xff]   ;;  %v2975_v25 = vld [vmem:[%s3627_s1 + $0x38] sm:$0xff]   ;;  %v263_v27 = vrot.slane %v261_v22, 1  ;;  %v2992_v30 = vld [vmem:[%s3627_s1 + $0xc0] sm:$0xff]  }
  0x19   : >> { %2302 = vmatpush3.bf16.msra.mxu1 %v2878_v5  ;;  %2283 = vmatprep.subr.bf16.mxu0 %v2793_v2  ;;  %v256_v18 = vshll.u32 %v1888_v15, 16  ;;  %v254_v20 = vshrl.u32 %v1888_v15, 16  ;;  %v2999_v31 = vld [vmem:[%s3627_s1 + $0x88] sm:$0xff]   ;;  %v3017_v33 = vld [vmem:[%s3627_s1 + $0x90] sm:$0xff]   ;;  %v3031_v35 = vld [vmem:[%s3627_s1 + $0x98] sm:$0xff]  }
  0x1a   : >> { %2303 = vmatprep.subr.bf16.mxu1 %v2793_v2  ;;  %v3006_v32 = vld [vmem:[%s3627_s1 + $0xc8] sm:$0xff]   ;;  %v3024_v34 = vld [vmem:[%s3627_s1 + $0xd0] sm:$0xff]   ;;  %v3038_v36 = vld [vmem:[%s3627_s1 + $0xd8] sm:$0xff]  }
  0x1b   : >> { %v258_v21 = vrot.slane %v256_v18, 1  ;;  %v3045_v37 = vld [vmem:[%s3627_s1 + $0xa0] sm:$0xff]   ;;  %v3059_v39 = vld [vmem:[%s3627_s1 + $0xa8] sm:$0xff]   ;;  %v3073_v42 = vld [vmem:[%s3627_s1 + $0xb0] sm:$0xff]  }
  0x1c   : >> { %2284 = vmatpush3.bf16.msra.mxu0 %v2887_v6  ;;  %v3052_v38 = vld [vmem:[%s3627_s1 + $0xe0] sm:$0xff]   ;;  %v3066_v40 = vld [vmem:[%s3627_s1 + $0xe8] sm:$0xff]   ;;  %v3082_v44 = vld [vmem:[%s3627_s1 + $0xf0] sm:$0xff]  }
  0x1d   : >> { %2304 = vmatpush3.bf16.msra.mxu1 %v2894_v7  ;;  %2285 = vmatprep.subr.bf16.mxu0 %v2793_v2  ;;  %v259_v26 = vor.u32 %v258_v21, %v254_v20  ;;  %v445_v41 = vld [vmem:[%s2913_s20] sm:$0xe]  ;;  %v3090_v46 = vld [vmem:[%s3627_s1 + $0xb8] sm:$0xff]   ;;  %v3101_v49 = vld [vmem:[%s2913_s20 + $0xc] sm:$0xff]  }
  0x1e   : >> { %2305 = vmatprep.subr.bf16.mxu1 %v2793_v2  ;;  %v1922_v43 = vcombine.low %v445_v41, %v2931_v13  ;;  %v3097_v48 = vld [vmem:[%s3627_s1 + $0xf8] sm:$0xff]   ;;  %v3108_v51 = vld [vmem:[%s3627_s1 + $0x100] sm:$0xff]   ;;  %v3123_v53 = vld [vmem:[%s3627_s1 + $0x108] sm:$0xff]  }
  0x1f   : >> { %v264_v28 = vsel %vm252_vm1, %v259_v26, %v263_v27  ;;  %v3115_v52 = vld [vmem:[%s3627_s1 + $0x140] sm:$0xff]   ;;  %v3130_v54 = vld [vmem:[%s3627_s1 + $0x148] sm:$0xff]   ;;  %v3141_v55 = vld [vmem:[%s3627_s1 + $0x110] sm:$0xff]  }
  0x20   : >> { %2286 = vmatpush3.bf16.msra.mxu0 %v2902_v8  ;;  %v467_v47 = vrot.slane %v1922_v43, 1  ;;  %v3148_v56 = vld [vmem:[%s3627_s1 + $0x150] sm:$0xff]   ;;  %v3154_v57 = vld [vmem:[%s3627_s1 + $0x118] sm:$0xff]   ;;  %v1960_v59 = vld [vmem:[%s2913_s20 + $0xc] sm:$0xf] }
  0x21   : >> { %2306 = vmatpush3.bf16.msra.mxu1 %v2909_v9  ;;  %2287 = vmatprep.subr.bf16.mxu0 %v2793_v2  ;;  %v3160_v58 = vld [vmem:[%s3627_s1 + $0x158] sm:$0xff]   ;;  %v1961_v60 = vld [vmem:[%s2913_s20 + $0x10] sm:$0xf]  ;;  %v3171_v61 = vld [vmem:[%s3627_s1 + $0x120] sm:$0xff]  }
  0x22   : >> { %2307 = vmatprep.subr.bf16.mxu1 %v2793_v2  ;;  %v469_v50 = vsel %vm466_vm2, %v467_v47, %v468_v45  ;;  %v1979_v62 = vcombine.low %v1960_v59, %v1961_v60  ;;  %v3178_v63 = vld [vmem:[%s3627_s1 + $0x160] sm:$0xff]   ;;  %v3185_v12 = vld [vmem:[%s3627_s1 + $0x128] sm:$0xff]   ;;  %v2727_v13 = vld [vmem:[%s2913_s20 + $0x14] ss:$0 sps:$4 sm:$0x11]  }
  0x23   : >> { %3647 = vst [vmem:[#allocation4_spill] sm:$0xff] %v3178_v63  ;;  %v3193_v16 = vld [vmem:[%s3627_s1 + $0x168] sm:$0xff]   ;;  %v3201_v20 = vld [vmem:[%s3627_s1 + $0x130] sm:$0xff]   ;;  %v718_v26 = vshll.u32 %v2727_v13, 16  ;;  %v3215_v41 = vld [vmem:[%s3627_s1 + $0x138] sm:$0xff]   ;;  %v836_v59 = vrot.slane %v2727_v13, 1 }
  0x24   : >> { %2288 = vmatpush3.bf16.msra.mxu0 %v2919_v10  ;;  %3648 = vst [vmem:[#allocation5_spill] sm:$0xff] %v3193_v16  ;;  %v1989_v18 = vld [vmem:[%s2913_s20 + $0xc] sm:$0xe]  ;;  %v711_v21 = vshrl.u32 %v1979_v62, 16  ;;  %v3208_v27 = vld [vmem:[%s3627_s1 + $0x170] sm:$0xff]   ;;  %v3222_v47 = vld [vmem:[%s3627_s1 + $0x178] sm:$0xff]  }
  0x25   : >> { %2308 = vmatpush3.bf16.msra.mxu1 %v2926_v11  ;;  %2289 = vmatprep.subr.bf16.mxu0 %v2793_v2  ;;  %3649 = vst [vmem:[#allocation6_spill] sm:$0xff] %v3208_v27  ;;  %v720_v45 = vrot.slane %v718_v26, 1  ;;  %3650 = vst [vmem:[#allocation7_spill] sm:$0xff] %v3222_v47  ;;  %v3242_v13 = vld [vmem:[%s3627_s1 + $0x1c0] sm:$0xff]   ;;  %v3276_v26 = vld [vmem:[%s3627_s1 + $0x1d0] sm:$0xff]  }
  0x26   : >> { %2309 = vmatprep.subr.bf16.mxu1 %v2793_v2  ;;  %3651 = vst [vmem:[#allocation8_spill] sm:$0xff] %v3242_v13  ;;  %3653 = vst [vmem:[#allocation10_spill] sm:$0xff] %v3276_v26  ;;  %v3308_v0 = vld [vmem:[%s3627_s1 + $0x1e0] sm:$0xff]  }
  0x27   : >> { %3656 = vst [vmem:[#allocation13_spill] sm:$0xff] %v3308_v0 }
  0x28   : >> { %2290 = vmatpush3.bf16.msra.mxu0 %v2936_v14 }
  0x29   : >> { %2310 = vmatpush3.bf16.msra.mxu1 %v2948_v17  ;;  %2291 = vmatprep.subr.bf16.mxu0 %v2793_v2 }
  0x2a   : >> { %2311 = vmatprep.subr.bf16.mxu1 %v2793_v2 }
  0x2c   : >> { %2292 = vmatpush3.bf16.msra.mxu0 %v2954_v19 }
  0x2d   : >> { %2312 = vmatpush3.bf16.msra.mxu1 %v2963_v23  ;;  %2293 = vmatprep.subr.bf16.mxu0 %v2793_v2 }
  0x2e   : >> { %2313 = vmatprep.subr.bf16.mxu1 %v2793_v2 }
  0x30   : >> { %2294 = vmatpush3.bf16.msra.mxu0 %v2969_v24 }
  0x31   : >> { %2314 = vmatpush3.bf16.msra.mxu1 %v2975_v25  ;;  %2319 = vmatprep.subr.bf16.mxu0 %v2793_v2 }
  0x32   : >> { %2339 = vmatprep.subr.bf16.mxu1 %v2793_v2 }
  0x33   : >> { %2296 = vmatmul.mubr.bf16.vlgmr.msra.gmra.mrb[0].mxu0 %v264_v28  ;;  %v2006_v28 = vcombine.low %v1989_v18, %v1961_v60  ;;  %v3251_v18 = vld [vmem:[%s3627_s1 + $0x188] sm:$0xff]  }
  0x34   : >> { %2316 = vmatmul.mubr.bf16.vlgmr.msra.gmra.mrb[0].mxu1 %v1888_v15  ;;  %2320 = vmatpush3.bf16.msra.mxu0 %v2985_v29  ;;  %v713_v15 = vshll.u32 %v1979_v62, 16  ;;  %v3232_v62 = vld [vmem:[%s3627_s1 + $0x180] sm:$0xff]  }
  0x35   : >> { %2340 = vmatpush3.bf16.msra.mxu1 %v2992_v30  ;;  %2321 = vmatprep.subr.bf16.mxu0 %v2793_v2 }
  0x36   : >> { %2341 = vmatprep.subr.bf16.mxu1 %v2793_v2  ;;  %2335 = vmatprep.mubr.msk.bf16.mxu0 %vm2794_vm0, %v2793_v2  ;;  %v715_v22 = vrot.slane %v713_v15, 1 }
  0x37   : >> { %2355 = vmatprep.mubr.msk.bf16.mxu1 %vm2794_vm0, %v2793_v2 }
  0x38   : >> { %2322 = vmatpush3.bf16.msra.mxu0 %v2999_v31  ;;  %v716_v43 = vor.u32 %v715_v22, %v711_v21  ;;  %v3258_v21 = vld [vmem:[%s3627_s1 + $0x1c8] sm:$0xff]   ;;  %v3269_v22 = vld [vmem:[%s3627_s1 + $0x190] sm:$0xff]  }
  0x39   : >> { %2342 = vmatpush3.bf16.msra.mxu1 %v3006_v32  ;;  %2323 = vmatprep.subr.bf16.mxu0 %v2793_v2  ;;  %3652 = vst [vmem:[#allocation9_spill] sm:$0xff] %v3258_v21 }
  0x3a   : >> { %2343 = vmatprep.subr.bf16.mxu1 %v2793_v2  ;;  %v3227_v60 = vsel %vm252_vm1, %v716_v43, %v720_v45  ;;  %v3290_v43 = vld [vmem:[%s3627_s1 + $0x1d8] sm:$0xff]  }
  0x3b   : >> { %3654 = vst [vmem:[#allocation11_spill] sm:$0xff] %v3290_v43  ;;  %v2044_v45 = vld [vmem:[%s2913_s20 + $0x18] sm:$0xf] }
  0x3c   : >> { %2324 = vmatpush3.bf16.msra.mxu0 %v3017_v33 }
  0x3d   : >> { %2344 = vmatpush3.bf16.msra.mxu1 %v3024_v34  ;;  %2325 = vmatprep.subr.bf16.mxu0 %v2793_v2 }
  0x3e   : >> { %2345 = vmatprep.subr.bf16.mxu1 %v2793_v2 }
  0x40   : >> { %2326 = vmatpush3.bf16.msra.mxu0 %v3031_v35 }
  0x41   : >> { %2346 = vmatpush3.bf16.msra.mxu1 %v3038_v36  ;;  %2327 = vmatprep.subr.bf16.mxu0 %v2793_v2 }
  0x42   : >> { %2347 = vmatprep.subr.bf16.mxu1 %v2793_v2 }
  0x44   : >> { %2328 = vmatpush3.bf16.msra.mxu0 %v3045_v37 }
  0x45   : >> { %2348 = vmatpush3.bf16.msra.mxu1 %v3052_v38  ;;  %2329 = vmatprep.subr.bf16.mxu0 %v2793_v2 }
  0x46   : >> { %2349 = vmatprep.subr.bf16.mxu1 %v2793_v2 }
  0x48   : >> { %2330 = vmatpush3.bf16.msra.mxu0 %v3059_v39 }
  0x49   : >> { %2350 = vmatpush3.bf16.msra.mxu1 %v3066_v40  ;;  %2331 = vmatprep.subr.bf16.mxu0 %v2793_v2 }
  0x4a   : >> { %2351 = vmatprep.subr.bf16.mxu1 %v2793_v2 }
  0x4c   : >> { %2332 = vmatpush3.bf16.msra.mxu0 %v3073_v42 }
  0x4d   : >> { %2352 = vmatpush3.bf16.msra.mxu1 %v3082_v44  ;;  %2333 = vmatprep.subr.bf16.mxu0 %v2793_v2 }
  0x4e   : >> { %2353 = vmatprep.subr.bf16.mxu1 %v2793_v2 }
  0x50   : >> { %2334 = vmatpush3.bf16.msra.mxu0 %v3090_v46 }
  0x51   : >> { %2354 = vmatpush3.bf16.msra.mxu1 %v3097_v48  ;;  %2359 = vmatprep.subr.bf16.mxu0 %v2793_v2 }
  0x52   : >> { %2379 = vmatprep.subr.bf16.mxu1 %v2793_v2 }
  0x53   : >> { %2336 = vmatmul.mubr.bf16.vlgmr.msra.gmra.mrb[4].mxu0 %v469_v50  ;;  %v835_v50 = vrot.slane %v2006_v28, 1  ;;  %v3283_v28 = vld [vmem:[%s3627_s1 + $0x198] sm:$0xff]  }
  0x54   : >> { %2356 = vmatmul.mubr.bf16.vlgmr.msra.gmra.mrb[4].mxu1 %v3101_v49  ;;  %2360 = vmatpush3.bf16.msra.mxu0 %v3108_v51 }
  0x55   : >> { %2380 = vmatpush3.bf16.msra.mxu1 %v3115_v52  ;;  %2361 = vmatprep.subr.bf16.mxu0 %v2793_v2  ;;  %v3236_v15 = vsel %vm466_vm2, %v835_v50, %v836_v59  ;;  %v3295_v50 = vld [vmem:[%s2913_s20 + $0x1c] sm:$0xf]  ;;  %v3301_v59 = vld [vmem:[%s3627_s1 + $0x1a0] sm:$0xff]  }
  0x56   : >> { %2381 = vmatprep.subr.bf16.mxu1 %v2793_v2  ;;  %2375 = vmatprep.mubr.msk.bf16.mxu0 %vm2794_vm0, %v2793_v2  ;;  %3655 = vst [vmem:[#allocation12_spill] sm:$0xff] %v3301_v59 }
  0x57   : >> { %2395 = vmatprep.mubr.msk.bf16.mxu1 %vm2794_vm0, %v2793_v2 }
  0x58   : >> { %2362 = vmatpush3.bf16.msra.mxu0 %v3123_v53 }
  0x59   : >> { %2382 = vmatpush3.bf16.msra.mxu1 %v3130_v54  ;;  %2363 = vmatprep.subr.bf16.mxu0 %v2793_v2 }
  0x5a   : >> { %2383 = vmatprep.subr.bf16.mxu1 %v2793_v2 }
  0x5c   : >> { %2364 = vmatpush3.bf16.msra.mxu0 %v3141_v55 }
  0x5d   : >> { %2384 = vmatpush3.bf16.msra.mxu1 %v3148_v56  ;;  %2365 = vmatprep.subr.bf16.mxu0 %v2793_v2 }
  0x5e   : >> { %2385 = vmatprep.subr.bf16.mxu1 %v2793_v2 }
  0x60   : >> { %2366 = vmatpush3.bf16.msra.mxu0 %v3154_v57 }
  0x61   : >> { %2386 = vmatpush3.bf16.msra.mxu1 %v3160_v58  ;;  %2367 = vmatprep.subr.bf16.mxu0 %v2793_v2 }
  0x62   : >> { %2387 = vmatprep.subr.bf16.mxu1 %v2793_v2 }
  0x64   : >> { %2368 = vmatpush3.bf16.msra.mxu0 %v3171_v61 }
  0x65   : >> { %2388 = vmatpush3.bf16.msra.mxu1 %v3178_v63  ;;  %2369 = vmatprep.subr.bf16.mxu0 %v2793_v2  ;;  %v3359_v63 = vld [vmem:[%s2913_s20 + $0x18] sm:$0xff]  }
  0x66   : >> { %2389 = vmatprep.subr.bf16.mxu1 %v2793_v2 }
  0x68   : >> { %2370 = vmatpush3.bf16.msra.mxu0 %v3185_v12 }
  0x69   : >> { %2390 = vmatpush3.bf16.msra.mxu1 %v3193_v16  ;;  %2371 = vmatprep.subr.bf16.mxu0 %v2793_v2 }
  0x6a   : >> { %2391 = vmatprep.subr.bf16.mxu1 %v2793_v2 }
  0x6c   : >> { %2372 = vmatpush3.bf16.msra.mxu0 %v3201_v20 }
  0x6d   : >> { %2392 = vmatpush3.bf16.msra.mxu1 %v3208_v27  ;;  %2373 = vmatprep.subr.bf16.mxu0 %v2793_v2 }
  0x6e   : >> { %2393 = vmatprep.subr.bf16.mxu1 %v2793_v2 }
  0x70   : >> { %2374 = vmatpush3.bf16.msra.mxu0 %v3215_v41 }
  0x71   : >> { %2394 = vmatpush3.bf16.msra.mxu1 %v3222_v47  ;;  %2399 = vmatprep.subr.bf16.mxu0 %v2793_v2  ;;  %v3333_v47 = vld [vmem:[%s3627_s1 + $0x1b0] sm:$0xff]  }
  0x72   : >> { %2419 = vmatprep.subr.bf16.mxu1 %v2793_v2  ;;  %3659 = vst [vmem:[#allocation16_spill] sm:$0xff] %v3333_v47 }
  0x73   : >> { %2376 = vmatmul.mubr.bf16.vlgmr.msra.gmra.mrb[8].mxu0 %v3227_v60 }
  0x74   : >> { %2396 = vmatmul.mubr.bf16.vlgmr.msra.gmra.mrb[8].mxu1 %v3236_v15  ;;  %2400 = vmatpush3.bf16.msra.mxu0 %v3232_v62 }
  0x75   : >> { %2420 = vmatpush3.bf16.msra.mxu1 %v3242_v13  ;;  %2401 = vmatprep.subr.bf16.mxu0 %v2793_v2  ;;  %v3326_v13 = vld [vmem:[%s2913_s20 + $0x20] ss:$0 sps:$4 sm:$0x11]  }
  0x76   : >> { %2421 = vmatprep.subr.bf16.mxu1 %v2793_v2  ;;  %2415 = vmatprep.mubr.msk.bf16.mxu0 %vm2794_vm0, %v2793_v2 }
  0x77   : >> { %2435 = vmatprep.mubr.msk.bf16.mxu1 %vm2794_vm0, %v2793_v2 }
  0x78   : >> { %2402 = vmatpush3.bf16.msra.mxu0 %v3251_v18 }
  0x79   : >> { %2422 = vmatpush3.bf16.msra.mxu1 %v3258_v21  ;;  %2403 = vmatprep.subr.bf16.mxu0 %v2793_v2  ;;  %v3316_v21 = vld [vmem:[%s3627_s1 + $0x1a8] sm:$0xff]  }
  0x7a   : >> { %2423 = vmatprep.subr.bf16.mxu1 %v2793_v2  ;;  %3657 = vst [vmem:[#allocation14_spill] sm:$0xff] %v3316_v21 }
  0x7c   : >> { %2404 = vmatpush3.bf16.msra.mxu0 %v3269_v22 }
  0x7d   : >> { %2424 = vmatpush3.bf16.msra.mxu1 %v3276_v26  ;;  %2405 = vmatprep.subr.bf16.mxu0 %v2793_v2  ;;  %v2063_v26 = vcombine.low %v2044_v45, %v3295_v50 }
  0x7e   : >> { %2425 = vmatprep.subr.bf16.mxu1 %v2793_v2 }
  0x7f   : >> { %v1081_v45 = vshll.u32 %v2063_v26, 16  ;;  %v1079_v27 = vshrl.u32 %v2063_v26, 16  ;;  %v3355_v26 = vld [vmem:[%s3627_s1 + $0x1f8] sm:$0xff]  }
  0x80   : >> { %2406 = vmatpush3.bf16.msra.mxu0 %v3283_v28  ;;  %3661 = vst [vmem:[#allocation18_spill] sm:$0xff] %v3355_v26 }
  0x81   : >> { %2426 = vmatpush3.bf16.msra.mxu1 %v3290_v43  ;;  %2407 = vmatprep.subr.bf16.mxu0 %v2793_v2  ;;  %v3323_v43 = vld [vmem:[%s3627_s1 + $0x1e8] sm:$0xff]   ;;  %v1083_v16 = vrot.slane %v1081_v45, 1 }
  0x82   : >> { %2427 = vmatprep.subr.bf16.mxu1 %v2793_v2  ;;  %3658 = vst [vmem:[#allocation15_spill] sm:$0xff] %v3323_v43 }
  0x83   : >> { %v1084_v45 = vor.u32 %v1083_v16, %v1079_v27  ;;  %v3379_v16 = vld [vmem:[%s3627_s1 + $0x208] sm:$0xff]   ;;  %v3392_v27 = vld [vmem:[%s3627_s1 + $0x210] sm:$0xff]  }
  0x84   : >> { %2408 = vmatpush3.bf16.msra.mxu0 %v3301_v59  ;;  %v1086_v59 = vshll.u32 %v3326_v13, 16 }
  0x85   : >> { %2428 = vmatpush3.bf16.msra.mxu1 %v3308_v0  ;;  %2409 = vmatprep.subr.bf16.mxu0 %v2793_v2  ;;  %v3340_v0 = vld [vmem:[%s3627_s1 + $0x1f0] sm:$0xff]  }
  0x86   : >> { %2429 = vmatprep.subr.bf16.mxu1 %v2793_v2  ;;  %3660 = vst [vmem:[#allocation17_spill] sm:$0xff] %v3340_v0 }
  0x88   : >> { %2410 = vmatpush3.bf16.msra.mxu0 %v3316_v21  ;;  %v3348_v21 = vld [vmem:[%s3627_s1 + $0x1b8] sm:$0xff]  }
  0x89   : >> { %2430 = vmatpush3.bf16.msra.mxu1 %v3323_v43  ;;  %2411 = vmatprep.subr.bf16.mxu0 %v2793_v2  ;;  %v1088_v43 = vrot.slane %v1086_v59, 1 }
  0x8a   : >> { %2431 = vmatprep.subr.bf16.mxu1 %v2793_v2 }
  0x8c   : >> { %2412 = vmatpush3.bf16.msra.mxu0 %v3333_v47  ;;  %v3365_v47 = vld [vmem:[%s3627_s1 + $0x200] sm:$0xff]  }
  0x8d   : >> { %2432 = vmatpush3.bf16.msra.mxu1 %v3340_v0  ;;  %2413 = vmatprep.subr.bf16.mxu0 %v2793_v2  ;;  %v3369_v0 = vsel %vm252_vm1, %v1084_v45, %v1088_v43  ;;  %v2073_v43 = vld [vmem:[%s2913_s20 + $0x18] sm:$0xe] }
  0x8e   : >> { %2433 = vmatprep.subr.bf16.mxu1 %v2793_v2  ;;  %v2090_v59 = vcombine.low %v2073_v43, %v3295_v50 }
  0x90   : >> { %2414 = vmatpush3.bf16.msra.mxu0 %v3348_v21  ;;  %v1203_v45 = vrot.slane %v2090_v59, 1 }
  0x91   : >> { %2434 = vmatpush3.bf16.msra.mxu1 %v3355_v26  ;;  %2439 = vmatprep.subr.bf16.mxu0 %v2793_v2  ;;  %v1204_v26 = vrot.slane %v3326_v13, 1 }
  0x92   : >> { %2459 = vmatprep.subr.bf16.mxu1 %v2793_v2 }
  0x93   : >> { %2416 = vmatmul.mubr.bf16.vlgmr.msra.gmra.mrb[12].mxu0 %v3359_v63 }
  0x94   : >> { %2436 = vmatmul.mubr.bf16.vlgmr.msra.gmra.mrb[12].mxu1 %v3369_v0  ;;  %2440 = vmatpush3.bf16.msra.mxu0 %v3365_v47 }
  0x95   : >> { %2460 = vmatpush3.bf16.msra.mxu1 %v2856_v1  ;;  %2441 = vmatprep.subr.bf16.mxu0 %v2793_v2  ;;  %v3401_v1 = vld [vmem:[%s3627_s1 + $0x218] sm:$0xff]  }
  0x96   : >> { %2461 = vmatprep.subr.bf16.mxu1 %v2793_v2  ;;  %2455 = vmatprep.mubr.msk.bf16.mxu0 %vm2794_vm0, %v2793_v2 }
  0x97   : >> { %2475 = vmatprep.mubr.msk.bf16.mxu1 %vm2794_vm0, %v2793_v2 }
  0x98   : >> { %2442 = vmatpush3.bf16.msra.mxu0 %v3379_v16 }
  0x99   : >> { %2462 = vmatpush3.bf16.msra.mxu1 %v2869_v4  ;;  %2443 = vmatprep.subr.bf16.mxu0 %v2793_v2  ;;  %v3410_v4 = vld [vmem:[%s3627_s1 + $0x220] sm:$0xff]  }
  0x9a   : >> { %2463 = vmatprep.subr.bf16.mxu1 %v2793_v2 }
  0x9c   : >> { %2444 = vmatpush3.bf16.msra.mxu0 %v3392_v27 }
  0x9d   : >> { %2464 = vmatpush3.bf16.msra.mxu1 %v2887_v6  ;;  %2445 = vmatprep.subr.bf16.mxu0 %v2793_v2  ;;  %v3419_v6 = vld [vmem:[%s3627_s1 + $0x228] sm:$0xff]  }
  0x9e   : >> { %2465 = vmatprep.subr.bf16.mxu1 %v2793_v2 }
  0xa0   : >> { %2446 = vmatpush3.bf16.msra.mxu0 %v3401_v1 }
  0xa1   : >> { %2466 = vmatpush3.bf16.msra.mxu1 %v2902_v8  ;;  %2447 = vmatprep.subr.bf16.mxu0 %v2793_v2  ;;  %v3429_v8 = vld [vmem:[%s3627_s1 + $0x230] sm:$0xff]  }
  0xa2   : >> { %2467 = vmatprep.subr.bf16.mxu1 %v2793_v2 }
  0xa4   : >> { %2448 = vmatpush3.bf16.msra.mxu0 %v3410_v4 }
  0xa5   : >> { %2468 = vmatpush3.bf16.msra.mxu1 %v2919_v10  ;;  %2449 = vmatprep.subr.bf16.mxu0 %v2793_v2  ;;  %v3439_v10 = vld [vmem:[%s3627_s1 + $0x238] sm:$0xff]  }
  0xa6   : >> { %2469 = vmatprep.subr.bf16.mxu1 %v2793_v2 }
  0xa8   : >> { %2450 = vmatpush3.bf16.msra.mxu0 %v3419_v6 }
  0xa9   : >> { %2470 = vmatpush3.bf16.msra.mxu1 %v2936_v14  ;;  %2451 = vmatprep.subr.bf16.mxu0 %v2793_v2  ;;  %v3447_v14 = vsel %vm466_vm2, %v1203_v45, %v1204_v26  ;;  %v3676_v26 = vld [vmem:[#allocation18_spill] sm:$0xff] }
  0xaa   : >> { %2471 = vmatprep.subr.bf16.mxu1 %v2793_v2 }
  0xac   : >> { %2452 = vmatpush3.bf16.msra.mxu0 %v3429_v8 }
  0xad   : >> { %2472 = vmatpush3.bf16.msra.mxu1 %v2954_v19  ;;  %2453 = vmatprep.subr.bf16.mxu0 %v2793_v2 }
  0xae   : >> { %2473 = vmatprep.subr.bf16.mxu1 %v2793_v2 }
  0xb0   : >> { %2454 = vmatpush3.bf16.msra.mxu0 %v3439_v10 }
  0xb1   : >> { %2474 = vmatpush3.bf16.msra.mxu1 %v2969_v24  ;;  %2479 = vmatprep.subr.bf16.mxu0 %v2793_v2 }
  0xb2   : >> { %2499 = vmatprep.subr.bf16.mxu1 %v2793_v2 }
  0xb3   : >> { %2456 = vmatmul.mubr.bf16.vlgmr.msra.gmra.mrb[16].mxu0 %v3447_v14 }
  0xb4   : >> { %2476 = vmatmul.mubr.bf16.vlgmr.msra.gmra.mrb[16].mxu1 %v3227_v60  ;;  %2480 = vmatpush3.bf16.msra.mxu0 %v2863_v3  ;;  %v3663_v3 = vld [vmem:[#allocation12_spill] sm:$0xff] }
  0xb5   : >> { %2500 = vmatpush3.bf16.msra.mxu1 %v2985_v29  ;;  %2481 = vmatprep.subr.bf16.mxu0 %v2793_v2 }
  0xb6   : >> { %2501 = vmatprep.subr.bf16.mxu1 %v2793_v2  ;;  %2495 = vmatprep.mubr.msk.bf16.mxu0 %vm2794_vm0, %v2793_v2 }
  0xb7   : >> { %2515 = vmatprep.mubr.msk.bf16.mxu1 %vm2794_vm0, %v2793_v2 }
  0xb8   : >> { %2482 = vmatpush3.bf16.msra.mxu0 %v2878_v5 }
  0xb9   : >> { %2502 = vmatpush3.bf16.msra.mxu1 %v2999_v31  ;;  %2483 = vmatprep.subr.bf16.mxu0 %v2793_v2 }
  0xba   : >> { %2503 = vmatprep.subr.bf16.mxu1 %v2793_v2 }
  0xbc   : >> { %2484 = vmatpush3.bf16.msra.mxu0 %v2894_v7 }
  0xbd   : >> { %2504 = vmatpush3.bf16.msra.mxu1 %v3017_v33  ;;  %2485 = vmatprep.subr.bf16.mxu0 %v2793_v2  ;;  %v3667_v33 = vld [vmem:[#allocation16_spill] sm:$0xff] }
  0xbe   : >> { %2505 = vmatprep.subr.bf16.mxu1 %v2793_v2 }
  0xc0   : >> { %2486 = vmatpush3.bf16.msra.mxu0 %v2909_v9 }
  0xc1   : >> { %2506 = vmatpush3.bf16.msra.mxu1 %v3031_v35  ;;  %2487 = vmatprep.subr.bf16.mxu0 %v2793_v2  ;;  %v2757_v35 = vld [vmem:[%s2913_s20 + $0x24] sm:$0xff]  }
  0xc2   : >> { %2507 = vmatprep.subr.bf16.mxu1 %v2793_v2 }
  0xc4   : >> { %2488 = vmatpush3.bf16.msra.mxu0 %v2926_v11 }
  0xc5   : >> { %2508 = vmatpush3.bf16.msra.mxu1 %v3045_v37  ;;  %2489 = vmatprep.subr.bf16.mxu0 %v2793_v2  ;;  %v3670_v37 = vld [vmem:[#allocation9_spill] sm:$0xff] }
  0xc6   : >> { %2509 = vmatprep.subr.bf16.mxu1 %v2793_v2 }
  0xc8   : >> { %2490 = vmatpush3.bf16.msra.mxu0 %v2948_v17 }
  0xc9   : >> { %2510 = vmatpush3.bf16.msra.mxu1 %v3059_v39  ;;  %2491 = vmatprep.subr.bf16.mxu0 %v2793_v2  ;;  %v2105_v39 = vld [vmem:[%s2913_s20 + $0x24] sm:$0xf] }
  0xca   : >> { %2511 = vmatprep.subr.bf16.mxu1 %v2793_v2 }
  0xcc   : >> { %2492 = vmatpush3.bf16.msra.mxu0 %v2963_v23  ;;  %v3664_v23 = vld [vmem:[#allocation5_spill] sm:$0xff] }
  0xcd   : >> { %2512 = vmatpush3.bf16.msra.mxu1 %v3073_v42  ;;  %2493 = vmatprep.subr.bf16.mxu0 %v2793_v2  ;;  %v3672_v42 = vld [vmem:[#allocation11_spill] sm:$0xff] }
  0xce   : >> { %2513 = vmatprep.subr.bf16.mxu1 %v2793_v2 }
  0xd0   : >> { %2494 = vmatpush3.bf16.msra.mxu0 %v2975_v25  ;;  %v3665_v25 = vld [vmem:[#allocation14_spill] sm:$0xff] }
  0xd1   : >> { %2514 = vmatpush3.bf16.msra.mxu1 %v3090_v46  ;;  %2519 = vmatprep.subr.bf16.mxu0 %v2793_v2  ;;  %v3673_v46 = vld [vmem:[#allocation13_spill] sm:$0xff] }
  0xd2   : >> { %2539 = vmatprep.subr.bf16.mxu1 %v2793_v2 }
  0xd3   : >> { %2496 = vmatmul.mubr.bf16.vlgmr.msra.gmra.mrb[20].mxu0 %v3101_v49 }
  0xd4   : >> { %2516 = vmatmul.mubr.bf16.vlgmr.msra.gmra.mrb[20].mxu1 %v3236_v15  ;;  %2520 = vmatpush3.bf16.msra.mxu0 %v2992_v30 }
  0xd5   : >> { %2540 = vmatpush3.bf16.msra.mxu1 %v3108_v51  ;;  %2521 = vmatprep.subr.bf16.mxu0 %v2793_v2 }
  0xd6   : >> { %2541 = vmatprep.subr.bf16.mxu1 %v2793_v2  ;;  %2535 = vmatprep.mubr.msk.bf16.mxu0 %vm2794_vm0, %v2793_v2 }
  0xd7   : >> { %2555 = vmatprep.mubr.msk.bf16.mxu1 %vm2794_vm0, %v2793_v2 }
  0xd8   : >> { %2522 = vmatpush3.bf16.msra.mxu0 %v3006_v32  ;;  %v3666_v32 = vld [vmem:[#allocation6_spill] sm:$0xff] }
  0xd9   : >> { %2542 = vmatpush3.bf16.msra.mxu1 %v3123_v53  ;;  %2523 = vmatprep.subr.bf16.mxu0 %v2793_v2 }
  0xda   : >> { %2543 = vmatprep.subr.bf16.mxu1 %v2793_v2 }
  0xdc   : >> { %2524 = vmatpush3.bf16.msra.mxu0 %v3024_v34  ;;  %v3668_v34 = vld [vmem:[#allocation7_spill] sm:$0xff] }
  0xdd   : >> { %2544 = vmatpush3.bf16.msra.mxu1 %v3141_v55  ;;  %2525 = vmatprep.subr.bf16.mxu0 %v2793_v2 }
  0xde   : >> { %2545 = vmatprep.subr.bf16.mxu1 %v2793_v2 }
  0xe0   : >> { %2526 = vmatpush3.bf16.msra.mxu0 %v3038_v36  ;;  %v3669_v36 = vld [vmem:[#allocation8_spill] sm:$0xff] }
  0xe1   : >> { %2546 = vmatpush3.bf16.msra.mxu1 %v3154_v57  ;;  %2527 = vmatprep.subr.bf16.mxu0 %v2793_v2 }
  0xe2   : >> { %2547 = vmatprep.subr.bf16.mxu1 %v2793_v2 }
  0xe4   : >> { %2528 = vmatpush3.bf16.msra.mxu0 %v3052_v38  ;;  %v3671_v38 = vld [vmem:[#allocation10_spill] sm:$0xff] }
  0xe5   : >> { %2548 = vmatpush3.bf16.msra.mxu1 %v3171_v61  ;;  %2529 = vmatprep.subr.bf16.mxu0 %v2793_v2 }
  0xe6   : >> { %2549 = vmatprep.subr.bf16.mxu1 %v2793_v2 }
  0xe8   : >> { %2530 = vmatpush3.bf16.msra.mxu0 %v3066_v40  ;;  %v2106_v40 = vld [vmem:[%s2913_s20 + $0x28] sm:$0xf] }
  0xe9   : >> { %2550 = vmatpush3.bf16.msra.mxu1 %v3185_v12  ;;  %2531 = vmatprep.subr.bf16.mxu0 %v2793_v2 }
  0xea   : >> { %2551 = vmatprep.subr.bf16.mxu1 %v2793_v2 }
  0xec   : >> { %2532 = vmatpush3.bf16.msra.mxu0 %v3082_v44  ;;  %v2108_v44 = vcombine.low %v2105_v39, %v2106_v40 }
  0xed   : >> { %2552 = vmatpush3.bf16.msra.mxu1 %v3201_v20  ;;  %2533 = vmatprep.subr.bf16.mxu0 %v2793_v2 }
  0xee   : >> { %2553 = vmatprep.subr.bf16.mxu1 %v2793_v2  ;;  %v1631_v49 = vshll.u32 %v2108_v44, 16  ;;  %v1629_v61 = vshrl.u32 %v2108_v44, 16 }
  0xf0   : >> { %2534 = vmatpush3.bf16.msra.mxu0 %v3097_v48  ;;  %v2759_v48 = vld [vmem:[%s2913_s20 + $0x2c] ss:$0 sps:$4 sm:$0x11]  }
  0xf1   : >> { %2554 = vmatpush3.bf16.msra.mxu1 %v3215_v41  ;;  %2559 = vmatprep.subr.bf16.mxu0 %v2793_v2  ;;  %v1636_v12 = vshll.u32 %v2759_v48, 16  ;;  %v1689_v50 = vrot.slane %v2759_v48, 1 }
  0xf2   : >> { %2579 = vmatprep.subr.bf16.mxu1 %v2793_v2 }
  0xf3   : >> { %2536 = vmatmul.mubr.bf16.vlgmr.msra.gmra.mrb[24].mxu0 %v3359_v63  ;;  %v1633_v63 = vrot.slane %v1631_v49, 1 }
  0xf4   : >> { %2556 = vmatmul.mubr.bf16.vlgmr.msra.gmra.mrb[24].mxu1 %v3369_v0  ;;  %2560 = vmatpush3.bf16.msra.mxu0 %v3115_v52  ;;  %v3662_v0 = vld [vmem:[#allocation4_spill] sm:$0xff]  ;;  %v2110_v52 = vld [vmem:[%s2913_s20 + $0x24] sm:$0xe]  ;;  %s2112_s20 = sshll.u32 %s2791_s26, 2  ;;  %s201_s26 = sadd.s32 1, %s2791_s26  }
  0xf5   : >> { %2580 = vmatpush3.bf16.msra.mxu1 %v3232_v62  ;;  %2561 = vmatprep.subr.bf16.mxu0 %v2793_v2  ;;  %v2111_v62 = vcombine.low %v2110_v52, %v2106_v40  ;;  %s1749_s5 = scalar_lea.vmem %s2841_s22, %s2112_s20  ;;  %p198_p5 = scmp.ge.s32.totalorder %s201_s26, 8  }
  0xf6   : >> { %2581 = vmatprep.subr.bf16.mxu1 %v2793_v2  ;;  %2575 = vmatprep.mubr.msk.bf16.mxu0 %vm2794_vm0, %v2793_v2 }
  0xf7   : >> { %2595 = vmatprep.mubr.msk.bf16.mxu1 %vm2794_vm0, %v2793_v2 }
  0xf8   : >> { %2562 = vmatpush3.bf16.msra.mxu0 %v3130_v54 }
  0xf9   : >> { %2582 = vmatpush3.bf16.msra.mxu1 %v3251_v18  ;;  %2563 = vmatprep.subr.bf16.mxu0 %v2793_v2  ;;  %v3675_v18 = vld [vmem:[#allocation17_spill] sm:$0xff] }
  0xfa   : >> { %2583 = vmatprep.subr.bf16.mxu1 %v2793_v2 }
  0xfc   : >> { %2564 = vmatpush3.bf16.msra.mxu0 %v3148_v56 }
  0xfd   : >> { %2584 = vmatpush3.bf16.msra.mxu1 %v3269_v22  ;;  %2565 = vmatprep.subr.bf16.mxu0 %v2793_v2  ;;  %v1638_v22 = vrot.slane %v1636_v12, 1 }
  0xfe   : >> { %2585 = vmatprep.subr.bf16.mxu1 %v2793_v2 }
 0x100   : >> { %2566 = vmatpush3.bf16.msra.mxu0 %v3160_v58  ;;  %v3674_v58 = vld [vmem:[#allocation15_spill] sm:$0xff] }
 0x101   : >> { %2586 = vmatpush3.bf16.msra.mxu1 %v3283_v28  ;;  %2567 = vmatprep.subr.bf16.mxu0 %v2793_v2  ;;  %v1688_v28 = vrot.slane %v2111_v62, 1 }
 0x102   : >> { %2587 = vmatprep.subr.bf16.mxu1 %v2793_v2 }
 0x104   : >> { %2568 = vmatpush3.bf16.msra.mxu0 %v3662_v0 }
 0x105   : >> { %2588 = vmatpush3.bf16.msra.mxu1 %v3663_v3  ;;  %2569 = vmatprep.subr.bf16.mxu0 %v2793_v2 }
 0x106   : >> { %v348_v5 = vpop.f32.mrb[0].mxu0  ;;  %2589 = vmatprep.subr.bf16.mxu1 %v2793_v2 }
 0x107   : >> { %v438_v7 = vpop.f32.mrb[0].mxu1  ;;  %v2297_v9 = vpop.f32.mrb[1].mxu0 }
 0x108   : >> { %v439_v11 = vadd.f32 %v438_v7, %v348_v5  ;;  %v2317_v17 = vpop.f32.mrb[1].mxu1  ;;  %v351_v19 = vpop.f32.mrb[2].mxu0  ;;  %2570 = vmatpush3.bf16.msra.mxu0 %v3664_v23 }
 0x109   : >> { %v441_v24 = vpop.f32.mrb[2].mxu1  ;;  %2590 = vmatpush3.bf16.msra.mxu1 %v3665_v25  ;;  %v2298_v29 = vpop.f32.mrb[3].mxu0  ;;  %2571 = vmatprep.subr.bf16.mxu0 %v2793_v2 }
 0x10a   : >> { %v442_v30 = vadd.f32 %v441_v24, %v351_v19  ;;  %v2318_v31 = vpop.f32.mrb[3].mxu1  ;;  %2591 = vmatprep.subr.bf16.mxu1 %v2793_v2 }
 0x10c   : >> { %2572 = vmatpush3.bf16.msra.mxu0 %v3666_v32 }
 0x10d   : >> { %2592 = vmatpush3.bf16.msra.mxu1 %v3667_v33  ;;  %2573 = vmatprep.subr.bf16.mxu0 %v2793_v2 }
 0x10e   : >> { %2593 = vmatprep.subr.bf16.mxu1 %v2793_v2 }
 0x110   : >> { %2574 = vmatpush3.bf16.msra.mxu0 %v3668_v34 }
 0x111   : >> { %2594 = vmatpush3.bf16.msra.mxu1 %v3348_v21  ;;  %2599 = vmatprep.subr.bf16.mxu0 %v2793_v2  ;;  %v1634_v21 = vor.u32 %v1633_v63, %v1629_v61 }
 0x112   : >> { %2619 = vmatprep.subr.bf16.mxu1 %v2793_v2 }
 0x113   : >> { %2576 = vmatmul.mubr.bf16.vlgmr.msra.gmra.mrb[28].mxu0 %v3447_v14 }
 0x114   : >> { %2596 = vmatmul.mubr.bf16.vlgmr.msra.gmra.mrb[28].mxu1 %v2757_v35  ;;  %2600 = vmatpush3.bf16.msra.mxu0 %v3669_v36 }
 0x115   : >> { %2620 = vmatpush3.bf16.msra.mxu1 %v3365_v47  ;;  %2601 = vmatprep.subr.bf16.mxu0 %v2793_v2 }
 0x116   : >> { %2621 = vmatprep.subr.bf16.mxu1 %v2793_v2  ;;  %2615 = vmatprep.mubr.msk.bf16.mxu0 %vm2794_vm0, %v2793_v2 }
 0x117   : >> { %2635 = vmatprep.mubr.msk.bf16.mxu1 %vm2794_vm0, %v2793_v2 }
 0x118   : >> { %2602 = vmatpush3.bf16.msra.mxu0 %v3670_v37 }
 0x119   : >> { %2622 = vmatpush3.bf16.msra.mxu1 %v3379_v16  ;;  %2603 = vmatprep.subr.bf16.mxu0 %v2793_v2  ;;  %v1639_v16 = vsel %vm252_vm1, %v1634_v21, %v1638_v22 }
 0x11a   : >> { %2623 = vmatprep.subr.bf16.mxu1 %v2793_v2 }
 0x11c   : >> { %2604 = vmatpush3.bf16.msra.mxu0 %v3671_v38 }
 0x11d   : >> { %2624 = vmatpush3.bf16.msra.mxu1 %v3392_v27  ;;  %2605 = vmatprep.subr.bf16.mxu0 %v2793_v2  ;;  %v1690_v27 = vsel %vm466_vm2, %v1688_v28, %v1689_v50 }
 0x11e   : >> { %2625 = vmatprep.subr.bf16.mxu1 %v2793_v2 }
 0x120   : >> { %2606 = vmatpush3.bf16.msra.mxu0 %v3672_v42 }
 0x121   : >> { %2626 = vmatpush3.bf16.msra.mxu1 %v3401_v1  ;;  %2607 = vmatprep.subr.bf16.mxu0 %v2793_v2 }
 0x122   : >> { %2627 = vmatprep.subr.bf16.mxu1 %v2793_v2 }
 0x124   : >> { %2608 = vmatpush3.bf16.msra.mxu0 %v3673_v46 }
 0x125   : >> { %2628 = vmatpush3.bf16.msra.mxu1 %v3410_v4  ;;  %2609 = vmatprep.subr.bf16.mxu0 %v2793_v2 }
 0x126   : >> { %v553_v51 = vpop.f32.mrb[4].mxu0  ;;  %2629 = vmatprep.subr.bf16.mxu1 %v2793_v2 }
 0x127   : >> { %v560_v53 = vadd.f32 %v553_v51, %v439_v11  ;;  %v673_v54 = vpop.f32.mrb[4].mxu1  ;;  %v2337_v55 = vpop.f32.mrb[5].mxu0 }
 0x128   : >> { %v2357_v56 = vpop.f32.mrb[5].mxu1  ;;  %v556_v57 = vpop.f32.mrb[6].mxu0  ;;  %2610 = vmatpush3.bf16.msra.mxu0 %v3674_v58 }
 0x129   : >> { %v680_v20 = vadd.f32 %v673_v54, %v560_v53  ;;  %v561_v41 = vadd.f32 %v556_v57, %v442_v30  ;;  %v676_v47 = vpop.f32.mrb[6].mxu1  ;;  %2630 = vmatpush3.bf16.msra.mxu1 %v3419_v6  ;;  %v2338_v60 = vpop.f32.mrb[7].mxu0  ;;  %2611 = vmatprep.subr.bf16.mxu0 %v2793_v2 }
 0x12a   : >> { %v2358_v15 = vpop.f32.mrb[7].mxu1  ;;  %2631 = vmatprep.subr.bf16.mxu1 %v2793_v2 }
 0x12b   : >> { %v681_v13 = vadd.f32 %v676_v47, %v561_v41 }
 0x12c   : >> { %2612 = vmatpush3.bf16.msra.mxu0 %v3675_v18 }
 0x12d   : >> { %2632 = vmatpush3.bf16.msra.mxu1 %v3429_v8  ;;  %2613 = vmatprep.subr.bf16.mxu0 %v2793_v2 }
 0x12e   : >> { %2633 = vmatprep.subr.bf16.mxu1 %v2793_v2 }
 0x130   : >> { %2614 = vmatpush3.bf16.msra.mxu0 %v3676_v26 }
 0x131   : >> { %2634 = vmatpush3.bf16.msra.mxu1 %v3439_v10 }
 0x133   : >> { %2616 = vmatmul.mubr.bf16.vlgmr.msra.gmra.mrb[32].mxu0 %v1639_v16 }
 0x134   : >> { %2636 = vmatmul.mubr.bf16.vlgmr.msra.gmra.mrb[32].mxu1 %v1690_v27 }
 0x146   : >> { %v805_v1 = vpop.f32.mrb[8].mxu0 }
 0x147   : >> { %v812_v4 = vadd.f32 %v805_v1, %v680_v20  ;;  %v921_v6 = vpop.f32.mrb[8].mxu1  ;;  %v2377_v43 = vpop.f32.mrb[9].mxu0 }
 0x148   : >> { %v2397_v8 = vpop.f32.mrb[9].mxu1  ;;  %v808_v59 = vpop.f32.mrb[10].mxu0 }
 0x149   : >> { %v928_v45 = vadd.f32 %v921_v6, %v812_v4  ;;  %v813_v14 = vadd.f32 %v808_v59, %v681_v13  ;;  %v924_v0 = vpop.f32.mrb[10].mxu1  ;;  %v2378_v2 = vpop.f32.mrb[11].mxu0 }
 0x14a   : >> { %v2398_v3 = vpop.f32.mrb[11].mxu1 }
 0x14b   : >> { %v929_v5 = vadd.f32 %v924_v0, %v813_v14 }
 0x166   : >> { %v1041_v7 = vpop.f32.mrb[12].mxu0 }
 0x167   : >> { %v1048_v9 = vadd.f32 %v1041_v7, %v928_v45  ;;  %v1173_v11 = vpop.f32.mrb[12].mxu1  ;;  %v2417_v10 = vpop.f32.mrb[13].mxu0  ;;  %v3677_v7 = vld [vmem:[#allocation3_spill] sm:$0xff] }
 0x168   : >> { %v2437_v17 = vpop.f32.mrb[13].mxu1  ;;  %v1044_v19 = vpop.f32.mrb[14].mxu0 }
 0x169   : >> { %v1180_v23 = vadd.f32 %v1173_v11, %v1048_v9  ;;  %v1049_v24 = vadd.f32 %v1044_v19, %v929_v5  ;;  %v1176_v25 = vpop.f32.mrb[14].mxu1  ;;  %v2418_v29 = vpop.f32.mrb[15].mxu0 }
 0x16a   : >> { %v2438_v30 = vpop.f32.mrb[15].mxu1 }
 0x16b   : >> { %v1181_v31 = vadd.f32 %v1176_v25, %v1049_v24 }
 0x186   : >> { %v1289_v32 = vpop.f32.mrb[16].mxu0 }
 0x187   : >> { %v1296_v33 = vadd.f32 %v1289_v32, %v1180_v23  ;;  %v1342_v34 = vpop.f32.mrb[16].mxu1  ;;  %v2457_v35 = vpop.f32.mrb[17].mxu0 }
 0x188   : >> { %v2477_v36 = vpop.f32.mrb[17].mxu1  ;;  %v1292_v37 = vpop.f32.mrb[18].mxu0 }
 0x189   : >> { %v1297_v38 = vadd.f32 %v1292_v37, %v1181_v31  ;;  %v1345_v39 = vpop.f32.mrb[18].mxu1  ;;  %v2458_v40 = vpop.f32.mrb[19].mxu0  ;;  %v1304_v9 = vadd.f32 %v3677_v7, %v1296_v33 }
 0x18a   : >> { %v2478_v42 = vpop.f32.mrb[19].mxu1 }
 0x18b   : >> { %v1305_v24 = vadd.f32 %v3677_v7, %v1297_v38  ;;  %v1306_v30 = vmax.f32 %v1304_v9, 0.0 }
 0x1a6   : >> { %v1383_v44 = vpop.f32.mrb[20].mxu0 }
 0x1a7   : >> { %v1384_v46 = vadd.f32 %v1383_v44, %v1342_v34  ;;  %v1424_v48 = vpop.f32.mrb[20].mxu1  ;;  %v2497_v49 = vpop.f32.mrb[21].mxu0  ;;  %v1307_v34 = vmax.f32 %v1305_v24, 0.0 }
 0x1a8   : >> { %v2517_v51 = vpop.f32.mrb[21].mxu1  ;;  %v1386_v52 = vpop.f32.mrb[22].mxu0 }
 0x1a9   : >> { %v1431_v53 = vadd.f32 %v1424_v48, %v1384_v46  ;;  %v1387_v54 = vadd.f32 %v1386_v52, %v1345_v39  ;;  %v1427_v55 = vpop.f32.mrb[22].mxu1  ;;  %v2498_v56 = vpop.f32.mrb[23].mxu0 }
 0x1aa   : >> { %v2518_v57 = vpop.f32.mrb[23].mxu1 }
 0x1ab   : >> { %v1432_v58 = vadd.f32 %v1427_v55, %v1387_v54 }
 0x1c6   : >> { %v1467_v61 = vpop.f32.mrb[24].mxu0 }
 0x1c7   : >> { %v1474_v63 = vadd.f32 %v1467_v61, %v1431_v53  ;;  %v1510_v12 = vpop.f32.mrb[24].mxu1  ;;  %v2537_v20 = vpop.f32.mrb[25].mxu0 }
 0x1c8   : >> { %v2557_v41 = vpop.f32.mrb[25].mxu1  ;;  %v1470_v47 = vpop.f32.mrb[26].mxu0 }
 0x1c9   : >> { %v1517_v60 = vadd.f32 %v1510_v12, %v1474_v63  ;;  %v1475_v62 = vadd.f32 %v1470_v47, %v1432_v58  ;;  %v1513_v15 = vpop.f32.mrb[26].mxu1  ;;  %v2538_v13 = vpop.f32.mrb[27].mxu0 }
 0x1ca   : >> { %v2558_v18 = vpop.f32.mrb[27].mxu1 }
 0x1cb   : >> { %v1518_v21 = vadd.f32 %v1513_v15, %v1475_v62 }
 0x1e6   : >> { %v1553_v22 = vpop.f32.mrb[28].mxu0 }
 0x1e7   : >> { %v1560_v28 = vadd.f32 %v1553_v22, %v1517_v60  ;;  %v1608_v50 = vpop.f32.mrb[28].mxu1  ;;  %v2577_v26 = vpop.f32.mrb[29].mxu0 }
 0x1e8   : >> { %v2597_v16 = vpop.f32.mrb[29].mxu1  ;;  %v1556_v27 = vpop.f32.mrb[30].mxu0 }
 0x1e9   : >> { %v1615_v1 = vadd.f32 %v1608_v50, %v1560_v28  ;;  %v1561_v4 = vadd.f32 %v1556_v27, %v1518_v21  ;;  %v1611_v6 = vpop.f32.mrb[30].mxu1  ;;  %v2578_v43 = vpop.f32.mrb[31].mxu0 }
 0x1ea   : >> { %v2598_v8 = vpop.f32.mrb[31].mxu1 }
 0x1eb   : >> { %v1616_v59 = vadd.f32 %v1611_v6, %v1561_v4 }
 0x206   : >> { %v1675_v45 = vpop.f32.mrb[32].mxu0 }
 0x207   : >> { %v1682_v14 = vadd.f32 %v1675_v45, %v1615_v1  ;;  %v1726_v0 = vpop.f32.mrb[32].mxu1  ;;  %v2617_v2 = vpop.f32.mrb[33].mxu0 }
 0x208   : >> { %v2637_v3 = vpop.f32.mrb[33].mxu1  ;;  %v1678_v5 = vpop.f32.mrb[34].mxu0 }
 0x209   : >> { %v1733_v11 = vadd.f32 %v1726_v0, %v1682_v14  ;;  %v1683_v10 = vadd.f32 %v1678_v5, %v1616_v59  ;;  %v1729_v17 = vpop.f32.mrb[34].mxu1  ;;  %v2618_v19 = vpop.f32.mrb[35].mxu0 }
 0x20a   : >> { %v2638_v23 = vpop.f32.mrb[35].mxu1 }
 0x20b   : >> { %v1735_v25 = vadd.f32 %v3677_v7, %v1733_v11  ;;  %v1734_v29 = vadd.f32 %v1729_v17, %v1683_v10 }
 0x20d   : >> { %v1737_v31 = vmax.f32 %v1735_v25, 0.0  ;;  %v1736_v32 = vadd.f32 %v3677_v7, %v1734_v29 }
 0x20f   : >> { %v1739_v35 = vmax.f32 %v1306_v30, %v1737_v31  ;;  %v1738_v36 = vmax.f32 %v1736_v32, 0.0 }
 0x211   : >> { %1741 = vst [vmem:[#allocation2] sm:$0xff] %v1739_v35  ;;  %v1740_v33 = vmax.f32 %v1307_v34, %v1738_v36 }
 0x213   : >> { %1742 = vst [vmem:[#allocation2 + $0x8] sm:$0xff] %v1740_v33 }
 0x219   : > { %200 = sbr.rel (!%p198_p5) target bundleno = 18 (0x12), region = 83 }
 0x21a   : >> { %v1743_v37 = vld [vmem:[#allocation2] ss:$2 sm:$0xff]  ;;  %v1745_v39 = vld [vmem:[#allocation2 + $0x1] ss:$2 sm:$0xff] }
 0x21b   : >> { %v1746_v40 = vmax.f32 %v1743_v37, %v1745_v39 }
 0x21d   : >> { %v1747_v38 = vpack.c.bf16 %v1746_v40, %v1746_v40 }
 0x21f   : >> { %1750 = vst [vmem:[%s1749_s5] sm:$0xf] %v1747_v38 }
 0x220 PF: > { %s13_s14 = sadd.s32 1, %s2787_s14   ;;  %s3678_s12 = smov %s2783_s13 }
 0x221   : > { %p10_p6 = scmp.ge.s32.totalorder %s13_s14, 4   ;;  %s3679_s13 = smov %s3681_s15 }
 0x223   :  { %12 = sbr.rel (!%p10_p6) target bundleno = 2 (0x2), region = 94 }

// kernel: simple_cnn_forward.11
= control target key start
LH: loop header
LB: loop body
LE: loop exit
PB: predicated region body
PF: predicated region fallthrough
CT: control target
= control target key end

     0   :  { %v68_v9 = vlaneseq  ;;  %v314_v13 = vmov 1966171168   ;;  %s402_s0 = inlined_call_operand.vmem [shape: bf16[2,256], index: 0, kind: input, shape index: {}]   ;;  %s403_s1 = inlined_call_operand.vmem [shape: bf16[256,128], index: 1, kind: input, shape index: {}]   ;;  %s404_s2 = inlined_call_operand.vmem [shape: f32[1,128], index: 2, kind: input, shape index: {}]   ;;  %s405_s3 = inlined_call_operand.hbm [shape: f32[2,128], index: 3, kind: output, shape index: {}]  }
   0x1   :  { %v274_v0 = vld [vmem:[%s403_s1 + $0x40] sm:$0xff]   ;;  %v276_v2 = vld [vmem:[%s403_s1 + $0x48] sm:$0xff]   ;;  %v278_v4 = vld [vmem:[%s403_s1 + $0x50] sm:$0xff]   ;;  %v66_v14 = vunpack.c.l.s4 %v314_v13 }
   0x2   :  { %v275_v1 = vld [vmem:[%s403_s1] sm:$0xff]   ;;  %250 = vmatprep.subr.bf16.mxu0 %v274_v0  ;;  %v277_v3 = vld [vmem:[%s403_s1 + $0x8] sm:$0xff]   ;;  %v279_v5 = vld [vmem:[%s403_s1 + $0x10] sm:$0xff]   ;;  %v69_v15 = vshrl.u32 %v68_v9, 7 }
   0x3   :  { %251 = vmatpush3.bf16.msra.mxu0 %v275_v1  ;;  %v280_v6 = vld [vmem:[%s403_s1 + $0x58] sm:$0xff]   ;;  %v282_v8 = vld [vmem:[%s403_s1 + $0x60] sm:$0xff]   ;;  %v284_v11 = vld [vmem:[%s403_s1 + $0x68] sm:$0xff]  }
   0x4   :  { %252 = vmatprep.subr.bf16.mxu0 %v276_v2  ;;  %v281_v7 = vld [vmem:[%s403_s1 + $0x18] sm:$0xff]   ;;  %v283_v10 = vld [vmem:[%s403_s1 + $0x20] sm:$0xff]  }
   0x5   :  { %v233_v12 = vld.sshfl [vmem:[%s402_s0] sm:$0x11 pattern:$0x75316420] }
   0x7   :  { %253 = vmatpush3.bf16.msra.mxu0 %v277_v3 }
   0x8   :  { %254 = vmatprep.subr.bf16.mxu0 %v278_v4 }
   0xb   :  { %255 = vmatpush3.bf16.msra.mxu0 %v279_v5 }
   0xc   :  { %256 = vmatprep.subr.bf16.mxu0 %v280_v6 }
   0xf   :  { %257 = vmatpush3.bf16.msra.mxu0 %v281_v7 }
  0x10   :  { %258 = vmatprep.subr.bf16.mxu0 %v282_v8 }
  0x11   :  { %8 = vsyncpa [#allocation3], 0  ;;  %v285_v16 = vld [vmem:[%s403_s1 + $0x28] sm:$0xff]   ;;  %v64_v17 = vcombine.high %v233_v12, %v233_v12  ;;  %v67_v18 = vunpack.c.0.s8 %v66_v14  ;;  %v286_v19 = vld [vmem:[%s403_s1 + $0x70] sm:$0xff]   ;;  %s315_s20 = smov [#allocation2]  }
  0x12   :  { %v287_v21 = vld [vmem:[%s403_s1 + $0x30] sm:$0xff]   ;;  %v288_v23 = vld [vmem:[%s403_s1 + $0x78] sm:$0xff]   ;;  %v232_v28 = vld [vmem:[%s404_s2] ss:$0 sm:$0xff]  ;;  %s224_s21 = sshll.u32 %s315_s20, 4  ;;  %s225_s21 = int_to_ptr.vmem [resolvable:$true] %s224_s21 }
  0x13   :  { %259 = vmatpush3.bf16.msra.mxu0 %v283_v10  ;;  %v70_v20 = vsub.s32 %v67_v18, %v69_v15  ;;  %v289_v24 = vld [vmem:[%s403_s1 + $0x38] sm:$0xff]   ;;  %s290_s22 = scalar_lea.vmem %s225_s21, 32  ;;  %p295_p1 = scmp.lt.s32.totalorder %s225_s21, %s225_s21 }
  0x14   :  { %260 = vmatprep.subr.bf16.mxu0 %v284_v11  ;;  %p291_p0 = scmp.ne.s32.totalorder %s225_s21, %s290_s22  ;;  %p296_p2 = scmp.lt.s32.totalorder %s290_s22, %s290_s22 }
  0x15   :  { %v78_v22 = vrot.slane %v64_v17, %v70_v20  ;;  %v71_v25 = vrot.slane %v233_v12, %v70_v20 }
  0x16   :  { %p297_p3 = por %p296_p2, %p295_p1 }
  0x17   :  { %261 = vmatpush3.bf16.msra.mxu0 %v285_v16  ;;  %209 = vmatprep.mubr.bf16.mxu0 %v78_v22 }
  0x18   :  { %262 = vmatprep.subr.bf16.mxu0 %v286_v19  ;;  %p298_p4 = pnand %p297_p3, %p291_p0 }
  0x1b   :  { %263 = vmatpush3.bf16.msra.mxu0 %v287_v21 }
  0x1c   :  { %264 = vmatprep.subr.bf16.mxu0 %v288_v23 }
  0x1f   :  { %265 = vmatpush3.bf16.msra.mxu0 %v289_v24 }
  0x22   :  { %210 = vmatmul.mubr.bf16.vlgmr.msra.gmra.mrb[0].mxu0 %v71_v25 }
  0xf5   :  { %v266_v26 = vpop.f32.mrb[0].mxu0 }
  0xf6   :  { %v267_v27 = vpop.f32.mrb[1].mxu0 }
  0xf7   :  { %v268_v29 = vadd.f32 %v267_v27, %v266_v26  ;;  %v269_v30 = vpop.f32.mrb[2].mxu0 }
  0xf8   :  { %v270_v31 = vpop.f32.mrb[3].mxu0 }
  0xf9   :  { %v212_v32 = vadd.f32 %v268_v29, %v232_v28 }
  0xfb   :  { %217 = vst [vmem:[#allocation2] sm:$0x3] %v212_v32 }
  0xfc   :  { %301 = shalt.err (!%p298_p4)
}
  0xfd   :  { %s302_s24 = scalar_lea.hbm %s405_s3, 32 }
  0xfe   :  { %p303_p5 = scmp.ne.s32.totalorder %s405_s3, %s302_s24  ;;  %p306_p6 = scmp.lt.u32.totalorder %s302_s24, %s405_s3 }
 0x100   :  { %p308_p7 = pnand %p306_p6, %p303_p5 }
 0x102   :  { %311 = shalt.err (!%p308_p7)
}
 0x103   :  { %227 = dma.vmem_to_hbm [thread:$0]  %s225_s21, 32, %s405_s3, [#allocation3]  }
 0x104   :  { %312 = dma.done.wait [#allocation3], 32  }
 0x105   :  { %313 = vsyncadd [#allocation3], 4294967264 }
 0x106   :  { %231 = vsyncpa [#allocation3], 1 }

// kernel: simple_cnn_forward.8
= control target key start
LH: loop header
LB: loop body
LE: loop exit
PB: predicated region body
PF: predicated region fallthrough
CT: control target
= control target key end

     0   :  { %s2693_s12 = smov 0   ;;  %s2695_s13 = smov 0   ;;  %s3482_s0 = inlined_call_operand.vmem [shape: bf16[2,10,10,128], index: 0, kind: input, shape index: {}]   ;;  %s3483_s1 = inlined_call_operand.vmem [shape: bf16[9,128,128], index: 1, kind: input, shape index: {}]   ;;  %s3484_s2 = inlined_call_operand.vmem [shape: f32[1,128], index: 2, kind: input, shape index: {}]   ;;  %s3485_s3 = inlined_call_operand.vmem [shape: bf16[2,4,4,128], index: 3, kind: output, shape index: {}]  }
   0x1   :  { %s2697_s14 = smov 0  }
   0x2 LB: > { %s25_s15 = sadd.s32 1, %s2661_s13  ;;  %p1759_p0 = scmp.ge.s32.totalorder %s2665_s14, 1  ;;  %s2665_s14 = sphi %s2697_s14, %s13_s14   ;;  %s2661_s13 = sphi %s2695_s13, %s3526_s13   ;;  %s2657_s12 = sphi %s2693_s12, %s3525_s12  }
   0x3   : > { %p27_p1 = scmp.ge.s32.totalorder %s25_s15, 2  ;;  %p151_p2 = scmp.lt.s32.totalorder %s2665_s14, 3 }
   0x5   : > { %s3528_s15 = smov (%p27_p1, %s25_s15), 0  ;;  %p152_p3 = pnand %p1759_p0, %p151_p2 }
   0x6   : > { %p179_p4 = scmp.lt.s32.totalorder (!%p152_p3), %s2657_s12, 1  ;;  %v2714_v0 = vld [vmem:[%s3484_s2] ss:$0 sm:$0xff] (!%p152_p3)  ;;  %s2726_s26 = smov (!%p152_p3), 0  }
   0x7   : > { %155 = sbr.rel (%p152_p3) target bundleno = 542 (0x21e), region = 32  ;;  %3499 = vst [vmem:[#allocation3_spill] sm:$0xff] (!%p152_p3), %v2714_v0 }
   0xe   : > { %s3530_s12 = smov (!%p179_p4, %s2657_s12), 1 }
   0xf   : > { %s2524_s18 = smul.u32 80, %s3530_s12  ;;  %s1996_s19 = sshll.u32 %s3530_s12, 3 }
  0x10   : > { %s2719_s22 = scalar_lea.vmem %s3485_s3, %s1996_s19 }
  0x11   : > { %s2724_s25 = scalar_lea.vmem %s3482_s0, %s2524_s18 }
  0x12 LB: >> { %v2734_v1 = vld [vmem:[%s3483_s1 + $0x40] sm:$0xff]   ;;  %v2671_v2 = vmov 0.0   ;;  %v2747_v4 = vld [vmem:[%s3483_s1 + $0x48] sm:$0xff]   ;;  %vm2672_vm0 = vmmov 0   ;;  %v2765_v6 = vld [vmem:[%s3483_s1 + $0x50] sm:$0xff]   ;;  %s1998_s17 = sshll.u32 %s2669_s26, 4  ;;  %s2669_s26 = sphi %s2726_s26, %s201_s26  }
  0x13   : >> { %2164 = vmatprep.subr.bf16.mxu0 %v2671_v2  ;;  %2184 = vmatprep.subr.bf16.mxu1 %v2671_v2  ;;  %v2741_v3 = vld [vmem:[%s3483_s1] sm:$0xff]   ;;  %v2756_v5 = vld [vmem:[%s3483_s1 + $0x8] sm:$0xff]   ;;  %v2772_v7 = vld [vmem:[%s3483_s1 + $0x10] sm:$0xff]   ;;  %s2791_s20 = scalar_lea.vmem %s2724_s25, %s1998_s17 }
  0x14   : >> { %2165 = vmatpush3.bf16.msra.mxu0 %v2734_v1  ;;  %2180 = vmatprep.mubr.msk.bf16.mxu0 %vm2672_vm0, %v2671_v2  ;;  %v2779_v8 = vld [vmem:[%s3483_s1 + $0x58] sm:$0xff]   ;;  %v2797_v10 = vld [vmem:[%s3483_s1 + $0x60] sm:$0xff]   ;;  %v2816_v15 = vld [vmem:[%s3483_s1 + $0x68] sm:$0xff]  }
  0x15   : >> { %2185 = vmatpush3.bf16.msra.mxu1 %v2741_v3  ;;  %2166 = vmatprep.subr.bf16.mxu0 %v2671_v2  ;;  %v2787_v9 = vld [vmem:[%s3483_s1 + $0x18] sm:$0xff]   ;;  %v2804_v11 = vld [vmem:[%s3483_s1 + $0x20] sm:$0xff]   ;;  %v2823_v16 = vld [vmem:[%s3483_s1 + $0x28] sm:$0xff]  }
  0x16   : >> { %2186 = vmatprep.subr.bf16.mxu1 %v2671_v2  ;;  %2200 = vmatprep.mubr.msk.bf16.mxu1 %vm2672_vm0, %v2671_v2  ;;  %v208_v12 = vld [vmem:[%s2791_s20] sm:$0xf]  ;;  %v2809_v13 = vld [vmem:[%s2791_s20 + $0x4] sm:$0x1]  ;;  %v2830_v18 = vld [vmem:[%s3483_s1 + $0x70] sm:$0xff]  }
  0x17   : >> { %v1782_v14 = vcombine.low %v208_v12, %v2809_v13  ;;  %v2837_v19 = vld [vmem:[%s3483_s1 + $0x30] sm:$0xff]   ;;  %v2844_v22 = vld [vmem:[%s3483_s1 + $0x78] sm:$0xff]   ;;  %v2858_v25 = vld [vmem:[%s3483_s1 + $0x80] sm:$0xff]  }
  0x18   : >> { %2167 = vmatpush3.bf16.msra.mxu0 %v2747_v4  ;;  %v2851_v23 = vld [vmem:[%s3483_s1 + $0x38] sm:$0xff]   ;;  %v2865_v26 = vld [vmem:[%s3483_s1 + $0xc0] sm:$0xff]   ;;  %v2872_v27 = vld [vmem:[%s3483_s1 + $0x88] sm:$0xff]  }
  0x19   : >> { %2187 = vmatpush3.bf16.msra.mxu1 %v2756_v5  ;;  %2168 = vmatprep.subr.bf16.mxu0 %v2671_v2  ;;  %v251_v17 = vshll.u32 %v1782_v14, 16  ;;  %v249_v20 = vshrl.u32 %v1782_v14, 16  ;;  %v2879_v28 = vld [vmem:[%s3483_s1 + $0xc8] sm:$0xff]   ;;  %v2890_v29 = vld [vmem:[%s3483_s1 + $0x90] sm:$0xff]   ;;  %v2904_v31 = vld [vmem:[%s3483_s1 + $0x98] sm:$0xff]  }
  0x1a   : >> { %2188 = vmatprep.subr.bf16.mxu1 %v2671_v2  ;;  %v2897_v30 = vld [vmem:[%s3483_s1 + $0xd0] sm:$0xff]   ;;  %v2911_v32 = vld [vmem:[%s3483_s1 + $0xd8] sm:$0xff]   ;;  %v2918_v33 = vld [vmem:[%s3483_s1 + $0xa0] sm:$0xff]  }
  0x1b   : >> { %v253_v21 = vrot.slane %v251_v17, 1  ;;  %v2925_v34 = vld [vmem:[%s3483_s1 + $0xe0] sm:$0xff]   ;;  %v2932_v35 = vld [vmem:[%s3483_s1 + $0xa8] sm:$0xff]   ;;  %v2945_v37 = vld [vmem:[%s3483_s1 + $0xb0] sm:$0xff]  }
  0x1c   : >> { %2169 = vmatpush3.bf16.msra.mxu0 %v2765_v6  ;;  %v2939_v36 = vld [vmem:[%s3483_s1 + $0xe8] sm:$0xff]   ;;  %v2950_v38 = vld [vmem:[%s3483_s1 + $0xf0] sm:$0xff]   ;;  %v432_v39 = vld [vmem:[%s2791_s20] sm:$0xe] }
  0x1d   : >> { %2189 = vmatpush3.bf16.msra.mxu1 %v2772_v7  ;;  %2170 = vmatprep.subr.bf16.mxu0 %v2671_v2  ;;  %v254_v24 = vor.u32 %v253_v21, %v249_v20  ;;  %v1815_v40 = vcombine.low %v432_v39, %v2809_v13  ;;  %v2962_v41 = vld [vmem:[%s3483_s1 + $0xb8] sm:$0xff]   ;;  %v2973_v44 = vld [vmem:[%s2791_s20 + $0x8] sm:$0xf]  ;;  %v2979_v45 = vld [vmem:[%s3483_s1 + $0x100] sm:$0xff]  }
  0x1e   : >> { %2190 = vmatprep.subr.bf16.mxu1 %v2671_v2  ;;  %v2969_v42 = vld [vmem:[%s3483_s1 + $0xf8] sm:$0xff]   ;;  %v2986_v46 = vld [vmem:[%s3483_s1 + $0x140] sm:$0xff]   ;;  %v2994_v47 = vld [vmem:[%s3483_s1 + $0x108] sm:$0xff]  }
  0x1f   : >> { %v453_v43 = vrot.slane %v1815_v40, 1  ;;  %v3001_v48 = vld [vmem:[%s3483_s1 + $0x148] sm:$0xff]   ;;  %v3012_v49 = vld [vmem:[%s3483_s1 + $0x110] sm:$0xff]   ;;  %v3026_v51 = vld [vmem:[%s3483_s1 + $0x118] sm:$0xff]  }
  0x20   : >> { %2171 = vmatpush3.bf16.msra.mxu0 %v2779_v8  ;;  %v3017_v50 = vld [vmem:[%s3483_s1 + $0x150] sm:$0xff]   ;;  %v3033_v52 = vld [vmem:[%s3483_s1 + $0x158] sm:$0xff]   ;;  %v3040_v53 = vld [vmem:[%s3483_s1 + $0x120] sm:$0xff]  }
  0x21   : >> { %2191 = vmatpush3.bf16.msra.mxu1 %v2787_v9  ;;  %2172 = vmatprep.subr.bf16.mxu0 %v2671_v2  ;;  %v1851_v54 = vld [vmem:[%s2791_s20 + $0x8] sm:$0xf]  ;;  %v1852_v55 = vld [vmem:[%s2791_s20 + $0xc] sm:$0x1]  ;;  %v3049_v56 = vld [vmem:[%s3483_s1 + $0x160] sm:$0xff]  }
  0x22   : >> { %2192 = vmatprep.subr.bf16.mxu1 %v2671_v2  ;;  %v1869_v57 = vcombine.low %v1851_v54, %v1852_v55  ;;  %v3056_v58 = vld [vmem:[%s3483_s1 + $0x128] sm:$0xff]   ;;  %v3070_v61 = vld [vmem:[%s3483_s1 + $0x130] sm:$0xff]   ;;  %v3085_v14 = vld [vmem:[%s3483_s1 + $0x138] sm:$0xff]  }
  0x23   : >> { %v3063_v59 = vld [vmem:[%s3483_s1 + $0x168] sm:$0xff]   ;;  %v3077_v62 = vld [vmem:[%s3483_s1 + $0x170] sm:$0xff]   ;;  %v3092_v20 = vld [vmem:[%s3483_s1 + $0x178] sm:$0xff]  }
  0x24   : >> { %2173 = vmatpush3.bf16.msra.mxu0 %v2797_v10  ;;  %3500 = vst [vmem:[#allocation4_spill] sm:$0xff] %v3063_v59  ;;  %v682_v60 = vshll.u32 %v1869_v57, 16  ;;  %3501 = vst [vmem:[#allocation5_spill] sm:$0xff] %v3077_v62  ;;  %v1878_v63 = vld [vmem:[%s2791_s20 + $0x8] sm:$0xe]  ;;  %v3103_v39 = vld [vmem:[%s3483_s1 + $0x180] sm:$0xff]  }
  0x25   : >> { %2193 = vmatpush3.bf16.msra.mxu1 %v2804_v11  ;;  %2174 = vmatprep.subr.bf16.mxu0 %v2671_v2  ;;  %v1895_v17 = vcombine.low %v1878_v63, %v1852_v55  ;;  %3502 = vst [vmem:[#allocation6_spill] sm:$0xff] %v3092_v20  ;;  %v3110_v40 = vld [vmem:[%s3483_s1 + $0x1c0] sm:$0xff]   ;;  %v3126_v54 = vld [vmem:[%s3483_s1 + $0x1c8] sm:$0xff]   ;;  %v3137_v55 = vld [vmem:[%s3483_s1 + $0x190] sm:$0xff]  }
  0x26   : >> { %2194 = vmatprep.subr.bf16.mxu1 %v2671_v2  ;;  %v684_v13 = vrot.slane %v682_v60, 1  ;;  %3503 = vst [vmem:[#allocation7_spill] sm:$0xff] %v3110_v40  ;;  %3504 = vst [vmem:[#allocation8_spill] sm:$0xff] %v3126_v54  ;;  %v3151_v60 = vld [vmem:[%s3483_s1 + $0x198] sm:$0xff]   ;;  %v3176_v0 = vld [vmem:[%s2791_s20 + $0x14] sm:$0x1] }
  0x27   : >> { %v3158_v63 = vld [vmem:[%s3483_s1 + $0x1d8] sm:$0xff]  }
  0x28   : >> { %2175 = vmatpush3.bf16.msra.mxu0 %v2816_v15  ;;  %3506 = vst [vmem:[#allocation10_spill] sm:$0xff] %v3158_v63 }
  0x29   : >> { %2195 = vmatpush3.bf16.msra.mxu1 %v2823_v16  ;;  %2176 = vmatprep.subr.bf16.mxu0 %v2671_v2 }
  0x2a   : >> { %2196 = vmatprep.subr.bf16.mxu1 %v2671_v2 }
  0x2c   : >> { %2177 = vmatpush3.bf16.msra.mxu0 %v2830_v18 }
  0x2d   : >> { %2197 = vmatpush3.bf16.msra.mxu1 %v2837_v19  ;;  %2178 = vmatprep.subr.bf16.mxu0 %v2671_v2 }
  0x2e   : >> { %2198 = vmatprep.subr.bf16.mxu1 %v2671_v2 }
  0x30   : >> { %2179 = vmatpush3.bf16.msra.mxu0 %v2844_v22 }
  0x31   : >> { %2199 = vmatpush3.bf16.msra.mxu1 %v2851_v23  ;;  %2204 = vmatprep.subr.bf16.mxu0 %v2671_v2 }
  0x32   : >> { %2224 = vmatprep.subr.bf16.mxu1 %v2671_v2 }
  0x33   : >> { %2181 = vmatmul.mubr.bf16.vlgmr.msra.gmra.mrb[0].mxu0 %v254_v24  ;;  %v3098_v24 = vrot.slane %v1895_v17, 1  ;;  %v1931_v17 = vld [vmem:[%s2791_s20 + $0x10] sm:$0xf] }
  0x34   : >> { %2201 = vmatmul.mubr.bf16.vlgmr.msra.gmra.mrb[0].mxu1 %v208_v12  ;;  %2205 = vmatpush3.bf16.msra.mxu0 %v2858_v25  ;;  %v680_v12 = vshrl.u32 %v1869_v57, 16  ;;  %v3144_v57 = vld [vmem:[%s3483_s1 + $0x1d0] sm:$0xff]  }
  0x35   : >> { %2225 = vmatpush3.bf16.msra.mxu1 %v2865_v26  ;;  %2206 = vmatprep.subr.bf16.mxu0 %v2671_v2  ;;  %3505 = vst [vmem:[#allocation9_spill] sm:$0xff] %v3144_v57 }
  0x36   : >> { %2226 = vmatprep.subr.bf16.mxu1 %v2671_v2  ;;  %2220 = vmatprep.mubr.msk.bf16.mxu0 %vm2672_vm0, %v2671_v2  ;;  %v3095_v21 = vor.u32 %v684_v13, %v680_v12  ;;  %v3165_v12 = vld [vmem:[%s3483_s1 + $0x1a0] sm:$0xff]  }
  0x37   : >> { %2240 = vmatprep.mubr.msk.bf16.mxu1 %vm2672_vm0, %v2671_v2  ;;  %v3172_v13 = vld [vmem:[%s3483_s1 + $0x1e0] sm:$0xff]  }
  0x38   : >> { %2207 = vmatpush3.bf16.msra.mxu0 %v2872_v27  ;;  %3507 = vst [vmem:[#allocation11_spill] sm:$0xff] %v3172_v13 }
  0x39   : >> { %2227 = vmatpush3.bf16.msra.mxu1 %v2879_v28  ;;  %2208 = vmatprep.subr.bf16.mxu0 %v2671_v2 }
  0x3a   : >> { %2228 = vmatprep.subr.bf16.mxu1 %v2671_v2 }
  0x3c   : >> { %2209 = vmatpush3.bf16.msra.mxu0 %v2890_v29 }
  0x3d   : >> { %2229 = vmatpush3.bf16.msra.mxu1 %v2897_v30  ;;  %2210 = vmatprep.subr.bf16.mxu0 %v2671_v2 }
  0x3e   : >> { %2230 = vmatprep.subr.bf16.mxu1 %v2671_v2 }
  0x40   : >> { %2211 = vmatpush3.bf16.msra.mxu0 %v2904_v31 }
  0x41   : >> { %2231 = vmatpush3.bf16.msra.mxu1 %v2911_v32  ;;  %2212 = vmatprep.subr.bf16.mxu0 %v2671_v2 }
  0x42   : >> { %2232 = vmatprep.subr.bf16.mxu1 %v2671_v2 }
  0x44   : >> { %2213 = vmatpush3.bf16.msra.mxu0 %v2918_v33 }
  0x45   : >> { %2233 = vmatpush3.bf16.msra.mxu1 %v2925_v34  ;;  %2214 = vmatprep.subr.bf16.mxu0 %v2671_v2 }
  0x46   : >> { %2234 = vmatprep.subr.bf16.mxu1 %v2671_v2 }
  0x48   : >> { %2215 = vmatpush3.bf16.msra.mxu0 %v2932_v35 }
  0x49   : >> { %2235 = vmatpush3.bf16.msra.mxu1 %v2939_v36  ;;  %2216 = vmatprep.subr.bf16.mxu0 %v2671_v2 }
  0x4a   : >> { %2236 = vmatprep.subr.bf16.mxu1 %v2671_v2 }
  0x4c   : >> { %2217 = vmatpush3.bf16.msra.mxu0 %v2945_v37 }
  0x4d   : >> { %2237 = vmatpush3.bf16.msra.mxu1 %v2950_v38  ;;  %2218 = vmatprep.subr.bf16.mxu0 %v2671_v2 }
  0x4e   : >> { %2238 = vmatprep.subr.bf16.mxu1 %v2671_v2 }
  0x50   : >> { %2219 = vmatpush3.bf16.msra.mxu0 %v2962_v41 }
  0x51   : >> { %2239 = vmatpush3.bf16.msra.mxu1 %v2969_v42  ;;  %2244 = vmatprep.subr.bf16.mxu0 %v2671_v2 }
  0x52   : >> { %2264 = vmatprep.subr.bf16.mxu1 %v2671_v2 }
  0x53   : >> { %2221 = vmatmul.mubr.bf16.vlgmr.msra.gmra.mrb[4].mxu0 %v453_v43  ;;  %v3119_v43 = vld [vmem:[%s3483_s1 + $0x188] sm:$0xff]  }
  0x54   : >> { %2241 = vmatmul.mubr.bf16.vlgmr.msra.gmra.mrb[4].mxu1 %v2973_v44  ;;  %2245 = vmatpush3.bf16.msra.mxu0 %v2979_v45 }
  0x55   : >> { %2265 = vmatpush3.bf16.msra.mxu1 %v2986_v46  ;;  %2246 = vmatprep.subr.bf16.mxu0 %v2671_v2 }
  0x56   : >> { %2266 = vmatprep.subr.bf16.mxu1 %v2671_v2  ;;  %2260 = vmatprep.mubr.msk.bf16.mxu0 %vm2672_vm0, %v2671_v2 }
  0x57   : >> { %2280 = vmatprep.mubr.msk.bf16.mxu1 %vm2672_vm0, %v2671_v2 }
  0x58   : >> { %2247 = vmatpush3.bf16.msra.mxu0 %v2994_v47 }
  0x59   : >> { %2267 = vmatpush3.bf16.msra.mxu1 %v3001_v48  ;;  %2248 = vmatprep.subr.bf16.mxu0 %v2671_v2 }
  0x5a   : >> { %2268 = vmatprep.subr.bf16.mxu1 %v2671_v2 }
  0x5c   : >> { %2249 = vmatpush3.bf16.msra.mxu0 %v3012_v49 }
  0x5d   : >> { %2269 = vmatpush3.bf16.msra.mxu1 %v3017_v50  ;;  %2250 = vmatprep.subr.bf16.mxu0 %v2671_v2 }
  0x5e   : >> { %2270 = vmatprep.subr.bf16.mxu1 %v2671_v2 }
  0x60   : >> { %2251 = vmatpush3.bf16.msra.mxu0 %v3026_v51 }
  0x61   : >> { %2271 = vmatpush3.bf16.msra.mxu1 %v3033_v52  ;;  %2252 = vmatprep.subr.bf16.mxu0 %v2671_v2 }
  0x62   : >> { %2272 = vmatprep.subr.bf16.mxu1 %v2671_v2 }
  0x64   : >> { %2253 = vmatpush3.bf16.msra.mxu0 %v3040_v53 }
  0x65   : >> { %2273 = vmatpush3.bf16.msra.mxu1 %v3049_v56  ;;  %2254 = vmatprep.subr.bf16.mxu0 %v2671_v2 }
  0x66   : >> { %2274 = vmatprep.subr.bf16.mxu1 %v2671_v2 }
  0x68   : >> { %2255 = vmatpush3.bf16.msra.mxu0 %v3056_v58 }
  0x69   : >> { %2275 = vmatpush3.bf16.msra.mxu1 %v3063_v59  ;;  %2256 = vmatprep.subr.bf16.mxu0 %v2671_v2 }
  0x6a   : >> { %2276 = vmatprep.subr.bf16.mxu1 %v2671_v2 }
  0x6c   : >> { %2257 = vmatpush3.bf16.msra.mxu0 %v3070_v61 }
  0x6d   : >> { %2277 = vmatpush3.bf16.msra.mxu1 %v3077_v62  ;;  %2258 = vmatprep.subr.bf16.mxu0 %v2671_v2 }
  0x6e   : >> { %2278 = vmatprep.subr.bf16.mxu1 %v2671_v2 }
  0x70   : >> { %2259 = vmatpush3.bf16.msra.mxu0 %v3085_v14 }
  0x71   : >> { %2279 = vmatpush3.bf16.msra.mxu1 %v3092_v20  ;;  %2284 = vmatprep.subr.bf16.mxu0 %v2671_v2  ;;  %v3212_v20 = vld [vmem:[%s3483_s1 + $0x1b8] sm:$0xff]  }
  0x72   : >> { %2304 = vmatprep.subr.bf16.mxu1 %v2671_v2 }
  0x73   : >> { %2261 = vmatmul.mubr.bf16.vlgmr.msra.gmra.mrb[8].mxu0 %v3095_v21 }
  0x74   : >> { %2281 = vmatmul.mubr.bf16.vlgmr.msra.gmra.mrb[8].mxu1 %v3098_v24  ;;  %2285 = vmatpush3.bf16.msra.mxu0 %v3103_v39 }
  0x75   : >> { %2305 = vmatpush3.bf16.msra.mxu1 %v3110_v40  ;;  %2286 = vmatprep.subr.bf16.mxu0 %v2671_v2  ;;  %v3198_v40 = vld [vmem:[%s3483_s1 + $0x1b0] sm:$0xff]  }
  0x76   : >> { %2306 = vmatprep.subr.bf16.mxu1 %v2671_v2  ;;  %2300 = vmatprep.mubr.msk.bf16.mxu0 %vm2672_vm0, %v2671_v2  ;;  %3510 = vst [vmem:[#allocation14_spill] sm:$0xff] %v3198_v40 }
  0x77   : >> { %2320 = vmatprep.mubr.msk.bf16.mxu1 %vm2672_vm0, %v2671_v2 }
  0x78   : >> { %2287 = vmatpush3.bf16.msra.mxu0 %v3119_v43 }
  0x79   : >> { %2307 = vmatpush3.bf16.msra.mxu1 %v3126_v54  ;;  %2288 = vmatprep.subr.bf16.mxu0 %v2671_v2  ;;  %v3191_v54 = vld [vmem:[%s3483_s1 + $0x1e8] sm:$0xff]  }
  0x7a   : >> { %2308 = vmatprep.subr.bf16.mxu1 %v2671_v2  ;;  %3509 = vst [vmem:[#allocation13_spill] sm:$0xff] %v3191_v54 }
  0x7c   : >> { %2289 = vmatpush3.bf16.msra.mxu0 %v3137_v55 }
  0x7d   : >> { %2309 = vmatpush3.bf16.msra.mxu1 %v3144_v57  ;;  %2290 = vmatprep.subr.bf16.mxu0 %v2671_v2  ;;  %v3183_v57 = vld [vmem:[%s3483_s1 + $0x1a8] sm:$0xff]  }
  0x7e   : >> { %2310 = vmatprep.subr.bf16.mxu1 %v2671_v2  ;;  %3508 = vst [vmem:[#allocation12_spill] sm:$0xff] %v3183_v57 }
  0x80   : >> { %2291 = vmatpush3.bf16.msra.mxu0 %v3151_v60 }
  0x81   : >> { %2311 = vmatpush3.bf16.msra.mxu1 %v3158_v63  ;;  %2292 = vmatprep.subr.bf16.mxu0 %v2671_v2  ;;  %v1949_v63 = vcombine.low %v1931_v17, %v3176_v0 }
  0x82   : >> { %2312 = vmatprep.subr.bf16.mxu1 %v2671_v2 }
  0x83   : >> { %v1026_v17 = vshll.u32 %v1949_v63, 16  ;;  %v1024_v62 = vshrl.u32 %v1949_v63, 16  ;;  %v3231_v63 = vld [vmem:[%s3483_s1 + $0x200] sm:$0xff]  }
  0x84   : >> { %2293 = vmatpush3.bf16.msra.mxu0 %v3165_v12 }
  0x85   : >> { %2313 = vmatpush3.bf16.msra.mxu1 %v3172_v13  ;;  %2294 = vmatprep.subr.bf16.mxu0 %v2671_v2  ;;  %v3205_v13 = vld [vmem:[%s3483_s1 + $0x1f0] sm:$0xff]  }
  0x86   : >> { %2314 = vmatprep.subr.bf16.mxu1 %v2671_v2 }
  0x88   : >> { %2295 = vmatpush3.bf16.msra.mxu0 %v3183_v57  ;;  %v1028_v57 = vrot.slane %v1026_v17, 1  ;;  %v1958_v17 = vld [vmem:[%s2791_s20 + $0x10] sm:$0xe] }
  0x89   : >> { %2315 = vmatpush3.bf16.msra.mxu1 %v3191_v54  ;;  %2296 = vmatprep.subr.bf16.mxu0 %v2671_v2  ;;  %v3219_v54 = vld [vmem:[%s3483_s1 + $0x1f8] sm:$0xff]  }
  0x8a   : >> { %2316 = vmatprep.subr.bf16.mxu1 %v2671_v2  ;;  %3511 = vst [vmem:[#allocation15_spill] sm:$0xff] %v3219_v54  ;;  %v3226_v59 = vor.u32 %v1028_v57, %v1024_v62  ;;  %v3242_v62 = vld [vmem:[%s3483_s1 + $0x208] sm:$0xff]   ;;  %v3255_v57 = vld [vmem:[%s3483_s1 + $0x210] sm:$0xff]  }
  0x8c   : >> { %2297 = vmatpush3.bf16.msra.mxu0 %v3198_v40  ;;  %v3224_v40 = vld [vmem:[%s2791_s20 + $0x10] sm:$0xf] }
  0x8d   : >> { %2317 = vmatpush3.bf16.msra.mxu1 %v3205_v13  ;;  %2298 = vmatprep.subr.bf16.mxu0 %v2671_v2 }
  0x8e   : >> { %2318 = vmatprep.subr.bf16.mxu1 %v2671_v2 }
  0x90   : >> { %2299 = vmatpush3.bf16.msra.mxu0 %v3212_v20 }
  0x91   : >> { %2319 = vmatpush3.bf16.msra.mxu1 %v3219_v54  ;;  %2324 = vmatprep.subr.bf16.mxu0 %v2671_v2  ;;  %v3302_v54 = vld [vmem:[%s3483_s1 + $0x238] sm:$0xff]  }
  0x92   : >> { %2344 = vmatprep.subr.bf16.mxu1 %v2671_v2 }
  0x93   : >> { %2301 = vmatmul.mubr.bf16.vlgmr.msra.gmra.mrb[12].mxu0 %v3224_v40 }
  0x94   : >> { %2321 = vmatmul.mubr.bf16.vlgmr.msra.gmra.mrb[12].mxu1 %v3226_v59  ;;  %2325 = vmatpush3.bf16.msra.mxu0 %v3231_v63 }
  0x95   : >> { %2345 = vmatpush3.bf16.msra.mxu1 %v2734_v1  ;;  %2326 = vmatprep.subr.bf16.mxu0 %v2671_v2  ;;  %v3264_v1 = vld [vmem:[%s3483_s1 + $0x218] sm:$0xff]  }
  0x96   : >> { %2346 = vmatprep.subr.bf16.mxu1 %v2671_v2  ;;  %2340 = vmatprep.mubr.msk.bf16.mxu0 %vm2672_vm0, %v2671_v2 }
  0x97   : >> { %2360 = vmatprep.mubr.msk.bf16.mxu1 %vm2672_vm0, %v2671_v2 }
  0x98   : >> { %2327 = vmatpush3.bf16.msra.mxu0 %v3242_v62 }
  0x99   : >> { %2347 = vmatpush3.bf16.msra.mxu1 %v2747_v4  ;;  %2328 = vmatprep.subr.bf16.mxu0 %v2671_v2  ;;  %v3273_v4 = vld [vmem:[%s3483_s1 + $0x220] sm:$0xff]  }
  0x9a   : >> { %2348 = vmatprep.subr.bf16.mxu1 %v2671_v2 }
  0x9c   : >> { %2329 = vmatpush3.bf16.msra.mxu0 %v3255_v57 }
  0x9d   : >> { %2349 = vmatpush3.bf16.msra.mxu1 %v2765_v6  ;;  %2330 = vmatprep.subr.bf16.mxu0 %v2671_v2  ;;  %v3282_v6 = vld [vmem:[%s3483_s1 + $0x228] sm:$0xff]  }
  0x9e   : >> { %2350 = vmatprep.subr.bf16.mxu1 %v2671_v2 }
  0xa0   : >> { %2331 = vmatpush3.bf16.msra.mxu0 %v3264_v1 }
  0xa1   : >> { %2351 = vmatpush3.bf16.msra.mxu1 %v2779_v8  ;;  %2332 = vmatprep.subr.bf16.mxu0 %v2671_v2  ;;  %v3291_v8 = vld [vmem:[%s3483_s1 + $0x230] sm:$0xff]  }
  0xa2   : >> { %2352 = vmatprep.subr.bf16.mxu1 %v2671_v2 }
  0xa4   : >> { %2333 = vmatpush3.bf16.msra.mxu0 %v3273_v4 }
  0xa5   : >> { %2353 = vmatpush3.bf16.msra.mxu1 %v2797_v10  ;;  %2334 = vmatprep.subr.bf16.mxu0 %v2671_v2  ;;  %v1975_v10 = vcombine.low %v1958_v17, %v3176_v0 }
  0xa6   : >> { %2354 = vmatprep.subr.bf16.mxu1 %v2671_v2 }
  0xa8   : >> { %2335 = vmatpush3.bf16.msra.mxu0 %v3282_v6 }
  0xa9   : >> { %2355 = vmatpush3.bf16.msra.mxu1 %v2816_v15  ;;  %2336 = vmatprep.subr.bf16.mxu0 %v2671_v2  ;;  %v3307_v15 = vrot.slane %v1975_v10, 1 }
  0xaa   : >> { %2356 = vmatprep.subr.bf16.mxu1 %v2671_v2 }
  0xac   : >> { %2337 = vmatpush3.bf16.msra.mxu0 %v3291_v8 }
  0xad   : >> { %2357 = vmatpush3.bf16.msra.mxu1 %v2830_v18  ;;  %2338 = vmatprep.subr.bf16.mxu0 %v2671_v2 }
  0xae   : >> { %2358 = vmatprep.subr.bf16.mxu1 %v2671_v2 }
  0xb0   : >> { %2339 = vmatpush3.bf16.msra.mxu0 %v3302_v54 }
  0xb1   : >> { %2359 = vmatpush3.bf16.msra.mxu1 %v2844_v22  ;;  %2364 = vmatprep.subr.bf16.mxu0 %v2671_v2 }
  0xb2   : >> { %2384 = vmatprep.subr.bf16.mxu1 %v2671_v2 }
  0xb3   : >> { %2341 = vmatmul.mubr.bf16.vlgmr.msra.gmra.mrb[16].mxu0 %v3307_v15 }
  0xb4   : >> { %2361 = vmatmul.mubr.bf16.vlgmr.msra.gmra.mrb[16].mxu1 %v3095_v21  ;;  %2365 = vmatpush3.bf16.msra.mxu0 %v2741_v3 }
  0xb5   : >> { %2385 = vmatpush3.bf16.msra.mxu1 %v2858_v25  ;;  %2366 = vmatprep.subr.bf16.mxu0 %v2671_v2  ;;  %v3514_v25 = vld [vmem:[#allocation5_spill] sm:$0xff] }
  0xb6   : >> { %2386 = vmatprep.subr.bf16.mxu1 %v2671_v2  ;;  %2380 = vmatprep.mubr.msk.bf16.mxu0 %vm2672_vm0, %v2671_v2 }
  0xb7   : >> { %2400 = vmatprep.mubr.msk.bf16.mxu1 %vm2672_vm0, %v2671_v2 }
  0xb8   : >> { %2367 = vmatpush3.bf16.msra.mxu0 %v2756_v5 }
  0xb9   : >> { %2387 = vmatpush3.bf16.msra.mxu1 %v2872_v27  ;;  %2368 = vmatprep.subr.bf16.mxu0 %v2671_v2  ;;  %v3516_v27 = vld [vmem:[#allocation6_spill] sm:$0xff] }
  0xba   : >> { %2388 = vmatprep.subr.bf16.mxu1 %v2671_v2 }
  0xbc   : >> { %2369 = vmatpush3.bf16.msra.mxu0 %v2772_v7 }
  0xbd   : >> { %2389 = vmatpush3.bf16.msra.mxu1 %v2890_v29  ;;  %2370 = vmatprep.subr.bf16.mxu0 %v2671_v2  ;;  %v3517_v29 = vld [vmem:[#allocation7_spill] sm:$0xff] }
  0xbe   : >> { %2390 = vmatprep.subr.bf16.mxu1 %v2671_v2 }
  0xc0   : >> { %2371 = vmatpush3.bf16.msra.mxu0 %v2787_v9 }
  0xc1   : >> { %2391 = vmatpush3.bf16.msra.mxu1 %v2904_v31  ;;  %2372 = vmatprep.subr.bf16.mxu0 %v2671_v2  ;;  %v3519_v31 = vld [vmem:[#allocation9_spill] sm:$0xff] }
  0xc2   : >> { %2392 = vmatprep.subr.bf16.mxu1 %v2671_v2 }
  0xc4   : >> { %2373 = vmatpush3.bf16.msra.mxu0 %v2804_v11 }
  0xc5   : >> { %2393 = vmatpush3.bf16.msra.mxu1 %v2918_v33  ;;  %2374 = vmatprep.subr.bf16.mxu0 %v2671_v2  ;;  %v1988_v33 = vld [vmem:[%s2791_s20 + $0x18] sm:$0xf] }
  0xc6   : >> { %2394 = vmatprep.subr.bf16.mxu1 %v2671_v2 }
  0xc8   : >> { %2375 = vmatpush3.bf16.msra.mxu0 %v2823_v16  ;;  %v3512_v16 = vld [vmem:[#allocation4_spill] sm:$0xff] }
  0xc9   : >> { %2395 = vmatpush3.bf16.msra.mxu1 %v2932_v35  ;;  %2376 = vmatprep.subr.bf16.mxu0 %v2671_v2 }
  0xca   : >> { %2396 = vmatprep.subr.bf16.mxu1 %v2671_v2 }
  0xcc   : >> { %2377 = vmatpush3.bf16.msra.mxu0 %v2837_v19  ;;  %v3513_v19 = vld [vmem:[#allocation12_spill] sm:$0xff] }
  0xcd   : >> { %2397 = vmatpush3.bf16.msra.mxu1 %v2945_v37  ;;  %2378 = vmatprep.subr.bf16.mxu0 %v2671_v2 }
  0xce   : >> { %2398 = vmatprep.subr.bf16.mxu1 %v2671_v2 }
  0xd0   : >> { %2379 = vmatpush3.bf16.msra.mxu0 %v2851_v23 }
  0xd1   : >> { %2399 = vmatpush3.bf16.msra.mxu1 %v2962_v41  ;;  %2404 = vmatprep.subr.bf16.mxu0 %v2671_v2 }
  0xd2   : >> { %2424 = vmatprep.subr.bf16.mxu1 %v2671_v2 }
  0xd3   : >> { %2381 = vmatmul.mubr.bf16.vlgmr.msra.gmra.mrb[20].mxu0 %v2973_v44 }
  0xd4   : >> { %2401 = vmatmul.mubr.bf16.vlgmr.msra.gmra.mrb[20].mxu1 %v3098_v24  ;;  %2405 = vmatpush3.bf16.msra.mxu0 %v2865_v26  ;;  %v3515_v26 = vld [vmem:[#allocation14_spill] sm:$0xff] }
  0xd5   : >> { %2425 = vmatpush3.bf16.msra.mxu1 %v2979_v45  ;;  %2406 = vmatprep.subr.bf16.mxu0 %v2671_v2 }
  0xd6   : >> { %2426 = vmatprep.subr.bf16.mxu1 %v2671_v2  ;;  %2420 = vmatprep.mubr.msk.bf16.mxu0 %vm2672_vm0, %v2671_v2 }
  0xd7   : >> { %2440 = vmatprep.mubr.msk.bf16.mxu1 %vm2672_vm0, %v2671_v2 }
  0xd8   : >> { %2407 = vmatpush3.bf16.msra.mxu0 %v2879_v28  ;;  %v1987_v28 = vld [vmem:[%s2791_s20 + $0x18] sm:$0xf] }
  0xd9   : >> { %2427 = vmatpush3.bf16.msra.mxu1 %v2994_v47  ;;  %2408 = vmatprep.subr.bf16.mxu0 %v2671_v2  ;;  %v3522_v47 = vld [vmem:[#allocation13_spill] sm:$0xff] }
  0xda   : >> { %2428 = vmatprep.subr.bf16.mxu1 %v2671_v2 }
  0xdc   : >> { %2409 = vmatpush3.bf16.msra.mxu0 %v2897_v30  ;;  %v3518_v30 = vld [vmem:[#allocation8_spill] sm:$0xff] }
  0xdd   : >> { %2429 = vmatpush3.bf16.msra.mxu1 %v3012_v49  ;;  %2410 = vmatprep.subr.bf16.mxu0 %v2671_v2 }
  0xde   : >> { %2430 = vmatprep.subr.bf16.mxu1 %v2671_v2 }
  0xe0   : >> { %2411 = vmatpush3.bf16.msra.mxu0 %v2911_v32  ;;  %v3520_v32 = vld [vmem:[#allocation10_spill] sm:$0xff] }
  0xe1   : >> { %2431 = vmatpush3.bf16.msra.mxu1 %v3026_v51  ;;  %2412 = vmatprep.subr.bf16.mxu0 %v2671_v2  ;;  %v1991_v51 = vld [vmem:[%s2791_s20 + $0x18] sm:$0xe] }
  0xe2   : >> { %2432 = vmatprep.subr.bf16.mxu1 %v2671_v2 }
  0xe4   : >> { %2413 = vmatpush3.bf16.msra.mxu0 %v2925_v34  ;;  %v1989_v34 = vld [vmem:[%s2791_s20 + $0x1c] sm:$0x1]  ;;  %s1993_s20 = sshll.u32 %s2669_s26, 1  ;;  %s201_s26 = sadd.s32 1, %s2669_s26  }
  0xe5   : >> { %2433 = vmatpush3.bf16.msra.mxu1 %v3040_v53  ;;  %2414 = vmatprep.subr.bf16.mxu0 %v2671_v2  ;;  %v1990_v35 = vcombine.low %v1988_v33, %v1989_v34  ;;  %s1643_s5 = scalar_lea.vmem %s2719_s22, %s1993_s20  ;;  %p198_p5 = scmp.ge.s32.totalorder %s201_s26, 4  }
  0xe6   : >> { %2434 = vmatprep.subr.bf16.mxu1 %v2671_v2 }
  0xe7   : >> { %v1540_v44 = vshll.u32 %v1990_v35, 16  ;;  %v1538_v53 = vshrl.u32 %v1990_v35, 16 }
  0xe8   : >> { %2415 = vmatpush3.bf16.msra.mxu0 %v2939_v36  ;;  %v3521_v36 = vld [vmem:[#allocation11_spill] sm:$0xff] }
  0xe9   : >> { %2435 = vmatpush3.bf16.msra.mxu1 %v3056_v58  ;;  %2416 = vmatprep.subr.bf16.mxu0 %v2671_v2  ;;  %v1992_v58 = vcombine.low %v1991_v51, %v1989_v34 }
  0xea   : >> { %2436 = vmatprep.subr.bf16.mxu1 %v2671_v2 }
  0xec   : >> { %2417 = vmatpush3.bf16.msra.mxu0 %v2950_v38 }
  0xed   : >> { %2437 = vmatpush3.bf16.msra.mxu1 %v3070_v61  ;;  %2418 = vmatprep.subr.bf16.mxu0 %v2671_v2  ;;  %v3523_v61 = vld [vmem:[#allocation15_spill] sm:$0xff] }
  0xee   : >> { %2438 = vmatprep.subr.bf16.mxu1 %v2671_v2 }
  0xf0   : >> { %2419 = vmatpush3.bf16.msra.mxu0 %v2969_v42 }
  0xf1   : >> { %2439 = vmatpush3.bf16.msra.mxu1 %v3085_v14  ;;  %2444 = vmatprep.subr.bf16.mxu0 %v2671_v2  ;;  %v1590_v14 = vrot.slane %v1992_v58, 1 }
  0xf2   : >> { %2464 = vmatprep.subr.bf16.mxu1 %v2671_v2 }
  0xf3   : >> { %2421 = vmatmul.mubr.bf16.vlgmr.msra.gmra.mrb[24].mxu0 %v3224_v40 }
  0xf4   : >> { %2441 = vmatmul.mubr.bf16.vlgmr.msra.gmra.mrb[24].mxu1 %v3226_v59  ;;  %2445 = vmatpush3.bf16.msra.mxu0 %v2986_v46 }
  0xf5   : >> { %2465 = vmatpush3.bf16.msra.mxu1 %v3103_v39  ;;  %2446 = vmatprep.subr.bf16.mxu0 %v2671_v2 }
  0xf6   : >> { %2466 = vmatprep.subr.bf16.mxu1 %v2671_v2  ;;  %2460 = vmatprep.mubr.msk.bf16.mxu0 %vm2672_vm0, %v2671_v2 }
  0xf7   : >> { %2480 = vmatprep.mubr.msk.bf16.mxu1 %vm2672_vm0, %v2671_v2 }
  0xf8   : >> { %2447 = vmatpush3.bf16.msra.mxu0 %v3001_v48 }
  0xf9   : >> { %2467 = vmatpush3.bf16.msra.mxu1 %v3119_v43  ;;  %2448 = vmatprep.subr.bf16.mxu0 %v2671_v2 }
  0xfa   : >> { %2468 = vmatprep.subr.bf16.mxu1 %v2671_v2 }
  0xfc   : >> { %2449 = vmatpush3.bf16.msra.mxu0 %v3017_v50 }
  0xfd   : >> { %2469 = vmatpush3.bf16.msra.mxu1 %v3137_v55  ;;  %2450 = vmatprep.subr.bf16.mxu0 %v2671_v2 }
  0xfe   : >> { %2470 = vmatprep.subr.bf16.mxu1 %v2671_v2 }
 0x100   : >> { %2451 = vmatpush3.bf16.msra.mxu0 %v3033_v52 }
 0x101   : >> { %2471 = vmatpush3.bf16.msra.mxu1 %v3151_v60  ;;  %2452 = vmatprep.subr.bf16.mxu0 %v2671_v2 }
 0x102   : >> { %2472 = vmatprep.subr.bf16.mxu1 %v2671_v2 }
 0x104   : >> { %2453 = vmatpush3.bf16.msra.mxu0 %v3049_v56  ;;  %v1542_v56 = vrot.slane %v1540_v44, 1 }
 0x105   : >> { %2473 = vmatpush3.bf16.msra.mxu1 %v3165_v12  ;;  %2454 = vmatprep.subr.bf16.mxu0 %v2671_v2 }
 0x106   : >> { %v338_v0 = vpop.f32.mrb[0].mxu0  ;;  %2474 = vmatprep.subr.bf16.mxu1 %v2671_v2  ;;  %v1543_v59 = vor.u32 %v1542_v56, %v1538_v53 }
 0x107   : >> { %v426_v3 = vpop.f32.mrb[0].mxu1  ;;  %v2182_v5 = vpop.f32.mrb[1].mxu0 }
 0x108   : >> { %v427_v7 = vadd.f32 %v426_v3, %v338_v0  ;;  %v2202_v9 = vpop.f32.mrb[1].mxu1  ;;  %v341_v11 = vpop.f32.mrb[2].mxu0  ;;  %2455 = vmatpush3.bf16.msra.mxu0 %v3512_v16 }
 0x109   : >> { %v429_v18 = vpop.f32.mrb[2].mxu1  ;;  %2475 = vmatpush3.bf16.msra.mxu1 %v3513_v19  ;;  %v2183_v22 = vpop.f32.mrb[3].mxu0  ;;  %2456 = vmatprep.subr.bf16.mxu0 %v2671_v2 }
 0x10a   : >> { %v2203_v23 = vpop.f32.mrb[3].mxu1  ;;  %2476 = vmatprep.subr.bf16.mxu1 %v2671_v2 }
 0x10c   : >> { %2457 = vmatpush3.bf16.msra.mxu0 %v3514_v25 }
 0x10d   : >> { %2477 = vmatpush3.bf16.msra.mxu1 %v3515_v26  ;;  %2458 = vmatprep.subr.bf16.mxu0 %v2671_v2 }
 0x10e   : >> { %2478 = vmatprep.subr.bf16.mxu1 %v2671_v2 }
 0x110   : >> { %2459 = vmatpush3.bf16.msra.mxu0 %v3516_v27 }
 0x111   : >> { %2479 = vmatpush3.bf16.msra.mxu1 %v3212_v20  ;;  %2484 = vmatprep.subr.bf16.mxu0 %v2671_v2 }
 0x112   : >> { %2504 = vmatprep.subr.bf16.mxu1 %v2671_v2 }
 0x113   : >> { %2461 = vmatmul.mubr.bf16.vlgmr.msra.gmra.mrb[28].mxu0 %v3307_v15 }
 0x114   : >> { %2481 = vmatmul.mubr.bf16.vlgmr.msra.gmra.mrb[28].mxu1 %v1987_v28  ;;  %2485 = vmatpush3.bf16.msra.mxu0 %v3517_v29 }
 0x115   : >> { %2505 = vmatpush3.bf16.msra.mxu1 %v3231_v63  ;;  %2486 = vmatprep.subr.bf16.mxu0 %v2671_v2 }
 0x116   : >> { %2506 = vmatprep.subr.bf16.mxu1 %v2671_v2  ;;  %2500 = vmatprep.mubr.msk.bf16.mxu0 %vm2672_vm0, %v2671_v2 }
 0x117   : >> { %2520 = vmatprep.mubr.msk.bf16.mxu1 %vm2672_vm0, %v2671_v2 }
 0x118   : >> { %2487 = vmatpush3.bf16.msra.mxu0 %v3518_v30 }
 0x119   : >> { %2507 = vmatpush3.bf16.msra.mxu1 %v3242_v62  ;;  %2488 = vmatprep.subr.bf16.mxu0 %v2671_v2 }
 0x11a   : >> { %2508 = vmatprep.subr.bf16.mxu1 %v2671_v2 }
 0x11c   : >> { %2489 = vmatpush3.bf16.msra.mxu0 %v3519_v31 }
 0x11d   : >> { %2509 = vmatpush3.bf16.msra.mxu1 %v3255_v57  ;;  %2490 = vmatprep.subr.bf16.mxu0 %v2671_v2 }
 0x11e   : >> { %2510 = vmatprep.subr.bf16.mxu1 %v2671_v2 }
 0x120   : >> { %2491 = vmatpush3.bf16.msra.mxu0 %v3520_v32 }
 0x121   : >> { %2511 = vmatpush3.bf16.msra.mxu1 %v3264_v1  ;;  %2492 = vmatprep.subr.bf16.mxu0 %v2671_v2 }
 0x122   : >> { %2512 = vmatprep.subr.bf16.mxu1 %v2671_v2 }
 0x124   : >> { %2493 = vmatpush3.bf16.msra.mxu0 %v3521_v36 }
 0x125   : >> { %2513 = vmatpush3.bf16.msra.mxu1 %v3273_v4  ;;  %2494 = vmatprep.subr.bf16.mxu0 %v2671_v2 }
 0x126   : >> { %v537_v37 = vpop.f32.mrb[4].mxu0  ;;  %2514 = vmatprep.subr.bf16.mxu1 %v2671_v2 }
 0x127   : >> { %v543_v38 = vadd.f32 %v537_v37, %v427_v7  ;;  %v648_v41 = vpop.f32.mrb[4].mxu1  ;;  %v2222_v42 = vpop.f32.mrb[5].mxu0 }
 0x128   : >> { %v2242_v45 = vpop.f32.mrb[5].mxu1  ;;  %v540_v46 = vpop.f32.mrb[6].mxu0  ;;  %2495 = vmatpush3.bf16.msra.mxu0 %v3522_v47 }
 0x129   : >> { %v654_v48 = vadd.f32 %v648_v41, %v543_v38  ;;  %v651_v49 = vpop.f32.mrb[6].mxu1  ;;  %2515 = vmatpush3.bf16.msra.mxu1 %v3282_v6  ;;  %v2223_v50 = vpop.f32.mrb[7].mxu0  ;;  %2496 = vmatprep.subr.bf16.mxu0 %v2671_v2 }
 0x12a   : >> { %v2243_v52 = vpop.f32.mrb[7].mxu1  ;;  %2516 = vmatprep.subr.bf16.mxu1 %v2671_v2 }
 0x12c   : >> { %2497 = vmatpush3.bf16.msra.mxu0 %v3205_v13 }
 0x12d   : >> { %2517 = vmatpush3.bf16.msra.mxu1 %v3291_v8  ;;  %2498 = vmatprep.subr.bf16.mxu0 %v2671_v2 }
 0x12e   : >> { %2518 = vmatprep.subr.bf16.mxu1 %v2671_v2 }
 0x130   : >> { %2499 = vmatpush3.bf16.msra.mxu0 %v3523_v61 }
 0x131   : >> { %2519 = vmatpush3.bf16.msra.mxu1 %v3302_v54 }
 0x133   : >> { %2501 = vmatmul.mubr.bf16.vlgmr.msra.gmra.mrb[32].mxu0 %v1543_v59 }
 0x134   : >> { %2521 = vmatmul.mubr.bf16.vlgmr.msra.gmra.mrb[32].mxu1 %v1590_v14 }
 0x146   : >> { %v769_v20 = vpop.f32.mrb[8].mxu0 }
 0x147   : >> { %v775_v21 = vadd.f32 %v769_v20, %v654_v48  ;;  %v881_v24 = vpop.f32.mrb[8].mxu1  ;;  %v2262_v39 = vpop.f32.mrb[9].mxu0 }
 0x148   : >> { %v2282_v40 = vpop.f32.mrb[9].mxu1  ;;  %v772_v43 = vpop.f32.mrb[10].mxu0 }
 0x149   : >> { %v887_v55 = vadd.f32 %v881_v24, %v775_v21  ;;  %v884_v60 = vpop.f32.mrb[10].mxu1  ;;  %v2263_v12 = vpop.f32.mrb[11].mxu0  ;;  %v3524_v21 = vld [vmem:[#allocation3_spill] sm:$0xff] }
 0x14a   : >> { %v2283_v13 = vpop.f32.mrb[11].mxu1 }
 0x166   : >> { %v992_v63 = vpop.f32.mrb[12].mxu0 }
 0x167   : >> { %v998_v2 = vadd.f32 %v992_v63, %v887_v55  ;;  %v1113_v62 = vpop.f32.mrb[12].mxu1  ;;  %v2302_v57 = vpop.f32.mrb[13].mxu0 }
 0x168   : >> { %v2322_v1 = vpop.f32.mrb[13].mxu1  ;;  %v995_v4 = vpop.f32.mrb[14].mxu0 }
 0x169   : >> { %v1119_v6 = vadd.f32 %v1113_v62, %v998_v2  ;;  %v1116_v54 = vpop.f32.mrb[14].mxu1  ;;  %v2303_v8 = vpop.f32.mrb[15].mxu0 }
 0x16a   : >> { %v2323_v17 = vpop.f32.mrb[15].mxu1 }
 0x186   : >> { %v1225_v10 = vpop.f32.mrb[16].mxu0 }
 0x187   : >> { %v1231_v15 = vadd.f32 %v1225_v10, %v1119_v6  ;;  %v1274_v0 = vpop.f32.mrb[16].mxu1  ;;  %v2342_v3 = vpop.f32.mrb[17].mxu0 }
 0x188   : >> { %v2362_v5 = vpop.f32.mrb[17].mxu1  ;;  %v1228_v7 = vpop.f32.mrb[18].mxu0 }
 0x189   : >> { %v1277_v9 = vpop.f32.mrb[18].mxu1  ;;  %v2343_v11 = vpop.f32.mrb[19].mxu0  ;;  %v1238_v24 = vadd.f32 %v3524_v21, %v1231_v15 }
 0x18a   : >> { %v2363_v16 = vpop.f32.mrb[19].mxu1 }
 0x18b   : >> { %v1239_v12 = vmax.f32 %v1238_v24, 0.0 }
 0x1a6   : >> { %v1314_v18 = vpop.f32.mrb[20].mxu0 }
 0x1a7   : >> { %v1315_v19 = vadd.f32 %v1314_v18, %v1274_v0  ;;  %v1354_v22 = vpop.f32.mrb[20].mxu1  ;;  %v2382_v23 = vpop.f32.mrb[21].mxu0 }
 0x1a8   : >> { %v2402_v25 = vpop.f32.mrb[21].mxu1  ;;  %v1317_v26 = vpop.f32.mrb[22].mxu0 }
 0x1a9   : >> { %v1360_v27 = vadd.f32 %v1354_v22, %v1315_v19  ;;  %v1357_v28 = vpop.f32.mrb[22].mxu1  ;;  %v2383_v29 = vpop.f32.mrb[23].mxu0 }
 0x1aa   : >> { %v2403_v30 = vpop.f32.mrb[23].mxu1 }
 0x1c6   : >> { %v1395_v31 = vpop.f32.mrb[24].mxu0 }
 0x1c7   : >> { %v1401_v32 = vadd.f32 %v1395_v31, %v1360_v27  ;;  %v1436_v33 = vpop.f32.mrb[24].mxu1  ;;  %v2422_v34 = vpop.f32.mrb[25].mxu0 }
 0x1c8   : >> { %v2442_v35 = vpop.f32.mrb[25].mxu1  ;;  %v1398_v36 = vpop.f32.mrb[26].mxu0 }
 0x1c9   : >> { %v1442_v37 = vadd.f32 %v1436_v33, %v1401_v32  ;;  %v1439_v38 = vpop.f32.mrb[26].mxu1  ;;  %v2423_v41 = vpop.f32.mrb[27].mxu0 }
 0x1ca   : >> { %v2443_v42 = vpop.f32.mrb[27].mxu1 }
 0x1e6   : >> { %v1477_v44 = vpop.f32.mrb[28].mxu0 }
 0x1e7   : >> { %v1483_v45 = vadd.f32 %v1477_v44, %v1442_v37  ;;  %v1523_v46 = vpop.f32.mrb[28].mxu1  ;;  %v2462_v47 = vpop.f32.mrb[29].mxu0 }
 0x1e8   : >> { %v2482_v48 = vpop.f32.mrb[29].mxu1  ;;  %v1480_v49 = vpop.f32.mrb[30].mxu0 }
 0x1e9   : >> { %v1529_v50 = vadd.f32 %v1523_v46, %v1483_v45  ;;  %v1526_v51 = vpop.f32.mrb[30].mxu1  ;;  %v2463_v52 = vpop.f32.mrb[31].mxu0 }
 0x1ea   : >> { %v2483_v53 = vpop.f32.mrb[31].mxu1 }
 0x206   : >> { %v1579_v56 = vpop.f32.mrb[32].mxu0 }
 0x207   : >> { %v1585_v58 = vadd.f32 %v1579_v56, %v1529_v50  ;;  %v1626_v59 = vpop.f32.mrb[32].mxu1  ;;  %v2502_v61 = vpop.f32.mrb[33].mxu0 }
 0x208   : >> { %v2522_v14 = vpop.f32.mrb[33].mxu1  ;;  %v1582_v20 = vpop.f32.mrb[34].mxu0 }
 0x209   : >> { %v1632_v39 = vadd.f32 %v1626_v59, %v1585_v58  ;;  %v1629_v40 = vpop.f32.mrb[34].mxu1  ;;  %v2503_v43 = vpop.f32.mrb[35].mxu0 }
 0x20a   : >> { %v2523_v55 = vpop.f32.mrb[35].mxu1 }
 0x20b   : >> { %v1633_v60 = vadd.f32 %v3524_v21, %v1632_v39 }
 0x20d   : >> { %v1634_v13 = vmax.f32 %v1633_v60, 0.0 }
 0x20f   : >> { %v1635_v63 = vmax.f32 %v1239_v12, %v1634_v13 }
 0x211   : >> { %1636 = vst [vmem:[#allocation2] sm:$0xff] %v1635_v63 }
 0x217   : > { %200 = sbr.rel (!%p198_p5) target bundleno = 18 (0x12), region = 83 }
 0x218   : >> { %v1637_v2 = vld [vmem:[#allocation2] ss:$2 sm:$0xf]  ;;  %v1639_v62 = vld [vmem:[#allocation2 + $0x1] ss:$2 sm:$0xf] }
 0x219   : >> { %v1640_v57 = vmax.f32 %v1637_v2, %v1639_v62 }
 0x21b   : >> { %v1641_v1 = vpack.c.bf16 %v1640_v57, %v1640_v57 }
 0x21d   : >> { %1644 = vst [vmem:[%s1643_s5] sm:$0x3] %v1641_v1 }
 0x21e PF: > { %s13_s14 = sadd.s32 1, %s2665_s14   ;;  %s3525_s12 = smov %s2661_s13 }
 0x21f   : > { %p10_p6 = scmp.ge.s32.totalorder %s13_s14, 4   ;;  %s3526_s13 = smov %s3528_s15 }
 0x221   :  { %12 = sbr.rel (!%p10_p6) target bundleno = 2 (0x2), region = 94 }

// kernel: simple_cnn_forward.9
= control target key start
LH: loop header
LB: loop body
LE: loop exit
PB: predicated region body
PF: predicated region fallthrough
CT: control target
= control target key end

     0   :  { %s2660_s12 = smov 0   ;;  %s2662_s13 = smov 0   ;;  %s3444_s0 = inlined_call_operand.vmem [shape: bf16[2,6,6,128], index: 0, kind: input, shape index: {}]   ;;  %s3445_s1 = inlined_call_operand.vmem [shape: bf16[9,128,128], index: 1, kind: input, shape index: {}]   ;;  %s3446_s2 = inlined_call_operand.vmem [shape: f32[1,128], index: 2, kind: input, shape index: {}]   ;;  %s3447_s3 = inlined_call_operand.vmem [shape: bf16[2,2,2,128], index: 3, kind: output, shape index: {}]  }
   0x1   :  { %s2664_s14 = smov 0  }
   0x2 LB: > { %s25_s15 = sadd.s32 1, %s2628_s13  ;;  %p1734_p0 = scmp.ge.s32.totalorder %s2632_s14, 1  ;;  %s2632_s14 = sphi %s2664_s14, %s13_s14   ;;  %s2628_s13 = sphi %s2662_s13, %s3484_s13   ;;  %s2624_s12 = sphi %s2660_s12, %s3483_s12  }
   0x3   : > { %p27_p1 = scmp.ge.s32.totalorder %s25_s15, 2  ;;  %p151_p2 = scmp.lt.s32.totalorder %s2632_s14, 3 }
   0x5   : > { %s3486_s15 = smov (%p27_p1, %s25_s15), 0  ;;  %p152_p3 = pnand %p1734_p0, %p151_p2 }
   0x6   : > { %p178_p4 = scmp.lt.s32.totalorder (!%p152_p3), %s2624_s12, 1  ;;  %v2681_v0 = vld [vmem:[%s3446_s2] ss:$0 sm:$0xff] (!%p152_p3)  ;;  %s2693_s26 = smov (!%p152_p3), 0  }
   0x7   : > { %155 = sbr.rel (%p152_p3) target bundleno = 542 (0x21e), region = 32  ;;  %3460 = vst [vmem:[#allocation3_spill] sm:$0xff] (!%p152_p3), %v2681_v0 }
   0xe   : > { %s3488_s12 = smov (!%p178_p4, %s2624_s12), 1 }
   0xf   : > { %s2491_s18 = smul.u32 24, %s3488_s12  ;;  %s1736_s19 = sshll.u32 %s3488_s12, 1 }
  0x10   : > { %s2686_s22 = scalar_lea.vmem %s3447_s3, %s1736_s19 }
  0x11   : > { %s2691_s25 = scalar_lea.vmem %s3444_s0, %s2491_s18 }
  0x12 LB: >> { %v2701_v1 = vld [vmem:[%s3445_s1 + $0x40] sm:$0xff]   ;;  %v2638_v2 = vmov 0.0   ;;  %v2714_v4 = vld [vmem:[%s3445_s1 + $0x48] sm:$0xff]   ;;  %vm2639_vm0 = vmmov 0   ;;  %v2732_v6 = vld [vmem:[%s3445_s1 + $0x50] sm:$0xff]   ;;  %s1965_s17 = sshll.u32 %s2636_s26, 3  ;;  %s2636_s26 = sphi %s2693_s26, %s199_s26  }
  0x13   : >> { %2131 = vmatprep.subr.bf16.mxu0 %v2638_v2  ;;  %2151 = vmatprep.subr.bf16.mxu1 %v2638_v2  ;;  %v2708_v3 = vld [vmem:[%s3445_s1] sm:$0xff]   ;;  %v2723_v5 = vld [vmem:[%s3445_s1 + $0x8] sm:$0xff]   ;;  %v2739_v7 = vld [vmem:[%s3445_s1 + $0x10] sm:$0xff]   ;;  %s2758_s20 = scalar_lea.vmem %s2691_s25, %s1965_s17 }
  0x14   : >> { %2132 = vmatpush3.bf16.msra.mxu0 %v2701_v1  ;;  %2147 = vmatprep.mubr.msk.bf16.mxu0 %vm2639_vm0, %v2638_v2  ;;  %v2746_v8 = vld [vmem:[%s3445_s1 + $0x58] sm:$0xff]   ;;  %v2764_v10 = vld [vmem:[%s3445_s1 + $0x60] sm:$0xff]   ;;  %v2779_v13 = vld [vmem:[%s3445_s1 + $0x68] sm:$0xff]  }
  0x15   : >> { %2152 = vmatpush3.bf16.msra.mxu1 %v2708_v3  ;;  %2133 = vmatprep.subr.bf16.mxu0 %v2638_v2  ;;  %v2754_v9 = vld [vmem:[%s3445_s1 + $0x18] sm:$0xff]   ;;  %v2771_v11 = vld [vmem:[%s3445_s1 + $0x20] sm:$0xff]   ;;  %v2786_v14 = vld [vmem:[%s3445_s1 + $0x28] sm:$0xff]  }
  0x16   : >> { %2153 = vmatprep.subr.bf16.mxu1 %v2638_v2  ;;  %2167 = vmatprep.mubr.msk.bf16.mxu1 %vm2639_vm0, %v2638_v2  ;;  %v2542_v12 = vld [vmem:[%s2758_s20] ss:$0 sps:$4 sm:$0x77]   ;;  %v2793_v16 = vld [vmem:[%s3445_s1 + $0x70] sm:$0xff]   ;;  %v2807_v20 = vld [vmem:[%s3445_s1 + $0x78] sm:$0xff]  }
  0x17   : >> { %v246_v15 = vshll.u32 %v2542_v12, 16  ;;  %v2800_v17 = vld [vmem:[%s3445_s1 + $0x30] sm:$0xff]   ;;  %v244_v18 = vshrl.u32 %v2542_v12, 16  ;;  %v2814_v21 = vld [vmem:[%s3445_s1 + $0x38] sm:$0xff]   ;;  %v2820_v23 = vld [vmem:[%s3445_s1 + $0x80] sm:$0xff]  }
  0x18   : >> { %2134 = vmatpush3.bf16.msra.mxu0 %v2714_v4  ;;  %v205_v24 = vld [vmem:[%s2758_s20] sm:$0x3]  ;;  %v2836_v26 = vld [vmem:[%s3445_s1 + $0x88] sm:$0xff]   ;;  %v2854_v28 = vld [vmem:[%s3445_s1 + $0x90] sm:$0xff]  }
  0x19   : >> { %2154 = vmatpush3.bf16.msra.mxu1 %v2723_v5  ;;  %2135 = vmatprep.subr.bf16.mxu0 %v2638_v2  ;;  %v248_v19 = vrot.slane %v246_v15, 1  ;;  %v2829_v25 = vld [vmem:[%s3445_s1 + $0xc0] sm:$0xff]   ;;  %v2843_v27 = vld [vmem:[%s3445_s1 + $0xc8] sm:$0xff]   ;;  %v2861_v29 = vld [vmem:[%s3445_s1 + $0xd0] sm:$0xff]  }
  0x1a   : >> { %2155 = vmatprep.subr.bf16.mxu1 %v2638_v2  ;;  %v2868_v30 = vld [vmem:[%s3445_s1 + $0x98] sm:$0xff]   ;;  %v2882_v32 = vld [vmem:[%s3445_s1 + $0xa0] sm:$0xff]   ;;  %v2896_v34 = vld [vmem:[%s3445_s1 + $0xa8] sm:$0xff]  }
  0x1b   : >> { %v249_v22 = vor.u32 %v248_v19, %v244_v18  ;;  %v2875_v31 = vld [vmem:[%s3445_s1 + $0xd8] sm:$0xff]   ;;  %v2889_v33 = vld [vmem:[%s3445_s1 + $0xe0] sm:$0xff]   ;;  %v2903_v35 = vld [vmem:[%s3445_s1 + $0xe8] sm:$0xff]  }
  0x1c   : >> { %2136 = vmatpush3.bf16.msra.mxu0 %v2732_v6  ;;  %v2910_v36 = vld [vmem:[%s3445_s1 + $0xb0] sm:$0xff]   ;;  %v2559_v38 = vld [vmem:[%s2758_s20] ss:$0 sps:$4 sm:$0x66]   ;;  %v2925_v39 = vld [vmem:[%s3445_s1 + $0xb8] sm:$0xff]  }
  0x1d   : >> { %2156 = vmatpush3.bf16.msra.mxu1 %v2739_v7  ;;  %2137 = vmatprep.subr.bf16.mxu0 %v2638_v2  ;;  %v2917_v37 = vld [vmem:[%s3445_s1 + $0xf0] sm:$0xff]   ;;  %v2932_v40 = vld [vmem:[%s3445_s1 + $0xf8] sm:$0xff]   ;;  %v448_v41 = vrot.slane %v2559_v38, 1  ;;  %v2936_v42 = vld [vmem:[%s2758_s20 + $0x4] sm:$0x3] }
  0x1e   : >> { %2157 = vmatprep.subr.bf16.mxu1 %v2638_v2  ;;  %v2942_v43 = vld [vmem:[%s3445_s1 + $0x100] sm:$0xff]   ;;  %v2957_v45 = vld [vmem:[%s3445_s1 + $0x108] sm:$0xff]   ;;  %v2975_v47 = vld [vmem:[%s3445_s1 + $0x110] sm:$0xff]  }
  0x1f   : >> { %v2949_v44 = vld [vmem:[%s3445_s1 + $0x140] sm:$0xff]   ;;  %v2964_v46 = vld [vmem:[%s3445_s1 + $0x148] sm:$0xff]   ;;  %v2982_v48 = vld [vmem:[%s3445_s1 + $0x150] sm:$0xff]  }
  0x20   : >> { %2138 = vmatpush3.bf16.msra.mxu0 %v2746_v8  ;;  %v2989_v49 = vld [vmem:[%s3445_s1 + $0x118] sm:$0xff]   ;;  %v3003_v51 = vld [vmem:[%s3445_s1 + $0x120] sm:$0xff]   ;;  %v3018_v54 = vld [vmem:[%s3445_s1 + $0x128] sm:$0xff]  }
  0x21   : >> { %2158 = vmatpush3.bf16.msra.mxu1 %v2754_v9  ;;  %2139 = vmatprep.subr.bf16.mxu0 %v2638_v2  ;;  %v2996_v50 = vld [vmem:[%s3445_s1 + $0x158] sm:$0xff]   ;;  %v3010_v52 = vld [vmem:[%s3445_s1 + $0x160] sm:$0xff]   ;;  %v3025_v55 = vld [vmem:[%s3445_s1 + $0x168] sm:$0xff]  }
  0x22   : >> { %2159 = vmatprep.subr.bf16.mxu1 %v2638_v2  ;;  %v2576_v53 = vld [vmem:[%s2758_s20 + $0x4] ss:$0 sps:$4 sm:$0x77]   ;;  %v3032_v57 = vld [vmem:[%s3445_s1 + $0x130] sm:$0xff]   ;;  %v3046_v61 = vld [vmem:[%s3445_s1 + $0x138] sm:$0xff]  }
  0x23   : >> { %v673_v56 = vshll.u32 %v2576_v53, 16  ;;  %v3039_v58 = vld [vmem:[%s3445_s1 + $0x170] sm:$0xff]   ;;  %v671_v59 = vshrl.u32 %v2576_v53, 16  ;;  %v3049_v62 = vld [vmem:[%s2758_s20 + $0x4] ss:$0 sps:$4 sm:$0x66]  }
  0x24   : >> { %2140 = vmatpush3.bf16.msra.mxu0 %v2764_v10  ;;  %3461 = vst [vmem:[#allocation4_spill] sm:$0xff] %v3039_v58  ;;  %v3056_v63 = vld [vmem:[%s3445_s1 + $0x178] sm:$0xff]   ;;  %v3448_v15 = vrot.slane %v3049_v62, 1  ;;  %v3066_v18 = vld [vmem:[%s3445_s1 + $0x180] sm:$0xff]   ;;  %v3101_v38 = vld [vmem:[%s3445_s1 + $0x190] sm:$0xff]  }
  0x25   : >> { %2160 = vmatpush3.bf16.msra.mxu1 %v2771_v11  ;;  %2141 = vmatprep.subr.bf16.mxu0 %v2638_v2  ;;  %v675_v60 = vrot.slane %v673_v56, 1  ;;  %3462 = vst [vmem:[#allocation5_spill] sm:$0xff] %v3056_v63  ;;  %v3073_v19 = vld [vmem:[%s3445_s1 + $0x1c0] sm:$0xff]   ;;  %v3115_v53 = vld [vmem:[%s3445_s1 + $0x198] sm:$0xff]  }
  0x26   : >> { %2161 = vmatprep.subr.bf16.mxu1 %v2638_v2  ;;  %3463 = vst [vmem:[#allocation6_spill] sm:$0xff] %v3073_v19  ;;  %v3122_v56 = vld [vmem:[%s3445_s1 + $0x1d8] sm:$0xff]   ;;  %v2594_v0 = vld [vmem:[%s2758_s20 + $0x8] ss:$0 sps:$4 sm:$0x77]  }
  0x27   : >> { %v3059_v12 = vor.u32 %v675_v60, %v671_v59  ;;  %3466 = vst [vmem:[#allocation9_spill] sm:$0xff] %v3122_v56  ;;  %v3129_v59 = vld [vmem:[%s3445_s1 + $0x1a0] sm:$0xff]  }
  0x28   : >> { %2142 = vmatpush3.bf16.msra.mxu0 %v2779_v13  ;;  %v3136_v60 = vld [vmem:[%s3445_s1 + $0x1e0] sm:$0xff]  }
  0x29   : >> { %2162 = vmatpush3.bf16.msra.mxu1 %v2786_v14  ;;  %2143 = vmatprep.subr.bf16.mxu0 %v2638_v2  ;;  %3467 = vst [vmem:[#allocation10_spill] sm:$0xff] %v3136_v60 }
  0x2a   : >> { %2163 = vmatprep.subr.bf16.mxu1 %v2638_v2 }
  0x2c   : >> { %2144 = vmatpush3.bf16.msra.mxu0 %v2793_v16 }
  0x2d   : >> { %2164 = vmatpush3.bf16.msra.mxu1 %v2800_v17  ;;  %2145 = vmatprep.subr.bf16.mxu0 %v2638_v2 }
  0x2e   : >> { %2165 = vmatprep.subr.bf16.mxu1 %v2638_v2 }
  0x30   : >> { %2146 = vmatpush3.bf16.msra.mxu0 %v2807_v20 }
  0x31   : >> { %2166 = vmatpush3.bf16.msra.mxu1 %v2814_v21  ;;  %2171 = vmatprep.subr.bf16.mxu0 %v2638_v2 }
  0x32   : >> { %2191 = vmatprep.subr.bf16.mxu1 %v2638_v2 }
  0x33   : >> { %2148 = vmatmul.mubr.bf16.vlgmr.msra.gmra.mrb[0].mxu0 %v249_v22  ;;  %v3083_v22 = vld [vmem:[%s3445_s1 + $0x188] sm:$0xff]  }
  0x34   : >> { %2168 = vmatmul.mubr.bf16.vlgmr.msra.gmra.mrb[0].mxu1 %v205_v24  ;;  %2172 = vmatpush3.bf16.msra.mxu0 %v2820_v23  ;;  %v3090_v24 = vld [vmem:[%s3445_s1 + $0x1c8] sm:$0xff]  }
  0x35   : >> { %2192 = vmatpush3.bf16.msra.mxu1 %v2829_v25  ;;  %2173 = vmatprep.subr.bf16.mxu0 %v2638_v2  ;;  %3464 = vst [vmem:[#allocation7_spill] sm:$0xff] %v3090_v24 }
  0x36   : >> { %2193 = vmatprep.subr.bf16.mxu1 %v2638_v2  ;;  %2187 = vmatprep.mubr.msk.bf16.mxu0 %vm2639_vm0, %v2638_v2 }
  0x37   : >> { %2207 = vmatprep.mubr.msk.bf16.mxu1 %vm2639_vm0, %v2638_v2 }
  0x38   : >> { %2174 = vmatpush3.bf16.msra.mxu0 %v2836_v26 }
  0x39   : >> { %2194 = vmatpush3.bf16.msra.mxu1 %v2843_v27  ;;  %2175 = vmatprep.subr.bf16.mxu0 %v2638_v2 }
  0x3a   : >> { %2195 = vmatprep.subr.bf16.mxu1 %v2638_v2 }
  0x3c   : >> { %2176 = vmatpush3.bf16.msra.mxu0 %v2854_v28 }
  0x3d   : >> { %2196 = vmatpush3.bf16.msra.mxu1 %v2861_v29  ;;  %2177 = vmatprep.subr.bf16.mxu0 %v2638_v2 }
  0x3e   : >> { %2197 = vmatprep.subr.bf16.mxu1 %v2638_v2 }
  0x40   : >> { %2178 = vmatpush3.bf16.msra.mxu0 %v2868_v30 }
  0x41   : >> { %2198 = vmatpush3.bf16.msra.mxu1 %v2875_v31  ;;  %2179 = vmatprep.subr.bf16.mxu0 %v2638_v2 }
  0x42   : >> { %2199 = vmatprep.subr.bf16.mxu1 %v2638_v2 }
  0x44   : >> { %2180 = vmatpush3.bf16.msra.mxu0 %v2882_v32 }
  0x45   : >> { %2200 = vmatpush3.bf16.msra.mxu1 %v2889_v33  ;;  %2181 = vmatprep.subr.bf16.mxu0 %v2638_v2 }
  0x46   : >> { %2201 = vmatprep.subr.bf16.mxu1 %v2638_v2 }
  0x48   : >> { %2182 = vmatpush3.bf16.msra.mxu0 %v2896_v34 }
  0x49   : >> { %2202 = vmatpush3.bf16.msra.mxu1 %v2903_v35  ;;  %2183 = vmatprep.subr.bf16.mxu0 %v2638_v2 }
  0x4a   : >> { %2203 = vmatprep.subr.bf16.mxu1 %v2638_v2 }
  0x4c   : >> { %2184 = vmatpush3.bf16.msra.mxu0 %v2910_v36 }
  0x4d   : >> { %2204 = vmatpush3.bf16.msra.mxu1 %v2917_v37  ;;  %2185 = vmatprep.subr.bf16.mxu0 %v2638_v2 }
  0x4e   : >> { %2205 = vmatprep.subr.bf16.mxu1 %v2638_v2 }
  0x50   : >> { %2186 = vmatpush3.bf16.msra.mxu0 %v2925_v39 }
  0x51   : >> { %2206 = vmatpush3.bf16.msra.mxu1 %v2932_v40  ;;  %2211 = vmatprep.subr.bf16.mxu0 %v2638_v2 }
  0x52   : >> { %2231 = vmatprep.subr.bf16.mxu1 %v2638_v2 }
  0x53   : >> { %2188 = vmatmul.mubr.bf16.vlgmr.msra.gmra.mrb[4].mxu0 %v448_v41  ;;  %v3108_v41 = vld [vmem:[%s3445_s1 + $0x1d0] sm:$0xff]  }
  0x54   : >> { %2208 = vmatmul.mubr.bf16.vlgmr.msra.gmra.mrb[4].mxu1 %v2936_v42  ;;  %2212 = vmatpush3.bf16.msra.mxu0 %v2942_v43  ;;  %3465 = vst [vmem:[#allocation8_spill] sm:$0xff] %v3108_v41 }
  0x55   : >> { %2232 = vmatpush3.bf16.msra.mxu1 %v2949_v44  ;;  %2213 = vmatprep.subr.bf16.mxu0 %v2638_v2 }
  0x56   : >> { %2233 = vmatprep.subr.bf16.mxu1 %v2638_v2  ;;  %2227 = vmatprep.mubr.msk.bf16.mxu0 %vm2639_vm0, %v2638_v2 }
  0x57   : >> { %2247 = vmatprep.mubr.msk.bf16.mxu1 %vm2639_vm0, %v2638_v2 }
  0x58   : >> { %2214 = vmatpush3.bf16.msra.mxu0 %v2957_v45 }
  0x59   : >> { %2234 = vmatpush3.bf16.msra.mxu1 %v2964_v46  ;;  %2215 = vmatprep.subr.bf16.mxu0 %v2638_v2 }
  0x5a   : >> { %2235 = vmatprep.subr.bf16.mxu1 %v2638_v2 }
  0x5c   : >> { %2216 = vmatpush3.bf16.msra.mxu0 %v2975_v47 }
  0x5d   : >> { %2236 = vmatpush3.bf16.msra.mxu1 %v2982_v48  ;;  %2217 = vmatprep.subr.bf16.mxu0 %v2638_v2 }
  0x5e   : >> { %2237 = vmatprep.subr.bf16.mxu1 %v2638_v2 }
  0x60   : >> { %2218 = vmatpush3.bf16.msra.mxu0 %v2989_v49 }
  0x61   : >> { %2238 = vmatpush3.bf16.msra.mxu1 %v2996_v50  ;;  %2219 = vmatprep.subr.bf16.mxu0 %v2638_v2 }
  0x62   : >> { %2239 = vmatprep.subr.bf16.mxu1 %v2638_v2 }
  0x64   : >> { %2220 = vmatpush3.bf16.msra.mxu0 %v3003_v51 }
  0x65   : >> { %2240 = vmatpush3.bf16.msra.mxu1 %v3010_v52  ;;  %2221 = vmatprep.subr.bf16.mxu0 %v2638_v2 }
  0x66   : >> { %2241 = vmatprep.subr.bf16.mxu1 %v2638_v2 }
  0x68   : >> { %2222 = vmatpush3.bf16.msra.mxu0 %v3018_v54 }
  0x69   : >> { %2242 = vmatpush3.bf16.msra.mxu1 %v3025_v55  ;;  %2223 = vmatprep.subr.bf16.mxu0 %v2638_v2 }
  0x6a   : >> { %2243 = vmatprep.subr.bf16.mxu1 %v2638_v2 }
  0x6c   : >> { %2224 = vmatpush3.bf16.msra.mxu0 %v3032_v57 }
  0x6d   : >> { %2244 = vmatpush3.bf16.msra.mxu1 %v3039_v58  ;;  %2225 = vmatprep.subr.bf16.mxu0 %v2638_v2 }
  0x6e   : >> { %2245 = vmatprep.subr.bf16.mxu1 %v2638_v2 }
  0x70   : >> { %2226 = vmatpush3.bf16.msra.mxu0 %v3046_v61 }
  0x71   : >> { %2246 = vmatpush3.bf16.msra.mxu1 %v3056_v63  ;;  %2251 = vmatprep.subr.bf16.mxu0 %v2638_v2  ;;  %v1011_v63 = vshrl.u32 %v2594_v0, 16 }
  0x72   : >> { %2271 = vmatprep.subr.bf16.mxu1 %v2638_v2 }
  0x73   : >> { %2228 = vmatmul.mubr.bf16.vlgmr.msra.gmra.mrb[8].mxu0 %v3059_v12 }
  0x74   : >> { %2248 = vmatmul.mubr.bf16.vlgmr.msra.gmra.mrb[8].mxu1 %v3448_v15  ;;  %2252 = vmatpush3.bf16.msra.mxu0 %v3066_v18  ;;  %v3143_v15 = vld [vmem:[%s3445_s1 + $0x1a8] sm:$0xff]  }
  0x75   : >> { %2272 = vmatpush3.bf16.msra.mxu1 %v3073_v19  ;;  %2253 = vmatprep.subr.bf16.mxu0 %v2638_v2  ;;  %3468 = vst [vmem:[#allocation11_spill] sm:$0xff] %v3143_v15  ;;  %v3172_v19 = vld [vmem:[%s3445_s1 + $0x1b8] sm:$0xff]  }
  0x76   : >> { %2273 = vmatprep.subr.bf16.mxu1 %v2638_v2  ;;  %2267 = vmatprep.mubr.msk.bf16.mxu0 %vm2639_vm0, %v2638_v2 }
  0x77   : >> { %2287 = vmatprep.mubr.msk.bf16.mxu1 %vm2639_vm0, %v2638_v2 }
  0x78   : >> { %2254 = vmatpush3.bf16.msra.mxu0 %v3083_v22 }
  0x79   : >> { %2274 = vmatpush3.bf16.msra.mxu1 %v3090_v24  ;;  %2255 = vmatprep.subr.bf16.mxu0 %v2638_v2  ;;  %v1013_v24 = vshll.u32 %v2594_v0, 16  ;;  %v3191_v0 = vld [vmem:[%s3445_s1 + $0x200] sm:$0xff]  }
  0x7a   : >> { %2275 = vmatprep.subr.bf16.mxu1 %v2638_v2 }
  0x7b   : >> { %v1015_v58 = vrot.slane %v1013_v24, 1  ;;  %v3257_v24 = vld [vmem:[%s2758_s20 + $0x8] ss:$0 sps:$4 sm:$0x66]  }
  0x7c   : >> { %2256 = vmatpush3.bf16.msra.mxu0 %v3101_v38 }
  0x7d   : >> { %2276 = vmatpush3.bf16.msra.mxu1 %v3108_v41  ;;  %2257 = vmatprep.subr.bf16.mxu0 %v2638_v2  ;;  %v3158_v41 = vld [vmem:[%s3445_s1 + $0x1b0] sm:$0xff]  }
  0x7e   : >> { %2277 = vmatprep.subr.bf16.mxu1 %v2638_v2  ;;  %3470 = vst [vmem:[#allocation13_spill] sm:$0xff] %v3158_v41 }
  0x80   : >> { %2258 = vmatpush3.bf16.msra.mxu0 %v3115_v53 }
  0x81   : >> { %2278 = vmatpush3.bf16.msra.mxu1 %v3122_v56  ;;  %2259 = vmatprep.subr.bf16.mxu0 %v2638_v2  ;;  %v3151_v56 = vld [vmem:[%s3445_s1 + $0x1e8] sm:$0xff]  }
  0x82   : >> { %2279 = vmatprep.subr.bf16.mxu1 %v2638_v2  ;;  %3469 = vst [vmem:[#allocation12_spill] sm:$0xff] %v3151_v56 }
  0x84   : >> { %2260 = vmatpush3.bf16.msra.mxu0 %v3129_v59 }
  0x85   : >> { %2280 = vmatpush3.bf16.msra.mxu1 %v3136_v60  ;;  %2261 = vmatprep.subr.bf16.mxu0 %v2638_v2  ;;  %v3165_v60 = vld [vmem:[%s3445_s1 + $0x1f0] sm:$0xff]  }
  0x86   : >> { %2281 = vmatprep.subr.bf16.mxu1 %v2638_v2 }
  0x88   : >> { %2262 = vmatpush3.bf16.msra.mxu0 %v3143_v15  ;;  %v3186_v15 = vor.u32 %v1015_v58, %v1011_v63  ;;  %v3202_v58 = vld [vmem:[%s3445_s1 + $0x208] sm:$0xff]   ;;  %v3215_v63 = vld [vmem:[%s3445_s1 + $0x210] sm:$0xff]  }
  0x89   : >> { %2282 = vmatpush3.bf16.msra.mxu1 %v3151_v56  ;;  %2263 = vmatprep.subr.bf16.mxu0 %v2638_v2  ;;  %v3179_v56 = vld [vmem:[%s3445_s1 + $0x1f8] sm:$0xff]  }
  0x8a   : >> { %2283 = vmatprep.subr.bf16.mxu1 %v2638_v2 }
  0x8c   : >> { %2264 = vmatpush3.bf16.msra.mxu0 %v3158_v41  ;;  %v3184_v41 = vld [vmem:[%s2758_s20 + $0x8] sm:$0x3] }
  0x8d   : >> { %2284 = vmatpush3.bf16.msra.mxu1 %v3165_v60  ;;  %2265 = vmatprep.subr.bf16.mxu0 %v2638_v2 }
  0x8e   : >> { %2285 = vmatprep.subr.bf16.mxu1 %v2638_v2 }
  0x90   : >> { %2266 = vmatpush3.bf16.msra.mxu0 %v3172_v19 }
  0x91   : >> { %2286 = vmatpush3.bf16.msra.mxu1 %v3179_v56  ;;  %2291 = vmatprep.subr.bf16.mxu0 %v2638_v2 }
  0x92   : >> { %2311 = vmatprep.subr.bf16.mxu1 %v2638_v2 }
  0x93   : >> { %2268 = vmatmul.mubr.bf16.vlgmr.msra.gmra.mrb[12].mxu0 %v3184_v41 }
  0x94   : >> { %2288 = vmatmul.mubr.bf16.vlgmr.msra.gmra.mrb[12].mxu1 %v3186_v15  ;;  %2292 = vmatpush3.bf16.msra.mxu0 %v3191_v0 }
  0x95   : >> { %2312 = vmatpush3.bf16.msra.mxu1 %v2701_v1  ;;  %2293 = vmatprep.subr.bf16.mxu0 %v2638_v2  ;;  %v3224_v1 = vld [vmem:[%s3445_s1 + $0x218] sm:$0xff]  }
  0x96   : >> { %2313 = vmatprep.subr.bf16.mxu1 %v2638_v2  ;;  %2307 = vmatprep.mubr.msk.bf16.mxu0 %vm2639_vm0, %v2638_v2 }
  0x97   : >> { %2327 = vmatprep.mubr.msk.bf16.mxu1 %vm2639_vm0, %v2638_v2 }
  0x98   : >> { %2294 = vmatpush3.bf16.msra.mxu0 %v3202_v58 }
  0x99   : >> { %2314 = vmatpush3.bf16.msra.mxu1 %v2714_v4  ;;  %2295 = vmatprep.subr.bf16.mxu0 %v2638_v2  ;;  %v3233_v4 = vld [vmem:[%s3445_s1 + $0x220] sm:$0xff]  }
  0x9a   : >> { %2315 = vmatprep.subr.bf16.mxu1 %v2638_v2 }
  0x9c   : >> { %2296 = vmatpush3.bf16.msra.mxu0 %v3215_v63 }
  0x9d   : >> { %2316 = vmatpush3.bf16.msra.mxu1 %v2732_v6  ;;  %2297 = vmatprep.subr.bf16.mxu0 %v2638_v2  ;;  %v3242_v6 = vld [vmem:[%s3445_s1 + $0x228] sm:$0xff]  }
  0x9e   : >> { %2317 = vmatprep.subr.bf16.mxu1 %v2638_v2 }
  0xa0   : >> { %2298 = vmatpush3.bf16.msra.mxu0 %v3224_v1 }
  0xa1   : >> { %2318 = vmatpush3.bf16.msra.mxu1 %v2746_v8  ;;  %2299 = vmatprep.subr.bf16.mxu0 %v2638_v2  ;;  %v3251_v8 = vld [vmem:[%s3445_s1 + $0x230] sm:$0xff]  }
  0xa2   : >> { %2319 = vmatprep.subr.bf16.mxu1 %v2638_v2 }
  0xa4   : >> { %2300 = vmatpush3.bf16.msra.mxu0 %v3233_v4 }
  0xa5   : >> { %2320 = vmatpush3.bf16.msra.mxu1 %v2764_v10  ;;  %2301 = vmatprep.subr.bf16.mxu0 %v2638_v2  ;;  %v3263_v10 = vld [vmem:[%s3445_s1 + $0x238] sm:$0xff]  }
  0xa6   : >> { %2321 = vmatprep.subr.bf16.mxu1 %v2638_v2 }
  0xa8   : >> { %2302 = vmatpush3.bf16.msra.mxu0 %v3242_v6 }
  0xa9   : >> { %2322 = vmatpush3.bf16.msra.mxu1 %v2779_v13  ;;  %2303 = vmatprep.subr.bf16.mxu0 %v2638_v2  ;;  %v1128_v13 = vrot.slane %v3257_v24, 1 }
  0xaa   : >> { %2323 = vmatprep.subr.bf16.mxu1 %v2638_v2 }
  0xac   : >> { %2304 = vmatpush3.bf16.msra.mxu0 %v3251_v8 }
  0xad   : >> { %2324 = vmatpush3.bf16.msra.mxu1 %v2793_v16  ;;  %2305 = vmatprep.subr.bf16.mxu0 %v2638_v2 }
  0xae   : >> { %2325 = vmatprep.subr.bf16.mxu1 %v2638_v2 }
  0xb0   : >> { %2306 = vmatpush3.bf16.msra.mxu0 %v3263_v10 }
  0xb1   : >> { %2326 = vmatpush3.bf16.msra.mxu1 %v2807_v20  ;;  %2331 = vmatprep.subr.bf16.mxu0 %v2638_v2  ;;  %v3472_v20 = vld [vmem:[#allocation11_spill] sm:$0xff] }
  0xb2   : >> { %2351 = vmatprep.subr.bf16.mxu1 %v2638_v2 }
  0xb3   : >> { %2308 = vmatmul.mubr.bf16.vlgmr.msra.gmra.mrb[16].mxu0 %v1128_v13 }
  0xb4   : >> { %2328 = vmatmul.mubr.bf16.vlgmr.msra.gmra.mrb[16].mxu1 %v3059_v12  ;;  %2332 = vmatpush3.bf16.msra.mxu0 %v2708_v3  ;;  %v3471_v3 = vrot.slane %v3049_v62, 1 }
  0xb5   : >> { %2352 = vmatpush3.bf16.msra.mxu1 %v2820_v23  ;;  %2333 = vmatprep.subr.bf16.mxu0 %v2638_v2 }
  0xb6   : >> { %2353 = vmatprep.subr.bf16.mxu1 %v2638_v2  ;;  %2347 = vmatprep.mubr.msk.bf16.mxu0 %vm2639_vm0, %v2638_v2 }
  0xb7   : >> { %2367 = vmatprep.mubr.msk.bf16.mxu1 %vm2639_vm0, %v2638_v2 }
  0xb8   : >> { %2334 = vmatpush3.bf16.msra.mxu0 %v2723_v5 }
  0xb9   : >> { %2354 = vmatpush3.bf16.msra.mxu1 %v2836_v26  ;;  %2335 = vmatprep.subr.bf16.mxu0 %v2638_v2  ;;  %v3474_v26 = vld [vmem:[#allocation13_spill] sm:$0xff] }
  0xba   : >> { %2355 = vmatprep.subr.bf16.mxu1 %v2638_v2 }
  0xbc   : >> { %2336 = vmatpush3.bf16.msra.mxu0 %v2739_v7 }
  0xbd   : >> { %2356 = vmatpush3.bf16.msra.mxu1 %v2854_v28  ;;  %2337 = vmatprep.subr.bf16.mxu0 %v2638_v2  ;;  %v1958_v28 = vld [vmem:[%s2758_s20 + $0xc] sm:$0x3] }
  0xbe   : >> { %2357 = vmatprep.subr.bf16.mxu1 %v2638_v2 }
  0xc0   : >> { %2338 = vmatpush3.bf16.msra.mxu0 %v2754_v9 }
  0xc1   : >> { %2358 = vmatpush3.bf16.msra.mxu1 %v2868_v30  ;;  %2339 = vmatprep.subr.bf16.mxu0 %v2638_v2  ;;  %v3477_v30 = vld [vmem:[#allocation7_spill] sm:$0xff] }
  0xc2   : >> { %2359 = vmatprep.subr.bf16.mxu1 %v2638_v2 }
  0xc4   : >> { %2340 = vmatpush3.bf16.msra.mxu0 %v2771_v11 }
  0xc5   : >> { %2360 = vmatpush3.bf16.msra.mxu1 %v2882_v32  ;;  %2341 = vmatprep.subr.bf16.mxu0 %v2638_v2  ;;  %v3479_v32 = vld [vmem:[#allocation9_spill] sm:$0xff] }
  0xc6   : >> { %2361 = vmatprep.subr.bf16.mxu1 %v2638_v2 }
  0xc8   : >> { %2342 = vmatpush3.bf16.msra.mxu0 %v2786_v14 }
  0xc9   : >> { %2362 = vmatpush3.bf16.msra.mxu1 %v2896_v34  ;;  %2343 = vmatprep.subr.bf16.mxu0 %v2638_v2  ;;  %v3480_v34 = vld [vmem:[#allocation10_spill] sm:$0xff] }
  0xca   : >> { %2363 = vmatprep.subr.bf16.mxu1 %v2638_v2 }
  0xcc   : >> { %2344 = vmatpush3.bf16.msra.mxu0 %v2800_v17 }
  0xcd   : >> { %2364 = vmatpush3.bf16.msra.mxu1 %v2910_v36  ;;  %2345 = vmatprep.subr.bf16.mxu0 %v2638_v2 }
  0xce   : >> { %2365 = vmatprep.subr.bf16.mxu1 %v2638_v2 }
  0xd0   : >> { %2346 = vmatpush3.bf16.msra.mxu0 %v2814_v21 }
  0xd1   : >> { %2366 = vmatpush3.bf16.msra.mxu1 %v2925_v39  ;;  %2371 = vmatprep.subr.bf16.mxu0 %v2638_v2 }
  0xd2   : >> { %2391 = vmatprep.subr.bf16.mxu1 %v2638_v2 }
  0xd3   : >> { %2348 = vmatmul.mubr.bf16.vlgmr.msra.gmra.mrb[20].mxu0 %v2936_v42 }
  0xd4   : >> { %2368 = vmatmul.mubr.bf16.vlgmr.msra.gmra.mrb[20].mxu1 %v3471_v3  ;;  %2372 = vmatpush3.bf16.msra.mxu0 %v2829_v25  ;;  %v3473_v25 = vld [vmem:[#allocation4_spill] sm:$0xff] }
  0xd5   : >> { %2392 = vmatpush3.bf16.msra.mxu1 %v2942_v43  ;;  %2373 = vmatprep.subr.bf16.mxu0 %v2638_v2 }
  0xd6   : >> { %2393 = vmatprep.subr.bf16.mxu1 %v2638_v2  ;;  %2387 = vmatprep.mubr.msk.bf16.mxu0 %vm2639_vm0, %v2638_v2 }
  0xd7   : >> { %2407 = vmatprep.mubr.msk.bf16.mxu1 %vm2639_vm0, %v2638_v2 }
  0xd8   : >> { %2374 = vmatpush3.bf16.msra.mxu0 %v2843_v27  ;;  %v3475_v27 = vld [vmem:[#allocation5_spill] sm:$0xff] }
  0xd9   : >> { %2394 = vmatpush3.bf16.msra.mxu1 %v2957_v45  ;;  %2375 = vmatprep.subr.bf16.mxu0 %v2638_v2 }
  0xda   : >> { %2395 = vmatprep.subr.bf16.mxu1 %v2638_v2 }
  0xdc   : >> { %2376 = vmatpush3.bf16.msra.mxu0 %v2861_v29  ;;  %v3476_v29 = vld [vmem:[#allocation6_spill] sm:$0xff] }
  0xdd   : >> { %2396 = vmatpush3.bf16.msra.mxu1 %v2975_v47  ;;  %2377 = vmatprep.subr.bf16.mxu0 %v2638_v2 }
  0xde   : >> { %2397 = vmatprep.subr.bf16.mxu1 %v2638_v2 }
  0xe0   : >> { %2378 = vmatpush3.bf16.msra.mxu0 %v2875_v31  ;;  %v3478_v31 = vld [vmem:[#allocation8_spill] sm:$0xff] }
  0xe1   : >> { %2398 = vmatpush3.bf16.msra.mxu1 %v2989_v49  ;;  %2379 = vmatprep.subr.bf16.mxu0 %v2638_v2 }
  0xe2   : >> { %2399 = vmatprep.subr.bf16.mxu1 %v2638_v2 }
  0xe4   : >> { %2380 = vmatpush3.bf16.msra.mxu0 %v2889_v33  ;;  %v2604_v33 = vld [vmem:[%s2758_s20 + $0xc] ss:$0 sps:$4 sm:$0x77]  }
  0xe5   : >> { %2400 = vmatpush3.bf16.msra.mxu1 %v3003_v51  ;;  %2381 = vmatprep.subr.bf16.mxu0 %v2638_v2  ;;  %v1521_v49 = vshrl.u32 %v2604_v33, 16  ;;  %v2605_v51 = vld [vmem:[%s2758_s20 + $0xc] ss:$0 sps:$4 sm:$0x66]   ;;  %s1625_s20 = scalar_lea.vmem %s2686_s22, %s2636_s26  ;;  %s199_s26 = sadd.s32 1, %s2636_s26  }
  0xe6   : >> { %2401 = vmatprep.subr.bf16.mxu1 %v2638_v2  ;;  %p196_p5 = scmp.ge.s32.totalorder %s199_s26, 2  }
  0xe8   : >> { %2382 = vmatpush3.bf16.msra.mxu0 %v2903_v35 }
  0xe9   : >> { %2402 = vmatpush3.bf16.msra.mxu1 %v3018_v54  ;;  %2383 = vmatprep.subr.bf16.mxu0 %v2638_v2  ;;  %v1573_v54 = vrot.slane %v2605_v51, 1 }
  0xea   : >> { %2403 = vmatprep.subr.bf16.mxu1 %v2638_v2 }
  0xec   : >> { %2384 = vmatpush3.bf16.msra.mxu0 %v2917_v37 }
  0xed   : >> { %2404 = vmatpush3.bf16.msra.mxu1 %v3032_v57  ;;  %2385 = vmatprep.subr.bf16.mxu0 %v2638_v2 }
  0xee   : >> { %2405 = vmatprep.subr.bf16.mxu1 %v2638_v2 }
  0xf0   : >> { %2386 = vmatpush3.bf16.msra.mxu0 %v2932_v40  ;;  %v1523_v40 = vshll.u32 %v2604_v33, 16 }
  0xf1   : >> { %2406 = vmatpush3.bf16.msra.mxu1 %v3046_v61  ;;  %2411 = vmatprep.subr.bf16.mxu0 %v2638_v2 }
  0xf2   : >> { %2431 = vmatprep.subr.bf16.mxu1 %v2638_v2 }
  0xf3   : >> { %2388 = vmatmul.mubr.bf16.vlgmr.msra.gmra.mrb[24].mxu0 %v3184_v41 }
  0xf4   : >> { %2408 = vmatmul.mubr.bf16.vlgmr.msra.gmra.mrb[24].mxu1 %v3186_v15  ;;  %2412 = vmatpush3.bf16.msra.mxu0 %v2949_v44  ;;  %v3481_v44 = vld [vmem:[#allocation12_spill] sm:$0xff] }
  0xf5   : >> { %2432 = vmatpush3.bf16.msra.mxu1 %v3066_v18  ;;  %2413 = vmatprep.subr.bf16.mxu0 %v2638_v2 }
  0xf6   : >> { %2433 = vmatprep.subr.bf16.mxu1 %v2638_v2  ;;  %2427 = vmatprep.mubr.msk.bf16.mxu0 %vm2639_vm0, %v2638_v2 }
  0xf7   : >> { %2447 = vmatprep.mubr.msk.bf16.mxu1 %vm2639_vm0, %v2638_v2 }
  0xf8   : >> { %2414 = vmatpush3.bf16.msra.mxu0 %v2964_v46 }
  0xf9   : >> { %2434 = vmatpush3.bf16.msra.mxu1 %v3083_v22  ;;  %2415 = vmatprep.subr.bf16.mxu0 %v2638_v2 }
  0xfa   : >> { %2435 = vmatprep.subr.bf16.mxu1 %v2638_v2 }
  0xfc   : >> { %2416 = vmatpush3.bf16.msra.mxu0 %v2982_v48 }
  0xfd   : >> { %2436 = vmatpush3.bf16.msra.mxu1 %v3101_v38  ;;  %2417 = vmatprep.subr.bf16.mxu0 %v2638_v2 }
  0xfe   : >> { %2437 = vmatprep.subr.bf16.mxu1 %v2638_v2 }
 0x100   : >> { %2418 = vmatpush3.bf16.msra.mxu0 %v2996_v50  ;;  %v1525_v50 = vrot.slane %v1523_v40, 1 }
 0x101   : >> { %2438 = vmatpush3.bf16.msra.mxu1 %v3115_v53  ;;  %2419 = vmatprep.subr.bf16.mxu0 %v2638_v2 }
 0x102   : >> { %2439 = vmatprep.subr.bf16.mxu1 %v2638_v2 }
 0x104   : >> { %2420 = vmatpush3.bf16.msra.mxu0 %v3010_v52  ;;  %v1526_v52 = vor.u32 %v1525_v50, %v1521_v49 }
 0x105   : >> { %2440 = vmatpush3.bf16.msra.mxu1 %v3129_v59  ;;  %2421 = vmatprep.subr.bf16.mxu0 %v2638_v2 }
 0x106   : >> { %v333_v5 = vpop.f32.mrb[0].mxu0  ;;  %2441 = vmatprep.subr.bf16.mxu1 %v2638_v2 }
 0x107   : >> { %v421_v7 = vpop.f32.mrb[0].mxu1  ;;  %v2149_v9 = vpop.f32.mrb[1].mxu0 }
 0x108   : >> { %v422_v11 = vadd.f32 %v421_v7, %v333_v5  ;;  %v2169_v14 = vpop.f32.mrb[1].mxu1  ;;  %v336_v16 = vpop.f32.mrb[2].mxu0  ;;  %2422 = vmatpush3.bf16.msra.mxu0 %v3025_v55 }
 0x109   : >> { %v424_v17 = vpop.f32.mrb[2].mxu1  ;;  %2442 = vmatpush3.bf16.msra.mxu1 %v3472_v20  ;;  %v2150_v21 = vpop.f32.mrb[3].mxu0  ;;  %2423 = vmatprep.subr.bf16.mxu0 %v2638_v2 }
 0x10a   : >> { %v2170_v23 = vpop.f32.mrb[3].mxu1  ;;  %2443 = vmatprep.subr.bf16.mxu1 %v2638_v2 }
 0x10c   : >> { %2424 = vmatpush3.bf16.msra.mxu0 %v3473_v25 }
 0x10d   : >> { %2444 = vmatpush3.bf16.msra.mxu1 %v3474_v26  ;;  %2425 = vmatprep.subr.bf16.mxu0 %v2638_v2 }
 0x10e   : >> { %2445 = vmatprep.subr.bf16.mxu1 %v2638_v2 }
 0x110   : >> { %2426 = vmatpush3.bf16.msra.mxu0 %v3475_v27 }
 0x111   : >> { %2446 = vmatpush3.bf16.msra.mxu1 %v3172_v19  ;;  %2451 = vmatprep.subr.bf16.mxu0 %v2638_v2 }
 0x112   : >> { %2471 = vmatprep.subr.bf16.mxu1 %v2638_v2 }
 0x113   : >> { %2428 = vmatmul.mubr.bf16.vlgmr.msra.gmra.mrb[28].mxu0 %v1128_v13 }
 0x114   : >> { %2448 = vmatmul.mubr.bf16.vlgmr.msra.gmra.mrb[28].mxu1 %v1958_v28  ;;  %2452 = vmatpush3.bf16.msra.mxu0 %v3476_v29 }
 0x115   : >> { %2472 = vmatpush3.bf16.msra.mxu1 %v3191_v0  ;;  %2453 = vmatprep.subr.bf16.mxu0 %v2638_v2 }
 0x116   : >> { %2473 = vmatprep.subr.bf16.mxu1 %v2638_v2  ;;  %2467 = vmatprep.mubr.msk.bf16.mxu0 %vm2639_vm0, %v2638_v2 }
 0x117   : >> { %2487 = vmatprep.mubr.msk.bf16.mxu1 %vm2639_vm0, %v2638_v2 }
 0x118   : >> { %2454 = vmatpush3.bf16.msra.mxu0 %v3477_v30 }
 0x119   : >> { %2474 = vmatpush3.bf16.msra.mxu1 %v3202_v58  ;;  %2455 = vmatprep.subr.bf16.mxu0 %v2638_v2 }
 0x11a   : >> { %2475 = vmatprep.subr.bf16.mxu1 %v2638_v2 }
 0x11c   : >> { %2456 = vmatpush3.bf16.msra.mxu0 %v3478_v31 }
 0x11d   : >> { %2476 = vmatpush3.bf16.msra.mxu1 %v3215_v63  ;;  %2457 = vmatprep.subr.bf16.mxu0 %v2638_v2 }
 0x11e   : >> { %2477 = vmatprep.subr.bf16.mxu1 %v2638_v2 }
 0x120   : >> { %2458 = vmatpush3.bf16.msra.mxu0 %v3479_v32 }
 0x121   : >> { %2478 = vmatpush3.bf16.msra.mxu1 %v3224_v1  ;;  %2459 = vmatprep.subr.bf16.mxu0 %v2638_v2 }
 0x122   : >> { %2479 = vmatprep.subr.bf16.mxu1 %v2638_v2 }
 0x124   : >> { %2460 = vmatpush3.bf16.msra.mxu0 %v3480_v34 }
 0x125   : >> { %2480 = vmatpush3.bf16.msra.mxu1 %v3233_v4  ;;  %2461 = vmatprep.subr.bf16.mxu0 %v2638_v2 }
 0x126   : >> { %v532_v35 = vpop.f32.mrb[4].mxu0  ;;  %2481 = vmatprep.subr.bf16.mxu1 %v2638_v2 }
 0x127   : >> { %v538_v36 = vadd.f32 %v532_v35, %v422_v11  ;;  %v642_v37 = vpop.f32.mrb[4].mxu1  ;;  %v2189_v39 = vpop.f32.mrb[5].mxu0 }
 0x128   : >> { %v2209_v42 = vpop.f32.mrb[5].mxu1  ;;  %v535_v43 = vpop.f32.mrb[6].mxu0  ;;  %2462 = vmatpush3.bf16.msra.mxu0 %v3481_v44 }
 0x129   : >> { %v648_v45 = vadd.f32 %v642_v37, %v538_v36  ;;  %v645_v46 = vpop.f32.mrb[6].mxu1  ;;  %2482 = vmatpush3.bf16.msra.mxu1 %v3242_v6  ;;  %v2190_v47 = vpop.f32.mrb[7].mxu0  ;;  %2463 = vmatprep.subr.bf16.mxu0 %v2638_v2 }
 0x12a   : >> { %v2210_v48 = vpop.f32.mrb[7].mxu1  ;;  %2483 = vmatprep.subr.bf16.mxu1 %v2638_v2 }
 0x12c   : >> { %2464 = vmatpush3.bf16.msra.mxu0 %v3165_v60 }
 0x12d   : >> { %2484 = vmatpush3.bf16.msra.mxu1 %v3251_v8  ;;  %2465 = vmatprep.subr.bf16.mxu0 %v2638_v2 }
 0x12e   : >> { %2485 = vmatprep.subr.bf16.mxu1 %v2638_v2 }
 0x130   : >> { %2466 = vmatpush3.bf16.msra.mxu0 %v3179_v56 }
 0x131   : >> { %2486 = vmatpush3.bf16.msra.mxu1 %v3263_v10 }
 0x133   : >> { %2468 = vmatmul.mubr.bf16.vlgmr.msra.gmra.mrb[32].mxu0 %v1526_v52 }
 0x134   : >> { %2488 = vmatmul.mubr.bf16.vlgmr.msra.gmra.mrb[32].mxu1 %v1573_v54 }
 0x146   : >> { %v760_v55 = vpop.f32.mrb[8].mxu0 }
 0x147   : >> { %v766_v57 = vadd.f32 %v760_v55, %v648_v45  ;;  %v872_v61 = vpop.f32.mrb[8].mxu1  ;;  %v2229_v62 = vpop.f32.mrb[9].mxu0 }
 0x148   : >> { %v2249_v12 = vpop.f32.mrb[9].mxu1  ;;  %v763_v15 = vpop.f32.mrb[10].mxu0 }
 0x149   : >> { %v878_v18 = vadd.f32 %v872_v61, %v766_v57  ;;  %v875_v19 = vpop.f32.mrb[10].mxu1  ;;  %v2230_v22 = vpop.f32.mrb[11].mxu0  ;;  %v3482_v57 = vld [vmem:[#allocation3_spill] sm:$0xff] }
 0x14a   : >> { %v2250_v38 = vpop.f32.mrb[11].mxu1 }
 0x166   : >> { %v982_v41 = vpop.f32.mrb[12].mxu0 }
 0x167   : >> { %v988_v2 = vadd.f32 %v982_v41, %v878_v18  ;;  %v1100_v53 = vpop.f32.mrb[12].mxu1  ;;  %v2269_v59 = vpop.f32.mrb[13].mxu0 }
 0x168   : >> { %v2289_v56 = vpop.f32.mrb[13].mxu1  ;;  %v985_v60 = vpop.f32.mrb[14].mxu0 }
 0x169   : >> { %v1106_v0 = vadd.f32 %v1100_v53, %v988_v2  ;;  %v1103_v58 = vpop.f32.mrb[14].mxu1  ;;  %v2270_v63 = vpop.f32.mrb[15].mxu0 }
 0x16a   : >> { %v2290_v1 = vpop.f32.mrb[15].mxu1 }
 0x186   : >> { %v1212_v4 = vpop.f32.mrb[16].mxu0 }
 0x187   : >> { %v1218_v6 = vadd.f32 %v1212_v4, %v1106_v0  ;;  %v1261_v8 = vpop.f32.mrb[16].mxu1  ;;  %v2309_v24 = vpop.f32.mrb[17].mxu0 }
 0x188   : >> { %v2329_v10 = vpop.f32.mrb[17].mxu1  ;;  %v1215_v13 = vpop.f32.mrb[18].mxu0 }
 0x189   : >> { %v1264_v3 = vpop.f32.mrb[18].mxu1  ;;  %v2310_v5 = vpop.f32.mrb[19].mxu0  ;;  %v1225_v61 = vadd.f32 %v3482_v57, %v1218_v6 }
 0x18a   : >> { %v2330_v7 = vpop.f32.mrb[19].mxu1 }
 0x18b   : >> { %v1226_v22 = vmax.f32 %v1225_v61, 0.0 }
 0x1a6   : >> { %v1301_v9 = vpop.f32.mrb[20].mxu0 }
 0x1a7   : >> { %v1302_v11 = vadd.f32 %v1301_v9, %v1261_v8  ;;  %v1341_v14 = vpop.f32.mrb[20].mxu1  ;;  %v2349_v16 = vpop.f32.mrb[21].mxu0 }
 0x1a8   : >> { %v2369_v17 = vpop.f32.mrb[21].mxu1  ;;  %v1304_v20 = vpop.f32.mrb[22].mxu0 }
 0x1a9   : >> { %v1347_v21 = vadd.f32 %v1341_v14, %v1302_v11  ;;  %v1344_v23 = vpop.f32.mrb[22].mxu1  ;;  %v2350_v25 = vpop.f32.mrb[23].mxu0 }
 0x1aa   : >> { %v2370_v26 = vpop.f32.mrb[23].mxu1 }
 0x1c6   : >> { %v1382_v27 = vpop.f32.mrb[24].mxu0 }
 0x1c7   : >> { %v1388_v28 = vadd.f32 %v1382_v27, %v1347_v21  ;;  %v1423_v29 = vpop.f32.mrb[24].mxu1  ;;  %v2389_v30 = vpop.f32.mrb[25].mxu0 }
 0x1c8   : >> { %v2409_v31 = vpop.f32.mrb[25].mxu1  ;;  %v1385_v32 = vpop.f32.mrb[26].mxu0 }
 0x1c9   : >> { %v1429_v33 = vadd.f32 %v1423_v29, %v1388_v28  ;;  %v1426_v34 = vpop.f32.mrb[26].mxu1  ;;  %v2390_v35 = vpop.f32.mrb[27].mxu0 }
 0x1ca   : >> { %v2410_v36 = vpop.f32.mrb[27].mxu1 }
 0x1e6   : >> { %v1464_v37 = vpop.f32.mrb[28].mxu0 }
 0x1e7   : >> { %v1470_v39 = vadd.f32 %v1464_v37, %v1429_v33  ;;  %v1509_v40 = vpop.f32.mrb[28].mxu1  ;;  %v2429_v42 = vpop.f32.mrb[29].mxu0 }
 0x1e8   : >> { %v2449_v43 = vpop.f32.mrb[29].mxu1  ;;  %v1467_v44 = vpop.f32.mrb[30].mxu0 }
 0x1e9   : >> { %v1515_v45 = vadd.f32 %v1509_v40, %v1470_v39  ;;  %v1512_v46 = vpop.f32.mrb[30].mxu1  ;;  %v2430_v47 = vpop.f32.mrb[31].mxu0 }
 0x1ea   : >> { %v2450_v48 = vpop.f32.mrb[31].mxu1 }
 0x206   : >> { %v1562_v49 = vpop.f32.mrb[32].mxu0 }
 0x207   : >> { %v1568_v50 = vadd.f32 %v1562_v49, %v1515_v45  ;;  %v1609_v51 = vpop.f32.mrb[32].mxu1  ;;  %v2469_v52 = vpop.f32.mrb[33].mxu0 }
 0x208   : >> { %v2489_v54 = vpop.f32.mrb[33].mxu1  ;;  %v1565_v55 = vpop.f32.mrb[34].mxu0 }
 0x209   : >> { %v1615_v62 = vadd.f32 %v1609_v51, %v1568_v50  ;;  %v1612_v12 = vpop.f32.mrb[34].mxu1  ;;  %v2470_v15 = vpop.f32.mrb[35].mxu0 }
 0x20a   : >> { %v2490_v18 = vpop.f32.mrb[35].mxu1 }
 0x20b   : >> { %v1616_v19 = vadd.f32 %v3482_v57, %v1615_v62 }
 0x20d   : >> { %v1617_v38 = vmax.f32 %v1616_v19, 0.0 }
 0x20f   : >> { %v1618_v41 = vmax.f32 %v1226_v22, %v1617_v38 }
 0x211   : >> { %1619 = vst [vmem:[#allocation2] sm:$0xf] %v1618_v41 }
 0x217   : > { %198 = sbr.rel (!%p196_p5) target bundleno = 18 (0x12), region = 83 }
 0x218   : >> { %v1620_v2 = vld [vmem:[#allocation2] ss:$2 sm:$0x3]  ;;  %v1622_v53 = vld [vmem:[#allocation2 + $0x1] ss:$2 sm:$0x3] }
 0x219   : >> { %v1623_v59 = vmax.f32 %v1620_v2, %v1622_v53 }
 0x21b   : >> { %v1624_v56 = vpack.c.bf16 %v1623_v59, %v1623_v59 }
 0x21d   : >> { %1626 = vst [vmem:[%s1625_s20] sm:$0x1] %v1624_v56 }
 0x21e PF: > { %s13_s14 = sadd.s32 1, %s2632_s14   ;;  %s3483_s12 = smov %s2628_s13 }
 0x21f   : > { %p10_p6 = scmp.ge.s32.totalorder %s13_s14, 4   ;;  %s3484_s13 = smov %s3486_s15 }
 0x221   :  { %12 = sbr.rel (!%p10_p6) target bundleno = 2 (0x2), region = 94 }

</bundles_post_ra>
